<compile_context>
chip_gen: v6e
topology: v6e:2x2x1
jax: 0.10.0
libtpu: 0.0.40
codegen_flags: <defaults>
</compile_context>

<pallas_src>
import jax
import jax.numpy as jnp
from jax.experimental import pallas as pl
from jax.experimental.pallas import tpu as pltpu


def _round_up(x, m):
    return (x + m - 1) // m * m


# ----------------------------- Pallas MLP kernel -----------------------------

def _mlp_kernel(feat_ref, s_ref, w1_ref, w2_ref, b2_ref, w3_ref, b3_ref,
                w4_ref, b4_ref, o_ref, wf_ref):
    # Grid = (batch, n_tile).  The K=512 contraction (augmented layer-1 weight @ feature map)
    # is done once per batch at n_tile==0 and cached in VMEM scratch; every n_tile then only
    # pays the (hidden, HW_aug) @ (HW_aug, TN) sampling matmul + three hidden x hidden matmuls.
    @pl.when(pl.program_id(1) == 0)
    def _():
        wf_ref[...] = jnp.dot(
            w1_ref[...], feat_ref[...],
            preferred_element_type=jnp.float32).astype(jnp.bfloat16)

    # Layer 1: bilinear sampling, the coarse channel and b1 are all folded into this single
    # matmul (S_aug carries a coarse row + a ones row; wf carries w1_coarse + b1 columns).
    h = jnp.dot(wf_ref[...], s_ref[...],
                preferred_element_type=jnp.float32).astype(jnp.bfloat16)
    h = jnp.maximum(h, 0.0)

    # Layers 2-3: cast the f32 MXU accumulator to bf16, then bias + ReLU on the VPU in bf16.
    h = jnp.dot(w2_ref[...], h, preferred_element_type=jnp.float32).astype(jnp.bfloat16)
    h = jnp.maximum(h + b2_ref[...], 0.0)
    h = jnp.dot(w3_ref[...], h, preferred_element_type=jnp.float32).astype(jnp.bfloat16)
    h = jnp.maximum(h + b3_ref[...], 0.0)

    # Layer 4 (num_classes padded to 8 rows -> full-sublane MXU pass and output store).
    o_ref[...] = jnp.dot(w4_ref[...], h, preferred_element_type=jnp.float32) + b4_ref[...]


def point_mlp_pallas(feat_aug, s_aug, w1a, w2b, b2b, w3b, b3b, w4p, b4p, *, tn=1024):
    """feat_aug: (B, C_aug, HW_aug) bf16; s_aug: (B, HW_aug, N) bf16 sampling operator
    (with coarse + ones rows).  Returns (B, c_out_padded, N) f32 MLP output."""
    B, C_aug, HW_aug = feat_aug.shape
    _, _, N = s_aug.shape
    hidden = w1a.shape[0]
    c_out = w4p.shape[0]
    TN = min(tn, N)
    assert N % TN == 0, (N, TN)

    def const_spec(a):
        # Full-array (weight/bias) block, same block every grid step -> fetched once.
        return pl.BlockSpec(a.shape, lambda b, n: (0,) * a.ndim)

    return pl.pallas_call(
        _mlp_kernel,
        out_shape=jax.ShapeDtypeStruct((B, c_out, N), jnp.float32),
        grid_spec=pltpu.PrefetchScalarGridSpec(
            num_scalar_prefetch=0,
            grid=(B, N // TN),
            in_specs=[
                # feature map: constant in the N-tile axis (not re-fetched per tile)
                pl.BlockSpec((pl.Squeezed(), C_aug, HW_aug), lambda b, n: (b, 0, 0)),
                # sampling operator: blocked along N so tile n+1 prefetches under compute
                pl.BlockSpec((pl.Squeezed(), HW_aug, TN), lambda b, n: (b, 0, n)),
                const_spec(w1a), const_spec(w2b), const_spec(b2b),
                const_spec(w3b), const_spec(b3b), const_spec(w4p), const_spec(b4p),
            ],
            out_specs=pl.BlockSpec((pl.Squeezed(), c_out, TN), lambda b, n: (b, 0, n)),
            # per-batch cached wf = w1_aug @ feat_aug (bf16)
            scratch_shapes=[pltpu.VMEM((hidden, HW_aug), jnp.bfloat16)],
        ),
        compiler_params=pltpu.CompilerParams(
            # batch axis parallel (megacore / v7x two-TC sharding); N-tile axis sequential
            # because the wf scratch is carried across it.
            dimension_semantics=("parallel", "arbitrary"),
            # Live footprint is only a few MiB; explicit limit keeps v5e/v6e/v7x identical.
            # TODO(synk): if HW ever grows to thousands, tile HW as a reduction grid axis
            # instead of loading the whole S block (v7x 64 MiB VMEM is the first cliff).
            vmem_limit_bytes=32 * 1024 * 1024,
        ),
    )(feat_aug, s_aug, w1a, w2b, b2b, w3b, b3b, w4p, b4p)


# ------------------------------ JAX glue (sampling) ------------------------------

def point_sample(feat, points):
    """F.grid_sample(feat, 2*points-1, bilinear, padding='zeros', align_corners=False) on a
    (B, N, 1, 2) grid, squeezed to (B, C, N).  Used only for 1-channel maps (cheap gather);
    the 512-channel feature sampling happens inside the Pallas kernel via the S matrix."""
    B, C, H, W = feat.shape
    x = points[..., 0] * W - 0.5
    y = points[..., 1] * H - 0.5
    x0 = jnp.floor(x)
    y0 = jnp.floor(y)

    flat = feat.reshape(B, C, H * W)

    def gather(xi, yi):
        valid = (xi >= 0) & (xi <= W - 1) & (yi >= 0) & (yi <= H - 1)
        xc = jnp.clip(xi, 0, W - 1).astype(jnp.int32)
        yc = jnp.clip(yi, 0, H - 1).astype(jnp.int32)
        idx = yc * W + xc                                       # (B, N)
        g = jnp.take_along_axis(flat, idx[:, None, :], axis=2)  # (B, C, N)
        return g * valid[:, None, :].astype(feat.dtype)

    wx1 = x - x0
    wx0 = 1.0 - wx1
    wy1 = y - y0
    wy0 = 1.0 - wy1
    return (gather(x0, y0) * (wx0 * wy0)[:, None, :]
            + gather(x0 + 1.0, y0) * (wx1 * wy0)[:, None, :]
            + gather(x0, y0 + 1.0) * (wx0 * wy1)[:, None, :]
            + gather(x0 + 1.0, y0 + 1.0) * (wx1 * wy1)[:, None, :])


def build_s_aug(points, coarse, H, W, HW_aug, dtype=jnp.bfloat16):
    """Augmented bilinear-sampling operator S_aug: (B, HW_aug, N) bf16 such that
    wf_aug @ S_aug reproduces layer 1 of the MLP:
      rows 0..HW-1 : bilinear weights (grid_sample align_corners=False, zero padding)
      row  HW      : sampled coarse (mask) logits
      row  HW+1    : ones (picks up b1)
      rows HW+2..  : zero padding to HW_aug."""
    B, N, _ = points.shape
    HW = H * W
    x = points[..., 0] * W - 0.5
    y = points[..., 1] * H - 0.5
    x0 = jnp.floor(x)
    y0 = jnp.floor(y)
    wx1 = x - x0
    wx0 = 1.0 - wx1
    wy1 = y - y0
    wy0 = 1.0 - wy1

    rows = jnp.arange(HW, dtype=jnp.int32)[None, :, None]        # (1, HW, 1)

    def corner(xi, yi, w):
        valid = (xi >= 0) & (xi <= W - 1) & (yi >= 0) & (yi <= H - 1)
        xc = jnp.clip(xi, 0, W - 1).astype(jnp.int32)
        yc = jnp.clip(yi, 0, H - 1).astype(jnp.int32)
        idx = yc * W + xc                                        # (B, N)
        w = (w * valid).astype(dtype)                            # invalid corner -> exact 0
        return jnp.where(idx[:, None, :] == rows, w[:, None, :], jnp.zeros((), dtype))

    S = (corner(x0, y0, wx0 * wy0)
         + corner(x0 + 1.0, y0, wx1 * wy0)
         + corner(x0, y0 + 1.0, wx0 * wy1)
         + corner(x0 + 1.0, y0 + 1.0, wx1 * wy1))                # (B, HW, N) bf16

    coarse_row = coarse.astype(dtype)                            # (B, 1, N)
    ones_row = jnp.ones((B, 1, N), dtype)
    pad = jnp.zeros((B, HW_aug - HW - 2, N), dtype)
    return jnp.concatenate([S, coarse_row, ones_row, pad], axis=1)


def build_feat_aug(feature, C_aug, HW_aug):
    """Augmented flattened feature map (B, C_aug, HW_aug) bf16: fine features in the top-left
    block plus two indicator entries so that w1_aug @ feat_aug also produces the w1_coarse and
    b1 columns of wf (see _prepare_mlp_params)."""
    B, C_fine, H, W = feature.shape
    HW = H * W
    feat_aug = jnp.zeros((B, C_aug, HW_aug), jnp.bfloat16)
    feat_aug = feat_aug.at[:, :C_fine, :HW].set(
        feature.reshape(B, C_fine, HW).astype(jnp.bfloat16))
    feat_aug = feat_aug.at[:, C_fine, HW].set(1.0)        # -> wf[:, HW]   = w1_coarse
    feat_aug = feat_aug.at[:, C_fine + 1, HW + 1].set(1.0)  # -> wf[:, HW+1] = b1
    return feat_aug


def _prepare_mlp_params(params, HW, pad=16):
    """Cast / augment the Conv1d weights for the kernel.  NOTE: assumes the PyTorch channel
    order of torch.cat([coarse, fine], dim=1): w1[:, 0] is the coarse (mask) channel and
    w1[:, 1:] the 512 fine channels — fragile if a checkpoint uses a different concat order."""
    w1, b1, w2, b2, w3, b3, w4, b4 = params
    hidden, in_c = w1.shape
    c_fine = in_c - 1
    num_classes = w4.shape[0]
    C_aug = _round_up(c_fine + 2, pad)       # fine + coarse-col + b1-col, padded for bf16
    HW_aug = _round_up(HW + 2, pad)          # HW + coarse-row + ones-row, padded for bf16

    w1a = jnp.zeros((hidden, C_aug), jnp.float32)
    w1a = w1a.at[:, :c_fine].set(w1[:, 1:])          # fine channels
    w1a = w1a.at[:, c_fine].set(w1[:, 0])            # coarse channel
    w1a = w1a.at[:, c_fine + 1].set(b1[:, 0])        # layer-1 bias
    w1a = w1a.astype(jnp.bfloat16)

    c_out = max(8, num_classes)                      # pad tiny class dim (full sublane tile)
    w4p = jnp.zeros((c_out, hidden), jnp.float32).at[:num_classes].set(w4).astype(jnp.bfloat16)
    b4p = jnp.zeros((c_out, 1), jnp.float32).at[:num_classes].set(b4)

    return (w1a, w2.astype(jnp.bfloat16), b2.astype(jnp.bfloat16),
            w3.astype(jnp.bfloat16), b3.astype(jnp.bfloat16), w4p, b4p,
            C_aug, HW_aug, num_classes)


def sampling_points_v2(mask_prob, N, k, beta, key):
    """Training-mode importance point sampling (binary uncertainty = -|p - 0.5|).
    mask_prob: (B, 1, H, W) sigmoid probs.  Returns points (B, N, 2) in [0, 1]."""
    B = mask_prob.shape[0]
    k_over, k_cov = jax.random.split(key)
    over = jax.random.uniform(k_over, (B, k * N, 2), dtype=jnp.float32)
    over_map = point_sample(mask_prob, over)[:, 0]               # (B, k*N)
    uncertainty = -jnp.abs(over_map - 0.5)
    n_imp = int(beta * N)
    _, idx = jax.lax.top_k(uncertainty, n_imp)                   # (B, n_imp)
    importance = jnp.take_along_axis(over, idx[..., None], axis=1)   # (B, n_imp, 2)
    coverage = jax.random.uniform(k_cov, (B, N - n_imp, 2), dtype=jnp.float32)
    return jnp.concatenate([importance, coverage], axis=1)


# ------------------------------ PointHead forward ------------------------------

def init_point_head_params(key, in_c=513, num_classes=1):
    """Deterministic init mirroring nn.Conv1d(kernel_size=1) weight/bias shapes.
    Column 0 of w1 corresponds to the coarse (mask) channel, columns 1..in_c-1 to fine."""
    dims = [(256, in_c), (256, 256), (256, 256), (num_classes, 256)]
    params = []
    for (o, c) in dims:
        key, kw, kb = jax.random.split(key, 3)
        bound = 1.0 / (c ** 0.5)
        w = jax.random.uniform(kw, (o, c), jnp.float32, -bound, bound)   # (out, in)
        b = jax.random.uniform(kb, (o, 1), jnp.float32, -bound, bound)   # (out, 1)
        params += [w, b]
    return params


def point_head_forward(params, x, feature, mask, key, k=3, beta=0.75):
    # TODO(synk): inference branch (data-dependent while-loop with F.interpolate + scatter_)
    # is not implemented; this is the training-mode forward only.
    num_points = 2048
    B, c_fine, H, W = feature.shape
    HW = H * W

    points = sampling_points_v2(jax.nn.sigmoid(mask), num_points, k, beta, key)
    coarse = point_sample(mask, points)                      # (B, 1, N) sampled mask logits

    (w1a, w2b, b2b, w3b, b3b, w4p, b4p,
     C_aug, HW_aug, num_classes) = _prepare_mlp_params(params, HW)

    feat_aug = build_feat_aug(feature, C_aug, HW_aug)        # (B, C_aug, HW_aug) bf16
    s_aug = build_s_aug(points, coarse, H, W, HW_aug)        # (B, HW_aug, N)     bf16

    rend = point_mlp_pallas(feat_aug, s_aug, w1a, w2b, b2b, w3b, b3b, w4p, b4p)
    return {'rend': rend[:, :num_classes, :], 'points': points, 'coarse': mask}


def point_head_reference(params, feature, mask, points):
    """Pure-JAX f32 reference of PointHead.mlp(cat([coarse, fine], 1)) for the given points."""
    w1, b1, w2, b2, w3, b3, w4, b4 = params
    coarse = point_sample(mask, points)
    fine = point_sample(feature, points)
    h = jnp.concatenate([coarse, fine], axis=1)                              # (B, 513, N)
    h = jnp.maximum(jnp.einsum('oc,bcn->bon', w1, h) + b1[None], 0.0)
    h = jnp.maximum(jnp.einsum('oc,bcn->bon', w2, h) + b2[None], 0.0)
    h = jnp.maximum(jnp.einsum('oc,bcn->bon', w3, h) + b3[None], 0.0)
    return jnp.einsum('oc,bcn->bon', w4, h) + b4[None]


if __name__ == "__main__":
    key = jax.random.PRNGKey(0)
    kp, kx, kf, km, ks = jax.random.split(key, 5)

    B, H, W = 2, 16, 16
    x = jax.random.normal(kx, (B, 3, 64, 64), dtype=jnp.float32)     # shape-only (inference path)
    feature = jax.random.normal(kf, (B, 512, H, W), dtype=jnp.float32)
    mask = jax.random.normal(km, (B, 1, H, W), dtype=jnp.float32)    # logits

    params = init_point_head_params(kp, in_c=513, num_classes=1)

    fwd = jax.jit(point_head_forward)
    out = fwd(params, x, feature, mask, ks)
    out = jax.block_until_ready(out)

    assert out['rend'].shape == (B, 1, 2048)
    assert out['points'].shape == (B, 2048, 2)
    assert out['coarse'].shape == mask.shape
    assert bool(jnp.all(jnp.isfinite(out['rend'])))

    # Numerical check vs the f32 reference (bf16 MXU path => loose tolerance, ~1e-2 relative).
    rend_ref = point_head_reference(params, feature, mask, out['points'])
    max_ref = float(jnp.max(jnp.abs(rend_ref)))
    max_err = float(jnp.max(jnp.abs(out['rend'] - rend_ref)))
    assert max_err < 1e-1 + 5e-2 * max_ref, (max_err, max_ref)

    print("KERNEL_OK")
</pallas_src>

<mosaic_0001>
module attributes {stable_mosaic.version = 11 : i64} {
  func.func @_mlp_kernel(%arg0: i32, %arg1: i32, %arg2: memref<1x528x272xbf16, #tpu.memory_space<vmem>>, %arg3: memref<1x272x1024xbf16, #tpu.memory_space<vmem>>, %arg4: memref<256x528xbf16, #tpu.memory_space<vmem>>, %arg5: memref<256x256xbf16, #tpu.memory_space<vmem>>, %arg6: memref<256x1xbf16, #tpu.memory_space<vmem>>, %arg7: memref<256x256xbf16, #tpu.memory_space<vmem>>, %arg8: memref<256x1xbf16, #tpu.memory_space<vmem>>, %arg9: memref<8x256xbf16, #tpu.memory_space<vmem>>, %arg10: memref<8x1xf32, #tpu.memory_space<vmem>>, %arg11: memref<1x8x1024xf32, #tpu.memory_space<vmem>>, %arg12: memref<256x272xbf16, #tpu.memory_space<vmem>>) attributes {dimension_semantics = [#tpu.dimension_semantics<parallel>, #tpu.dimension_semantics<arbitrary>], iteration_bounds = array<i64: 2, 2>, scalar_prefetch = 0 : i64, scratch_operands = 1 : i64, tpu.core_type = #tpu.core_type<tc>, window_params = [{transform_indices = @transform_0, window_bounds = array<i64: 1, 528, 272>}, {transform_indices = @transform_1, window_bounds = array<i64: 1, 272, 1024>}, {pipeline_mode = #tpu.pipeline_mode<synchronous>, transform_indices = @transform_2, window_bounds = array<i64: 256, 528>}, {pipeline_mode = #tpu.pipeline_mode<synchronous>, transform_indices = @transform_3, window_bounds = array<i64: 256, 256>}, {pipeline_mode = #tpu.pipeline_mode<synchronous>, transform_indices = @transform_4, window_bounds = array<i64: 256, 1>}, {pipeline_mode = #tpu.pipeline_mode<synchronous>, transform_indices = @transform_5, window_bounds = array<i64: 256, 256>}, {pipeline_mode = #tpu.pipeline_mode<synchronous>, transform_indices = @transform_6, window_bounds = array<i64: 256, 1>}, {pipeline_mode = #tpu.pipeline_mode<synchronous>, transform_indices = @transform_7, window_bounds = array<i64: 8, 256>}, {pipeline_mode = #tpu.pipeline_mode<synchronous>, transform_indices = @transform_8, window_bounds = array<i64: 8, 1>}, {transform_indices = @transform_9, window_bounds = array<i64: 1, 8, 1024>}]} {
    %c0_i32 = arith.constant 0 : i32
    %0 = arith.cmpi eq, %arg1, %c0_i32 : i32
    %1 = arith.extui %0 : i1 to i32
    %c0_i32_0 = arith.constant 0 : i32
    %2 = arith.cmpi ne, %1, %c0_i32_0 : i32
    scf.if %2 {
      %c0_26 = arith.constant 0 : index
      %c0_27 = arith.constant 0 : index
      %34 = vector.load %arg4[%c0_26, %c0_27] : memref<256x528xbf16, #tpu.memory_space<vmem>>, vector<256x528xbf16>
      %c0_28 = arith.constant 0 : index
      %c0_29 = arith.constant 0 : index
      %c0_30 = arith.constant 0 : index
      %35 = vector.load %arg2[%c0_28, %c0_29, %c0_30] : memref<1x528x272xbf16, #tpu.memory_space<vmem>>, vector<1x528x272xbf16>
      %36 = vector.shape_cast %35 : vector<1x528x272xbf16> to vector<528x272xbf16>
      %cst_31 = arith.constant dense<0.000000e+00> : vector<256x272xf32>
      %37 = tpu.matmul %34, %36, %cst_31 {dimension_numbers = #tpu.dot_dimension_numbers<[1], [0], [0], [1], [0, 0, 1, 1], [], []>} : vector<256x528xbf16>, vector<528x272xbf16>, vector<256x272xf32> -> vector<256x272xf32>
      %38 = arith.truncf %37 : vector<256x272xf32> to vector<256x272xbf16>
      %c0_32 = arith.constant 0 : index
      %c0_33 = arith.constant 0 : index
      %39 = vector.load %arg12[%c0_32, %c0_33] : memref<256x272xbf16, #tpu.memory_space<vmem>>, vector<256x272xbf16>
      tpu.vector_store %arg12[%c0_32, %c0_33], %38 {strides = array<i32>} : memref<256x272xbf16, #tpu.memory_space<vmem>>, vector<256x272xbf16>,
    } else {
    }
    %c0 = arith.constant 0 : index
    %c0_1 = arith.constant 0 : index
    %3 = vector.load %arg12[%c0, %c0_1] : memref<256x272xbf16, #tpu.memory_space<vmem>>, vector<256x272xbf16>
    %c0_2 = arith.constant 0 : index
    %c0_3 = arith.constant 0 : index
    %c0_4 = arith.constant 0 : index
    %4 = vector.load %arg3[%c0_2, %c0_3, %c0_4] : memref<1x272x1024xbf16, #tpu.memory_space<vmem>>, vector<1x272x1024xbf16>
    %5 = vector.shape_cast %4 : vector<1x272x1024xbf16> to vector<272x1024xbf16>
    %cst = arith.constant dense<0.000000e+00> : vector<256x1024xf32>
    %6 = tpu.matmul %3, %5, %cst {dimension_numbers = #tpu.dot_dimension_numbers<[1], [0], [0], [1], [0, 0, 1, 1], [], []>} : vector<256x272xbf16>, vector<272x1024xbf16>, vector<256x1024xf32> -> vector<256x1024xf32>
    %7 = arith.truncf %6 : vector<256x1024xf32> to vector<256x1024xbf16>
    %cst_5 = arith.constant 0.000000e+00 : bf16
    %8 = vector.broadcast %cst_5 : bf16 to vector<256x1024xbf16>
    %9 = arith.maximumf %7, %8 : vector<256x1024xbf16>
    %c0_6 = arith.constant 0 : index
    %c0_7 = arith.constant 0 : index
    %10 = vector.load %arg5[%c0_6, %c0_7] : memref<256x256xbf16, #tpu.memory_space<vmem>>, vector<256x256xbf16>
    %cst_8 = arith.constant dense<0.000000e+00> : vector<256x1024xf32>
    %11 = tpu.matmul %10, %9, %cst_8 {dimension_numbers = #tpu.dot_dimension_numbers<[1], [0], [0], [1], [0, 0, 1, 1], [], []>} : vector<256x256xbf16>, vector<256x1024xbf16>, vector<256x1024xf32> -> vector<256x1024xf32>
    %12 = arith.truncf %11 : vector<256x1024xf32> to vector<256x1024xbf16>
    %c0_9 = arith.constant 0 : index
    %c0_10 = arith.constant 0 : index
    %13 = vector.load %arg6[%c0_9, %c0_10] : memref<256x1xbf16, #tpu.memory_space<vmem>>, vector<256x1xbf16>
    %14 = vector.broadcast %13 : vector<256x1xbf16> to vector<256x1024xbf16>
    %15 = arith.addf %12, %14 : vector<256x1024xbf16>
    %cst_11 = arith.constant 0.000000e+00 : bf16
    %16 = vector.broadcast %cst_11 : bf16 to vector<256x1024xbf16>
    %17 = arith.maximumf %15, %16 : vector<256x1024xbf16>
    %c0_12 = arith.constant 0 : index
    %c0_13 = arith.constant 0 : index
    %18 = vector.load %arg7[%c0_12, %c0_13] : memref<256x256xbf16, #tpu.memory_space<vmem>>, vector<256x256xbf16>
    %cst_14 = arith.constant dense<0.000000e+00> : vector<256x1024xf32>
    %19 = tpu.matmul %18, %17, %cst_14 {dimension_numbers = #tpu.dot_dimension_numbers<[1], [0], [0], [1], [0, 0, 1, 1], [], []>} : vector<256x256xbf16>, vector<256x1024xbf16>, vector<256x1024xf32> -> vector<256x1024xf32>
    %20 = arith.truncf %19 : vector<256x1024xf32> to vector<256x1024xbf16>
    %c0_15 = arith.constant 0 : index
    %c0_16 = arith.constant 0 : index
    %21 = vector.load %arg8[%c0_15, %c0_16] : memref<256x1xbf16, #tpu.memory_space<vmem>>, vector<256x1xbf16>
    %22 = vector.broadcast %21 : vector<256x1xbf16> to vector<256x1024xbf16>
    %23 = arith.addf %20, %22 : vector<256x1024xbf16>
    %cst_17 = arith.constant 0.000000e+00 : bf16
    %24 = vector.broadcast %cst_17 : bf16 to vector<256x1024xbf16>
    %25 = arith.maximumf %23, %24 : vector<256x1024xbf16>
    %c0_18 = arith.constant 0 : index
    %c0_19 = arith.constant 0 : index
    %26 = vector.load %arg9[%c0_18, %c0_19] : memref<8x256xbf16, #tpu.memory_space<vmem>>, vector<8x256xbf16>
    %cst_20 = arith.constant dense<0.000000e+00> : vector<8x1024xf32>
    %27 = tpu.matmul %26, %25, %cst_20 {dimension_numbers = #tpu.dot_dimension_numbers<[1], [0], [0], [1], [0, 0, 1, 1], [], []>} : vector<8x256xbf16>, vector<256x1024xbf16>, vector<8x1024xf32> -> vector<8x1024xf32>
    %c0_21 = arith.constant 0 : index
    %c0_22 = arith.constant 0 : index
    %28 = vector.load %arg10[%c0_21, %c0_22] : memref<8x1xf32, #tpu.memory_space<vmem>>, vector<8x1xf32>
    %29 = vector.broadcast %28 : vector<8x1xf32> to vector<8x1024xf32>
    %30 = arith.addf %27, %29 : vector<8x1024xf32>
    %c0_23 = arith.constant 0 : index
    %c0_24 = arith.constant 0 : index
    %c0_25 = arith.constant 0 : index
    %31 = vector.load %arg11[%c0_23, %c0_24, %c0_25] : memref<1x8x1024xf32, #tpu.memory_space<vmem>>, vector<1x8x1024xf32>
    %32 = vector.shape_cast %31 : vector<1x8x1024xf32> to vector<8x1024xf32>
    %33 = vector.shape_cast %30 : vector<8x1024xf32> to vector<1x8x1024xf32>
    tpu.vector_store %arg11[%c0_23, %c0_24, %c0_25], %33 {strides = array<i32>} : memref<1x8x1024xf32, #tpu.memory_space<vmem>>, vector<1x8x1024xf32>,
    return
  }
  func.func @transform_0(%arg0: i32, %arg1: i32) -> (i32, i32, i32) {
    %c0_i32 = arith.constant 0 : i32
    %c0_i32_0 = arith.constant 0 : i32
    %c0_i32_1 = arith.constant 0 : i32
    return %arg0, %c0_i32, %c0_i32_0 : i32, i32, i32
  }
  func.func @transform_1(%arg0: i32, %arg1: i32) -> (i32, i32, i32) {
    %c0_i32 = arith.constant 0 : i32
    %c0_i32_0 = arith.constant 0 : i32
    return %arg0, %c0_i32, %arg1 : i32, i32, i32
  }
  func.func @transform_2(%arg0: i32, %arg1: i32) -> (i32, i32) {
    %c0_i32 = arith.constant 0 : i32
    %c0_i32_0 = arith.constant 0 : i32
    %c0_i32_1 = arith.constant 0 : i32
    return %c0_i32, %c0_i32_0 : i32, i32
  }
  func.func @transform_3(%arg0: i32, %arg1: i32) -> (i32, i32) {
    %c0_i32 = arith.constant 0 : i32
    %c0_i32_0 = arith.constant 0 : i32
    %c0_i32_1 = arith.constant 0 : i32
    return %c0_i32, %c0_i32_0 : i32, i32
  }
  func.func @transform_4(%arg0: i32, %arg1: i32) -> (i32, i32) {
    %c0_i32 = arith.constant 0 : i32
    %c0_i32_0 = arith.constant 0 : i32
    %c0_i32_1 = arith.constant 0 : i32
    return %c0_i32, %c0_i32_0 : i32, i32
  }
  func.func @transform_5(%arg0: i32, %arg1: i32) -> (i32, i32) {
    %c0_i32 = arith.constant 0 : i32
    %c0_i32_0 = arith.constant 0 : i32
    %c0_i32_1 = arith.constant 0 : i32
    return %c0_i32, %c0_i32_0 : i32, i32
  }
  func.func @transform_6(%arg0: i32, %arg1: i32) -> (i32, i32) {
    %c0_i32 = arith.constant 0 : i32
    %c0_i32_0 = arith.constant 0 : i32
    %c0_i32_1 = arith.constant 0 : i32
    return %c0_i32, %c0_i32_0 : i32, i32
  }
  func.func @transform_7(%arg0: i32, %arg1: i32) -> (i32, i32) {
    %c0_i32 = arith.constant 0 : i32
    %c0_i32_0 = arith.constant 0 : i32
    %c0_i32_1 = arith.constant 0 : i32
    return %c0_i32, %c0_i32_0 : i32, i32
  }
  func.func @transform_8(%arg0: i32, %arg1: i32) -> (i32, i32) {
    %c0_i32 = arith.constant 0 : i32
    %c0_i32_0 = arith.constant 0 : i32
    %c0_i32_1 = arith.constant 0 : i32
    return %c0_i32, %c0_i32_0 : i32, i32
  }
  func.func @transform_9(%arg0: i32, %arg1: i32) -> (i32, i32, i32) {
    %c0_i32 = arith.constant 0 : i32
    %c0_i32_0 = arith.constant 0 : i32
    return %arg0, %c0_i32, %arg1 : i32, i32, i32
  }
}

</mosaic_0001>

<bundles_post_ra>
// kernel: point_head_forward.1
= control target key start
LH: loop header
LB: loop body
LE: loop exit
PB: predicated region body
PF: predicated region fallthrough
CT: control target
= control target key end

     0   :  { %s18886_s0 = inlined_call_operand.vmem [shape: bf16[2,528,272], index: 0, kind: input, shape index: {}]   ;;  %s18887_s1 = inlined_call_operand.vmem [shape: bf16[2,272,2048], index: 1, kind: input, shape index: {}]   ;;  %s18888_s2 = inlined_call_operand.vmem [shape: bf16[256,528], index: 2, kind: input, shape index: {}]   ;;  %s18889_s3 = inlined_call_operand.vmem [shape: bf16[256,256], index: 3, kind: input, shape index: {}]   ;;  %s18890_s4 = inlined_call_operand.vmem [shape: bf16[256,1], index: 4, kind: input, shape index: {}]   ;;  %s18891_s5 = inlined_call_operand.vmem [shape: bf16[256,256], index: 5, kind: input, shape index: {}]   ;;  %s18892_s6 = inlined_call_operand.vmem [shape: bf16[256,1], index: 6, kind: input, shape index: {}]   ;;  %s18893_s7 = inlined_call_operand.vmem [shape: bf16[8,256], index: 7, kind: input, shape index: {}]   ;;  %s18894_s8 = inlined_call_operand.vmem [shape: f32[8,1], index: 8, kind: input, shape index: {}]   ;;  %s18895_s9 = inlined_call_operand.vmem [shape: f32[2,8,2048], index: 9, kind: output, shape index: {}]  }
   0x1   :  { %19175 = sst [smem:[#allocation134_spill]] %s18887_s1 }
   0x2   :  { %s11979_s30 = smov 0   ;;  %s11981_s10 = smov 0  }
   0x3   :  { %s11983_s11 = smov 0   ;;  %s11985_s12 = smov 0  }
   0x4   :  { %s11987_s13 = smov 0   ;;  %s11989_s14 = smov 0  }
   0x5   :  { %s11991_s15 = smov 0  }
   0x6 LB: > { %s28_s16 = sadd.s32 1, %s11916_s13  ;;  %s31_s17 = sadd.s32 1, %s11920_s14  ;;  %s11924_s15 = sphi %s11991_s15, %s19_s15   ;;  %s11920_s14 = sphi %s11989_s14, %s20169_s14   ;;  %s11916_s13 = sphi %s11987_s13, %s20168_s13   ;;  %s11912_s12 = sphi %s11985_s12, %s20167_s12   ;;  %s11908_s11 = sphi %s11983_s11, %s20166_s11   ;;  %s11904_s10 = sphi %s11981_s10, %s20165_s10   ;;  %s11900_s30 = sphi %s11979_s30, %s20164_s30  }
   0x7   : > { %p29_p0 = scmp.ge.s32.totalorder %s28_s16, 2  ;;  %p73_p1 = scmp.ne.s32.totalorder %s11904_s10, %s11900_s30 }
   0x8   : > { %p74_p2 = scmp.eq.s32.totalorder %s11924_s15, 0  ;;  %s66_s21 = sadd.s32 1, %s11904_s10 }
   0x9   : > { %s20171_s16 = smov (%p29_p0, %s28_s16), 0  ;;  %s20173_s17 = smov (!%p29_p0, %s31_s17), %s11920_s14 }
   0xa   : > { %p75_p3 = por %p74_p2, %p73_p1  ;;  %p33_p4 = scmp.ge.s32.totalorder %s20173_s17, 2 }
   0xb   : > { %s62_s18 = ssub.s32 %s11916_s13, %s20171_s16  ;;  %p10311_p6 = scmp.ge.s32.totalorder %s11924_s15, 4 }
   0xc   : > { %s20175_s17 = smov (%p33_p4, %s20173_s17), 0 }
   0xd   : > { %19176 = sst [smem:[#allocation4_spill]] %s20175_s17  ;;  %s61_s19 = ssub.s32 %s11920_s14, %s20175_s17 }
   0xe   : > { %s63_s20 = sor.u32 %s62_s18, %s61_s19  ;;  %295 = sbr.rel (%p10311_p6) target bundleno = 97 (0x61), region = 44 }
   0xf   : > { %p64_p5 = scmp.eq.s32.totalorder %s63_s20, 0 }
  0x11   : > { %s12030_s22 = scalar_select %p64_p5, %s11904_s10, %s66_s21  }
  0x13   : > { %306 = sbr.rel (!%p75_p3) target bundleno = 97 (0x61), region = 52  ;;  %s308_s23 = sand.u32 (%p75_p3), 1, %s11904_s10  }
  0x14   : > { %s11284_s24 = smul.u32 (%p75_p3), 1088, %s308_s23  ;;  %s10312_s25 = sshll.u32 (%p75_p3), %s11916_s13, 3 }
  0x15   : > { %s11285_s26 = smul.u32 (%p75_p3), 544, %s11920_s14  ;;  %s19177_s1 = sld [smem:[#allocation134_spill]] (%p75_p3) }
  0x16   : > { %s12044_s19 = scalar_lea.vmem (%p75_p3), [#allocation3], %s11284_s24 }
  0x17   : > { %s313_s27 = sadd.s32 (%p75_p3), %s11285_s26, %s10312_s25 }
  0x18   : > { %s10313_s28 = sshll.u32 %s313_s27, 2 }
  0x1b   : > { %s12039_s18 = scalar_lea.vmem %s19177_s1, %s10313_s28 }
  0x1c   : > { %v328_v0 = vld [vmem:[%s12039_s18] sm:$0xff]  ;;  %v330_v1 = vld [vmem:[%s12039_s18 + $0x8] sm:$0xff]  ;;  %v332_v2 = vld [vmem:[%s12039_s18 + $0x10] sm:$0xff] }
  0x1d   : > { %329 = vst [vmem:[%s12044_s19] sm:$0xff] %v328_v0  ;;  %331 = vst [vmem:[%s12044_s19 + $0x8] sm:$0xff] %v330_v1  ;;  %v334_v3 = vld [vmem:[%s12039_s18 + $0x18] sm:$0xff]  ;;  %v336_v4 = vld [vmem:[%s12039_s18 + $0x40] sm:$0xff] }
  0x1e   : > { %333 = vst [vmem:[%s12044_s19 + $0x10] sm:$0xff] %v332_v2  ;;  %v338_v5 = vld [vmem:[%s12039_s18 + $0x48] sm:$0xff]  ;;  %335 = vst [vmem:[%s12044_s19 + $0x18] sm:$0xff] %v334_v3  ;;  %v340_v6 = vld [vmem:[%s12039_s18 + $0x50] sm:$0xff] }
  0x1f   : > { %337 = vst [vmem:[%s12044_s19 + $0x20] sm:$0xff] %v336_v4  ;;  %339 = vst [vmem:[%s12044_s19 + $0x28] sm:$0xff] %v338_v5  ;;  %v342_v7 = vld [vmem:[%s12039_s18 + $0x58] sm:$0xff]  ;;  %v344_v8 = vld [vmem:[%s12039_s18 + $0x80] sm:$0xff] }
  0x20   : > { %341 = vst [vmem:[%s12044_s19 + $0x30] sm:$0xff] %v340_v6  ;;  %343 = vst [vmem:[%s12044_s19 + $0x38] sm:$0xff] %v342_v7  ;;  %v346_v9 = vld [vmem:[%s12039_s18 + $0x88] sm:$0xff]  ;;  %v348_v10 = vld [vmem:[%s12039_s18 + $0x90] sm:$0xff] }
  0x21   : > { %345 = vst [vmem:[%s12044_s19 + $0x40] sm:$0xff] %v344_v8  ;;  %v350_v11 = vld [vmem:[%s12039_s18 + $0x98] sm:$0xff]  ;;  %347 = vst [vmem:[%s12044_s19 + $0x48] sm:$0xff] %v346_v9  ;;  %v352_v12 = vld [vmem:[%s12039_s18 + $0xc0] sm:$0xff] }
  0x22   : > { %349 = vst [vmem:[%s12044_s19 + $0x50] sm:$0xff] %v348_v10  ;;  %351 = vst [vmem:[%s12044_s19 + $0x58] sm:$0xff] %v350_v11  ;;  %v354_v13 = vld [vmem:[%s12039_s18 + $0xc8] sm:$0xff]  ;;  %v356_v14 = vld [vmem:[%s12039_s18 + $0xd0] sm:$0xff] }
  0x23   : > { %353 = vst [vmem:[%s12044_s19 + $0x60] sm:$0xff] %v352_v12  ;;  %355 = vst [vmem:[%s12044_s19 + $0x68] sm:$0xff] %v354_v13  ;;  %v358_v15 = vld [vmem:[%s12039_s18 + $0xd8] sm:$0xff]  ;;  %v360_v16 = vld [vmem:[%s12039_s18 + $0x100] sm:$0xff] }
  0x24   : > { %357 = vst [vmem:[%s12044_s19 + $0x70] sm:$0xff] %v356_v14  ;;  %v362_v17 = vld [vmem:[%s12039_s18 + $0x108] sm:$0xff]  ;;  %359 = vst [vmem:[%s12044_s19 + $0x78] sm:$0xff] %v358_v15  ;;  %v364_v18 = vld [vmem:[%s12039_s18 + $0x110] sm:$0xff] }
  0x25   : > { %361 = vst [vmem:[%s12044_s19 + $0x80] sm:$0xff] %v360_v16  ;;  %363 = vst [vmem:[%s12044_s19 + $0x88] sm:$0xff] %v362_v17  ;;  %v366_v19 = vld [vmem:[%s12039_s18 + $0x118] sm:$0xff]  ;;  %v368_v20 = vld [vmem:[%s12039_s18 + $0x140] sm:$0xff] }
  0x26   : > { %365 = vst [vmem:[%s12044_s19 + $0x90] sm:$0xff] %v364_v18  ;;  %367 = vst [vmem:[%s12044_s19 + $0x98] sm:$0xff] %v366_v19  ;;  %v370_v21 = vld [vmem:[%s12039_s18 + $0x148] sm:$0xff]  ;;  %v372_v22 = vld [vmem:[%s12039_s18 + $0x150] sm:$0xff] }
  0x27   : > { %369 = vst [vmem:[%s12044_s19 + $0xa0] sm:$0xff] %v368_v20  ;;  %v374_v23 = vld [vmem:[%s12039_s18 + $0x158] sm:$0xff]  ;;  %371 = vst [vmem:[%s12044_s19 + $0xa8] sm:$0xff] %v370_v21  ;;  %v376_v24 = vld [vmem:[%s12039_s18 + $0x180] sm:$0xff] }
  0x28   : > { %373 = vst [vmem:[%s12044_s19 + $0xb0] sm:$0xff] %v372_v22  ;;  %375 = vst [vmem:[%s12044_s19 + $0xb8] sm:$0xff] %v374_v23  ;;  %v378_v25 = vld [vmem:[%s12039_s18 + $0x188] sm:$0xff]  ;;  %v380_v26 = vld [vmem:[%s12039_s18 + $0x190] sm:$0xff] }
  0x29   : > { %377 = vst [vmem:[%s12044_s19 + $0xc0] sm:$0xff] %v376_v24  ;;  %379 = vst [vmem:[%s12044_s19 + $0xc8] sm:$0xff] %v378_v25  ;;  %v382_v27 = vld [vmem:[%s12039_s18 + $0x198] sm:$0xff]  ;;  %v384_v28 = vld [vmem:[%s12039_s18 + $0x1c0] sm:$0xff] }
  0x2a   : > { %381 = vst [vmem:[%s12044_s19 + $0xd0] sm:$0xff] %v380_v26  ;;  %v386_v29 = vld [vmem:[%s12039_s18 + $0x1c8] sm:$0xff]  ;;  %383 = vst [vmem:[%s12044_s19 + $0xd8] sm:$0xff] %v382_v27  ;;  %v388_v30 = vld [vmem:[%s12039_s18 + $0x1d0] sm:$0xff] }
  0x2b   : > { %385 = vst [vmem:[%s12044_s19 + $0xe0] sm:$0xff] %v384_v28  ;;  %387 = vst [vmem:[%s12044_s19 + $0xe8] sm:$0xff] %v386_v29  ;;  %v390_v31 = vld [vmem:[%s12039_s18 + $0x1d8] sm:$0xff]  ;;  %v392_v32 = vld [vmem:[%s12039_s18 + $0x200] sm:$0xff] }
  0x2c   : > { %389 = vst [vmem:[%s12044_s19 + $0xf0] sm:$0xff] %v388_v30  ;;  %391 = vst [vmem:[%s12044_s19 + $0xf8] sm:$0xff] %v390_v31  ;;  %v394_v33 = vld [vmem:[%s12039_s18 + $0x208] sm:$0xff]  ;;  %v396_v34 = vld [vmem:[%s12039_s18 + $0x210] sm:$0xff] }
  0x2d   : > { %393 = vst [vmem:[%s12044_s19 + $0x100] sm:$0xff] %v392_v32  ;;  %v398_v35 = vld [vmem:[%s12039_s18 + $0x218] sm:$0xff]  ;;  %395 = vst [vmem:[%s12044_s19 + $0x108] sm:$0xff] %v394_v33  ;;  %v400_v36 = vld [vmem:[%s12039_s18 + $0x240] sm:$0xff] }
  0x2e   : > { %397 = vst [vmem:[%s12044_s19 + $0x110] sm:$0xff] %v396_v34  ;;  %399 = vst [vmem:[%s12044_s19 + $0x118] sm:$0xff] %v398_v35  ;;  %v402_v37 = vld [vmem:[%s12039_s18 + $0x248] sm:$0xff]  ;;  %v404_v38 = vld [vmem:[%s12039_s18 + $0x250] sm:$0xff] }
  0x2f   : > { %401 = vst [vmem:[%s12044_s19 + $0x120] sm:$0xff] %v400_v36  ;;  %403 = vst [vmem:[%s12044_s19 + $0x128] sm:$0xff] %v402_v37  ;;  %v406_v39 = vld [vmem:[%s12039_s18 + $0x258] sm:$0xff]  ;;  %v408_v40 = vld [vmem:[%s12039_s18 + $0x280] sm:$0xff] }
  0x30   : > { %405 = vst [vmem:[%s12044_s19 + $0x130] sm:$0xff] %v404_v38  ;;  %v410_v41 = vld [vmem:[%s12039_s18 + $0x288] sm:$0xff]  ;;  %407 = vst [vmem:[%s12044_s19 + $0x138] sm:$0xff] %v406_v39  ;;  %v412_v42 = vld [vmem:[%s12039_s18 + $0x290] sm:$0xff] }
  0x31   : > { %409 = vst [vmem:[%s12044_s19 + $0x140] sm:$0xff] %v408_v40  ;;  %411 = vst [vmem:[%s12044_s19 + $0x148] sm:$0xff] %v410_v41  ;;  %v414_v43 = vld [vmem:[%s12039_s18 + $0x298] sm:$0xff]  ;;  %v416_v44 = vld [vmem:[%s12039_s18 + $0x2c0] sm:$0xff] }
  0x32   : > { %413 = vst [vmem:[%s12044_s19 + $0x150] sm:$0xff] %v412_v42  ;;  %415 = vst [vmem:[%s12044_s19 + $0x158] sm:$0xff] %v414_v43  ;;  %v418_v45 = vld [vmem:[%s12039_s18 + $0x2c8] sm:$0xff]  ;;  %v420_v46 = vld [vmem:[%s12039_s18 + $0x2d0] sm:$0xff] }
  0x33   : > { %417 = vst [vmem:[%s12044_s19 + $0x160] sm:$0xff] %v416_v44  ;;  %v422_v47 = vld [vmem:[%s12039_s18 + $0x2d8] sm:$0xff]  ;;  %419 = vst [vmem:[%s12044_s19 + $0x168] sm:$0xff] %v418_v45  ;;  %v424_v48 = vld [vmem:[%s12039_s18 + $0x300] sm:$0xff] }
  0x34   : > { %421 = vst [vmem:[%s12044_s19 + $0x170] sm:$0xff] %v420_v46  ;;  %423 = vst [vmem:[%s12044_s19 + $0x178] sm:$0xff] %v422_v47  ;;  %v426_v49 = vld [vmem:[%s12039_s18 + $0x308] sm:$0xff]  ;;  %v428_v50 = vld [vmem:[%s12039_s18 + $0x310] sm:$0xff] }
  0x35   : > { %425 = vst [vmem:[%s12044_s19 + $0x180] sm:$0xff] %v424_v48  ;;  %427 = vst [vmem:[%s12044_s19 + $0x188] sm:$0xff] %v426_v49  ;;  %v430_v51 = vld [vmem:[%s12039_s18 + $0x318] sm:$0xff]  ;;  %v432_v52 = vld [vmem:[%s12039_s18 + $0x340] sm:$0xff] }
  0x36   : > { %429 = vst [vmem:[%s12044_s19 + $0x190] sm:$0xff] %v428_v50  ;;  %v434_v53 = vld [vmem:[%s12039_s18 + $0x348] sm:$0xff]  ;;  %431 = vst [vmem:[%s12044_s19 + $0x198] sm:$0xff] %v430_v51  ;;  %v436_v54 = vld [vmem:[%s12039_s18 + $0x350] sm:$0xff] }
  0x37   : > { %433 = vst [vmem:[%s12044_s19 + $0x1a0] sm:$0xff] %v432_v52  ;;  %435 = vst [vmem:[%s12044_s19 + $0x1a8] sm:$0xff] %v434_v53  ;;  %v438_v55 = vld [vmem:[%s12039_s18 + $0x358] sm:$0xff]  ;;  %v440_v56 = vld [vmem:[%s12039_s18 + $0x380] sm:$0xff] }
  0x38   : > { %437 = vst [vmem:[%s12044_s19 + $0x1b0] sm:$0xff] %v436_v54  ;;  %439 = vst [vmem:[%s12044_s19 + $0x1b8] sm:$0xff] %v438_v55  ;;  %v442_v57 = vld [vmem:[%s12039_s18 + $0x388] sm:$0xff]  ;;  %v444_v58 = vld [vmem:[%s12039_s18 + $0x390] sm:$0xff] }
  0x39   : > { %441 = vst [vmem:[%s12044_s19 + $0x1c0] sm:$0xff] %v440_v56  ;;  %v446_v59 = vld [vmem:[%s12039_s18 + $0x398] sm:$0xff]  ;;  %443 = vst [vmem:[%s12044_s19 + $0x1c8] sm:$0xff] %v442_v57  ;;  %v448_v60 = vld [vmem:[%s12039_s18 + $0x3c0] sm:$0xff] }
  0x3a   : > { %445 = vst [vmem:[%s12044_s19 + $0x1d0] sm:$0xff] %v444_v58  ;;  %447 = vst [vmem:[%s12044_s19 + $0x1d8] sm:$0xff] %v446_v59  ;;  %v450_v61 = vld [vmem:[%s12039_s18 + $0x3c8] sm:$0xff]  ;;  %v452_v62 = vld [vmem:[%s12039_s18 + $0x3d0] sm:$0xff] }
  0x3b   : > { %449 = vst [vmem:[%s12044_s19 + $0x1e0] sm:$0xff] %v448_v60  ;;  %451 = vst [vmem:[%s12044_s19 + $0x1e8] sm:$0xff] %v450_v61  ;;  %v454_v63 = vld [vmem:[%s12039_s18 + $0x3d8] sm:$0xff]  ;;  %v456_v0 = vld [vmem:[%s12039_s18 + $0x400] sm:$0xff] }
  0x3c   : > { %453 = vst [vmem:[%s12044_s19 + $0x1f0] sm:$0xff] %v452_v62  ;;  %v458_v1 = vld [vmem:[%s12039_s18 + $0x408] sm:$0xff]  ;;  %455 = vst [vmem:[%s12044_s19 + $0x1f8] sm:$0xff] %v454_v63  ;;  %v460_v2 = vld [vmem:[%s12039_s18 + $0x410] sm:$0xff] }
  0x3d   : > { %457 = vst [vmem:[%s12044_s19 + $0x200] sm:$0xff] %v456_v0  ;;  %459 = vst [vmem:[%s12044_s19 + $0x208] sm:$0xff] %v458_v1  ;;  %v462_v3 = vld [vmem:[%s12039_s18 + $0x418] sm:$0xff]  ;;  %v464_v4 = vld [vmem:[%s12039_s18 + $0x440] sm:$0xff] }
  0x3e   : > { %461 = vst [vmem:[%s12044_s19 + $0x210] sm:$0xff] %v460_v2  ;;  %463 = vst [vmem:[%s12044_s19 + $0x218] sm:$0xff] %v462_v3  ;;  %v466_v5 = vld [vmem:[%s12039_s18 + $0x448] sm:$0xff]  ;;  %v468_v6 = vld [vmem:[%s12039_s18 + $0x450] sm:$0xff] }
  0x3f   : > { %465 = vst [vmem:[%s12044_s19 + $0x220] sm:$0xff] %v464_v4  ;;  %v470_v7 = vld [vmem:[%s12039_s18 + $0x458] sm:$0xff]  ;;  %467 = vst [vmem:[%s12044_s19 + $0x228] sm:$0xff] %v466_v5  ;;  %v472_v8 = vld [vmem:[%s12039_s18 + $0x480] sm:$0xff] }
  0x40   : > { %469 = vst [vmem:[%s12044_s19 + $0x230] sm:$0xff] %v468_v6  ;;  %471 = vst [vmem:[%s12044_s19 + $0x238] sm:$0xff] %v470_v7  ;;  %v474_v9 = vld [vmem:[%s12039_s18 + $0x488] sm:$0xff]  ;;  %v476_v10 = vld [vmem:[%s12039_s18 + $0x490] sm:$0xff] }
  0x41   : > { %473 = vst [vmem:[%s12044_s19 + $0x240] sm:$0xff] %v472_v8  ;;  %475 = vst [vmem:[%s12044_s19 + $0x248] sm:$0xff] %v474_v9  ;;  %v478_v11 = vld [vmem:[%s12039_s18 + $0x498] sm:$0xff]  ;;  %v480_v12 = vld [vmem:[%s12039_s18 + $0x4c0] sm:$0xff] }
  0x42   : > { %477 = vst [vmem:[%s12044_s19 + $0x250] sm:$0xff] %v476_v10  ;;  %v482_v13 = vld [vmem:[%s12039_s18 + $0x4c8] sm:$0xff]  ;;  %479 = vst [vmem:[%s12044_s19 + $0x258] sm:$0xff] %v478_v11  ;;  %v484_v14 = vld [vmem:[%s12039_s18 + $0x4d0] sm:$0xff] }
  0x43   : > { %481 = vst [vmem:[%s12044_s19 + $0x260] sm:$0xff] %v480_v12  ;;  %483 = vst [vmem:[%s12044_s19 + $0x268] sm:$0xff] %v482_v13  ;;  %v486_v15 = vld [vmem:[%s12039_s18 + $0x4d8] sm:$0xff]  ;;  %v488_v16 = vld [vmem:[%s12039_s18 + $0x500] sm:$0xff] }
  0x44   : > { %485 = vst [vmem:[%s12044_s19 + $0x270] sm:$0xff] %v484_v14  ;;  %487 = vst [vmem:[%s12044_s19 + $0x278] sm:$0xff] %v486_v15  ;;  %v490_v17 = vld [vmem:[%s12039_s18 + $0x508] sm:$0xff]  ;;  %v492_v18 = vld [vmem:[%s12039_s18 + $0x510] sm:$0xff] }
  0x45   : > { %489 = vst [vmem:[%s12044_s19 + $0x280] sm:$0xff] %v488_v16  ;;  %v494_v19 = vld [vmem:[%s12039_s18 + $0x518] sm:$0xff]  ;;  %491 = vst [vmem:[%s12044_s19 + $0x288] sm:$0xff] %v490_v17  ;;  %v496_v20 = vld [vmem:[%s12039_s18 + $0x540] sm:$0xff] }
  0x46   : > { %493 = vst [vmem:[%s12044_s19 + $0x290] sm:$0xff] %v492_v18  ;;  %495 = vst [vmem:[%s12044_s19 + $0x298] sm:$0xff] %v494_v19  ;;  %v498_v21 = vld [vmem:[%s12039_s18 + $0x548] sm:$0xff]  ;;  %v500_v22 = vld [vmem:[%s12039_s18 + $0x550] sm:$0xff] }
  0x47   : > { %497 = vst [vmem:[%s12044_s19 + $0x2a0] sm:$0xff] %v496_v20  ;;  %499 = vst [vmem:[%s12044_s19 + $0x2a8] sm:$0xff] %v498_v21  ;;  %v502_v23 = vld [vmem:[%s12039_s18 + $0x558] sm:$0xff]  ;;  %v504_v24 = vld [vmem:[%s12039_s18 + $0x580] sm:$0xff] }
  0x48   : > { %501 = vst [vmem:[%s12044_s19 + $0x2b0] sm:$0xff] %v500_v22  ;;  %v506_v25 = vld [vmem:[%s12039_s18 + $0x588] sm:$0xff]  ;;  %503 = vst [vmem:[%s12044_s19 + $0x2b8] sm:$0xff] %v502_v23  ;;  %v508_v26 = vld [vmem:[%s12039_s18 + $0x590] sm:$0xff] }
  0x49   : > { %505 = vst [vmem:[%s12044_s19 + $0x2c0] sm:$0xff] %v504_v24  ;;  %507 = vst [vmem:[%s12044_s19 + $0x2c8] sm:$0xff] %v506_v25  ;;  %v510_v27 = vld [vmem:[%s12039_s18 + $0x598] sm:$0xff]  ;;  %v512_v28 = vld [vmem:[%s12039_s18 + $0x5c0] sm:$0xff] }
  0x4a   : > { %509 = vst [vmem:[%s12044_s19 + $0x2d0] sm:$0xff] %v508_v26  ;;  %511 = vst [vmem:[%s12044_s19 + $0x2d8] sm:$0xff] %v510_v27  ;;  %v514_v29 = vld [vmem:[%s12039_s18 + $0x5c8] sm:$0xff]  ;;  %v516_v30 = vld [vmem:[%s12039_s18 + $0x5d0] sm:$0xff] }
  0x4b   : > { %513 = vst [vmem:[%s12044_s19 + $0x2e0] sm:$0xff] %v512_v28  ;;  %v518_v31 = vld [vmem:[%s12039_s18 + $0x5d8] sm:$0xff]  ;;  %515 = vst [vmem:[%s12044_s19 + $0x2e8] sm:$0xff] %v514_v29  ;;  %v520_v32 = vld [vmem:[%s12039_s18 + $0x600] sm:$0xff] }
  0x4c   : > { %517 = vst [vmem:[%s12044_s19 + $0x2f0] sm:$0xff] %v516_v30  ;;  %519 = vst [vmem:[%s12044_s19 + $0x2f8] sm:$0xff] %v518_v31  ;;  %v522_v33 = vld [vmem:[%s12039_s18 + $0x608] sm:$0xff]  ;;  %v524_v34 = vld [vmem:[%s12039_s18 + $0x610] sm:$0xff] }
  0x4d   : > { %521 = vst [vmem:[%s12044_s19 + $0x300] sm:$0xff] %v520_v32  ;;  %523 = vst [vmem:[%s12044_s19 + $0x308] sm:$0xff] %v522_v33  ;;  %v526_v35 = vld [vmem:[%s12039_s18 + $0x618] sm:$0xff]  ;;  %v528_v36 = vld [vmem:[%s12039_s18 + $0x640] sm:$0xff] }
  0x4e   : > { %525 = vst [vmem:[%s12044_s19 + $0x310] sm:$0xff] %v524_v34  ;;  %v530_v37 = vld [vmem:[%s12039_s18 + $0x648] sm:$0xff]  ;;  %527 = vst [vmem:[%s12044_s19 + $0x318] sm:$0xff] %v526_v35  ;;  %v532_v38 = vld [vmem:[%s12039_s18 + $0x650] sm:$0xff] }
  0x4f   : > { %529 = vst [vmem:[%s12044_s19 + $0x320] sm:$0xff] %v528_v36  ;;  %531 = vst [vmem:[%s12044_s19 + $0x328] sm:$0xff] %v530_v37  ;;  %v534_v39 = vld [vmem:[%s12039_s18 + $0x658] sm:$0xff]  ;;  %v536_v40 = vld [vmem:[%s12039_s18 + $0x680] sm:$0xff] }
  0x50   : > { %533 = vst [vmem:[%s12044_s19 + $0x330] sm:$0xff] %v532_v38  ;;  %535 = vst [vmem:[%s12044_s19 + $0x338] sm:$0xff] %v534_v39  ;;  %v538_v41 = vld [vmem:[%s12039_s18 + $0x688] sm:$0xff]  ;;  %v540_v42 = vld [vmem:[%s12039_s18 + $0x690] sm:$0xff] }
  0x51   : > { %537 = vst [vmem:[%s12044_s19 + $0x340] sm:$0xff] %v536_v40  ;;  %v542_v43 = vld [vmem:[%s12039_s18 + $0x698] sm:$0xff]  ;;  %539 = vst [vmem:[%s12044_s19 + $0x348] sm:$0xff] %v538_v41  ;;  %v544_v44 = vld [vmem:[%s12039_s18 + $0x6c0] sm:$0xff] }
  0x52   : > { %541 = vst [vmem:[%s12044_s19 + $0x350] sm:$0xff] %v540_v42  ;;  %543 = vst [vmem:[%s12044_s19 + $0x358] sm:$0xff] %v542_v43  ;;  %v546_v45 = vld [vmem:[%s12039_s18 + $0x6c8] sm:$0xff]  ;;  %v548_v46 = vld [vmem:[%s12039_s18 + $0x6d0] sm:$0xff] }
  0x53   : > { %545 = vst [vmem:[%s12044_s19 + $0x360] sm:$0xff] %v544_v44  ;;  %547 = vst [vmem:[%s12044_s19 + $0x368] sm:$0xff] %v546_v45  ;;  %v550_v47 = vld [vmem:[%s12039_s18 + $0x6d8] sm:$0xff]  ;;  %v552_v48 = vld [vmem:[%s12039_s18 + $0x700] sm:$0xff] }
  0x54   : > { %549 = vst [vmem:[%s12044_s19 + $0x370] sm:$0xff] %v548_v46  ;;  %v554_v49 = vld [vmem:[%s12039_s18 + $0x708] sm:$0xff]  ;;  %551 = vst [vmem:[%s12044_s19 + $0x378] sm:$0xff] %v550_v47  ;;  %v556_v50 = vld [vmem:[%s12039_s18 + $0x710] sm:$0xff] }
  0x55   : > { %553 = vst [vmem:[%s12044_s19 + $0x380] sm:$0xff] %v552_v48  ;;  %555 = vst [vmem:[%s12044_s19 + $0x388] sm:$0xff] %v554_v49  ;;  %v558_v51 = vld [vmem:[%s12039_s18 + $0x718] sm:$0xff]  ;;  %v560_v52 = vld [vmem:[%s12039_s18 + $0x740] sm:$0xff] }
  0x56   : > { %557 = vst [vmem:[%s12044_s19 + $0x390] sm:$0xff] %v556_v50  ;;  %559 = vst [vmem:[%s12044_s19 + $0x398] sm:$0xff] %v558_v51  ;;  %v562_v53 = vld [vmem:[%s12039_s18 + $0x748] sm:$0xff]  ;;  %v564_v54 = vld [vmem:[%s12039_s18 + $0x750] sm:$0xff] }
  0x57   : > { %561 = vst [vmem:[%s12044_s19 + $0x3a0] sm:$0xff] %v560_v52  ;;  %v566_v55 = vld [vmem:[%s12039_s18 + $0x758] sm:$0xff]  ;;  %563 = vst [vmem:[%s12044_s19 + $0x3a8] sm:$0xff] %v562_v53  ;;  %v568_v56 = vld [vmem:[%s12039_s18 + $0x780] sm:$0xff] }
  0x58   : > { %565 = vst [vmem:[%s12044_s19 + $0x3b0] sm:$0xff] %v564_v54  ;;  %567 = vst [vmem:[%s12044_s19 + $0x3b8] sm:$0xff] %v566_v55  ;;  %v570_v57 = vld [vmem:[%s12039_s18 + $0x788] sm:$0xff]  ;;  %v572_v58 = vld [vmem:[%s12039_s18 + $0x790] sm:$0xff] }
  0x59   : > { %569 = vst [vmem:[%s12044_s19 + $0x3c0] sm:$0xff] %v568_v56  ;;  %571 = vst [vmem:[%s12044_s19 + $0x3c8] sm:$0xff] %v570_v57  ;;  %v574_v59 = vld [vmem:[%s12039_s18 + $0x798] sm:$0xff]  ;;  %v576_v60 = vld [vmem:[%s12039_s18 + $0x7c0] sm:$0xff] }
  0x5a   : > { %573 = vst [vmem:[%s12044_s19 + $0x3d0] sm:$0xff] %v572_v58  ;;  %v578_v61 = vld [vmem:[%s12039_s18 + $0x7c8] sm:$0xff]  ;;  %575 = vst [vmem:[%s12044_s19 + $0x3d8] sm:$0xff] %v574_v59  ;;  %v580_v62 = vld [vmem:[%s12039_s18 + $0x7d0] sm:$0xff] }
  0x5b   : > { %577 = vst [vmem:[%s12044_s19 + $0x3e0] sm:$0xff] %v576_v60  ;;  %579 = vst [vmem:[%s12044_s19 + $0x3e8] sm:$0xff] %v578_v61  ;;  %v582_v63 = vld [vmem:[%s12039_s18 + $0x7d8] sm:$0xff]  ;;  %v584_v0 = vld [vmem:[%s12039_s18 + $0x800] sm:$0xff] }
  0x5c   : > { %581 = vst [vmem:[%s12044_s19 + $0x3f0] sm:$0xff] %v580_v62  ;;  %583 = vst [vmem:[%s12044_s19 + $0x3f8] sm:$0xff] %v582_v63  ;;  %v586_v1 = vld [vmem:[%s12039_s18 + $0x808] sm:$0xff]  ;;  %v588_v2 = vld [vmem:[%s12039_s18 + $0x810] sm:$0xff] }
  0x5d   : > { %585 = vst [vmem:[%s12044_s19 + $0x400] sm:$0xff] %v584_v0  ;;  %v590_v3 = vld [vmem:[%s12039_s18 + $0x818] sm:$0xff]  ;;  %587 = vst [vmem:[%s12044_s19 + $0x408] sm:$0xff] %v586_v1  ;;  %v592_v4 = vld [vmem:[%s12039_s18 + $0x840] sm:$0xff] }
  0x5e   : > { %589 = vst [vmem:[%s12044_s19 + $0x410] sm:$0xff] %v588_v2  ;;  %591 = vst [vmem:[%s12044_s19 + $0x418] sm:$0xff] %v590_v3  ;;  %v594_v5 = vld [vmem:[%s12039_s18 + $0x848] sm:$0xff]  ;;  %v596_v6 = vld [vmem:[%s12039_s18 + $0x850] sm:$0xff] }
  0x5f   : > { %593 = vst [vmem:[%s12044_s19 + $0x420] sm:$0xff] %v592_v4  ;;  %595 = vst [vmem:[%s12044_s19 + $0x428] sm:$0xff] %v594_v5  ;;  %v598_v7 = vld [vmem:[%s12039_s18 + $0x858] sm:$0xff] }
  0x60   : > { %597 = vst [vmem:[%s12044_s19 + $0x430] sm:$0xff] %v596_v6  ;;  %599 = vst [vmem:[%s12044_s19 + $0x438] sm:$0xff] %v598_v7 }
  0x61 PF: > { %p10314_p7 = scmp.ge.s32.totalorder %s11924_s15, 1  ;;  %p604_p8 = scmp.lt.s32.totalorder %s11924_s15, 5 }
  0x63   : > { %p605_p9 = pnand %p10314_p7, %p604_p8 }
  0x65   : > { %608 = sbr.rel (%p605_p9) target bundleno = 2459 (0x99b), region = 75 }
  0x6a   : > { %s611_s17 = sand.u32 1, %s11900_s30   ;;  %p655_p10 = scmp.lt.s32.totalorder %s11912_s12, 1 }
  0x6b   : > { %s11286_s20 = smul.u32 1088, %s611_s17  ;;  %s10316_s21 = sshll.u32 %s11908_s11, 3 }
  0x6c   : > { %s20177_s12 = smov (!%p655_p10, %s11912_s12), 1  ;;  %p664_p11 = scmp.lt.s32.totalorder %s10316_s21, 15 }
  0x6d   : > { %s11287_s23 = smul.u32 792, %s20177_s12  ;;  %s10317_s24 = sshll.u32 %s20177_s12, 4 }
  0x6e   : > { %s20179_s21 = smov (!%p664_p11, %s10316_s21), 15  ;;  %s12331_s30 = scalar_lea.vmem [#allocation3], %s11286_s20 }
  0x6f   : > { %s12324_s27 = scalar_lea.vmem %s18886_s0, %s11287_s23  ;;  %s667_s28 = sadd.s32 %s10317_s24, %s20179_s21 }
  0x70   : > { %s10318_s29 = sshll.u32 %s667_s28, 3  ;;  %p10319_p12 = scmp.ne.s32.totalorder %s11908_s11, 0 }
  0x71   : > { %s12329_s1 = scalar_lea.vmem %s18895_s9, %s10318_s29 }
  0x72   : > { %675 = sbr.rel (%p10319_p12) target bundleno = 736 (0x2e0), region = 83 }
  0x77   : > { %v11347_v8 = vld [vmem:[%s12324_s27 + $0xac] ss:$12 sps:$4 sm:$0xff]   ;;  %v11351_v10 = vld [vmem:[%s12324_s27 + $0xa8] ss:$12 sps:$4 sm:$0xff]   ;;  %v11357_v14 = vld [vmem:[%s12324_s27 + $0x90] ss:$12 sps:$4 sm:$0xff]  }
  0x78   : > { %v11349_v9 = vld [vmem:[%s12324_s27 + $0x22c] ss:$12 sps:$4 sm:$0xff]   ;;  %1881 = vmatprep.subr.bf16.mxu0 %v11347_v8  ;;  %v11352_v11 = vld [vmem:[%s12324_s27 + $0x228] ss:$12 sps:$4 sm:$0xff]   ;;  %v11358_v15 = vld [vmem:[%s12324_s27 + $0x210] ss:$12 sps:$4 sm:$0xff]  }
  0x79   : > { %2074 = vmatprep.subr.bf16.mxu1 %v11349_v9  ;;  %v11353_v12 = vld [vmem:[%s12324_s27 + $0x94] ss:$12 sps:$4 sm:$0xff]   ;;  %1882 = vmatpush1.bf16.msra.mxu0 %v11351_v10  ;;  %v11359_v16 = vld [vmem:[%s12324_s27 + $0x7c] ss:$12 sps:$4 sm:$0xff]   ;;  %v11363_v18 = vld [vmem:[%s12324_s27 + $0x78] ss:$12 sps:$4 sm:$0xff]  }
  0x7a   : > { %2075 = vmatpush1.bf16.msra.mxu1 %v11352_v11  ;;  %v11355_v13 = vld [vmem:[%s12324_s27 + $0x214] ss:$12 sps:$4 sm:$0xff]   ;;  %1883 = vmatprep.subr.bf16.mxu0 %v11353_v12  ;;  %v11361_v17 = vld [vmem:[%s12324_s27 + $0x1fc] ss:$12 sps:$4 sm:$0xff]   ;;  %v11364_v19 = vld [vmem:[%s12324_s27 + $0x1f8] ss:$12 sps:$4 sm:$0xff]  }
  0x7b   : > { %2076 = vmatprep.subr.bf16.mxu1 %v11355_v13  ;;  %v11365_v20 = vld [vmem:[%s12324_s27 + $0x64] ss:$12 sps:$4 sm:$0xff]   ;;  %v11369_v22 = vld [vmem:[%s12324_s27 + $0x60] ss:$12 sps:$4 sm:$0xff]   ;;  %v11375_v26 = vld [vmem:[%s12324_s27 + $0x48] ss:$12 sps:$4 sm:$0xff]  }
  0x7c   : > { %v11367_v21 = vld [vmem:[%s12324_s27 + $0x1e4] ss:$12 sps:$4 sm:$0xff]   ;;  %v11370_v23 = vld [vmem:[%s12324_s27 + $0x1e0] ss:$12 sps:$4 sm:$0xff]   ;;  %v11376_v27 = vld [vmem:[%s12324_s27 + $0x1c8] ss:$12 sps:$4 sm:$0xff]  }
  0x7d   : > { %1884 = vmatpush1.bf16.msra.mxu0 %v11357_v14  ;;  %v11371_v24 = vld [vmem:[%s12324_s27 + $0x4c] ss:$12 sps:$4 sm:$0xff]   ;;  %v11377_v28 = vld [vmem:[%s12324_s27 + $0x34] ss:$12 sps:$4 sm:$0xff]   ;;  %v11381_v30 = vld [vmem:[%s12324_s27 + $0x30] ss:$12 sps:$4 sm:$0xff]  }
  0x7e   : > { %2077 = vmatpush1.bf16.msra.mxu1 %v11358_v15  ;;  %1885 = vmatprep.subr.bf16.mxu0 %v11359_v16  ;;  %v11373_v25 = vld [vmem:[%s12324_s27 + $0x1cc] ss:$12 sps:$4 sm:$0xff]   ;;  %v11379_v29 = vld [vmem:[%s12324_s27 + $0x1b4] ss:$12 sps:$4 sm:$0xff]   ;;  %v11382_v31 = vld [vmem:[%s12324_s27 + $0x1b0] ss:$12 sps:$4 sm:$0xff]  }
  0x7f   : > { %2078 = vmatprep.subr.bf16.mxu1 %v11361_v17  ;;  %v11383_v32 = vld [vmem:[%s12324_s27 + $0x1c] ss:$12 sps:$4 sm:$0xff]   ;;  %v11387_v34 = vld [vmem:[%s12324_s27 + $0x18] ss:$12 sps:$4 sm:$0xff]   ;;  %v11393_v38 = vld [vmem:[%s12324_s27] ss:$12 sps:$4 sm:$0xff]  }
  0x80   : > { %v11385_v33 = vld [vmem:[%s12324_s27 + $0x19c] ss:$12 sps:$4 sm:$0xff]   ;;  %v11388_v35 = vld [vmem:[%s12324_s27 + $0x198] ss:$12 sps:$4 sm:$0xff]   ;;  %v11394_v39 = vld [vmem:[%s12324_s27 + $0x180] ss:$12 sps:$4 sm:$0xff]  }
  0x81   : > { %1886 = vmatpush1.bf16.msra.mxu0 %v11363_v18  ;;  %v11389_v36 = vld [vmem:[%s12324_s27 + $0x4] ss:$12 sps:$4 sm:$0xff]   ;;  %v11395_v40 = vld [vmem:[%s12324_s27 + $0x16c] ss:$12 sps:$4 sm:$0xff]   ;;  %v11399_v42 = vld [vmem:[%s12324_s27 + $0x168] ss:$12 sps:$4 sm:$0xff]  }
  0x82   : > { %2079 = vmatpush1.bf16.msra.mxu1 %v11364_v19  ;;  %1887 = vmatprep.subr.bf16.mxu0 %v11365_v20  ;;  %v11391_v37 = vld [vmem:[%s12324_s27 + $0x184] ss:$12 sps:$4 sm:$0xff]   ;;  %v11397_v41 = vld [vmem:[%s12324_s27 + $0x2ec] ss:$12 sps:$4 sm:$0xff]   ;;  %v11400_v43 = vld [vmem:[%s12324_s27 + $0x2e8] ss:$12 sps:$4 sm:$0xff]  }
  0x83   : > { %2080 = vmatprep.subr.bf16.mxu1 %v11367_v21  ;;  %v11401_v44 = vld [vmem:[%s12324_s27 + $0x154] ss:$12 sps:$4 sm:$0xff]   ;;  %v11405_v46 = vld [vmem:[%s12324_s27 + $0x150] ss:$12 sps:$4 sm:$0xff]   ;;  %v11411_v50 = vld [vmem:[%s12324_s27 + $0x138] ss:$12 sps:$4 sm:$0xff]  }
  0x84   : > { %v11403_v45 = vld [vmem:[%s12324_s27 + $0x2d4] ss:$12 sps:$4 sm:$0xff]   ;;  %v11406_v47 = vld [vmem:[%s12324_s27 + $0x2d0] ss:$12 sps:$4 sm:$0xff]   ;;  %v11412_v51 = vld [vmem:[%s12324_s27 + $0x2b8] ss:$12 sps:$4 sm:$0xff]  }
  0x85   : > { %1888 = vmatpush1.bf16.msra.mxu0 %v11369_v22  ;;  %v11407_v48 = vld [vmem:[%s12324_s27 + $0x13c] ss:$12 sps:$4 sm:$0xff]   ;;  %v11413_v52 = vld [vmem:[%s12324_s27 + $0x124] ss:$12 sps:$4 sm:$0xff]   ;;  %v11417_v54 = vld [vmem:[%s12324_s27 + $0x120] ss:$12 sps:$4 sm:$0xff]  }
  0x86   : > { %2081 = vmatpush1.bf16.msra.mxu1 %v11370_v23  ;;  %1889 = vmatprep.subr.bf16.mxu0 %v11371_v24  ;;  %v11409_v49 = vld [vmem:[%s12324_s27 + $0x2bc] ss:$12 sps:$4 sm:$0xff]   ;;  %v11415_v53 = vld [vmem:[%s12324_s27 + $0x2a4] ss:$12 sps:$4 sm:$0xff]   ;;  %v11418_v55 = vld [vmem:[%s12324_s27 + $0x2a0] ss:$12 sps:$4 sm:$0xff]  }
  0x87   : > { %2082 = vmatprep.subr.bf16.mxu1 %v11373_v25  ;;  %v11419_v56 = vld [vmem:[%s12324_s27 + $0x10c] ss:$12 sps:$4 sm:$0xff]   ;;  %v11423_v60 = vld [vmem:[%s12324_s27 + $0x108] ss:$12 sps:$4 sm:$0xff]   ;;  %v11429_v0 = vld [vmem:[%s12324_s27 + $0xf0] ss:$12 sps:$4 sm:$0xff]  }
  0x88   : > { %v12386_v57 = vld [vmem:[%s18888_s2 + $0x4] ss:$20 sps:$4 sm:$0xff]   ;;  %v12392_v59 = vld [vmem:[%s18888_s2 + $0xc] ss:$20 sps:$4 sm:$0xff]   ;;  %v11424_v61 = vld [vmem:[%s12324_s27 + $0x288] ss:$12 sps:$4 sm:$0xff]  }
  0x89   : > { %1890 = vmatpush1.bf16.msra.mxu0 %v11375_v26  ;;  %v11421_v58 = vld [vmem:[%s12324_s27 + $0x28c] ss:$12 sps:$4 sm:$0xff]   ;;  %1913 = vmatprep.mubr.bf16.mxu0 %v12386_v57  ;;  %v11425_v62 = vld [vmem:[%s12324_s27 + $0xf4] ss:$12 sps:$4 sm:$0xff]   ;;  %v11430_v1 = vld [vmem:[%s12324_s27 + $0x270] ss:$12 sps:$4 sm:$0xff]  }
  0x8a   : > { %2083 = vmatpush1.bf16.msra.mxu1 %v11376_v27  ;;  %1891 = vmatprep.subr.bf16.mxu0 %v11377_v28  ;;  %v11427_v63 = vld [vmem:[%s12324_s27 + $0x274] ss:$12 sps:$4 sm:$0xff]   ;;  %v11431_v2 = vld [vmem:[%s12324_s27 + $0xdc] ss:$12 sps:$4 sm:$0xff]   ;;  %v11435_v4 = vld [vmem:[%s12324_s27 + $0xd8] ss:$12 sps:$4 sm:$0xff]  }
  0x8b   : > { %2084 = vmatprep.subr.bf16.mxu1 %v11379_v29  ;;  %2106 = vmatprep.mubr.bf16.mxu1 %v12392_v59  ;;  %v11433_v3 = vld [vmem:[%s12324_s27 + $0x25c] ss:$12 sps:$4 sm:$0xff]   ;;  %v11436_v5 = vld [vmem:[%s12324_s27 + $0x258] ss:$12 sps:$4 sm:$0xff]   ;;  %v11441_v8 = vld [vmem:[%s12324_s27 + $0xc0] ss:$12 sps:$4 sm:$0xff]  }
  0x8c   : > { %v11437_v6 = vld [vmem:[%s12324_s27 + $0xc4] ss:$12 sps:$4 sm:$0xff]   ;;  %v11442_v9 = vld [vmem:[%s12324_s27 + $0x240] ss:$12 sps:$4 sm:$0xff]   ;;  %v12419_v12 = vld [vmem:[%s18888_s2 + $0x8] ss:$20 sps:$4 sm:$0xff]  }
  0x8d   : > { %1892 = vmatpush1.bf16.msra.mxu0 %v11381_v30  ;;  %v11439_v7 = vld [vmem:[%s12324_s27 + $0x244] ss:$12 sps:$4 sm:$0xff]   ;;  %v12414_v11 = vld [vmem:[%s18888_s2] ss:$20 sps:$4 sm:$0xff]   ;;  %v12439_v16 = vld [vmem:[%s18888_s2 + $0x28] ss:$20 sps:$4 sm:$0xff]  }
  0x8e   : > { %2085 = vmatpush1.bf16.msra.mxu1 %v11382_v31  ;;  %1893 = vmatprep.subr.bf16.mxu0 %v11383_v32  ;;  %v11451_v10 = vld [vmem:[%s12324_s27 + $0x304] ss:$12 sps:$4 sm:$0xff]   ;;  %v11449_v13 = vld [vmem:[%s12324_s27 + $0x300] ss:$12 sps:$4 sm:$0xff]   ;;  %v12430_v15 = vld [vmem:[%s18888_s2 + $0x34] ss:$20 sps:$4 sm:$0xff]  }
  0x8f   : > { %2086 = vmatprep.subr.bf16.mxu1 %v11385_v33  ;;  %v12425_v14 = vld [vmem:[%s18888_s2 + $0x2c] ss:$20 sps:$4 sm:$0xff]   ;;  %v12444_v17 = vld [vmem:[%s18888_s2 + $0x30] ss:$20 sps:$4 sm:$0xff]   ;;  %v12449_v18 = vld [vmem:[%s18888_s2 + $0x54] ss:$20 sps:$4 sm:$0xff]  }
  0x90   : > { %v12454_v19 = vld [vmem:[%s18888_s2 + $0x5c] ss:$20 sps:$4 sm:$0xff]   ;;  %v12468_v21 = vld [vmem:[%s18888_s2 + $0x58] ss:$20 sps:$4 sm:$0xff]   ;;  %v12492_v25 = vld [vmem:[%s18888_s2 + $0x80] ss:$20 sps:$4 sm:$0xff]  }
  0x91   : > { %1894 = vmatpush1.bf16.msra.mxu0 %v11387_v34  ;;  %v12463_v20 = vld [vmem:[%s18888_s2 + $0x50] ss:$20 sps:$4 sm:$0xff]   ;;  %v12487_v24 = vld [vmem:[%s18888_s2 + $0x78] ss:$20 sps:$4 sm:$0xff]   ;;  %v12513_v30 = vld [vmem:[%s18888_s2 + $0xa0] ss:$20 sps:$4 sm:$0xff]  }
  0x92   : > { %2087 = vmatpush1.bf16.msra.mxu1 %v11388_v35  ;;  %1895 = vmatprep.subr.bf16.mxu0 %v11389_v36  ;;  %v12473_v22 = vld [vmem:[%s18888_s2 + $0x7c] ss:$20 sps:$4 sm:$0xff]   ;;  %v12478_v23 = vld [vmem:[%s18888_s2 + $0x84] ss:$20 sps:$4 sm:$0xff]   ;;  %v12502_v27 = vld [vmem:[%s18888_s2 + $0xac] ss:$20 sps:$4 sm:$0xff]  }
  0x93   : > { %2088 = vmatprep.subr.bf16.mxu1 %v11391_v37  ;;  %v12497_v26 = vld [vmem:[%s18888_s2 + $0xa4] ss:$20 sps:$4 sm:$0xff]   ;;  %v11544_v28 = vld [vmem:[%s12324_s27 + $0x170] ss:$12 sps:$4 sm:$0xff]   ;;  %v12523_v32 = vld [vmem:[%s18888_s2 + $0xcc] ss:$20 sps:$4 sm:$0xff]  }
  0x94   : > { %v11545_v29 = vld [vmem:[%s12324_s27 + $0x2f0] ss:$12 sps:$4 sm:$0xff]   ;;  %v12528_v33 = vld [vmem:[%s18888_s2 + $0xd4] ss:$20 sps:$4 sm:$0xff]   ;;  %vm1832_vm0 = vcmask 130048   ;;  %vm3264_vm1 = vcmask 125952  }
  0x95   : > { %1896 = vmatpush1.bf16.msra.mxu0 %v11393_v38  ;;  %v12518_v31 = vld [vmem:[%s18888_s2 + $0xa8] ss:$20 sps:$4 sm:$0xff]   ;;  %v12542_v35 = vld [vmem:[%s18888_s2 + $0xd0] ss:$20 sps:$4 sm:$0xff]  }
  0x96   : > { %2089 = vmatpush1.bf16.msra.mxu1 %v11394_v39  ;;  %1897 = vmatprep.subr.bf16.mxu0 %v11395_v40  ;;  %v12537_v34 = vld [vmem:[%s18888_s2 + $0xc8] ss:$20 sps:$4 sm:$0xff]   ;;  %v12561_v38 = vld [vmem:[%s18888_s2 + $0xf0] ss:$20 sps:$4 sm:$0xff]   ;;  %v12566_v39 = vld [vmem:[%s18888_s2 + $0xf8] ss:$20 sps:$4 sm:$0xff]  }
  0x97   : > { %2090 = vmatprep.subr.bf16.mxu1 %v11397_v41  ;;  %v12547_v36 = vld [vmem:[%s18888_s2 + $0xf4] ss:$20 sps:$4 sm:$0xff]   ;;  %v12552_v37 = vld [vmem:[%s18888_s2 + $0xfc] ss:$20 sps:$4 sm:$0xff]   ;;  %v12576_v41 = vld [vmem:[%s18888_s2 + $0x124] ss:$20 sps:$4 sm:$0xff]  }
  0x98   : > { %v12571_v40 = vld [vmem:[%s18888_s2 + $0x11c] ss:$20 sps:$4 sm:$0xff]  }
  0x99   : > { %1898 = vmatpush2.bf16.msra.mxu0 %v11399_v42  ;;  %v12585_v42 = vld [vmem:[%s18888_s2 + $0x118] ss:$20 sps:$4 sm:$0xff]  }
  0x9a   : > { %2091 = vmatpush2.bf16.msra.mxu1 %v11400_v43  ;;  %1899 = vmatprep.subr.bf16.mxu0 %v11401_v44  ;;  %v12590_v43 = vld [vmem:[%s18888_s2 + $0x120] ss:$20 sps:$4 sm:$0xff]   ;;  %v12595_v44 = vld [vmem:[%s18888_s2 + $0x144] ss:$20 sps:$4 sm:$0xff]  }
  0x9b   : > { %2092 = vmatprep.subr.bf16.mxu1 %v11403_v45  ;;  %v12600_v45 = vld [vmem:[%s18888_s2 + $0x14c] ss:$20 sps:$4 sm:$0xff]  }
  0x9d   : > { %1900 = vmatpush2.bf16.msra.mxu0 %v11405_v46  ;;  %v12609_v46 = vld [vmem:[%s18888_s2 + $0x140] ss:$20 sps:$4 sm:$0xff]  }
  0x9e   : > { %2093 = vmatpush2.bf16.msra.mxu1 %v11406_v47  ;;  %1901 = vmatprep.subr.bf16.mxu0 %v11407_v48  ;;  %v12614_v47 = vld [vmem:[%s18888_s2 + $0x148] ss:$20 sps:$4 sm:$0xff]   ;;  %v12619_v48 = vld [vmem:[%s18888_s2 + $0x16c] ss:$20 sps:$4 sm:$0xff]  }
  0x9f   : > { %2094 = vmatprep.subr.bf16.mxu1 %v11409_v49  ;;  %v12624_v49 = vld [vmem:[%s18888_s2 + $0x174] ss:$20 sps:$4 sm:$0xff]  }
  0xa0   : > { %19178 = vst [vmem:[#allocation5_spill] sm:$0xff] %v12624_v49 }
  0xa1   : > { %1902 = vmatpush2.bf16.msra.mxu0 %v11411_v50  ;;  %v12633_v50 = vld [vmem:[%s18888_s2 + $0x168] ss:$20 sps:$4 sm:$0xff]  }
  0xa2   : > { %2095 = vmatpush2.bf16.msra.mxu1 %v11412_v51  ;;  %1903 = vmatprep.subr.bf16.mxu0 %v11413_v52  ;;  %v12638_v51 = vld [vmem:[%s18888_s2 + $0x170] ss:$20 sps:$4 sm:$0xff]   ;;  %v12643_v52 = vld [vmem:[%s18888_s2 + $0x194] ss:$20 sps:$4 sm:$0xff]  }
  0xa3   : > { %2096 = vmatprep.subr.bf16.mxu1 %v11415_v53  ;;  %19179 = vst [vmem:[#allocation6_spill] sm:$0xff] %v12638_v51  ;;  %v12648_v53 = vld [vmem:[%s18888_s2 + $0x19c] ss:$20 sps:$4 sm:$0xff]  }
  0xa4   : > { %19180 = vst [vmem:[#allocation7_spill] sm:$0xff] %v12648_v53 }
  0xa5   : > { %1904 = vmatpush2.bf16.msra.mxu0 %v11417_v54  ;;  %v12657_v54 = vld [vmem:[%s18888_s2 + $0x190] ss:$20 sps:$4 sm:$0xff]  }
  0xa6   : > { %2097 = vmatpush2.bf16.msra.mxu1 %v11418_v55  ;;  %1905 = vmatprep.subr.bf16.mxu0 %v11419_v56  ;;  %v12662_v55 = vld [vmem:[%s18888_s2 + $0x198] ss:$20 sps:$4 sm:$0xff]   ;;  %v12667_v56 = vld [vmem:[%s18888_s2 + $0x1bc] ss:$20 sps:$4 sm:$0xff]  }
  0xa7   : > { %2098 = vmatprep.subr.bf16.mxu1 %v11421_v58  ;;  %19181 = vst [vmem:[#allocation8_spill] sm:$0xff] %v12662_v55  ;;  %v12672_v58 = vld [vmem:[%s18888_s2 + $0x1c4] ss:$20 sps:$4 sm:$0xff]  }
  0xa8   : > { %19182 = vst [vmem:[#allocation9_spill] sm:$0xff] %v12672_v58 }
  0xa9   : > { %1906 = vmatpush2.bf16.msra.mxu0 %v11423_v60  ;;  %v12681_v60 = vld [vmem:[%s18888_s2 + $0x1b8] ss:$20 sps:$4 sm:$0xff]  }
  0xaa   : > { %2099 = vmatpush2.bf16.msra.mxu1 %v11424_v61  ;;  %1907 = vmatprep.subr.bf16.mxu0 %v11425_v62  ;;  %v12686_v61 = vld [vmem:[%s18888_s2 + $0x1c0] ss:$20 sps:$4 sm:$0xff]   ;;  %v12691_v62 = vld [vmem:[%s18888_s2 + $0x1e4] ss:$20 sps:$4 sm:$0xff]  }
  0xab   : > { %2100 = vmatprep.subr.bf16.mxu1 %v11427_v63  ;;  %19183 = vst [vmem:[#allocation10_spill] sm:$0xff] %v12686_v61  ;;  %v12696_v63 = vld [vmem:[%s18888_s2 + $0x1ec] ss:$20 sps:$4 sm:$0xff]  }
  0xac   : > { %19184 = vst [vmem:[#allocation11_spill] sm:$0xff] %v12696_v63 }
  0xad   : > { %1908 = vmatpush2.bf16.msra.mxu0 %v11429_v0  ;;  %v12705_v0 = vld [vmem:[%s18888_s2 + $0x1e0] ss:$20 sps:$4 sm:$0xff]  }
  0xae   : > { %2101 = vmatpush2.bf16.msra.mxu1 %v11430_v1  ;;  %1909 = vmatprep.subr.bf16.mxu0 %v11431_v2  ;;  %v12710_v1 = vld [vmem:[%s18888_s2 + $0x1e8] ss:$20 sps:$4 sm:$0xff]   ;;  %v12715_v2 = vld [vmem:[%s18888_s2 + $0x20c] ss:$20 sps:$4 sm:$0xff]  }
  0xaf   : > { %2102 = vmatprep.subr.bf16.mxu1 %v11433_v3  ;;  %19185 = vst [vmem:[#allocation12_spill] sm:$0xff] %v12710_v1  ;;  %v12720_v3 = vld [vmem:[%s18888_s2 + $0x214] ss:$20 sps:$4 sm:$0xff]  }
  0xb0   : > { %19186 = vst [vmem:[#allocation13_spill] sm:$0xff] %v12720_v3 }
  0xb1   : > { %1910 = vmatpush2.bf16.msra.mxu0 %v11435_v4  ;;  %v12729_v4 = vld [vmem:[%s18888_s2 + $0x208] ss:$20 sps:$4 sm:$0xff]  }
  0xb2   : > { %2103 = vmatpush2.bf16.msra.mxu1 %v11436_v5  ;;  %1911 = vmatprep.subr.bf16.mxu0 %v11437_v6  ;;  %v12734_v5 = vld [vmem:[%s18888_s2 + $0x210] ss:$20 sps:$4 sm:$0xff]   ;;  %v12739_v6 = vld [vmem:[%s18888_s2 + $0x234] ss:$20 sps:$4 sm:$0xff]  }
  0xb3   : > { %2104 = vmatprep.subr.bf16.mxu1 %v11439_v7  ;;  %19187 = vst [vmem:[#allocation14_spill] sm:$0xff] %v12734_v5  ;;  %v12744_v7 = vld [vmem:[%s18888_s2 + $0x23c] ss:$20 sps:$4 sm:$0xff]  }
  0xb4   : > { %19188 = vst [vmem:[#allocation15_spill] sm:$0xff] %v12744_v7 }
  0xb5   : > { %1912 = vmatpush2.bf16.msra.mxu0 %v11441_v8  ;;  %v12753_v8 = vld [vmem:[%s18888_s2 + $0x230] ss:$20 sps:$4 sm:$0xff]  }
  0xb6   : > { %2105 = vmatpush2.bf16.msra.mxu1 %v11442_v9  ;;  %2281 = vmatprep.subr.bf16.mxu0 %v11451_v10  ;;  %v12758_v9 = vld [vmem:[%s18888_s2 + $0x238] ss:$20 sps:$4 sm:$0xff]  }
  0xb7   : > { %11282 = vmatprep.subr.bf16.mxu1 %v11451_v10  ;;  %19189 = vst [vmem:[#allocation16_spill] sm:$0xff] %v12758_v9  ;;  %v12763_v10 = vld [vmem:[%s18888_s2 + $0x25c] ss:$20 sps:$4 sm:$0xff]  }
  0xb8   : > { %1914 = vmatmul.mubr.bf16.vlgmr.msra.gmra.mxu0 %v12414_v11 }
  0xb9   : > { %2107 = vmatmul.mubr.bf16.vlgmr.msra.gmra.mxu1 %v12419_v12  ;;  %2282 = vmatpush1.bf16.msra.mxu0 %v11449_v13 }
  0xba   : > { %11283 = vmatpush1.bf16.msra.mxu1 %v11449_v13  ;;  %1923 = vmatprep.mubr.bf16.mxu0 %v12425_v14  ;;  %v12768_v13 = vld [vmem:[%s18888_s2 + $0x264] ss:$20 sps:$4 sm:$0xff]  }
  0xbb   : > { %2116 = vmatprep.mubr.bf16.mxu1 %v12430_v15  ;;  %11007 = vmatprep.subr.bf16.mxu1 %v11544_v28  ;;  %19190 = vst [vmem:[#allocation17_spill] sm:$0xff] %v12768_v13  ;;  %v12777_v28 = vld [vmem:[%s18888_s2 + $0x258] ss:$20 sps:$4 sm:$0xff]  }
  0xbc   : > { %11119 = vmatprep.subr.bf16.mxu0 %v11545_v29  ;;  %v12782_v29 = vld [vmem:[%s18888_s2 + $0x260] ss:$20 sps:$4 sm:$0xff]  }
  0xbd   : > { %19191 = vst [vmem:[#allocation18_spill] sm:$0xff] %v12782_v29 }
  0xc0   : > { %1924 = vmatmul.mubr.bf16.gmra.mxu0 %v12439_v16 }
  0xc1   : > { %2117 = vmatmul.mubr.bf16.gmra.mxu1 %v12444_v17  ;;  %1933 = vmatprep.mubr.bf16.mxu0 %v12449_v18 }
  0xc2   : > { %2126 = vmatprep.mubr.bf16.mxu1 %v12454_v19 }
  0xc8   : > { %1934 = vmatmul.mubr.bf16.gmra.mxu0 %v12463_v20 }
  0xc9   : > { %2127 = vmatmul.mubr.bf16.gmra.mxu1 %v12468_v21  ;;  %1943 = vmatprep.mubr.bf16.mxu0 %v12473_v22 }
  0xca   : > { %2136 = vmatprep.mubr.bf16.mxu1 %v12478_v23 }
  0xd0   : > { %1944 = vmatmul.mubr.bf16.gmra.mxu0 %v12487_v24 }
  0xd1   : > { %2137 = vmatmul.mubr.bf16.gmra.mxu1 %v12492_v25  ;;  %1953 = vmatprep.mubr.bf16.mxu0 %v12497_v26 }
  0xd2   : > { %2146 = vmatprep.mubr.bf16.mxu1 %v12502_v27 }
  0xd8   : > { %1954 = vmatmul.mubr.bf16.gmra.mxu0 %v12513_v30 }
  0xd9   : > { %2147 = vmatmul.mubr.bf16.gmra.mxu1 %v12518_v31  ;;  %1963 = vmatprep.mubr.bf16.mxu0 %v12523_v32 }
  0xda   : > { %2156 = vmatprep.mubr.bf16.mxu1 %v12528_v33 }
  0xe0   : > { %1964 = vmatmul.mubr.bf16.gmra.mxu0 %v12537_v34 }
  0xe1   : > { %2157 = vmatmul.mubr.bf16.gmra.mxu1 %v12542_v35  ;;  %1973 = vmatprep.mubr.bf16.mxu0 %v12547_v36 }
  0xe2   : > { %2166 = vmatprep.mubr.bf16.mxu1 %v12552_v37 }
  0xe8   : > { %1974 = vmatmul.mubr.bf16.gmra.mxu0 %v12561_v38 }
  0xe9   : > { %2167 = vmatmul.mubr.bf16.gmra.mxu1 %v12566_v39  ;;  %1983 = vmatprep.mubr.bf16.mxu0 %v12571_v40 }
  0xea   : > { %2176 = vmatprep.mubr.bf16.mxu1 %v12576_v41 }
  0xf0   : > { %1984 = vmatmul.mubr.bf16.gmra.mxu0 %v12585_v42 }
  0xf1   : > { %2177 = vmatmul.mubr.bf16.gmra.mxu1 %v12590_v43  ;;  %1993 = vmatprep.mubr.bf16.mxu0 %v12595_v44 }
  0xf2   : > { %2186 = vmatprep.mubr.bf16.mxu1 %v12600_v45 }
  0xf8   : > { %1994 = vmatmul.mubr.bf16.gmra.mxu0 %v12609_v46 }
  0xf9   : > { %2187 = vmatmul.mubr.bf16.gmra.mxu1 %v12614_v47  ;;  %2003 = vmatprep.mubr.bf16.mxu0 %v12619_v48 }
  0xfa   : > { %2196 = vmatprep.mubr.bf16.mxu1 %v12624_v49  ;;  %v11563_v49 = vld [vmem:[%s12324_s27 + $0x38] ss:$12 sps:$4 sm:$0xff]  }
 0x100   : > { %2004 = vmatmul.mubr.bf16.gmra.mxu0 %v12633_v50 }
 0x101   : > { %2197 = vmatmul.mubr.bf16.gmra.mxu1 %v12638_v51  ;;  %2013 = vmatprep.mubr.bf16.mxu0 %v12643_v52  ;;  %v11556_v51 = vld [vmem:[%s12324_s27 + $0x68] ss:$12 sps:$4 sm:$0xff]  }
 0x102   : > { %2206 = vmatprep.mubr.bf16.mxu1 %v12648_v53  ;;  %v11569_v53 = vld [vmem:[%s12324_s27 + $0x200] ss:$12 sps:$4 sm:$0xff]  }
 0x108   : > { %2014 = vmatmul.mubr.bf16.gmra.mxu0 %v12657_v54 }
 0x109   : > { %2207 = vmatmul.mubr.bf16.gmra.mxu1 %v12662_v55  ;;  %2023 = vmatprep.mubr.bf16.mxu0 %v12667_v56  ;;  %v11567_v55 = vld [vmem:[%s12324_s27 + $0x2c0] ss:$12 sps:$4 sm:$0xff]  }
 0x10a   : > { %2216 = vmatprep.mubr.bf16.mxu1 %v12672_v58  ;;  %v11552_v58 = vld [vmem:[%s12324_s27 + $0x140] ss:$12 sps:$4 sm:$0xff]  }
 0x110   : > { %2024 = vmatmul.mubr.bf16.gmra.mxu0 %v12681_v60 }
 0x111   : > { %2217 = vmatmul.mubr.bf16.gmra.mxu1 %v12686_v61  ;;  %2033 = vmatprep.mubr.bf16.mxu0 %v12691_v62  ;;  %v19193_v61 = vmov 0  }
 0x112   : > { %2226 = vmatprep.mubr.bf16.mxu1 %v12696_v63  ;;  %v11557_v63 = vld [vmem:[%s12324_s27 + $0x218] ss:$12 sps:$4 sm:$0xff]  }
 0x118   : > { %2034 = vmatmul.mubr.bf16.gmra.mxu0 %v12705_v0 }
 0x119   : > { %2227 = vmatmul.mubr.bf16.gmra.mxu1 %v12710_v1  ;;  %2043 = vmatprep.mubr.bf16.mxu0 %v12715_v2  ;;  %v11555_v1 = vld [vmem:[%s12324_s27 + $0x2d8] ss:$12 sps:$4 sm:$0xff]  }
 0x11a   : > { %2236 = vmatprep.mubr.bf16.mxu1 %v12720_v3  ;;  %v11548_v3 = vld [vmem:[%s12324_s27 + $0x158] ss:$12 sps:$4 sm:$0xff]  }
 0x120   : > { %2044 = vmatmul.mubr.bf16.gmra.mxu0 %v12729_v4 }
 0x121   : > { %2237 = vmatmul.mubr.bf16.gmra.mxu1 %v12734_v5  ;;  %2053 = vmatprep.mubr.bf16.mxu0 %v12739_v6  ;;  %v11547_v5 = vld [vmem:[%s12324_s27 + $0x230] ss:$12 sps:$4 sm:$0xff]  }
 0x122   : > { %2246 = vmatprep.mubr.bf16.mxu1 %v12744_v7  ;;  %v12796_v7 = vld [vmem:[%s18888_s2 + $0x1f0] ss:$20 sps:$4 sm:$0xff]  }
 0x123   : > { %19192 = vst [vmem:[#allocation19_spill] sm:$0xff] %v12796_v7 }
 0x128   : > { %2054 = vmatmul.mubr.bf16.gmra.mxu0 %v12753_v8 }
 0x129   : > { %2247 = vmatmul.mubr.bf16.gmra.mxu1 %v12758_v9  ;;  %2063 = vmatprep.mubr.bf16.mxu0 %v12763_v10  ;;  %v18904_v9 = vmov 0  }
 0x12a   : > { %2256 = vmatprep.mubr.bf16.mxu1 %v12768_v13  ;;  %v12791_v13 = vld [vmem:[%s18888_s2 + $0x10] ss:$20 sps:$4 sm:$0xff]  }
 0x130   : > { %2064 = vmatmul.mubr.bf16.gmra.mxu0 %v12777_v28 }
 0x131   : > { %2257 = vmatmul.mubr.bf16.gmra.mxu1 %v12782_v29  ;;  %2299 = vmatprep.mubr.bf16.mxu0 %v18904_v9  ;;  %v11546_v29 = vld [vmem:[%s12324_s27 + $0xb0] ss:$12 sps:$4 sm:$0xff]  }
 0x132   : > { %2419 = vmatprep.mubr.bf16.mxu1 %v18904_v9  ;;  %v11549_v9 = vld [vmem:[%s12324_s27 + $0x98] ss:$12 sps:$4 sm:$0xff]  }
 0x138   : > { %10499 = vmatmul.mubr.msk.bf16.vlgmr.msra.gmra.mxu0 %vm1832_vm0, %v12791_v13 }
 0x139   : > { %10511 = vmatmul.mubr.msk.bf16.vlgmr.msra.gmra.mxu1 %vm1832_vm0, %v12796_v7  ;;  %11120 = vmatpush3.bf16.msra.mxu0 %v11547_v5  ;;  %v12815_v7 = vld [vmem:[%s18888_s2 + $0x38] ss:$20 sps:$4 sm:$0xff]  }
 0x13a   : > { %11008 = vmatpush3.bf16.msra.mxu1 %v11546_v29  ;;  %2309 = vmatprep.mubr.bf16.mxu0 %v19193_v61  ;;  %v12820_v5 = vld [vmem:[%s18888_s2 + $0x218] ss:$20 sps:$4 sm:$0xff]   ;;  %v11554_v29 = vld [vmem:[%s12324_s27 + $0x128] ss:$12 sps:$4 sm:$0xff]  }
 0x13b   : > { %11009 = vmatprep.subr.bf16.mxu1 %v11548_v3  ;;  %2429 = vmatprep.mubr.bf16.mxu1 %v19193_v61  ;;  %19194 = vst [vmem:[#allocation20_spill] sm:$0xff] %v12820_v5  ;;  %v11553_v3 = vld [vmem:[%s12324_s27 + $0x80] ss:$12 sps:$4 sm:$0xff]  }
 0x13c   : > { %11121 = vmatprep.subr.bf16.mxu0 %v11555_v1  ;;  %v11573_v1 = vld [vmem:[%s12324_s27 + $0x2a8] ss:$12 sps:$4 sm:$0xff]  }
 0x13d   : > { %11122 = vmatpush3.bf16.msra.mxu0 %v11557_v63  ;;  %v12838_v63 = vld [vmem:[%s18888_s2 + $0x60] ss:$20 sps:$4 sm:$0xff]  }
 0x13e   : > { %11010 = vmatpush3.bf16.msra.mxu1 %v11549_v9  ;;  %11123 = vmatprep.subr.bf16.mxu0 %v11567_v55  ;;  %v11560_v55 = vld [vmem:[%s12324_s27 + $0x110] ss:$12 sps:$4 sm:$0xff]   ;;  %19195 = vst [vmem:[#allocation21_spill] sm:$0xff] %v12838_v63  ;;  %v12843_v9 = vld [vmem:[%s18888_s2 + $0x240] ss:$20 sps:$4 sm:$0xff]  }
 0x13f   : > { %11011 = vmatprep.subr.bf16.mxu1 %v11552_v58  ;;  %v11575_v58 = vld [vmem:[%s12324_s27 + $0x1e8] ss:$12 sps:$4 sm:$0xff]   ;;  %19196 = vst [vmem:[#allocation22_spill] sm:$0xff] %v12843_v9 }
 0x140   : > { %10500 = vmatmul.mubr.msk.bf16.gmra.mxu0 %vm1832_vm0, %v12815_v7 }
 0x141   : > { %10512 = vmatmul.mubr.msk.bf16.gmra.mxu1 %vm1832_vm0, %v12820_v5  ;;  %2319 = vmatprep.mubr.bf16.mxu0 %v19193_v61  ;;  %v11579_v5 = vld [vmem:[%s12324_s27 + $0x1d0] ss:$12 sps:$4 sm:$0xff]  }
 0x142   : > { %11012 = vmatpush3.bf16.msra.mxu1 %v11553_v3  ;;  %2439 = vmatprep.mubr.bf16.mxu1 %v19193_v61  ;;  %v11561_v3 = vld [vmem:[%s12324_s27 + $0x50] ss:$12 sps:$4 sm:$0xff]  }
 0x143   : > { %11013 = vmatprep.subr.bf16.mxu1 %v11554_v29  ;;  %11124 = vmatpush3.bf16.msra.mxu0 %v11569_v53  ;;  %v11562_v29 = vld [vmem:[%s12324_s27 + $0xf8] ss:$12 sps:$4 sm:$0xff]   ;;  %v11578_v53 = vld [vmem:[%s12324_s27 + $0x290] ss:$12 sps:$4 sm:$0xff]  }
 0x144   : > { %11125 = vmatprep.subr.bf16.mxu0 %v11573_v1  ;;  %v11566_v1 = vld [vmem:[%s12324_s27 + $0xe0] ss:$12 sps:$4 sm:$0xff]  }
 0x146   : > { %11014 = vmatpush3.bf16.msra.mxu1 %v11556_v51  ;;  %v11581_v51 = vld [vmem:[%s12324_s27 + $0x278] ss:$12 sps:$4 sm:$0xff]  }
 0x147   : > { %11015 = vmatprep.subr.bf16.mxu1 %v11560_v55  ;;  %11126 = vmatpush3.bf16.msra.mxu0 %v11575_v58  ;;  %v12861_v55 = vld [vmem:[%s18888_s2 + $0x88] ss:$20 sps:$4 sm:$0xff]  }
 0x148   : > { %10501 = vmatmul.mubr.msk.bf16.gmra.mxu0 %vm1832_vm0, %v12838_v63  ;;  %11127 = vmatprep.subr.bf16.mxu0 %v11578_v53  ;;  %v12866_v58 = vld [vmem:[%s18888_s2 + $0x268] ss:$20 sps:$4 sm:$0xff]   ;;  %v11585_v53 = vld [vmem:[%s12324_s27 + $0x260] ss:$12 sps:$4 sm:$0xff]  }
 0x149   : > { %10513 = vmatmul.mubr.msk.bf16.gmra.mxu1 %vm1832_vm0, %v12843_v9  ;;  %2329 = vmatprep.mubr.bf16.mxu0 %v19193_v61  ;;  %19197 = vst [vmem:[#allocation23_spill] sm:$0xff] %v12866_v58  ;;  %v11582_v9 = vld [vmem:[%s12324_s27 + $0x1b8] ss:$12 sps:$4 sm:$0xff]   ;;  %v11571_v63 = vld [vmem:[%s12324_s27 + $0x8] ss:$12 sps:$4 sm:$0xff]  }
 0x14a   : > { %11016 = vmatpush3.bf16.msra.mxu1 %v11561_v3  ;;  %2449 = vmatprep.mubr.bf16.mxu1 %v19193_v61  ;;  %v11568_v3 = vld [vmem:[%s12324_s27 + $0x20] ss:$12 sps:$4 sm:$0xff]  }
 0x14b   : > { %11017 = vmatprep.subr.bf16.mxu1 %v11562_v29  ;;  %11128 = vmatpush3.bf16.msra.mxu0 %v11579_v5  ;;  %v11570_v29 = vld [vmem:[%s12324_s27 + $0xc8] ss:$12 sps:$4 sm:$0xff]   ;;  %v11586_v5 = vld [vmem:[%s12324_s27 + $0x1a0] ss:$12 sps:$4 sm:$0xff]  }
 0x14c   : > { %11129 = vmatprep.subr.bf16.mxu0 %v11581_v51  ;;  %v12884_v51 = vld [vmem:[%s18888_s2 + $0xb0] ss:$20 sps:$4 sm:$0xff]  }
 0x14e   : > { %11018 = vmatpush3.bf16.msra.mxu1 %v11563_v49  ;;  %v11574_v49 = vld [vmem:[%s12324_s27 + $0x308] ss:$12 sps:$4 sm:$0xff]  }
 0x14f   : > { %11019 = vmatprep.subr.bf16.mxu1 %v11566_v1  ;;  %11130 = vmatpush3.bf16.msra.mxu0 %v11582_v9  ;;  %v11588_v1 = vld [vmem:[%s12324_s27 + $0x248] ss:$12 sps:$4 sm:$0xff]  }
 0x150   : > { %10502 = vmatmul.mubr.msk.bf16.gmra.mxu0 %vm1832_vm0, %v12861_v55  ;;  %11131 = vmatprep.subr.bf16.mxu0 %v11585_v53  ;;  %v12940_v53 = vld [vmem:[%s18888_s2 + $0x178] ss:$20 sps:$4 sm:$0xff]  }
 0x151   : > { %10514 = vmatmul.mubr.msk.bf16.gmra.mxu1 %vm1832_vm0, %v12866_v58  ;;  %2339 = vmatprep.mubr.bf16.mxu0 %v19193_v61 }
 0x152   : > { %11020 = vmatpush3.bf16.msra.mxu1 %v11568_v3  ;;  %2492 = vmatprep.mubr.bf16.mxu1 %v12386_v57  ;;  %v11589_v3 = vld [vmem:[%s12324_s27 + $0x188] ss:$12 sps:$4 sm:$0xff]   ;;  %v12896_v57 = vld [vmem:[%s18888_s2 + $0xd8] ss:$20 sps:$4 sm:$0xff]  }
 0x153   : > { %11021 = vmatprep.subr.bf16.mxu1 %v11570_v29  ;;  %11132 = vmatpush3.bf16.msra.mxu0 %v11586_v5 }
 0x154   : > { %11133 = vmatprep.subr.bf16.mxu0 %v11588_v1 }
 0x156   : > { %11022 = vmatpush3.bf16.msra.mxu1 %v11571_v63 }
 0x157   : > { %11248 = vmatprep.subr.bf16.mxu1 %v11574_v49  ;;  %11134 = vmatpush3.bf16.msra.mxu0 %v11589_v3 }
 0x158   : > { %10503 = vmatmul.mubr.msk.bf16.gmra.mxu0 %vm1832_vm0, %v12884_v51 }
 0x159   : > { %2493 = vmatmul.mubr.bf16.vlgmr.msra.gmra.mxu1 %v12414_v11  ;;  %2349 = vmatprep.mubr.bf16.mxu0 %v19193_v61  ;;  %v12906_v11 = vld [vmem:[%s18888_s2 + $0x100] ss:$20 sps:$4 sm:$0xff]  }
 0x15a   : > { %11249 = vmatpush3.bf16.msra.mxu1 %v11574_v49  ;;  %2500 = vmatprep.mubr.bf16.mxu1 %v12425_v14  ;;  %v12916_v14 = vld [vmem:[%s18888_s2 + $0x128] ss:$20 sps:$4 sm:$0xff]  }
 0x160   : > { %10504 = vmatmul.mubr.msk.bf16.gmra.mxu0 %vm1832_vm0, %v12896_v57 }
 0x161   : > { %2501 = vmatmul.mubr.bf16.gmra.mxu1 %v12439_v16  ;;  %2359 = vmatprep.mubr.bf16.mxu0 %v19193_v61  ;;  %v12926_v16 = vld [vmem:[%s18888_s2 + $0x150] ss:$20 sps:$4 sm:$0xff]  }
 0x162   : > { %2508 = vmatprep.mubr.bf16.mxu1 %v12449_v18 }
 0x168   : > { %10505 = vmatmul.mubr.msk.bf16.gmra.mxu0 %vm1832_vm0, %v12906_v11 }
 0x169   : > { %2509 = vmatmul.mubr.bf16.gmra.mxu1 %v12463_v20  ;;  %2369 = vmatprep.mubr.bf16.mxu0 %v19193_v61 }
 0x16a   : > { %2516 = vmatprep.mubr.bf16.mxu1 %v12473_v22 }
 0x170   : > { %10506 = vmatmul.mubr.msk.bf16.gmra.mxu0 %vm1832_vm0, %v12916_v14 }
 0x171   : > { %2517 = vmatmul.mubr.bf16.gmra.mxu1 %v12487_v24  ;;  %2379 = vmatprep.mubr.bf16.mxu0 %v19193_v61 }
 0x172   : > { %2524 = vmatprep.mubr.bf16.mxu1 %v12497_v26 }
 0x178   : > { %v1915_v18 = vpop.f32.mrf.mxu0  ;;  %10507 = vmatmul.mubr.msk.bf16.gmra.mxu0 %vm1832_vm0, %v12926_v16 }
 0x179   : > { %v2108_v20 = vpop.f32.mrf.mxu1  ;;  %2525 = vmatmul.mubr.bf16.gmra.mxu1 %v12513_v30  ;;  %2389 = vmatprep.mubr.bf16.mxu0 %v19193_v61 }
 0x17a   : > { %v12931_v22 = vadd.f32 %v2108_v20, %v1915_v18  ;;  %2532 = vmatprep.mubr.bf16.mxu1 %v12523_v32  ;;  %v1917_v24 = vpop.f32.mrf.mxu0 }
 0x17b   : > { %v2110_v26 = vpop.f32.mrf.mxu1 }
 0x17c   : > { %v12935_v63 = vadd.f32 %v2110_v26, %v1917_v24  ;;  %v1919_v9 = vpop.f32.mrf.mxu0 }
 0x17d   : > { %v2112_v29 = vpop.f32.mrf.mxu1 }
 0x17e   : > { %v12942_v49 = vadd.f32 %v2112_v29, %v1919_v9  ;;  %v1921_v30 = vpop.f32.mrf.mxu0 }
 0x17f   : > { %v2114_v5 = vpop.f32.mrf.mxu1 }
 0x180   : > { %v12944_v1 = vadd.f32 %v2114_v5, %v1921_v30  ;;  %v1925_v3 = vpop.f32.mrf.mxu0  ;;  %10508 = vmatmul.mubr.msk.bf16.gmra.mxu0 %vm1832_vm0, %v12940_v53  ;;  %v12958_v30 = vld [vmem:[%s18888_s2 + $0x1a0] ss:$20 sps:$4 sm:$0xff]  }
 0x181   : > { %v2118_v18 = vpop.f32.mrf.mxu1  ;;  %2533 = vmatmul.mubr.bf16.gmra.mxu1 %v12537_v34  ;;  %2399 = vmatprep.mubr.bf16.mxu0 %v19193_v61 }
 0x182   : > { %v12949_v32 = vadd.f32 %v2118_v18, %v1925_v3  ;;  %2540 = vmatprep.mubr.bf16.mxu1 %v12547_v36  ;;  %v1927_v20 = vpop.f32.mrf.mxu0 }
 0x183   : > { %v2120_v24 = vpop.f32.mrf.mxu1 }
 0x184   : > { %19198 = vst [vmem:[#allocation24_spill] sm:$0xff] %v12949_v32  ;;  %v12953_v26 = vadd.f32 %v2120_v24, %v1927_v20  ;;  %v1929_v9 = vpop.f32.mrf.mxu0 }
 0x185   : > { %v2122_v29 = vpop.f32.mrf.mxu1 }
 0x186   : > { %v12960_v5 = vadd.f32 %v2122_v29, %v1929_v9  ;;  %v1931_v34 = vpop.f32.mrf.mxu0 }
 0x187   : > { %v2124_v3 = vpop.f32.mrf.mxu1 }
 0x188   : > { %19199 = vst [vmem:[#allocation25_spill] sm:$0xff] %v12960_v5  ;;  %v12962_v18 = vadd.f32 %v2124_v3, %v1931_v34  ;;  %v1935_v58 = vpop.f32.mrf.mxu0  ;;  %10509 = vmatmul.mubr.msk.bf16.gmra.mxu0 %vm1832_vm0, %v12958_v30  ;;  %v12976_v3 = vld [vmem:[%s18888_s2 + $0x1c8] ss:$20 sps:$4 sm:$0xff]  }
 0x189   : > { %v2128_v32 = vpop.f32.mrf.mxu1  ;;  %2541 = vmatmul.mubr.bf16.gmra.mxu1 %v12561_v38  ;;  %2409 = vmatprep.mubr.bf16.mxu0 %v19193_v61 }
 0x18a   : > { %19200 = vst [vmem:[#allocation26_spill] sm:$0xff] %v12962_v18  ;;  %v12967_v36 = vadd.f32 %v2128_v32, %v1935_v58  ;;  %2548 = vmatprep.mubr.bf16.mxu1 %v12571_v40  ;;  %v1937_v20 = vpop.f32.mrf.mxu0 }
 0x18b   : > { %v2130_v24 = vpop.f32.mrf.mxu1 }
 0x18c   : > { %19201 = vst [vmem:[#allocation27_spill] sm:$0xff] %v12967_v36  ;;  %v12971_v9 = vadd.f32 %v2130_v24, %v1937_v20  ;;  %v1939_v29 = vpop.f32.mrf.mxu0 }
 0x18d   : > { %v2132_v34 = vpop.f32.mrf.mxu1 }
 0x18e   : > { %19202 = vst [vmem:[#allocation28_spill] sm:$0xff] %v12971_v9  ;;  %v12978_v18 = vadd.f32 %v2132_v34, %v1939_v29  ;;  %v1941_v38 = vpop.f32.mrf.mxu0 }
 0x18f   : > { %v2134_v58 = vpop.f32.mrf.mxu1 }
 0x190   : > { %19203 = vst [vmem:[#allocation29_spill] sm:$0xff] %v12978_v18  ;;  %v12980_v32 = vadd.f32 %v2134_v58, %v1941_v38  ;;  %v1945_v61 = vpop.f32.mrf.mxu0  ;;  %10510 = vmatmul.mubr.msk.bf16.gmra.mxu0 %vm1832_vm0, %v12976_v3 }
 0x191   : > { %v2138_v36 = vpop.f32.mrf.mxu1  ;;  %2549 = vmatmul.mubr.bf16.gmra.mxu1 %v12585_v42  ;;  %2653 = vmatprep.mubr.bf16.mxu0 %v12392_v59 }
 0x192   : > { %19204 = vst [vmem:[#allocation30_spill] sm:$0xff] %v12980_v32  ;;  %v12985_v40 = vadd.f32 %v2138_v36, %v1945_v61  ;;  %2556 = vmatprep.mubr.bf16.mxu1 %v12595_v44  ;;  %v1947_v20 = vpop.f32.mrf.mxu0 }
 0x193   : > { %v2140_v24 = vpop.f32.mrf.mxu1 }
 0x194   : > { %v12989_v29 = vadd.f32 %v2140_v24, %v1947_v20  ;;  %v1949_v34 = vpop.f32.mrf.mxu0 }
 0x195   : > { %v2142_v38 = vpop.f32.mrf.mxu1 }
 0x196   : > { %v12991_v58 = vadd.f32 %v2142_v38, %v1949_v34  ;;  %v1951_v32 = vpop.f32.mrf.mxu0 }
 0x197   : > { %v2144_v18 = vpop.f32.mrf.mxu1 }
 0x198   : > { %v12993_v9 = vadd.f32 %v2144_v18, %v1951_v32  ;;  %v1955_v5 = vpop.f32.mrf.mxu0  ;;  %2654 = vmatmul.mubr.bf16.vlgmr.msra.gmra.mxu0 %v12419_v12 }
 0x199   : > { %v2148_v42 = vpop.f32.mrf.mxu1  ;;  %2557 = vmatmul.mubr.bf16.gmra.mxu1 %v12609_v46  ;;  %2661 = vmatprep.mubr.bf16.mxu0 %v12430_v15 }
 0x19a   : > { %v12997_v44 = vadd.f32 %v2148_v42, %v1955_v5  ;;  %2564 = vmatprep.mubr.bf16.mxu1 %v12619_v48  ;;  %v1957_v59 = vpop.f32.mrf.mxu0 }
 0x19b   : > { %v2150_v36 = vpop.f32.mrf.mxu1 }
 0x19c   : > { %v13001_v61 = vadd.f32 %v2150_v36, %v1957_v59  ;;  %v1959_v20 = vpop.f32.mrf.mxu0 }
 0x19d   : > { %v2152_v24 = vpop.f32.mrf.mxu1 }
 0x19e   : > { %v13003_v18 = vadd.f32 %v2152_v24, %v1959_v20  ;;  %v1961_v32 = vpop.f32.mrf.mxu0 }
 0x19f   : > { %v2154_v34 = vpop.f32.mrf.mxu1 }
 0x1a0   : > { %v13005_v38 = vadd.f32 %v2154_v34, %v1961_v32  ;;  %v1965_v46 = vpop.f32.mrf.mxu0  ;;  %2662 = vmatmul.mubr.bf16.gmra.mxu0 %v12444_v17 }
 0x1a1   : > { %v2158_v12 = vpop.f32.mrf.mxu1  ;;  %2565 = vmatmul.mubr.bf16.gmra.mxu1 %v12633_v50  ;;  %2669 = vmatprep.mubr.bf16.mxu0 %v12454_v19 }
 0x1a2   : > { %v13009_v48 = vadd.f32 %v2158_v12, %v1965_v46  ;;  %2572 = vmatprep.mubr.bf16.mxu1 %v12643_v52  ;;  %v1967_v15 = vpop.f32.mrf.mxu0 }
 0x1a3   : > { %v2160_v5 = vpop.f32.mrf.mxu1 }
 0x1a4   : > { %v13013_v42 = vadd.f32 %v2160_v5, %v1967_v15  ;;  %v1969_v59 = vpop.f32.mrf.mxu0 }
 0x1a5   : > { %v2162_v36 = vpop.f32.mrf.mxu1 }
 0x1a6   : > { %19205 = vst [vmem:[#allocation31_spill] sm:$0xff] %v13013_v42  ;;  %v13015_v20 = vadd.f32 %v2162_v36, %v1969_v59  ;;  %v1971_v24 = vpop.f32.mrf.mxu0 }
 0x1a7   : > { %v2164_v32 = vpop.f32.mrf.mxu1 }
 0x1a8   : > { %19206 = vst [vmem:[#allocation32_spill] sm:$0xff] %v13015_v20  ;;  %v13017_v34 = vadd.f32 %v2164_v32, %v1971_v24  ;;  %v1975_v50 = vpop.f32.mrf.mxu0  ;;  %2670 = vmatmul.mubr.bf16.gmra.mxu0 %v12468_v21 }
 0x1a9   : > { %v2168_v17 = vpop.f32.mrf.mxu1  ;;  %2573 = vmatmul.mubr.bf16.gmra.mxu1 %v12657_v54  ;;  %2677 = vmatprep.mubr.bf16.mxu0 %v12478_v23 }
 0x1aa   : > { %19207 = vst [vmem:[#allocation33_spill] sm:$0xff] %v13017_v34  ;;  %v13021_v52 = vadd.f32 %v2168_v17, %v1975_v50  ;;  %2580 = vmatprep.mubr.bf16.mxu1 %v12667_v56  ;;  %v1977_v19 = vpop.f32.mrf.mxu0 }
 0x1ab   : > { %v2170_v46 = vpop.f32.mrf.mxu1 }
 0x1ac   : > { %19208 = vst [vmem:[#allocation34_spill] sm:$0xff] %v13021_v52  ;;  %v13025_v12 = vadd.f32 %v2170_v46, %v1977_v19  ;;  %v1979_v15 = vpop.f32.mrf.mxu0 }
 0x1ad   : > { %v2172_v5 = vpop.f32.mrf.mxu1 }
 0x1ae   : > { %19209 = vst [vmem:[#allocation35_spill] sm:$0xff] %v13025_v12  ;;  %v13027_v59 = vadd.f32 %v2172_v5, %v1979_v15  ;;  %v1981_v36 = vpop.f32.mrf.mxu0 }
 0x1af   : > { %v2174_v24 = vpop.f32.mrf.mxu1 }
 0x1b0   : > { %19210 = vst [vmem:[#allocation36_spill] sm:$0xff] %v13027_v59  ;;  %v13029_v32 = vadd.f32 %v2174_v24, %v1981_v36  ;;  %v1985_v54 = vpop.f32.mrf.mxu0  ;;  %2678 = vmatmul.mubr.bf16.gmra.mxu0 %v12492_v25 }
 0x1b1   : > { %v2178_v21 = vpop.f32.mrf.mxu1  ;;  %2581 = vmatmul.mubr.bf16.gmra.mxu1 %v12681_v60  ;;  %2685 = vmatprep.mubr.bf16.mxu0 %v12502_v27 }
 0x1b2   : > { %19211 = vst [vmem:[#allocation37_spill] sm:$0xff] %v13029_v32  ;;  %v13033_v56 = vadd.f32 %v2178_v21, %v1985_v54  ;;  %2588 = vmatprep.mubr.bf16.mxu1 %v12691_v62  ;;  %v1987_v23 = vpop.f32.mrf.mxu0 }
 0x1b3   : > { %v2180_v50 = vpop.f32.mrf.mxu1 }
 0x1b4   : > { %19212 = vst [vmem:[#allocation38_spill] sm:$0xff] %v13033_v56  ;;  %v13037_v17 = vadd.f32 %v2180_v50, %v1987_v23  ;;  %v1989_v19 = vpop.f32.mrf.mxu0 }
 0x1b5   : > { %v2182_v46 = vpop.f32.mrf.mxu1 }
 0x1b6   : > { %19213 = vst [vmem:[#allocation39_spill] sm:$0xff] %v13037_v17  ;;  %v13039_v15 = vadd.f32 %v2182_v46, %v1989_v19  ;;  %v1991_v5 = vpop.f32.mrf.mxu0 }
 0x1b7   : > { %v2184_v36 = vpop.f32.mrf.mxu1 }
 0x1b8   : > { %19214 = vst [vmem:[#allocation40_spill] sm:$0xff] %v13039_v15  ;;  %v13041_v24 = vadd.f32 %v2184_v36, %v1991_v5  ;;  %v1995_v60 = vpop.f32.mrf.mxu0  ;;  %2686 = vmatmul.mubr.bf16.gmra.mxu0 %v12518_v31  ;;  %v19241_v15 = vld [vmem:[#allocation13_spill] sm:$0xff] }
 0x1b9   : > { %v2188_v25 = vpop.f32.mrf.mxu1  ;;  %2589 = vmatmul.mubr.bf16.gmra.mxu1 %v12705_v0  ;;  %2693 = vmatprep.mubr.bf16.mxu0 %v12528_v33 }
 0x1ba   : > { %19215 = vst [vmem:[#allocation41_spill] sm:$0xff] %v13041_v24  ;;  %v13045_v62 = vadd.f32 %v2188_v25, %v1995_v60  ;;  %2596 = vmatprep.mubr.bf16.mxu1 %v12715_v2  ;;  %v1997_v27 = vpop.f32.mrf.mxu0 }
 0x1bb   : > { %v2190_v54 = vpop.f32.mrf.mxu1 }
 0x1bc   : > { %19216 = vst [vmem:[#allocation42_spill] sm:$0xff] %v13045_v62  ;;  %v13049_v21 = vadd.f32 %v2190_v54, %v1997_v27  ;;  %v1999_v23 = vpop.f32.mrf.mxu0 }
 0x1bd   : > { %v2192_v50 = vpop.f32.mrf.mxu1 }
 0x1be   : > { %19217 = vst [vmem:[#allocation43_spill] sm:$0xff] %v13049_v21  ;;  %v13051_v19 = vadd.f32 %v2192_v50, %v1999_v23  ;;  %v2001_v46 = vpop.f32.mrf.mxu0 }
 0x1bf   : > { %v2194_v5 = vpop.f32.mrf.mxu1 }
 0x1c0   : > { %19218 = vst [vmem:[#allocation44_spill] sm:$0xff] %v13051_v19  ;;  %v13053_v36 = vadd.f32 %v2194_v5, %v2001_v46  ;;  %v2005_v0 = vpop.f32.mrf.mxu0  ;;  %2694 = vmatmul.mubr.bf16.gmra.mxu0 %v12542_v35 }
 0x1c1   : > { %v2198_v31 = vpop.f32.mrf.mxu1  ;;  %2597 = vmatmul.mubr.bf16.gmra.mxu1 %v12729_v4  ;;  %2701 = vmatprep.mubr.bf16.mxu0 %v12552_v37 }
 0x1c2   : > { %19219 = vst [vmem:[#allocation45_spill] sm:$0xff] %v13053_v36  ;;  %v13057_v2 = vadd.f32 %v2198_v31, %v2005_v0  ;;  %2604 = vmatprep.mubr.bf16.mxu1 %v12739_v6  ;;  %v2007_v33 = vpop.f32.mrf.mxu0 }
 0x1c3   : > { %v2200_v60 = vpop.f32.mrf.mxu1 }
 0x1c4   : > { %19220 = vst [vmem:[#allocation46_spill] sm:$0xff] %v13057_v2  ;;  %v13061_v25 = vadd.f32 %v2200_v60, %v2007_v33  ;;  %v2009_v27 = vpop.f32.mrf.mxu0 }
 0x1c5   : > { %v2202_v54 = vpop.f32.mrf.mxu1 }
 0x1c6   : > { %19221 = vst [vmem:[#allocation47_spill] sm:$0xff] %v13061_v25  ;;  %v13063_v23 = vadd.f32 %v2202_v54, %v2009_v27  ;;  %v2011_v50 = vpop.f32.mrf.mxu0 }
 0x1c7   : > { %v2204_v46 = vpop.f32.mrf.mxu1 }
 0x1c8   : > { %19222 = vst [vmem:[#allocation48_spill] sm:$0xff] %v13063_v23  ;;  %v13065_v5 = vadd.f32 %v2204_v46, %v2011_v50  ;;  %v2015_v4 = vpop.f32.mrf.mxu0  ;;  %2702 = vmatmul.mubr.bf16.gmra.mxu0 %v12566_v39 }
 0x1c9   : > { %v2208_v35 = vpop.f32.mrf.mxu1  ;;  %2605 = vmatmul.mubr.bf16.gmra.mxu1 %v12753_v8  ;;  %2709 = vmatprep.mubr.bf16.mxu0 %v12576_v41 }
 0x1ca   : > { %19223 = vst [vmem:[#allocation49_spill] sm:$0xff] %v13065_v5  ;;  %v13069_v6 = vadd.f32 %v2208_v35, %v2015_v4  ;;  %2612 = vmatprep.mubr.bf16.mxu1 %v12763_v10  ;;  %v2017_v37 = vpop.f32.mrf.mxu0 }
 0x1cb   : > { %v2210_v0 = vpop.f32.mrf.mxu1 }
 0x1cc   : > { %19224 = vst [vmem:[#allocation50_spill] sm:$0xff] %v13069_v6  ;;  %v13073_v31 = vadd.f32 %v2210_v0, %v2017_v37  ;;  %v2019_v33 = vpop.f32.mrf.mxu0 }
 0x1cd   : > { %v2212_v60 = vpop.f32.mrf.mxu1 }
 0x1ce   : > { %19225 = vst [vmem:[#allocation51_spill] sm:$0xff] %v13073_v31  ;;  %v13075_v27 = vadd.f32 %v2212_v60, %v2019_v33  ;;  %v2021_v54 = vpop.f32.mrf.mxu0 }
 0x1cf   : > { %v2214_v50 = vpop.f32.mrf.mxu1 }
 0x1d0   : > { %19226 = vst [vmem:[#allocation52_spill] sm:$0xff] %v13075_v27  ;;  %v13077_v46 = vadd.f32 %v2214_v50, %v2021_v54  ;;  %v2025_v8 = vpop.f32.mrf.mxu0  ;;  %2710 = vmatmul.mubr.bf16.gmra.mxu0 %v12590_v43 }
 0x1d1   : > { %v2218_v39 = vpop.f32.mrf.mxu1  ;;  %2613 = vmatmul.mubr.bf16.gmra.mxu1 %v12777_v28  ;;  %2717 = vmatprep.mubr.bf16.mxu0 %v12600_v45  ;;  %v19232_v45 = vld [vmem:[#allocation5_spill] sm:$0xff] }
 0x1d2   : > { %19227 = vst [vmem:[#allocation53_spill] sm:$0xff] %v13077_v46  ;;  %v13081_v10 = vadd.f32 %v2218_v39, %v2025_v8  ;;  %11250 = vmatprep.mubr.msk.bf16.mxu1 %vm1832_vm0, %v12791_v13  ;;  %v2027_v41 = vpop.f32.mrf.mxu0  ;;  %v19233_v13 = vld [vmem:[#allocation21_spill] sm:$0xff] }
 0x1d3   : > { %v2220_v4 = vpop.f32.mrf.mxu1 }
 0x1d4   : > { %19228 = vst [vmem:[#allocation54_spill] sm:$0xff] %v13081_v10  ;;  %v13086_v35 = vadd.f32 %v2220_v4, %v2027_v41  ;;  %v2029_v37 = vpop.f32.mrf.mxu0 }
 0x1d5   : > { %v2222_v0 = vpop.f32.mrf.mxu1 }
 0x1d6   : > { %19229 = vst [vmem:[#allocation55_spill] sm:$0xff] %v13086_v35  ;;  %v13088_v33 = vadd.f32 %v2222_v0, %v2029_v37  ;;  %v2031_v60 = vpop.f32.mrf.mxu0 }
 0x1d7   : > { %v2224_v54 = vpop.f32.mrf.mxu1 }
 0x1d8   : > { %19230 = vst [vmem:[#allocation56_spill] sm:$0xff] %v13088_v33  ;;  %v13090_v28 = vadd.f32 %v2224_v54, %v2031_v60  ;;  %v2035_v43 = vpop.f32.mrf.mxu0  ;;  %2718 = vmatmul.mubr.bf16.gmra.mxu0 %v12614_v47  ;;  %v19235_v47 = vld [vmem:[#allocation7_spill] sm:$0xff] }
 0x1d9   : > { %v2228_v50 = vpop.f32.mrf.mxu1  ;;  %11251 = vmatmul.mubr.msk.bf16.vlgmr.msra.gmra.mxu1 %vm1832_vm0, %v12815_v7  ;;  %2725 = vmatprep.mubr.bf16.mxu0 %v19232_v45 }
 0x1da   : > { %19231 = vst [vmem:[#allocation57_spill] sm:$0xff] %v13090_v28  ;;  %11254 = vmatprep.mubr.msk.bf16.mxu1 %vm1832_vm0, %v19233_v13  ;;  %v2037_v8 = vpop.f32.mrf.mxu0  ;;  %v19234_v28 = vld [vmem:[#allocation6_spill] sm:$0xff] }
 0x1db   : > { %v2230_v39 = vpop.f32.mrf.mxu1 }
 0x1dc   : > { %v2039_v41 = vpop.f32.mrf.mxu0 }
 0x1dd   : > { %v2232_v4 = vpop.f32.mrf.mxu1 }
 0x1de   : > { %v2041_v37 = vpop.f32.mrf.mxu0  ;;  %v2233_v20 = vadd.f32 %v2232_v4, %v2039_v41 }
 0x1df   : > { %v2234_v0 = vpop.f32.mrf.mxu1 }
 0x1e0   : > { %v13098_v60 = vpop.f32.mrf.mxu0  ;;  %2726 = vmatmul.mubr.bf16.gmra.mxu0 %v19234_v28  ;;  %v2235_v42 = vadd.f32 %v2234_v0, %v2041_v37 }
 0x1e1   : > { %v13100_v54 = vpop.f32.mrf.mxu1  ;;  %11255 = vmatmul.mubr.msk.bf16.gmra.mxu1 %vm1832_vm0, %v12861_v55  ;;  %2733 = vmatprep.mubr.bf16.mxu0 %v19235_v47  ;;  %v19236_v55 = vld [vmem:[#allocation8_spill] sm:$0xff] }
 0x1e2   : > { %11258 = vmatprep.mubr.msk.bf16.mxu1 %vm1832_vm0, %v12884_v51  ;;  %v13108_v7 = vpop.f32.mrf.mxu0  ;;  %v19237_v51 = vld [vmem:[#allocation9_spill] sm:$0xff] }
 0x1e3   : > { %v2240_v45 = vpop.f32.mrf.mxu1 }
 0x1e4   : > { %v13110_v13 = vpop.f32.mrf.mxu0 }
 0x1e5   : > { %v13112_v33 = vpop.f32.mrf.mxu1 }
 0x1e6   : > { %v13114_v35 = vpop.f32.mrf.mxu0  ;;  %v2243_v0 = vadd.f32 %v13112_v33, %v13110_v13  ;;  %v19249_v33 = vld [vmem:[#allocation20_spill] sm:$0xff] }
 0x1e7   : > { %v13116_v10 = vpop.f32.mrf.mxu1 }
 0x1e8   : > { %v13118_v28 = vpop.f32.mrf.mxu0  ;;  %2734 = vmatmul.mubr.bf16.gmra.mxu0 %v19236_v55 }
 0x1e9   : > { %v13120_v46 = vpop.f32.mrf.mxu1  ;;  %11259 = vmatmul.mubr.msk.bf16.gmra.mxu1 %vm1832_vm0, %v12896_v57  ;;  %2741 = vmatprep.mubr.bf16.mxu0 %v19237_v51  ;;  %v19238_v51 = vld [vmem:[#allocation10_spill] sm:$0xff] }
 0x1ea   : > { %11262 = vmatprep.mubr.msk.bf16.mxu1 %vm1832_vm0, %v12906_v11  ;;  %v13128_v47 = vpop.f32.mrf.mxu0  ;;  %v19239_v11 = vld [vmem:[#allocation11_spill] sm:$0xff] }
 0x1eb   : > { %v13130_v27 = vpop.f32.mrf.mxu1 }
 0x1ec   : > { %v13132_v31 = vpop.f32.mrf.mxu0 }
 0x1ed   : > { %v13134_v6 = vpop.f32.mrf.mxu1 }
 0x1ee   : > { %v13136_v5 = vpop.f32.mrf.mxu0 }
 0x1ef   : > { %v13138_v23 = vpop.f32.mrf.mxu1 }
 0x1f0   : > { %v13140_v55 = vpop.f32.mrf.mxu0  ;;  %2742 = vmatmul.mubr.bf16.gmra.mxu0 %v19238_v51 }
 0x1f1   : > { %v13142_v57 = vpop.f32.mrf.mxu1  ;;  %11263 = vmatmul.mubr.msk.bf16.gmra.mxu1 %vm1832_vm0, %v12916_v14  ;;  %2749 = vmatprep.mubr.bf16.mxu0 %v19239_v11  ;;  %v19240_v14 = vld [vmem:[#allocation12_spill] sm:$0xff]  ;;  %v2231_v11 = vadd.f32 %v2230_v39, %v2037_v8 }
 0x1f2   : > { %11266 = vmatprep.mubr.msk.bf16.mxu1 %vm1832_vm0, %v12926_v16  ;;  %v13150_v25 = vpop.f32.mrf.mxu0  ;;  %v2229_v16 = vadd.f32 %v2228_v50, %v2035_v43 }
 0x1f3   : > { %v13152_v2 = vpop.f32.mrf.mxu1 }
 0x1f4   : > { %v13154_v36 = vpop.f32.mrf.mxu0 }
 0x1f5   : > { %v13156_v19 = vpop.f32.mrf.mxu1 }
 0x1f6   : > { %v13158_v21 = vpop.f32.mrf.mxu0 }
 0x1f7   : > { %v13160_v62 = vpop.f32.mrf.mxu1 }
 0x1f8   : > { %v2301_v51 = vpop.f32.mrf.mxu0  ;;  %2750 = vmatmul.mubr.bf16.gmra.mxu0 %v19240_v14 }
 0x1f9   : > { %v2421_v24 = vpop.f32.mrf.mxu1  ;;  %11267 = vmatmul.mubr.msk.bf16.gmra.mxu1 %vm1832_vm0, %v12940_v53  ;;  %2757 = vmatprep.mubr.bf16.mxu0 %v19241_v15  ;;  %v2302_v32 = vadd.f32 %v2301_v51, %v12931_v22 }
 0x1fa   : > { %11270 = vmatprep.mubr.msk.bf16.mxu1 %vm1832_vm0, %v12958_v30  ;;  %v2303_v17 = vpop.f32.mrf.mxu0  ;;  %v2422_v59 = vadd.f32 %v2421_v24, %v2229_v16 }
 0x1fb   : > { %v2423_v56 = vpop.f32.mrf.mxu1  ;;  %v2304_v12 = vadd.f32 %v2303_v17, %v12935_v63  ;;  %v19242_v63 = vld [vmem:[#allocation14_spill] sm:$0xff] }
 0x1fc   : > { %v2424_v52 = vadd.f32 %v2423_v56, %v2231_v11  ;;  %v2305_v34 = vpop.f32.mrf.mxu0  ;;  %v19243_v56 = vld [vmem:[#allocation15_spill] sm:$0xff]  ;;  %v19246_v11 = vld [vmem:[#allocation25_spill] sm:$0xff] }
 0x1fd   : > { %v2425_v14 = vpop.f32.mrf.mxu1  ;;  %v10943_v53 = vpack.c.bf16 %v2304_v12, %v2302_v32  ;;  %v2306_v30 = vadd.f32 %v2305_v34, %v12942_v49  ;;  %v2241_v12 = vadd.f32 %v2240_v45, %v13108_v7 }
 0x1fe   : > { %v10991_v43 = vpack.c.bf16 %v2424_v52, %v2422_v59  ;;  %v2307_v50 = vpop.f32.mrf.mxu0  ;;  %v2426_v15 = vadd.f32 %v2425_v14, %v2233_v20  ;;  %v2239_v52 = vadd.f32 %v13100_v54, %v13098_v60  ;;  %v2245_v60 = vadd.f32 %v13116_v10, %v13114_v35 }
 0x1ff   : > { %v2427_v8 = vpop.f32.mrf.mxu1  ;;  %3263 = vst [vmem:[#allocation2] sm:$0xff] %v10943_v53  ;;  %v2308_v39 = vadd.f32 %v2307_v50, %v12944_v1  ;;  %v19244_v1 = vld [vmem:[#allocation19_spill] sm:$0xff]  ;;  %v2249_v10 = vadd.f32 %v13120_v46, %v13118_v28  ;;  %v2251_v35 = vadd.f32 %v13130_v27, %v13128_v47  ;;  %v2253_v27 = vadd.f32 %v13134_v6, %v13132_v31 }
 0x200   : > { %3312 = vst [vmem:[#allocation2 + $0x120] sm:$0xff] %v10991_v43  ;;  %v2428_v22 = vadd.f32 %v2427_v8, %v2235_v42  ;;  %v2311_v24 = vpop.f32.mrf.mxu0  ;;  %2758 = vmatmul.mubr.bf16.gmra.mxu0 %v19242_v63  ;;  %v19245_v42 = vld [vmem:[#allocation24_spill] sm:$0xff]  ;;  %v19247_v43 = vld [vmem:[#allocation26_spill] sm:$0xff]  ;;  %v2255_v47 = vadd.f32 %v13138_v23, %v13136_v5  ;;  %v19257_v6 = vld [vmem:[#allocation23_spill] sm:$0xff]  ;;  %v2259_v23 = vadd.f32 %v13142_v57, %v13140_v55 }
 0x201   : > { %v2431_v51 = vpop.f32.mrf.mxu1  ;;  %11271 = vmatmul.mubr.msk.bf16.gmra.mxu1 %vm1832_vm0, %v12976_v3  ;;  %v10945_v59 = vpack.c.bf16 %v2308_v39, %v2306_v30  ;;  %2765 = vmatprep.mubr.bf16.mxu0 %v19243_v56  ;;  %v2312_v34 = vadd.f32 %v2311_v24, %v19245_v42  ;;  %v19251_v63 = vld [vmem:[#allocation22_spill] sm:$0xff]  ;;  %v2261_v5 = vadd.f32 %v13152_v2, %v13150_v25 }
 0x202   : > { %v10993_v32 = vpack.c.bf16 %v2428_v22, %v2426_v15  ;;  %v2313_v49 = vpop.f32.mrf.mxu0  ;;  %11274 = vmatprep.mubr.msk.bf16.mxu1 %vm1832_vm0, %v19244_v1  ;;  %v2432_v17 = vadd.f32 %v2431_v51, %v2239_v52  ;;  %v19248_v15 = vld [vmem:[#allocation16_spill] sm:$0xff]  ;;  %v19250_v22 = vld [vmem:[#allocation17_spill] sm:$0xff]  ;;  %v19252_v52 = vld [vmem:[#allocation27_spill] sm:$0xff]  ;;  %v2263_v55 = vadd.f32 %v13156_v19, %v13154_v36  ;;  %v2265_v2 = vadd.f32 %v13160_v62, %v13158_v21 }
 0x203   : > { %v2433_v20 = vpop.f32.mrf.mxu1  ;;  %3266 = vst [vmem:[#allocation2 + $0xc] sm:$0xff] %v10945_v59  ;;  %v2314_v3 = vadd.f32 %v2313_v49, %v12953_v26 }
 0x204   : > { %3314 = vst [vmem:[#allocation2 + $0x12c] sm:$0xff] %v10993_v32  ;;  %v2434_v41 = vadd.f32 %v2433_v20, %v2241_v12  ;;  %v2315_v4 = vpop.f32.mrf.mxu0  ;;  %v19253_v32 = vld [vmem:[#allocation28_spill] sm:$0xff] }
 0x205   : > { %v2435_v37 = vpop.f32.mrf.mxu1  ;;  %v10947_v54 = vpack.c.bf16 %v2314_v3, %v2312_v34  ;;  %v2316_v14 = vadd.f32 %v2315_v4, %v19246_v11  ;;  %v19255_v4 = vld [vmem:[#allocation30_spill] sm:$0xff] }
 0x206   : > { %v10995_v7 = vpack.c.bf16 %v2434_v41, %v2432_v17  ;;  %v2317_v45 = vpop.f32.mrf.mxu0  ;;  %v2436_v53 = vadd.f32 %v2435_v37, %v2243_v0  ;;  %v19254_v17 = vld [vmem:[#allocation29_spill] sm:$0xff] }
 0x207   : > { %v2437_v16 = vpop.f32.mrf.mxu1  ;;  %3268 = vst [vmem:[#allocation2 + $0x18] sm:$0xff] %v10947_v54  ;;  %v2318_v26 = vadd.f32 %v2317_v45, %v19247_v43 }
 0x208   : > { %3316 = vst [vmem:[#allocation2 + $0x138] sm:$0xff] %v10995_v7  ;;  %v2438_v50 = vadd.f32 %v2437_v16, %v2245_v60  ;;  %v2321_v8 = vpop.f32.mrf.mxu0  ;;  %2766 = vmatmul.mubr.bf16.gmra.mxu0 %v19248_v15  ;;  %v19256_v7 = vld [vmem:[#allocation18_spill] sm:$0xff] }
 0x209   : > { %v2441_v30 = vpop.f32.mrf.mxu1  ;;  %11275 = vmatmul.mubr.msk.bf16.gmra.mxu1 %vm1832_vm0, %v19249_v33  ;;  %v10949_v13 = vpack.c.bf16 %v2318_v26, %v2316_v14  ;;  %2773 = vmatprep.mubr.bf16.mxu0 %v19250_v22  ;;  %v2322_v12 = vadd.f32 %v2321_v8, %v19252_v52 }
 0x20a   : > { %v10997_v39 = vpack.c.bf16 %v2438_v50, %v2436_v53  ;;  %v2323_v24 = vpop.f32.mrf.mxu0  ;;  %11278 = vmatprep.mubr.msk.bf16.mxu1 %vm1832_vm0, %v19251_v63  ;;  %v2442_v59 = vadd.f32 %v2441_v30, %v2249_v10 }
 0x20b   : > { %v2443_v51 = vpop.f32.mrf.mxu1  ;;  %3270 = vst [vmem:[#allocation2 + $0x24] sm:$0xff] %v10949_v13  ;;  %v2324_v56 = vadd.f32 %v2323_v24, %v19253_v32 }
 0x20c   : > { %3318 = vst [vmem:[#allocation2 + $0x144] sm:$0xff] %v10997_v39  ;;  %v2444_v46 = vadd.f32 %v2443_v51, %v2251_v35  ;;  %v2325_v28 = vpop.f32.mrf.mxu0 }
 0x20d   : > { %v2445_v49 = vpop.f32.mrf.mxu1  ;;  %v10951_v20 = vpack.c.bf16 %v2324_v56, %v2322_v12  ;;  %v2326_v3 = vadd.f32 %v2325_v28, %v19254_v17 }
 0x20e   : > { %v10999_v1 = vpack.c.bf16 %v2444_v46, %v2442_v59  ;;  %v2327_v42 = vpop.f32.mrf.mxu0  ;;  %v2446_v41 = vadd.f32 %v2445_v49, %v2253_v27  ;;  %v19258_v27 = vld [vmem:[#allocation31_spill] sm:$0xff] }
 0x20f   : > { %v2447_v34 = vpop.f32.mrf.mxu1  ;;  %3272 = vst [vmem:[#allocation2 + $0x30] sm:$0xff] %v10951_v20  ;;  %v2328_v37 = vadd.f32 %v2327_v42, %v19255_v4 }
 0x210   : > { %3320 = vst [vmem:[#allocation2 + $0x150] sm:$0xff] %v10999_v1  ;;  %v2448_v0 = vadd.f32 %v2447_v34, %v2255_v47  ;;  %v2331_v60 = vpop.f32.mrf.mxu0  ;;  %2774 = vmatmul.mubr.bf16.gmra.mxu0 %v19256_v7 }
 0x211   : > { %v2451_v54 = vpop.f32.mrf.mxu1  ;;  %11279 = vmatmul.mubr.msk.bf16.gmra.mxu1 %vm1832_vm0, %v19257_v6  ;;  %v10953_v31 = vpack.c.bf16 %v2328_v37, %v2326_v3  ;;  %v2332_v14 = vadd.f32 %v2331_v60, %v12985_v40  ;;  %v19261_v6 = vld [vmem:[#allocation34_spill] sm:$0xff] }
 0x212   : > { %v11001_v45 = vpack.c.bf16 %v2448_v0, %v2446_v41  ;;  %v2333_v16 = vpop.f32.mrf.mxu0  ;;  %v2452_v53 = vadd.f32 %v2451_v54, %v2259_v23  ;;  %v19260_v41 = vld [vmem:[#allocation33_spill] sm:$0xff] }
 0x213   : > { %v2453_v11 = vpop.f32.mrf.mxu1  ;;  %3274 = vst [vmem:[#allocation2 + $0x3c] sm:$0xff] %v10953_v31  ;;  %v2334_v43 = vadd.f32 %v2333_v16, %v12989_v29 }
 0x214   : > { %3322 = vst [vmem:[#allocation2 + $0x15c] sm:$0xff] %v11001_v45  ;;  %v2454_v26 = vadd.f32 %v2453_v11, %v2261_v5  ;;  %v2335_v50 = vpop.f32.mrf.mxu0  ;;  %v19262_v5 = vld [vmem:[#allocation35_spill] sm:$0xff] }
 0x215   : > { %v2455_v8 = vpop.f32.mrf.mxu1  ;;  %v10955_v25 = vpack.c.bf16 %v2334_v43, %v2332_v14  ;;  %v2336_v40 = vadd.f32 %v2335_v50, %v12991_v58 }
 0x216   : > { %v11003_v57 = vpack.c.bf16 %v2454_v26, %v2452_v53  ;;  %v2337_v30 = vpop.f32.mrf.mxu0  ;;  %v2456_v33 = vadd.f32 %v2455_v8, %v2263_v55  ;;  %v19263_v26 = vld [vmem:[#allocation36_spill] sm:$0xff]  ;;  %v19264_v8 = vld [vmem:[#allocation37_spill] sm:$0xff] }
 0x217   : > { %v2457_v15 = vpop.f32.mrf.mxu1  ;;  %3276 = vst [vmem:[#allocation2 + $0x48] sm:$0xff] %v10955_v25  ;;  %v2338_v29 = vadd.f32 %v2337_v30, %v12993_v9 }
 0x218   : > { %3324 = vst [vmem:[#allocation2 + $0x168] sm:$0xff] %v11003_v57  ;;  %v2458_v10 = vadd.f32 %v2457_v15, %v2265_v2  ;;  %v2341_v35 = vpop.f32.mrf.mxu0 }
 0x219   : > { %v11023_v13 = vpop.f32.mrf.mxu1  ;;  %v10957_v39 = vpack.c.bf16 %v2338_v29, %v2336_v40  ;;  %v2342_v62 = vadd.f32 %v2341_v35, %v12997_v44 }
 0x21a   : > { %v11005_v22 = vpack.c.bf16 %v2458_v10, %v2456_v33  ;;  %v2343_v19 = vpop.f32.mrf.mxu0  ;;  %v19265_v33 = vld [vmem:[#allocation38_spill] sm:$0xff]  ;;  %v19266_v10 = vld [vmem:[#allocation39_spill] sm:$0xff] }
 0x21b   : > { %v11024_v36 = vpop.f32.mrf.mxu1  ;;  %3278 = vst [vmem:[#allocation2 + $0x54] sm:$0xff] %v10957_v39  ;;  %v2344_v21 = vadd.f32 %v2343_v19, %v13001_v61 }
 0x21c   : > { %3326 = vst [vmem:[#allocation2 + $0x174] sm:$0xff] %v11005_v22  ;;  %v13224_v24 = vadd.f32 %v11024_v36, %v11023_v13  ;;  %v2345_v51 = vpop.f32.mrf.mxu0 }
 0x21d   : > { %v11026_v58 = vpop.f32.mrf.mxu1  ;;  %v10959_v63 = vpack.c.bf16 %v2344_v21, %v2342_v62  ;;  %v2346_v12 = vadd.f32 %v2345_v51, %v13003_v18  ;;  %v19267_v21 = vld [vmem:[#allocation40_spill] sm:$0xff] }
 0x21e   : > { %v2347_v52 = vpop.f32.mrf.mxu0 }
 0x21f   : > { %v11027_v9 = vpop.f32.mrf.mxu1  ;;  %3280 = vst [vmem:[#allocation2 + $0x60] sm:$0xff] %v10959_v63  ;;  %v2348_v59 = vadd.f32 %v2347_v52, %v13005_v38  ;;  %v19259_v38 = vld [vmem:[#allocation32_spill] sm:$0xff] }
 0x220   : > { %v13228_v32 = vadd.f32 %v11027_v9, %v11026_v58  ;;  %v2351_v56 = vpop.f32.mrf.mxu0  ;;  %v19268_v58 = vld [vmem:[#allocation41_spill] sm:$0xff] }
 0x221   : > { %v11029_v46 = vpop.f32.mrf.mxu1  ;;  %v10961_v28 = vpack.c.bf16 %v2348_v59, %v2346_v12  ;;  %v2352_v61 = vadd.f32 %v2351_v56, %v13009_v48 }
 0x222   : > { %v2353_v44 = vpop.f32.mrf.mxu0 }
 0x223   : > { %v11030_v49 = vpop.f32.mrf.mxu1  ;;  %3282 = vst [vmem:[#allocation2 + $0x6c] sm:$0xff] %v10961_v28  ;;  %v2354_v47 = vadd.f32 %v2353_v44, %v19258_v27  ;;  %v19269_v28 = vld [vmem:[#allocation42_spill] sm:$0xff] }
 0x224   : > { %v13232_v20 = vadd.f32 %v11030_v49, %v11029_v46  ;;  %v2355_v1 = vpop.f32.mrf.mxu0  ;;  %v19270_v49 = vld [vmem:[#allocation43_spill] sm:$0xff] }
 0x225   : > { %v11032_v42 = vpop.f32.mrf.mxu1  ;;  %v10963_v34 = vpack.c.bf16 %v2354_v47, %v2352_v61  ;;  %v2356_v3 = vadd.f32 %v2355_v1, %v19259_v38 }
 0x226   : > { %v2357_v18 = vpop.f32.mrf.mxu0 }
 0x227   : > { %v11033_v17 = vpop.f32.mrf.mxu1  ;;  %3284 = vst [vmem:[#allocation2 + $0x78] sm:$0xff] %v10963_v34  ;;  %v2358_v4 = vadd.f32 %v2357_v18, %v19260_v41 }
 0x228   : > { %v13236_v37 = vadd.f32 %v11033_v17, %v11032_v42  ;;  %v2361_v0 = vpop.f32.mrf.mxu0  ;;  %v19271_v17 = vld [vmem:[#allocation44_spill] sm:$0xff] }
 0x229   : > { %v11035_v60 = vpop.f32.mrf.mxu1  ;;  %v10965_v54 = vpack.c.bf16 %v2358_v4, %v2356_v3  ;;  %v2362_v23 = vadd.f32 %v2361_v0, %v19261_v6  ;;  %v19272_v3 = vld [vmem:[#allocation45_spill] sm:$0xff]  ;;  %v19273_v6 = vld [vmem:[#allocation46_spill] sm:$0xff] }
 0x22a   : > { %v2363_v48 = vpop.f32.mrf.mxu0 }
 0x22b   : > { %v11036_v7 = vpop.f32.mrf.mxu1  ;;  %3286 = vst [vmem:[#allocation2 + $0x84] sm:$0xff] %v10965_v54  ;;  %v2364_v31 = vadd.f32 %v2363_v48, %v19262_v5  ;;  %v19274_v5 = vld [vmem:[#allocation47_spill] sm:$0xff] }
 0x22c   : > { %v13240_v45 = vadd.f32 %v11036_v7, %v11035_v60  ;;  %v2365_v16 = vpop.f32.mrf.mxu0 }
 0x22d   : > { %v11038_v11 = vpop.f32.mrf.mxu1  ;;  %v10967_v14 = vpack.c.bf16 %v2364_v31, %v2362_v23  ;;  %v2366_v50 = vadd.f32 %v2365_v16, %v19263_v26 }
 0x22e   : > { %v2367_v53 = vpop.f32.mrf.mxu0 }
 0x22f   : > { %v11039_v43 = vpop.f32.mrf.mxu1  ;;  %3288 = vst [vmem:[#allocation2 + $0x90] sm:$0xff] %v10967_v14  ;;  %v2368_v55 = vadd.f32 %v2367_v53, %v19264_v8 }
 0x230   : > { %v13244_v2 = vadd.f32 %v11039_v43, %v11038_v11  ;;  %v2371_v25 = vpop.f32.mrf.mxu0 }
 0x231   : > { %v11041_v57 = vpop.f32.mrf.mxu1  ;;  %v10969_v30 = vpack.c.bf16 %v2368_v55, %v2366_v50  ;;  %v2372_v29 = vadd.f32 %v2371_v25, %v19265_v33  ;;  %v19275_v50 = vld [vmem:[#allocation48_spill] sm:$0xff]  ;;  %v19276_v55 = vld [vmem:[#allocation49_spill] sm:$0xff] }
 0x232   : > { %v2373_v15 = vpop.f32.mrf.mxu0 }
 0x233   : > { %v11042_v40 = vpop.f32.mrf.mxu1  ;;  %3290 = vst [vmem:[#allocation2 + $0x9c] sm:$0xff] %v10969_v30  ;;  %v2374_v35 = vadd.f32 %v2373_v15, %v19266_v10  ;;  %v19277_v10 = vld [vmem:[#allocation50_spill] sm:$0xff] }
 0x234   : > { %v13248_v13 = vadd.f32 %v11042_v40, %v11041_v57  ;;  %v2375_v39 = vpop.f32.mrf.mxu0 }
 0x235   : > { %v11044_v22 = vpop.f32.mrf.mxu1  ;;  %v10971_v19 = vpack.c.bf16 %v2374_v35, %v2372_v29  ;;  %v2376_v51 = vadd.f32 %v2375_v39, %v19267_v21  ;;  %v19278_v39 = vld [vmem:[#allocation51_spill] sm:$0xff] }
 0x236   : > { %v2377_v36 = vpop.f32.mrf.mxu0 }
 0x237   : > { %v11045_v62 = vpop.f32.mrf.mxu1  ;;  %3292 = vst [vmem:[#allocation2 + $0xa8] sm:$0xff] %v10971_v19  ;;  %v2378_v63 = vadd.f32 %v2377_v36, %v19268_v58 }
 0x238   : > { %v13252_v52 = vadd.f32 %v11045_v62, %v11044_v22  ;;  %v2381_v9 = vpop.f32.mrf.mxu0 }
 0x239   : > { %v11047_v12 = vpop.f32.mrf.mxu1  ;;  %v10973_v59 = vpack.c.bf16 %v2378_v63, %v2376_v51  ;;  %v2382_v44 = vadd.f32 %v2381_v9, %v19269_v28  ;;  %v19279_v63 = vld [vmem:[#allocation52_spill] sm:$0xff] }
 0x23a   : > { %v2383_v56 = vpop.f32.mrf.mxu0 }
 0x23b   : > { %v11048_v46 = vpop.f32.mrf.mxu1  ;;  %3294 = vst [vmem:[#allocation2 + $0xb4] sm:$0xff] %v10973_v59  ;;  %v2384_v61 = vadd.f32 %v2383_v56, %v19270_v49 }
 0x23c   : > { %v13256_v27 = vadd.f32 %v11048_v46, %v11047_v12  ;;  %v2385_v47 = vpop.f32.mrf.mxu0  ;;  %v19280_v12 = vld [vmem:[#allocation53_spill] sm:$0xff] }
 0x23d   : > { %v11050_v1 = vpop.f32.mrf.mxu1  ;;  %v10975_v42 = vpack.c.bf16 %v2384_v61, %v2382_v44  ;;  %v2386_v38 = vadd.f32 %v2385_v47, %v19271_v17  ;;  %v19281_v47 = vld [vmem:[#allocation54_spill] sm:$0xff] }
 0x23e   : > { %v2387_v34 = vpop.f32.mrf.mxu0 }
 0x23f   : > { %v11051_v18 = vpop.f32.mrf.mxu1  ;;  %3296 = vst [vmem:[#allocation2 + $0xc0] sm:$0xff] %v10975_v42  ;;  %v2388_v41 = vadd.f32 %v2387_v34, %v19272_v3  ;;  %v19282_v42 = vld [vmem:[#allocation55_spill] sm:$0xff] }
 0x240   : > { %v13260_v4 = vadd.f32 %v11051_v18, %v11050_v1  ;;  %v2391_v0 = vpop.f32.mrf.mxu0 }
 0x241   : > { %v11053_v60 = vpop.f32.mrf.mxu1  ;;  %v10977_v54 = vpack.c.bf16 %v2388_v41, %v2386_v38  ;;  %v2392_v23 = vadd.f32 %v2391_v0, %v19273_v6 }
 0x242   : > { %v2393_v48 = vpop.f32.mrf.mxu0 }
 0x243   : > { %v11054_v7 = vpop.f32.mrf.mxu1  ;;  %3298 = vst [vmem:[#allocation2 + $0xcc] sm:$0xff] %v10977_v54  ;;  %v2394_v31 = vadd.f32 %v2393_v48, %v19274_v5  ;;  %v19284_v48 = vld [vmem:[#allocation57_spill] sm:$0xff] }
 0x244   : > { %v13264_v16 = vadd.f32 %v11054_v7, %v11053_v60  ;;  %v2395_v11 = vpop.f32.mrf.mxu0  ;;  %v19283_v60 = vld [vmem:[#allocation56_spill] sm:$0xff] }
 0x245   : > { %v11056_v14 = vpop.f32.mrf.mxu1  ;;  %v10979_v53 = vpack.c.bf16 %v2394_v31, %v2392_v23  ;;  %v2396_v8 = vadd.f32 %v2395_v11, %v19275_v50 }
 0x246   : > { %v2397_v43 = vpop.f32.mrf.mxu0 }
 0x247   : > { %v11057_v26 = vpop.f32.mrf.mxu1  ;;  %3300 = vst [vmem:[#allocation2 + $0xd8] sm:$0xff] %v10979_v53  ;;  %v2398_v25 = vadd.f32 %v2397_v43, %v19276_v55 }
 0x248   : > { %v13268_v57 = vadd.f32 %v11057_v26, %v11056_v14  ;;  %v2401_v30 = vpop.f32.mrf.mxu0 }
 0x249   : > { %v11059_v15 = vpop.f32.mrf.mxu1  ;;  %v10981_v40 = vpack.c.bf16 %v2398_v25, %v2396_v8  ;;  %v2402_v35 = vadd.f32 %v2401_v30, %v19277_v10 }
 0x24a   : > { %v2403_v33 = vpop.f32.mrf.mxu0 }
 0x24b   : > { %v11060_v29 = vpop.f32.mrf.mxu1  ;;  %3302 = vst [vmem:[#allocation2 + $0xe4] sm:$0xff] %v10981_v40  ;;  %v2404_v22 = vadd.f32 %v2403_v33, %v19278_v39 }
 0x24c   : > { %v13272_v19 = vadd.f32 %v11060_v29, %v11059_v15  ;;  %v2405_v36 = vpop.f32.mrf.mxu0 }
 0x24d   : > { %v11062_v62 = vpop.f32.mrf.mxu1  ;;  %v10983_v21 = vpack.c.bf16 %v2404_v22, %v2402_v35  ;;  %v2406_v9 = vadd.f32 %v2405_v36, %v19279_v63 }
 0x24e   : > { %v2407_v51 = vpop.f32.mrf.mxu0 }
 0x24f   : > { %v11063_v58 = vpop.f32.mrf.mxu1  ;;  %3304 = vst [vmem:[#allocation2 + $0xf0] sm:$0xff] %v10983_v21  ;;  %v2408_v59 = vadd.f32 %v2407_v51, %v19280_v12 }
 0x250   : > { %v13276_v56 = vadd.f32 %v11063_v58, %v11062_v62  ;;  %v2411_v46 = vpop.f32.mrf.mxu0 }
 0x251   : > { %v11065_v28 = vpop.f32.mrf.mxu1  ;;  %v10985_v44 = vpack.c.bf16 %v2408_v59, %v2406_v9  ;;  %v2412_v1 = vadd.f32 %v2411_v46, %v19281_v47 }
 0x252   : > { %v2413_v49 = vpop.f32.mrf.mxu0 }
 0x253   : > { %v11066_v61 = vpop.f32.mrf.mxu1  ;;  %3306 = vst [vmem:[#allocation2 + $0xfc] sm:$0xff] %v10985_v44  ;;  %v2414_v34 = vadd.f32 %v2413_v49, %v19282_v42 }
 0x254   : > { %v13280_v18 = vadd.f32 %v11066_v61, %v11065_v28  ;;  %v2415_v17 = vpop.f32.mrf.mxu0 }
 0x255   : > { %v11068_v38 = vpop.f32.mrf.mxu1  ;;  %v10987_v3 = vpack.c.bf16 %v2414_v34, %v2412_v1  ;;  %v2416_v54 = vadd.f32 %v2415_v17, %v19283_v60 }
 0x256   : > { %v2417_v41 = vpop.f32.mrf.mxu0 }
 0x257   : > { %v11069_v0 = vpop.f32.mrf.mxu1  ;;  %3308 = vst [vmem:[#allocation2 + $0x108] sm:$0xff] %v10987_v3  ;;  %v2418_v7 = vadd.f32 %v2417_v41, %v19284_v48 }
 0x258   : > { %v13284_v6 = vadd.f32 %v11069_v0, %v11068_v38  ;;  %v13286_v5 = vpop.f32.mrf.mxu0 }
 0x259   : > { %v11071_v23 = vpop.f32.mrf.mxu1  ;;  %v10989_v31 = vpack.c.bf16 %v2418_v7, %v2416_v54 }
 0x25a   : > { %v13288_v14 = vpop.f32.mrf.mxu0 }
 0x25b   : > { %v11072_v11 = vpop.f32.mrf.mxu1  ;;  %3310 = vst [vmem:[#allocation2 + $0x114] sm:$0xff] %v10989_v31 }
 0x25c   : > { %v13290_v53 = vadd.f32 %v11072_v11, %v11071_v23  ;;  %v13292_v26 = vpop.f32.mrf.mxu0 }
 0x25d   : > { %v11074_v43 = vpop.f32.mrf.mxu1 }
 0x25e   : > { %v13294_v8 = vpop.f32.mrf.mxu0 }
 0x25f   : > { %v11075_v50 = vpop.f32.mrf.mxu1 }
 0x260   : > { %v13296_v55 = vadd.f32 %v11075_v50, %v11074_v43  ;;  %v13298_v30 = vpop.f32.mrf.mxu0 }
 0x261   : > { %v11077_v25 = vpop.f32.mrf.mxu1 }
 0x262   : > { %v11142_v40 = vpop.f32.mrf.mxu0 }
 0x263   : > { %v11078_v15 = vpop.f32.mrf.mxu1 }
 0x264   : > { %v13300_v33 = vadd.f32 %v11078_v15, %v11077_v25  ;;  %v13302_v10 = vpop.f32.mrf.mxu0 }
 0x265   : > { %v11080_v29 = vpop.f32.mrf.mxu1 }
 0x266   : > { %v13304_v39 = vpop.f32.mrf.mxu0 }
 0x267   : > { %v11081_v35 = vpop.f32.mrf.mxu1 }
 0x268   : > { %v13306_v22 = vadd.f32 %v11081_v35, %v11080_v29  ;;  %v13308_v62 = vpop.f32.mrf.mxu0 }
 0x269   : > { %v11083_v36 = vpop.f32.mrf.mxu1 }
 0x26a   : > { %v13310_v51 = vpop.f32.mrf.mxu0 }
 0x26b   : > { %v11084_v21 = vpop.f32.mrf.mxu1 }
 0x26c   : > { %v13312_v58 = vadd.f32 %v11084_v21, %v11083_v36  ;;  %v13314_v9 = vpop.f32.mrf.mxu0 }
 0x26d   : > { %v11086_v63 = vpop.f32.mrf.mxu1 }
 0x26e   : > { %19285 = vst [vmem:[#allocation5_spill] sm:$0xff] %v13312_v58  ;;  %v13316_v59 = vpop.f32.mrf.mxu0 }
 0x26f   : > { %v11087_v12 = vpop.f32.mrf.mxu1 }
 0x270   : > { %v13318_v46 = vadd.f32 %v11087_v12, %v11086_v63  ;;  %v11153_v44 = vpop.f32.mrf.mxu0 }
 0x271   : > { %v11089_v28 = vpop.f32.mrf.mxu1 }
 0x272   : > { %19286 = vst [vmem:[#allocation21_spill] sm:$0xff] %v13318_v46  ;;  %v11154_v61 = vpop.f32.mrf.mxu0 }
 0x273   : > { %v11090_v49 = vpop.f32.mrf.mxu1 }
 0x274   : > { %v13320_v47 = vadd.f32 %v11090_v49, %v11089_v28  ;;  %v13322_v42 = vpop.f32.mrf.mxu0 }
 0x275   : > { %v11092_v1 = vpop.f32.mrf.mxu1 }
 0x276   : > { %19287 = vst [vmem:[#allocation6_spill] sm:$0xff] %v13320_v47  ;;  %v13324_v17 = vpop.f32.mrf.mxu0 }
 0x277   : > { %v11093_v34 = vpop.f32.mrf.mxu1 }
 0x278   : > { %v13326_v38 = vadd.f32 %v11093_v34, %v11092_v1  ;;  %v13328_v41 = vpop.f32.mrf.mxu0 }
 0x279   : > { %v11095_v3 = vpop.f32.mrf.mxu1 }
 0x27a   : > { %19288 = vst [vmem:[#allocation7_spill] sm:$0xff] %v13326_v38  ;;  %v13330_v60 = vpop.f32.mrf.mxu0 }
 0x27b   : > { %v11096_v0 = vpop.f32.mrf.mxu1 }
 0x27c   : > { %v13332_v54 = vadd.f32 %v11096_v0, %v11095_v3  ;;  %v13334_v7 = vpop.f32.mrf.mxu0 }
 0x27d   : > { %v11098_v48 = vpop.f32.mrf.mxu1 }
 0x27e   : > { %19289 = vst [vmem:[#allocation8_spill] sm:$0xff] %v13332_v54  ;;  %v13336_v31 = vpop.f32.mrf.mxu0 }
 0x27f   : > { %v11099_v23 = vpop.f32.mrf.mxu1 }
 0x280   : > { %v13338_v11 = vadd.f32 %v11099_v23, %v11098_v48  ;;  %v13340_v50 = vpop.f32.mrf.mxu0 }
 0x281   : > { %v11101_v43 = vpop.f32.mrf.mxu1 }
 0x282   : > { %19290 = vst [vmem:[#allocation9_spill] sm:$0xff] %v13338_v11  ;;  %v13342_v15 = vpop.f32.mrf.mxu0 }
 0x283   : > { %v11102_v25 = vpop.f32.mrf.mxu1 }
 0x284   : > { %v13344_v29 = vadd.f32 %v11102_v25, %v11101_v43  ;;  %v13346_v36 = vpop.f32.mrf.mxu0 }
 0x285   : > { %v11104_v35 = vpop.f32.mrf.mxu1 }
 0x286   : > { %19291 = vst [vmem:[#allocation10_spill] sm:$0xff] %v13344_v29  ;;  %v13348_v63 = vpop.f32.mrf.mxu0 }
 0x287   : > { %v11105_v21 = vpop.f32.mrf.mxu1 }
 0x288   : > { %v13350_v12 = vadd.f32 %v11105_v21, %v11104_v35  ;;  %v13352_v49 = vpop.f32.mrf.mxu0 }
 0x289   : > { %v11107_v28 = vpop.f32.mrf.mxu1 }
 0x28a   : > { %19292 = vst [vmem:[#allocation11_spill] sm:$0xff] %v13350_v12  ;;  %v13354_v34 = vpop.f32.mrf.mxu0  ;;  %v11143_v12 = vadd.f32 %v11142_v40, %v13298_v30  ;;  %v11140_v40 = vadd.f32 %v13294_v8, %v13292_v26 }
 0x28b   : > { %v11108_v1 = vpop.f32.mrf.mxu1 }
 0x28c   : > { %v13356_v3 = vadd.f32 %v11108_v1, %v11107_v28  ;;  %v13358_v48 = vpop.f32.mrf.mxu0 }
 0x28d   : > { %v11110_v0 = vpop.f32.mrf.mxu1 }
 0x28e   : > { %19293 = vst [vmem:[#allocation12_spill] sm:$0xff] %v13356_v3  ;;  %v13360_v43 = vpop.f32.mrf.mxu0  ;;  %v11137_v3 = vadd.f32 %v13288_v14, %v13286_v5 }
 0x28f   : > { %v11111_v23 = vpop.f32.mrf.mxu1 }
 0x290   : > { %v13362_v25 = vadd.f32 %v11111_v23, %v11110_v0  ;;  %v13364_v54 = vpop.f32.mrf.mxu0  ;;  %v11146_v0 = vadd.f32 %v13304_v39, %v13302_v10 }
 0x291   : > { %v11113_v11 = vpop.f32.mrf.mxu1 }
 0x292   : > { %19294 = vst [vmem:[#allocation13_spill] sm:$0xff] %v13362_v25  ;;  %v13366_v21 = vpop.f32.mrf.mxu0  ;;  %v2664_v25 = vadd.f32 %v11143_v12, %v13232_v20  ;;  %v2667_v39 = vadd.f32 %v11146_v0, %v13236_v37  ;;  %v11149_v12 = vadd.f32 %v13310_v51, %v13308_v62  ;;  %v11152_v51 = vadd.f32 %v13316_v59, %v13314_v9 }
 0x293   : > { %v11114_v35 = vpop.f32.mrf.mxu1  ;;  %v11161_v59 = vadd.f32 %v13330_v60, %v13328_v41  ;;  %v11164_v60 = vadd.f32 %v13336_v31, %v13334_v7  ;;  %v11173_v31 = vadd.f32 %v13354_v34, %v13352_v49  ;;  %v11176_v34 = vadd.f32 %v13360_v43, %v13358_v48 }
 0x294   : > { %v13369_v29 = vadd.f32 %v11114_v35, %v11113_v11  ;;  %v13371_v1 = vpop.f32.mrf.mxu0  ;;  %v2656_v35 = vadd.f32 %v11137_v3, %v13224_v24  ;;  %v2659_v24 = vadd.f32 %v11140_v40, %v13228_v32 }
 0x295   : > { %v11116_v28 = vpop.f32.mrf.mxu1 }
 0x296   : > { %19295 = vst [vmem:[#allocation14_spill] sm:$0xff] %v13369_v29  ;;  %v13375_v38 = vpop.f32.mrf.mxu0  ;;  %v11155_v29 = vadd.f32 %v11154_v61, %v11153_v44  ;;  %v11158_v44 = vadd.f32 %v13324_v17, %v13322_v42  ;;  %v11167_v17 = vadd.f32 %v13342_v15, %v13340_v50  ;;  %v11170_v15 = vadd.f32 %v13348_v63, %v13346_v36 }
 0x297   : > { %v11117_v46 = vpop.f32.mrf.mxu1  ;;  %v11179_v63 = vadd.f32 %v13366_v21, %v13364_v54  ;;  %v11182_v21 = vadd.f32 %v13375_v38, %v13371_v1 }
 0x298   : > { %v13379_v23 = vadd.f32 %v11117_v46, %v11116_v28  ;;  %v13382_v58 = vpop.f32.mrf.mxu0  ;;  %v2680_v28 = vadd.f32 %v11155_v29, %v13248_v13 }
 0x299   : > { %v11252_v30 = vpop.f32.mrf.mxu1 }
 0x29a   : > { %v2825_v11 = vadd.f32 %v11252_v30, %v2664_v25  ;;  %v13387_v5 = vpop.f32.mrf.mxu0  ;;  %v2672_v30 = vadd.f32 %v11149_v12, %v13240_v45  ;;  %v2696_v12 = vadd.f32 %v11167_v17, %v13264_v16  ;;  %v2704_v17 = vadd.f32 %v11173_v31, %v13272_v19 }
 0x29b   : > { %v2816_v14 = vpop.f32.mrf.mxu1  ;;  %v11185_v48 = vadd.f32 %v13387_v5, %v13382_v58  ;;  %v2707_v19 = vadd.f32 %v11176_v34, %v13276_v56 }
 0x29c   : > { %v10948_v47 = vpack.c.bf16 %v2825_v11, %v2825_v11  ;;  %v2817_v10 = vadd.f32 %v2816_v14, %v2656_v35  ;;  %v13390_v46 = vpop.f32.mrf.mxu0  ;;  %v2683_v11 = vadd.f32 %v11158_v44, %v13252_v52 }
 0x29d   : > { %v11253_v20 = vpop.f32.mrf.mxu1  ;;  %v2720_v56 = vadd.f32 %v11185_v48, %v13290_v53 }
 0x29e   : > { %3269 = vst.msk [vmem:[#allocation2 + $0x20] sm:$0xf] %vm3264_vm1, %v10948_v47  ;;  %v10944_v26 = vpack.c.bf16 %v2817_v10, %v2817_v10  ;;  %v2828_v8 = vadd.f32 %v11253_v20, %v2667_v39  ;;  %v13396_v3 = vpop.f32.mrf.mxu0  ;;  %v2675_v10 = vadd.f32 %v11152_v51, %v13244_v2 }
 0x29f   : > { %v2819_v25 = vpop.f32.mrf.mxu1  ;;  %v11188_v58 = vadd.f32 %v13396_v3, %v13390_v46 }
 0x2a0   : > { %3265 = vst.msk [vmem:[#allocation2 + $0x8] sm:$0xf] %vm3264_vm1, %v10944_v26  ;;  %v10950_v37 = vpack.c.bf16 %v2828_v8, %v2828_v8  ;;  %v2820_v61 = vadd.f32 %v2819_v25, %v2659_v24  ;;  %v13402_v0 = vpop.f32.mrf.mxu0  ;;  %v2688_v24 = vadd.f32 %v11161_v59, %v13256_v27 }
 0x2a1   : > { %v11256_v62 = vpop.f32.mrf.mxu1  ;;  %v2723_v53 = vadd.f32 %v11188_v58, %v13296_v55 }
 0x2a2   : > { %3271 = vst.msk [vmem:[#allocation2 + $0x2c] sm:$0xf] %vm3264_vm1, %v10950_v37  ;;  %v10946_v32 = vpack.c.bf16 %v2820_v61, %v2820_v61  ;;  %v2841_v47 = vadd.f32 %v11256_v62, %v2680_v28  ;;  %v11190_v40 = vpop.f32.mrf.mxu0  ;;  %v2699_v37 = vadd.f32 %v11170_v15, %v13268_v57  ;;  %v2691_v62 = vadd.f32 %v11164_v60, %v13260_v4 }
 0x2a3   : > { %v2832_v42 = vpop.f32.mrf.mxu1  ;;  %v11191_v38 = vadd.f32 %v11190_v40, %v13402_v0 }
 0x2a4   : > { %3267 = vst.msk [vmem:[#allocation2 + $0x14] sm:$0xf] %vm3264_vm1, %v10946_v32  ;;  %v10956_v13 = vpack.c.bf16 %v2841_v47, %v2841_v47  ;;  %v2833_v29 = vadd.f32 %v2832_v42, %v2672_v30  ;;  %v13412_v35 = vpop.f32.mrf.mxu0  ;;  %v2712_v47 = vadd.f32 %v11179_v63, %v13280_v18  ;;  %v2715_v18 = vadd.f32 %v11182_v21, %v13284_v6 }
 0x2a5   : > { %v11257_v9 = vpop.f32.mrf.mxu1  ;;  %v2728_v6 = vadd.f32 %v11191_v38, %v13300_v33 }
 0x2a6   : > { %3277 = vst.msk [vmem:[#allocation2 + $0x50] sm:$0xf] %vm3264_vm1, %v10956_v13  ;;  %v10952_v45 = vpack.c.bf16 %v2833_v29, %v2833_v29  ;;  %v2844_v14 = vadd.f32 %v11257_v9, %v2683_v11  ;;  %v11193_v39 = vpop.f32.mrf.mxu0 }
 0x2a7   : > { %v2835_v50 = vpop.f32.mrf.mxu1  ;;  %v11194_v0 = vadd.f32 %v11193_v39, %v13412_v35 }
 0x2a8   : > { %3273 = vst.msk [vmem:[#allocation2 + $0x38] sm:$0xf] %vm3264_vm1, %v10952_v45  ;;  %v10958_v52 = vpack.c.bf16 %v2844_v14, %v2844_v14  ;;  %v2836_v20 = vadd.f32 %v2835_v50, %v2675_v10  ;;  %v13422_v26 = vpop.f32.mrf.mxu0 }
 0x2a9   : > { %v11260_v41 = vpop.f32.mrf.mxu1  ;;  %v2731_v33 = vadd.f32 %v11194_v0, %v13306_v22 }
 0x2aa   : > { %3279 = vst.msk [vmem:[#allocation2 + $0x5c] sm:$0xf] %vm3264_vm1, %v10958_v52  ;;  %v10954_v2 = vpack.c.bf16 %v2836_v20, %v2836_v20  ;;  %v2857_v8 = vadd.f32 %v11260_v41, %v2696_v12  ;;  %v13428_v25 = vpop.f32.mrf.mxu0 }
 0x2ab   : > { %v2848_v36 = vpop.f32.mrf.mxu1  ;;  %v11197_v46 = vadd.f32 %v13428_v25, %v13422_v26 }
 0x2ac   : > { %3275 = vst.msk [vmem:[#allocation2 + $0x44] sm:$0xf] %vm3264_vm1, %v10954_v2  ;;  %v10964_v16 = vpack.c.bf16 %v2857_v8, %v2857_v8  ;;  %v2849_v44 = vadd.f32 %v2848_v36, %v2688_v24  ;;  %v13434_v61 = vpop.f32.mrf.mxu0 }
 0x2ad   : > { %v11261_v7 = vpop.f32.mrf.mxu1 }
 0x2ae   : > { %3285 = vst.msk [vmem:[#allocation2 + $0x80] sm:$0xf] %vm3264_vm1, %v10964_v16  ;;  %v10960_v27 = vpack.c.bf16 %v2849_v44, %v2849_v44  ;;  %v2860_v28 = vadd.f32 %v11261_v7, %v2699_v37  ;;  %v13440_v51 = vpop.f32.mrf.mxu0  ;;  %v19296_v7 = vld [vmem:[#allocation6_spill] sm:$0xff] }
 0x2af   : > { %v2851_v54 = vpop.f32.mrf.mxu1  ;;  %v11200_v26 = vadd.f32 %v13440_v51, %v13434_v61 }
 0x2b0   : > { %3281 = vst.msk [vmem:[#allocation2 + $0x68] sm:$0xf] %vm3264_vm1, %v10960_v27  ;;  %v10966_v57 = vpack.c.bf16 %v2860_v28, %v2860_v28  ;;  %v2852_v32 = vadd.f32 %v2851_v54, %v2691_v62  ;;  %v11201_v30 = vpop.f32.mrf.mxu0  ;;  %v19297_v62 = vld [vmem:[#allocation5_spill] sm:$0xff] }
 0x2b1   : > { %v11264_v49 = vpop.f32.mrf.mxu1  ;;  %v2736_v55 = vadd.f32 %v11197_v46, %v19297_v62 }
 0x2b2   : > { %3287 = vst.msk [vmem:[#allocation2 + $0x8c] sm:$0xf] %vm3264_vm1, %v10966_v57  ;;  %v10962_v4 = vpack.c.bf16 %v2852_v32, %v2852_v32  ;;  %v2873_v42 = vadd.f32 %v11264_v49, %v2712_v47  ;;  %v11202_v13 = vpop.f32.mrf.mxu0 }
 0x2b3   : > { %v2864_v29 = vpop.f32.mrf.mxu1  ;;  %v11203_v35 = vadd.f32 %v11202_v13, %v11201_v30  ;;  %v19298_v30 = vld [vmem:[#allocation7_spill] sm:$0xff] }
 0x2b4   : > { %3283 = vst.msk [vmem:[#allocation2 + $0x74] sm:$0xf] %vm3264_vm1, %v10962_v4  ;;  %v10972_v1 = vpack.c.bf16 %v2873_v42, %v2873_v42  ;;  %v2865_v11 = vadd.f32 %v2864_v29, %v2704_v17  ;;  %v11204_v9 = vpop.f32.mrf.mxu0  ;;  %v19299_v17 = vld [vmem:[#allocation21_spill] sm:$0xff] }
 0x2b5   : > { %v11265_v59 = vpop.f32.mrf.mxu1  ;;  %v2744_v22 = vadd.f32 %v11203_v35, %v19296_v7  ;;  %v2739_v13 = vadd.f32 %v11200_v26, %v19299_v17  ;;  %v19303_v35 = vld [vmem:[#allocation9_spill] sm:$0xff] }
 0x2b6   : > { %3293 = vst.msk [vmem:[#allocation2 + $0xb0] sm:$0xf] %vm3264_vm1, %v10972_v1  ;;  %v10968_v43 = vpack.c.bf16 %v2865_v11, %v2865_v11  ;;  %v2876_v45 = vadd.f32 %v11265_v59, %v2715_v18  ;;  %v11205_v14 = vpop.f32.mrf.mxu0 }
 0x2b7   : > { %v2867_v10 = vpop.f32.mrf.mxu1  ;;  %v11206_v16 = vadd.f32 %v11205_v14, %v11204_v9  ;;  %v19300_v9 = vld [vmem:[#allocation10_spill] sm:$0xff] }
 0x2b8   : > { %3289 = vst.msk [vmem:[#allocation2 + $0x98] sm:$0xf] %vm3264_vm1, %v10968_v43  ;;  %v10974_v40 = vpack.c.bf16 %v2876_v45, %v2876_v45  ;;  %v2868_v50 = vadd.f32 %v2867_v10, %v2707_v19  ;;  %v11207_v15 = vpop.f32.mrf.mxu0  ;;  %v19301_v10 = vld [vmem:[#allocation8_spill] sm:$0xff] }
 0x2b9   : > { %v11268_v52 = vpop.f32.mrf.mxu1  ;;  %v2747_v49 = vadd.f32 %v11206_v16, %v19298_v30 }
 0x2ba   : > { %3295 = vst.msk [vmem:[#allocation2 + $0xbc] sm:$0xf] %vm3264_vm1, %v10974_v40  ;;  %v10970_v5 = vpack.c.bf16 %v2868_v50, %v2868_v50  ;;  %v2889_v20 = vadd.f32 %v11268_v52, %v2728_v6  ;;  %v11208_v12 = vpop.f32.mrf.mxu0  ;;  %v19302_v52 = vld [vmem:[#allocation11_spill] sm:$0xff] }
 0x2bb   : > { %v2880_v41 = vpop.f32.mrf.mxu1  ;;  %v11209_v42 = vadd.f32 %v11208_v12, %v11207_v15 }
 0x2bc   : > { %3291 = vst.msk [vmem:[#allocation2 + $0xa4] sm:$0xf] %vm3264_vm1, %v10970_v5  ;;  %v10980_v39 = vpack.c.bf16 %v2889_v20, %v2889_v20  ;;  %v2881_v60 = vadd.f32 %v2880_v41, %v2720_v56  ;;  %v11210_v2 = vpop.f32.mrf.mxu0 }
 0x2bd   : > { %v11269_v8 = vpop.f32.mrf.mxu1  ;;  %v2752_v0 = vadd.f32 %v11209_v42, %v19301_v10 }
 0x2be   : > { %3301 = vst.msk [vmem:[#allocation2 + $0xe0] sm:$0xf] %vm3264_vm1, %v10980_v39  ;;  %v10976_v3 = vpack.c.bf16 %v2881_v60, %v2881_v60  ;;  %v2892_v24 = vadd.f32 %v11269_v8, %v2731_v33  ;;  %v11211_v36 = vpop.f32.mrf.mxu0 }
 0x2bf   : > { %v2883_v63 = vpop.f32.mrf.mxu1  ;;  %v11212_v45 = vadd.f32 %v11211_v36, %v11210_v2  ;;  %v19304_v36 = vld [vmem:[#allocation12_spill] sm:$0xff] }
 0x2c0   : > { %3297 = vst.msk [vmem:[#allocation2 + $0xc8] sm:$0xf] %vm3264_vm1, %v10976_v3  ;;  %v10982_v44 = vpack.c.bf16 %v2892_v24, %v2892_v24  ;;  %v2884_v37 = vadd.f32 %v2883_v63, %v2723_v53  ;;  %v11213_v31 = vpop.f32.mrf.mxu0 }
 0x2c1   : > { %v11272_v27 = vpop.f32.mrf.mxu1  ;;  %v2755_v39 = vadd.f32 %v11212_v45, %v19303_v35 }
 0x2c2   : > { %3303 = vst.msk [vmem:[#allocation2 + $0xec] sm:$0xf] %vm3264_vm1, %v10982_v44  ;;  %v10978_v25 = vpack.c.bf16 %v2884_v37, %v2884_v37  ;;  %v2905_v28 = vadd.f32 %v11272_v27, %v2744_v22  ;;  %v11214_v54 = vpop.f32.mrf.mxu0  ;;  %v19305_v27 = vld [vmem:[#allocation14_spill] sm:$0xff] }
 0x2c3   : > { %v2896_v21 = vpop.f32.mrf.mxu1  ;;  %v11215_v32 = vadd.f32 %v11214_v54, %v11213_v31 }
 0x2c4   : > { %3299 = vst.msk [vmem:[#allocation2 + $0xd4] sm:$0xf] %vm3264_vm1, %v10978_v25  ;;  %v10988_v57 = vpack.c.bf16 %v2905_v28, %v2905_v28  ;;  %v2897_v47 = vadd.f32 %v2896_v21, %v2736_v55  ;;  %v11216_v34 = vpop.f32.mrf.mxu0  ;;  %v19306_v28 = vld [vmem:[#allocation13_spill] sm:$0xff] }
 0x2c5   : > { %v11273_v4 = vpop.f32.mrf.mxu1  ;;  %v2760_v59 = vadd.f32 %v11215_v32, %v19300_v9 }
 0x2c6   : > { %3309 = vst.msk [vmem:[#allocation2 + $0x110] sm:$0xf] %vm3264_vm1, %v10988_v57  ;;  %v10984_v61 = vpack.c.bf16 %v2897_v47, %v2897_v47  ;;  %v2908_v51 = vadd.f32 %v11273_v4, %v2747_v49  ;;  %v11217_v29 = vpop.f32.mrf.mxu0 }
 0x2c7   : > { %v2899_v38 = vpop.f32.mrf.mxu1  ;;  %v11218_v11 = vadd.f32 %v11217_v29, %v11216_v34 }
 0x2c8   : > { %3305 = vst.msk [vmem:[#allocation2 + $0xf8] sm:$0xf] %vm3264_vm1, %v10984_v61  ;;  %v10990_v1 = vpack.c.bf16 %v2908_v51, %v2908_v51  ;;  %v2900_v18 = vadd.f32 %v2899_v38, %v2739_v13  ;;  %v11219_v48 = vpop.f32.mrf.mxu0 }
 0x2c9   : > { %v11276_v43 = vpop.f32.mrf.mxu1  ;;  %v2763_v58 = vadd.f32 %v11218_v11, %v19302_v52 }
 0x2ca   : > { %3311 = vst.msk [vmem:[#allocation2 + $0x11c] sm:$0xf] %vm3264_vm1, %v10990_v1  ;;  %v10986_v19 = vpack.c.bf16 %v2900_v18, %v2900_v18  ;;  %v2921_v14 = vadd.f32 %v11276_v43, %v2760_v59  ;;  %v11220_v40 = vpop.f32.mrf.mxu0 }
 0x2cb   : > { %v2912_v50 = vpop.f32.mrf.mxu1  ;;  %v11221_v56 = vadd.f32 %v11220_v40, %v11219_v48 }
 0x2cc   : > { %3307 = vst.msk [vmem:[#allocation2 + $0x104] sm:$0xf] %vm3264_vm1, %v10986_v19  ;;  %v10996_v6 = vpack.c.bf16 %v2921_v14, %v2921_v14  ;;  %v2913_v15 = vadd.f32 %v2912_v50, %v2752_v0  ;;  %v11222_v5 = vpop.f32.mrf.mxu0 }
 0x2cd   : > { %v11277_v20 = vpop.f32.mrf.mxu1  ;;  %v2768_v63 = vadd.f32 %v11221_v56, %v19304_v36 }
 0x2ce   : > { %3317 = vst.msk [vmem:[#allocation2 + $0x140] sm:$0xf] %vm3264_vm1, %v10996_v6  ;;  %v10992_v12 = vpack.c.bf16 %v2913_v15, %v2913_v15  ;;  %v2924_v41 = vadd.f32 %v11277_v20, %v2763_v58  ;;  %v11223_v60 = vpop.f32.mrf.mxu0 }
 0x2cf   : > { %v2915_v33 = vpop.f32.mrf.mxu1  ;;  %v11224_v24 = vadd.f32 %v11223_v60, %v11222_v5 }
 0x2d0   : > { %3313 = vst.msk [vmem:[#allocation2 + $0x128] sm:$0xf] %vm3264_vm1, %v10992_v12  ;;  %v10998_v2 = vpack.c.bf16 %v2924_v41, %v2924_v41  ;;  %v2916_v8 = vadd.f32 %v2915_v33, %v2755_v39  ;;  %v11225_v46 = vpop.f32.mrf.mxu0 }
 0x2d1   : > { %v11280_v3 = vpop.f32.mrf.mxu1  ;;  %v2771_v62 = vadd.f32 %v11224_v24, %v19306_v28 }
 0x2d2   : > { %3319 = vst.msk [vmem:[#allocation2 + $0x14c] sm:$0xf] %vm3264_vm1, %v10998_v2  ;;  %v10994_v53 = vpack.c.bf16 %v2916_v8, %v2916_v8  ;;  %v11226_v16 = vpop.f32.mrf.mxu0 }
 0x2d3   : > { %v2928_v44 = vpop.f32.mrf.mxu1  ;;  %v11227_v37 = vadd.f32 %v11226_v16, %v11225_v46 }
 0x2d4   : > { %3315 = vst.msk [vmem:[#allocation2 + $0x134] sm:$0xf] %vm3264_vm1, %v10994_v53  ;;  %v2929_v7 = vadd.f32 %v2928_v44, %v2768_v63  ;;  %v11228_v22 = vpop.f32.mrf.mxu0 }
 0x2d5   : > { %v11281_v31 = vpop.f32.mrf.mxu1  ;;  %v2776_v26 = vadd.f32 %v11227_v37, %v19305_v27 }
 0x2d6   : > { %v11000_v25 = vpack.c.bf16 %v2929_v7, %v2929_v7  ;;  %v11229_v55 = vpop.f32.mrf.mxu0 }
 0x2d7   : > { %v2931_v54 = vpop.f32.mrf.mxu1  ;;  %v2937_v21 = vadd.f32 %v11280_v3, %v2776_v26  ;;  %v11230_v57 = vadd.f32 %v11229_v55, %v11228_v22 }
 0x2d8   : > { %3321 = vst.msk [vmem:[#allocation2 + $0x158] sm:$0xf] %vm3264_vm1, %v11000_v25  ;;  %v2932_v32 = vadd.f32 %v2931_v54, %v2771_v62 }
 0x2d9   : > { %v11004_v47 = vpack.c.bf16 %v2937_v21, %v2937_v21  ;;  %v2779_v30 = vadd.f32 %v11230_v57, %v13379_v23 }
 0x2da   : > { %v11002_v49 = vpack.c.bf16 %v2932_v32, %v2932_v32 }
 0x2db   : > { %3325 = vst.msk [vmem:[#allocation2 + $0x170] sm:$0xf] %vm3264_vm1, %v11004_v47  ;;  %v2940_v34 = vadd.f32 %v11281_v31, %v2779_v30 }
 0x2dc   : > { %3323 = vst.msk [vmem:[#allocation2 + $0x164] sm:$0xf] %vm3264_vm1, %v11002_v49 }
 0x2dd   : > { %v11006_v4 = vpack.c.bf16 %v2940_v34, %v2940_v34 }
 0x2df   : > { %3327 = vst.msk [vmem:[#allocation2 + $0x17c] sm:$0xf] %vm3264_vm1, %v11006_v4 }
 0x2e0 PF: > { %v3448_v42 = vld [vmem:[%s12331_s30 + $0x1c0] sm:$0xff]  ;;  %v18924_v29 = vmov 0   ;;  %v11593_v43 = vld [vmem:[#allocation2 + $0x8] ss:$12 sps:$4 sm:$0xff]   ;;  %vm4448_vm2 = vcmask 130048  }
 0x2e1   : > { %v3452_v61 = vld [vmem:[%s12331_s30 + $0x1e0] sm:$0xff]  ;;  %4722 = vmatprep.mubr.bf16.mxu1 %v18924_v29  ;;  %11591 = vset.pattern.permute.xlu0 %v18924_v29  ;;  %v3449_v3 = vld [vmem:[%s12331_s30 + $0x1c8] sm:$0xff]  ;;  %v13537_v28 = vld [vmem:[#allocation2 + $0x50] ss:$12 sps:$4 sm:$0xff]  }
 0x2e2   : > { %v3520_v23 = vld [vmem:[%s12331_s30 + $0x400] sm:$0xff]  ;;  %v10700_v51 = vcombine.high %v3448_v42, %v3452_v61  ;;  %v10699_v13 = vcombine.low %v3448_v42, %v3452_v61  ;;  %11592 = vset.pattern.permute.xlu1 %v18924_v29  ;;  %v3453_v24 = vld [vmem:[%s12331_s30 + $0x1e8] sm:$0xff] }
 0x2e3   : > { %v3524_v17 = vld [vmem:[%s12331_s30 + $0x420] sm:$0xff]  ;;  %v10701_v53 = vcombine.low %v3449_v3, %v3453_v24  ;;  %v10702_v36 = vcombine.high %v3449_v3, %v3453_v24  ;;  %v3441_v63 = vld [vmem:[%s12331_s30 + $0x188] sm:$0xff] }
 0x2e4   : > { %v3440_v38 = vld [vmem:[%s12331_s30 + $0x180] sm:$0xff]  ;;  %v10772_v11 = vcombine.high %v3520_v23, %v3524_v17  ;;  %v10771_v18 = vcombine.low %v3520_v23, %v3524_v17  ;;  %4497 = vmatprep.subr.bf16.mxu0 %v10700_v51  ;;  %v3445_v44 = vld [vmem:[%s12331_s30 + $0x1a8] sm:$0xff] }
 0x2e5   : > { %v3444_v1 = vld [vmem:[%s12331_s30 + $0x1a0] sm:$0xff]  ;;  %4498 = vmatpush1.bf16.msra.mxu0 %v10699_v13  ;;  %v10694_v22 = vcombine.high %v3441_v63, %v3445_v44  ;;  %v10693_v27 = vcombine.low %v3441_v63, %v3445_v44  ;;  %v3433_v26 = vld [vmem:[%s12331_s30 + $0x148] sm:$0xff] }
 0x2e6   : > { %v10692_v9 = vcombine.high %v3440_v38, %v3444_v1  ;;  %v3432_v59 = vld [vmem:[%s12331_s30 + $0x140] sm:$0xff]  ;;  %4704 = vmatprep.subr.bf16.mxu1 %v10772_v11  ;;  %v10691_v45 = vcombine.low %v3440_v38, %v3444_v1  ;;  %v3437_v25 = vld [vmem:[%s12331_s30 + $0x168] sm:$0xff] }
 0x2e7   : > { %v3436_v48 = vld [vmem:[%s12331_s30 + $0x160] sm:$0xff]  ;;  %4705 = vmatpush1.bf16.msra.mxu1 %v10771_v18  ;;  %v3425_v54 = vld [vmem:[%s12331_s30 + $0x108] sm:$0xff]  ;;  %v10686_v47 = vcombine.high %v3433_v26, %v3437_v25  ;;  %v10685_v30 = vcombine.low %v3433_v26, %v3437_v25 }
 0x2e8   : > { %4499 = vmatprep.subr.bf16.mxu0 %v10692_v9  ;;  %v10684_v19 = vcombine.high %v3432_v59, %v3436_v48  ;;  %v3424_v14 = vld [vmem:[%s12331_s30 + $0x100] sm:$0xff]  ;;  %v10683_v0 = vcombine.low %v3432_v59, %v3436_v48  ;;  %4883 = vmatprep.subr.bf16.mxu1 %v10702_v36  ;;  %v3429_v21 = vld [vmem:[%s12331_s30 + $0x128] sm:$0xff] }
 0x2e9   : > { %v3428_v10 = vld [vmem:[%s12331_s30 + $0x120] sm:$0xff]  ;;  %4500 = vmatpush1.bf16.msra.mxu0 %v10691_v45  ;;  %v10678_v34 = vcombine.high %v3425_v54, %v3429_v21  ;;  %v10677_v23 = vcombine.low %v3425_v54, %v3429_v21  ;;  %v3417_v51 = vld [vmem:[%s12331_s30 + $0xc8] sm:$0xff] }
 0x2ea   : > { %10779 = vmatmul.mubr.msk.bf16.vlgmr.msra.gmra.mxu1 %vm4448_vm2, %v11593_v43  ;;  %4501 = vmatprep.subr.bf16.mxu0 %v10684_v19  ;;  %v10676_v40 = vcombine.high %v3424_v14, %v3428_v10  ;;  %v3416_v50 = vld [vmem:[%s12331_s30 + $0xc0] sm:$0xff]  ;;  %v10675_v52 = vcombine.low %v3424_v14, %v3428_v10  ;;  %v3421_v17 = vld [vmem:[%s12331_s30 + $0xe8] sm:$0xff] }
 0x2eb   : > { %4732 = vmatprep.mubr.bf16.mxu1 %v18924_v29  ;;  %v3420_v6 = vld [vmem:[%s12331_s30 + $0xe0] sm:$0xff]  ;;  %4884 = vmatpush1.bf16.msra.mxu1 %v10701_v53  ;;  %v13550_v13 = vld [vmem:[#allocation2 + $0x68] ss:$12 sps:$4 sm:$0xff]   ;;  %v10670_v48 = vcombine.high %v3417_v51, %v3421_v17  ;;  %v10669_v43 = vcombine.low %v3417_v51, %v3421_v17 }
 0x2ec   : > { %v11594_v15 = vld [vmem:[#allocation2 + $0x20] ss:$12 sps:$4 sm:$0xff]   ;;  %v10668_v58 = vcombine.high %v3416_v50, %v3420_v6  ;;  %v10667_v56 = vcombine.low %v3416_v50, %v3420_v6  ;;  %v11595_v39 = vld [vmem:[#allocation2 + $0x38] ss:$12 sps:$4 sm:$0xff]   ;;  %4885 = vmatprep.subr.bf16.mxu1 %v10694_v22 }
 0x2ed   : > { %4502 = vmatpush1.bf16.msra.mxu0 %v10683_v0  ;;  %v3408_v5 = vld [vmem:[%s12331_s30 + $0x80] sm:$0xff]  ;;  %v3409_v11 = vld [vmem:[%s12331_s30 + $0x88] sm:$0xff] }
 0x2ee   : > { %4503 = vmatprep.subr.bf16.mxu0 %v10676_v40  ;;  %v3412_v20 = vld [vmem:[%s12331_s30 + $0xa0] sm:$0xff]  ;;  %v3413_v18 = vld [vmem:[%s12331_s30 + $0xa8] sm:$0xff] }
 0x2ef   : > { %v10660_v12 = vcombine.high %v3408_v5, %v3412_v20  ;;  %v3400_v41 = vld [vmem:[%s12331_s30 + $0x40] sm:$0xff]  ;;  %v10659_v60 = vcombine.low %v3408_v5, %v3412_v20  ;;  %4886 = vmatpush1.bf16.msra.mxu1 %v10693_v27  ;;  %v10662_v19 = vcombine.high %v3409_v11, %v3413_v18  ;;  %v3401_v40 = vld [vmem:[%s12331_s30 + $0x48] sm:$0xff]  ;;  %v10661_v50 = vcombine.low %v3409_v11, %v3413_v18 }
 0x2f0   : > { %v3404_v35 = vld [vmem:[%s12331_s30 + $0x60] sm:$0xff]  ;;  %4887 = vmatprep.subr.bf16.mxu1 %v10686_v47  ;;  %v3405_v6 = vld [vmem:[%s12331_s30 + $0x68] sm:$0xff] }
 0x2f1   : > { %4504 = vmatpush1.bf16.msra.mxu0 %v10675_v52  ;;  %v3392_v33 = vld [vmem:[%s12331_s30] sm:$0xff]  ;;  %v10652_v8 = vcombine.high %v3400_v41, %v3404_v35  ;;  %v10651_v16 = vcombine.low %v3400_v41, %v3404_v35  ;;  %v3397_v20 = vld [vmem:[%s12331_s30 + $0x28] sm:$0xff]  ;;  %v10654_v41 = vcombine.high %v3401_v40, %v3405_v6  ;;  %v10653_v35 = vcombine.low %v3401_v40, %v3405_v6 }
 0x2f2   : > { %10780 = vmatmul.mubr.msk.bf16.gmra.mxu1 %vm4448_vm2, %v11594_v15  ;;  %4505 = vmatprep.subr.bf16.mxu0 %v10668_v58  ;;  %v13523_v2 = vld [vmem:[#allocation2 + $0x4] ss:$12 sps:$4 sm:$0xff]   ;;  %v13563_v15 = vld [vmem:[#allocation2 + $0x80] ss:$12 sps:$4 sm:$0xff]   ;;  %v13602_v18 = vld [vmem:[#allocation2 + $0xc8] ss:$12 sps:$4 sm:$0xff]  }
 0x2f3   : > { %4742 = vmatprep.mubr.bf16.mxu1 %v18924_v29  ;;  %v3396_v46 = vld [vmem:[%s12331_s30 + $0x20] sm:$0xff]  ;;  %4529 = vmatprep.mubr.bf16.mxu0 %v13523_v2  ;;  %v3393_v58 = vld [vmem:[%s12331_s30 + $0x8] sm:$0xff] }
 0x2f4   : > { %v10644_v37 = vcombine.high %v3392_v33, %v3396_v46  ;;  %v3512_v7 = vld [vmem:[%s12331_s30 + $0x3c0] sm:$0xff]  ;;  %v10643_v62 = vcombine.low %v3392_v33, %v3396_v46  ;;  %4888 = vmatpush1.bf16.msra.mxu1 %v10685_v30  ;;  %v10645_v24 = vcombine.low %v3393_v58, %v3397_v20  ;;  %v3513_v53 = vld [vmem:[%s12331_s30 + $0x3c8] sm:$0xff] }
 0x2f5   : > { %4506 = vmatpush1.bf16.msra.mxu0 %v10667_v56  ;;  %v3516_v31 = vld [vmem:[%s12331_s30 + $0x3e0] sm:$0xff]  ;;  %4889 = vmatprep.subr.bf16.mxu1 %v10678_v34  ;;  %v3517_v36 = vld [vmem:[%s12331_s30 + $0x3e8] sm:$0xff] }
 0x2f6   : > { %4507 = vmatprep.subr.bf16.mxu0 %v10660_v12  ;;  %v10764_v55 = vcombine.high %v3512_v7, %v3516_v31  ;;  %v3504_v57 = vld [vmem:[%s12331_s30 + $0x380] sm:$0xff]  ;;  %v10763_v49 = vcombine.low %v3512_v7, %v3516_v31  ;;  %v10766_v31 = vcombine.high %v3513_v53, %v3517_v36  ;;  %v10765_v27 = vcombine.low %v3513_v53, %v3517_v36  ;;  %v3521_v54 = vld [vmem:[%s12331_s30 + $0x408] sm:$0xff]  ;;  %v13650_v53 = vld [vmem:[#allocation2 + $0x110] ss:$12 sps:$4 sm:$0xff]  }
 0x2f7   : > { %v3508_v32 = vld [vmem:[%s12331_s30 + $0x3a0] sm:$0xff]  ;;  %v3525_v21 = vld [vmem:[%s12331_s30 + $0x428] sm:$0xff] }
 0x2f8   : > { %v10756_v4 = vcombine.high %v3504_v57, %v3508_v32  ;;  %v3496_v42 = vld [vmem:[%s12331_s30 + $0x340] sm:$0xff]  ;;  %v10755_v38 = vcombine.low %v3504_v57, %v3508_v32  ;;  %4890 = vmatpush1.bf16.msra.mxu1 %v10677_v23  ;;  %v3497_v32 = vld [vmem:[%s12331_s30 + $0x348] sm:$0xff] }
 0x2f9   : > { %4508 = vmatpush1.bf16.msra.mxu0 %v10659_v60  ;;  %v3500_v61 = vld [vmem:[%s12331_s30 + $0x360] sm:$0xff]  ;;  %4891 = vmatprep.subr.bf16.mxu1 %v10670_v48  ;;  %v10646_v60 = vcombine.high %v3393_v58, %v3397_v20  ;;  %v3501_v47 = vld [vmem:[%s12331_s30 + $0x368] sm:$0xff]  ;;  %v13621_v58 = vld [vmem:[#allocation2 + $0x30] ss:$12 sps:$4 sm:$0xff]  }
 0x2fa   : > { %10781 = vmatmul.mubr.msk.bf16.gmra.mxu1 %vm4448_vm2, %v11595_v39  ;;  %4509 = vmatprep.subr.bf16.mxu0 %v10652_v8  ;;  %v10748_v1 = vcombine.high %v3496_v42, %v3500_v61  ;;  %v3488_v9 = vld [vmem:[%s12331_s30 + $0x300] sm:$0xff]  ;;  %v10747_v45 = vcombine.low %v3496_v42, %v3500_v61  ;;  %v3493_v34 = vld [vmem:[%s12331_s30 + $0x328] sm:$0xff]  ;;  %v10774_v42 = vcombine.high %v3521_v54, %v3525_v21 }
 0x2fb   : > { %4752 = vmatprep.mubr.bf16.mxu1 %v18924_v29  ;;  %v3492_v59 = vld [vmem:[%s12331_s30 + $0x320] sm:$0xff]  ;;  %v13595_v61 = vld [vmem:[#allocation2 + $0x1c] ss:$12 sps:$4 sm:$0xff]   ;;  %v10750_v23 = vcombine.high %v3497_v32, %v3501_v47  ;;  %v10749_v51 = vcombine.low %v3497_v32, %v3501_v47 }
 0x2fc   : > { %v10740_v14 = vcombine.high %v3488_v9, %v3492_v59  ;;  %v3480_v10 = vld [vmem:[%s12331_s30 + $0x2c0] sm:$0xff]  ;;  %4892 = vmatpush1.bf16.msra.mxu1 %v10669_v43  ;;  %v10739_v52 = vcombine.low %v3488_v9, %v3492_v59  ;;  %v3481_v17 = vld [vmem:[%s12331_s30 + $0x2c8] sm:$0xff]  ;;  %v13704_v32 = vld [vmem:[#allocation2 + $0x170] ss:$12 sps:$4 sm:$0xff]  }
 0x2fd   : > { %4510 = vmatpush1.bf16.msra.mxu0 %v10651_v16  ;;  %v3484_v0 = vld [vmem:[%s12331_s30 + $0x2e0] sm:$0xff]  ;;  %4893 = vmatprep.subr.bf16.mxu1 %v10662_v19  ;;  %v3505_v16 = vld [vmem:[%s12331_s30 + $0x388] sm:$0xff]  ;;  %19309 = vst [vmem:[#allocation60_spill] sm:$0xff] %v13704_v32 }
 0x2fe   : > { %4511 = vmatprep.subr.bf16.mxu0 %v10644_v37  ;;  %v10732_v5 = vcombine.high %v3480_v10, %v3484_v0  ;;  %v3472_v56 = vld [vmem:[%s12331_s30 + $0x280] sm:$0xff]  ;;  %v10731_v39 = vcombine.low %v3480_v10, %v3484_v0  ;;  %v3509_v37 = vld [vmem:[%s12331_s30 + $0x3a8] sm:$0xff] }
 0x2ff   : > { %v3476_v12 = vld [vmem:[%s12331_s30 + $0x2a0] sm:$0xff]  ;;  %v10758_v25 = vcombine.high %v3505_v16, %v3509_v37  ;;  %v10757_v57 = vcombine.low %v3505_v16, %v3509_v37  ;;  %v3473_v43 = vld [vmem:[%s12331_s30 + $0x288] sm:$0xff]  ;;  %v13668_v37 = vld [vmem:[%s12331_s30 + $0x430] sm:$0xff] }
 0x300   : > { %4894 = vmatpush1.bf16.msra.mxu1 %v10661_v50  ;;  %v10724_v33 = vcombine.high %v3472_v56, %v3476_v12  ;;  %v13572_v8 = vld [vmem:[#allocation2 + $0x98] ss:$12 sps:$4 sm:$0xff]   ;;  %v10723_v63 = vcombine.low %v3472_v56, %v3476_v12  ;;  %v13610_v19 = vld [vmem:[#allocation2 + $0x34] ss:$12 sps:$4 sm:$0xff]   ;;  %v3465_v0 = vld [vmem:[%s12331_s30 + $0x248] sm:$0xff] }
 0x301   : > { %4512 = vmatpush1.bf16.msra.mxu0 %v10643_v62  ;;  %v3464_v46 = vld [vmem:[%s12331_s30 + $0x240] sm:$0xff]  ;;  %4895 = vmatprep.subr.bf16.mxu1 %v10654_v41  ;;  %v3469_v40 = vld [vmem:[%s12331_s30 + $0x268] sm:$0xff] }
 0x302   : > { %10782 = vmatmul.mubr.msk.bf16.gmra.mxu1 %vm4448_vm2, %v13537_v28  ;;  %4513 = vmatprep.subr.bf16.mxu0 %v10764_v55  ;;  %v3468_v3 = vld [vmem:[%s12331_s30 + $0x260] sm:$0xff]  ;;  %v13585_v55 = vld [vmem:[#allocation2 + $0xb0] ss:$12 sps:$4 sm:$0xff]   ;;  %v3461_v20 = vld [vmem:[%s12331_s30 + $0x228] sm:$0xff]  ;;  %v10717_v12 = vcombine.low %v3465_v0, %v3469_v40 }
 0x303   : > { %4762 = vmatprep.mubr.bf16.mxu1 %v18924_v29  ;;  %v10716_v44 = vcombine.high %v3464_v46, %v3468_v3  ;;  %v3456_v7 = vld [vmem:[%s12331_s30 + $0x200] sm:$0xff]  ;;  %v10715_v26 = vcombine.low %v3464_v46, %v3468_v3  ;;  %v13625_v56 = vld [vmem:[#allocation2 + $0x4c] ss:$12 sps:$4 sm:$0xff]   ;;  %v13642_v3 = vld [vmem:[#allocation2 + $0x48] ss:$12 sps:$4 sm:$0xff]  }
 0x304   : > { %4896 = vmatpush1.bf16.msra.mxu1 %v10653_v35  ;;  %v3460_v22 = vld [vmem:[%s12331_s30 + $0x220] sm:$0xff]  ;;  %v13631_v35 = vld [vmem:[%s12331_s30 + $0x1d0] sm:$0xff] }
 0x305   : > { %4514 = vmatpush2.bf16.msra.mxu0 %v10763_v49  ;;  %4897 = vmatprep.subr.bf16.mxu1 %v10646_v60  ;;  %v10708_v62 = vcombine.high %v3456_v7, %v3460_v22  ;;  %v10707_v30 = vcombine.low %v3456_v7, %v3460_v22  ;;  %v3489_v49 = vld [vmem:[%s12331_s30 + $0x308] sm:$0xff]  ;;  %v13606_v48 = vld [vmem:[#allocation2 + $0x18] ss:$12 sps:$4 sm:$0xff]  }
 0x306   : > { %4515 = vmatprep.subr.bf16.mxu0 %v10756_v4  ;;  %v13593_v4 = vld [vmem:[#allocation2] ss:$12 sps:$4 sm:$0xff]   ;;  %v10742_v11 = vcombine.high %v3489_v49, %v3493_v34  ;;  %v10741_v9 = vcombine.low %v3489_v49, %v3493_v34  ;;  %v13661_v16 = vld [vmem:[#allocation2 + $0x128] ss:$12 sps:$4 sm:$0xff]  }
 0x307   : > { %v13617_v50 = vld [vmem:[#allocation2 + $0xe0] ss:$12 sps:$4 sm:$0xff]   ;;  %v3442_v49 = vld [vmem:[%s12331_s30 + $0x190] sm:$0xff] }
 0x308   : > { %4898 = vmatpush1.bf16.msra.mxu1 %v10645_v24  ;;  %v13646_v24 = vld [vmem:[#allocation2 + $0x64] ss:$12 sps:$4 sm:$0xff]   ;;  %v13653_v36 = vld [vmem:[#allocation2 + $0x60] ss:$12 sps:$4 sm:$0xff]  }
 0x309   : > { %4516 = vmatpush2.bf16.msra.mxu0 %v10755_v38  ;;  %4899 = vmatprep.subr.bf16.mxu1 %v10766_v31  ;;  %v3485_v38 = vld [vmem:[%s12331_s30 + $0x2e8] sm:$0xff]  ;;  %v13674_v31 = vld [vmem:[#allocation2 + $0x78] ss:$12 sps:$4 sm:$0xff]   ;;  %v3446_v34 = vld [vmem:[%s12331_s30 + $0x1b0] sm:$0xff] }
 0x30a   : > { %10783 = vmatmul.mubr.msk.bf16.gmra.mxu1 %vm4448_vm2, %v13550_v13  ;;  %4517 = vmatprep.subr.bf16.mxu0 %v10748_v1  ;;  %v10773_v1 = vcombine.low %v3521_v54, %v3525_v21  ;;  %v10734_v59 = vcombine.high %v3481_v17, %v3485_v38  ;;  %v13693_v54 = vld [vmem:[#allocation2 + $0x158] ss:$12 sps:$4 sm:$0xff]   ;;  %v13696_v21 = vld [vmem:[#allocation2 + $0xa8] ss:$12 sps:$4 sm:$0xff]   ;;  %v13707_v47 = vld [vmem:[#allocation2 + $0xc0] ss:$12 sps:$4 sm:$0xff]  }
 0x30b   : > { %4772 = vmatprep.mubr.bf16.mxu1 %v18924_v29  ;;  %19307 = vst [vmem:[#allocation58_spill] sm:$0xff] %v13696_v21  ;;  %19310 = vst [vmem:[#allocation61_spill] sm:$0xff] %v13707_v47 }
 0x30c   : > { %4900 = vmatpush2.bf16.msra.mxu1 %v10765_v27  ;;  %v13678_v27 = vld [vmem:[#allocation2 + $0x94] ss:$12 sps:$4 sm:$0xff]  }
 0x30d   : > { %4518 = vmatpush2.bf16.msra.mxu0 %v10747_v45  ;;  %4901 = vmatprep.subr.bf16.mxu1 %v10758_v25  ;;  %v3477_v45 = vld [vmem:[%s12331_s30 + $0x2a8] sm:$0xff]  ;;  %v13685_v25 = vld [vmem:[#allocation2 + $0x90] ss:$12 sps:$4 sm:$0xff]  }
 0x30e   : > { %4519 = vmatprep.subr.bf16.mxu0 %v10740_v14  ;;  %v10733_v14 = vcombine.low %v3481_v17, %v3485_v38  ;;  %v10726_v10 = vcombine.high %v3473_v43, %v3477_v45  ;;  %v10725_v6 = vcombine.low %v3473_v43, %v3477_v45  ;;  %v3434_v17 = vld [vmem:[%s12331_s30 + $0x150] sm:$0xff] }
 0x30f   : > { %v3438_v38 = vld [vmem:[%s12331_s30 + $0x170] sm:$0xff] }
 0x310   : > { %4902 = vmatpush2.bf16.msra.mxu1 %v10757_v57  ;;  %v13700_v57 = vld [vmem:[#allocation2 + $0xc4] ss:$12 sps:$4 sm:$0xff]  }
 0x311   : > { %4520 = vmatpush2.bf16.msra.mxu0 %v10739_v52  ;;  %4903 = vmatprep.subr.bf16.mxu1 %v10750_v23  ;;  %v10718_v52 = vcombine.high %v3465_v0, %v3469_v40  ;;  %19308 = vst [vmem:[#allocation59_spill] sm:$0xff] %v13700_v57  ;;  %v10696_v23 = vcombine.high %v3442_v49, %v3446_v34  ;;  %v3426_v45 = vld [vmem:[%s12331_s30 + $0x110] sm:$0xff] }
 0x312   : > { %10784 = vmatmul.mubr.msk.bf16.gmra.mxu1 %vm4448_vm2, %v13563_v15  ;;  %4521 = vmatprep.subr.bf16.mxu0 %v10732_v5  ;;  %v3457_v5 = vld [vmem:[%s12331_s30 + $0x208] sm:$0xff]  ;;  %v13740_v40 = vld [vmem:[#allocation2 + $0xf0] ss:$12 sps:$4 sm:$0xff]  }
 0x313   : > { %4782 = vmatprep.mubr.bf16.mxu1 %v18924_v29  ;;  %v10710_v41 = vcombine.high %v3457_v5, %v3461_v20  ;;  %v10709_v60 = vcombine.low %v3457_v5, %v3461_v20  ;;  %19314 = vst [vmem:[#allocation65_spill] sm:$0xff] %v13740_v40  ;;  %v13745_v5 = vld [vmem:[#allocation2 + $0x10c] ss:$12 sps:$4 sm:$0xff]   ;;  %v3470_v43 = vld [vmem:[%s12331_s30 + $0x270] sm:$0xff] }
 0x314   : > { %4904 = vmatpush2.bf16.msra.mxu1 %v10749_v51  ;;  %v13720_v51 = vld [vmem:[#allocation2 + $0xd8] ss:$12 sps:$4 sm:$0xff]   ;;  %19315 = vst [vmem:[#allocation66_spill] sm:$0xff] %v13745_v5 }
 0x315   : > { %4522 = vmatpush2.bf16.msra.mxu0 %v10731_v39  ;;  %4905 = vmatprep.subr.bf16.mxu1 %v10742_v11  ;;  %v13634_v39 = vld [vmem:[%s12331_s30 + $0x1f0] sm:$0xff]  ;;  %19312 = vst [vmem:[#allocation63_spill] sm:$0xff] %v13720_v51  ;;  %v13731_v11 = vld [vmem:[%s12331_s30 + $0x1f8] sm:$0xff] }
 0x316   : > { %4523 = vmatprep.subr.bf16.mxu0 %v10724_v33  ;;  %v13637_v33 = vld [vmem:[#allocation2 + $0xf8] ss:$12 sps:$4 sm:$0xff]   ;;  %v10704_v46 = vcombine.high %v13631_v35, %v13634_v39 }
 0x318   : > { %4906 = vmatpush2.bf16.msra.mxu1 %v10741_v9  ;;  %v10695_v9 = vcombine.low %v3442_v49, %v3446_v34  ;;  %v3406_v49 = vld [vmem:[%s12331_s30 + $0x70] sm:$0xff] }
 0x319   : > { %4524 = vmatpush2.bf16.msra.mxu0 %v10723_v63  ;;  %4907 = vmatprep.subr.bf16.mxu1 %v10734_v59  ;;  %v13657_v63 = vld [vmem:[#allocation2 + $0x7c] ss:$12 sps:$4 sm:$0xff]   ;;  %v10688_v59 = vcombine.high %v3434_v17, %v3438_v38  ;;  %v13757_v34 = vld [vmem:[#allocation2 + $0x124] ss:$12 sps:$4 sm:$0xff]  }
 0x31a   : > { %10785 = vmatmul.mubr.msk.bf16.gmra.mxu1 %vm4448_vm2, %v13572_v8  ;;  %4525 = vmatprep.subr.bf16.mxu0 %v10716_v44  ;;  %v13665_v44 = vld [vmem:[%s12331_s30 + $0x410] sm:$0xff]  ;;  %19317 = vst [vmem:[#allocation68_spill] sm:$0xff] %v13757_v34 }
 0x31b   : > { %4792 = vmatprep.mubr.bf16.mxu1 %v18924_v29  ;;  %v10775_v7 = vcombine.low %v13665_v44, %v13668_v37  ;;  %v10776_v22 = vcombine.high %v13665_v44, %v13668_v37 }
 0x31c   : > { %4908 = vmatpush2.bf16.msra.mxu1 %v10733_v14  ;;  %v3430_v14 = vld [vmem:[%s12331_s30 + $0x130] sm:$0xff] }
 0x31d   : > { %4526 = vmatpush2.bf16.msra.mxu0 %v10715_v26  ;;  %4909 = vmatprep.subr.bf16.mxu1 %v10726_v10  ;;  %v13682_v26 = vld [vmem:[#allocation2 + $0x140] ss:$12 sps:$4 sm:$0xff]   ;;  %v10687_v10 = vcombine.low %v3434_v17, %v3438_v38  ;;  %v10680_v0 = vcombine.high %v3426_v45, %v3430_v14  ;;  %v10679_v20 = vcombine.low %v3426_v45, %v3430_v14  ;;  %v3394_v17 = vld [vmem:[%s12331_s30 + $0x10] sm:$0xff] }
 0x31e   : > { %4527 = vmatprep.subr.bf16.mxu0 %v10708_v62  ;;  %v13689_v62 = vld [vmem:[#allocation2 + $0xac] ss:$12 sps:$4 sm:$0xff]   ;;  %v3398_v38 = vld [vmem:[%s12331_s30 + $0x30] sm:$0xff] }
 0x31f   : > { %v13764_v45 = vld [vmem:[#allocation2 + $0x120] ss:$12 sps:$4 sm:$0xff]   ;;  %v3514_v14 = vld [vmem:[%s12331_s30 + $0x3d0] sm:$0xff] }
 0x320   : > { %4910 = vmatpush2.bf16.msra.mxu1 %v10725_v6  ;;  %v3418_v6 = vld [vmem:[%s12331_s30 + $0xd0] sm:$0xff]  ;;  %19318 = vst [vmem:[#allocation69_spill] sm:$0xff] %v13764_v45 }
 0x321   : > { %4528 = vmatpush2.bf16.msra.mxu0 %v10707_v30  ;;  %4911 = vmatprep.subr.bf16.mxu1 %v10718_v52  ;;  %v13711_v30 = vld [vmem:[#allocation2 + $0xdc] ss:$12 sps:$4 sm:$0xff]   ;;  %v3422_v52 = vld [vmem:[%s12331_s30 + $0xf0] sm:$0xff] }
 0x322   : > { %10786 = vmatmul.mubr.msk.bf16.gmra.mxu1 %vm4448_vm2, %v13585_v55  ;;  %5090 = vmatprep.subr.bf16.mxu0 %v10774_v42  ;;  %19311 = vst [vmem:[#allocation62_spill] sm:$0xff] %v13711_v30  ;;  %v10703_v42 = vcombine.low %v13631_v35, %v13634_v39  ;;  %v3414_v35 = vld [vmem:[%s12331_s30 + $0xb0] sm:$0xff]  ;;  %v10671_v39 = vcombine.low %v3418_v6, %v3422_v52 }
 0x323   : > { %4802 = vmatprep.mubr.bf16.mxu1 %v18924_v29 }
 0x324   : > { %4530 = vmatmul.mubr.bf16.vlgmr.msra.gmra.mxu0 %v13593_v4  ;;  %4912 = vmatpush2.bf16.msra.mxu1 %v10717_v12  ;;  %v10672_v12 = vcombine.high %v3418_v6, %v3422_v52  ;;  %v10647_v6 = vcombine.low %v3394_v17, %v3398_v38 }
 0x325   : > { %4539 = vmatprep.mubr.bf16.mxu0 %v13595_v61  ;;  %5091 = vmatpush1.bf16.msra.mxu0 %v10773_v1  ;;  %v13725_v1 = vld [vmem:[#allocation2 + $0xf4] ss:$12 sps:$4 sm:$0xff]  }
 0x326   : > { %4913 = vmatprep.subr.bf16.mxu1 %v10710_v41  ;;  %5476 = vmatprep.subr.bf16.mxu0 %v10776_v22  ;;  %19313 = vst [vmem:[#allocation64_spill] sm:$0xff] %v13725_v1  ;;  %v3410_v41 = vld [vmem:[%s12331_s30 + $0x90] sm:$0xff] }
 0x327   : > { %v3402_v22 = vld [vmem:[%s12331_s30 + $0x50] sm:$0xff] }
 0x328   : > { %4914 = vmatpush2.bf16.msra.mxu1 %v10709_v60  ;;  %v10664_v60 = vcombine.high %v3410_v41, %v3414_v35 }
 0x329   : > { %5269 = vmatprep.subr.bf16.mxu1 %v10704_v46  ;;  %v13752_v46 = vld [vmem:[#allocation2 + $0x108] ss:$12 sps:$4 sm:$0xff]  }
 0x32a   : > { %10787 = vmatmul.mubr.msk.bf16.gmra.mxu1 %vm4448_vm2, %v13602_v18  ;;  %19316 = vst [vmem:[#allocation67_spill] sm:$0xff] %v13752_v46 }
 0x32b   : > { %4812 = vmatprep.mubr.bf16.mxu1 %v18924_v29 }
 0x32c   : > { %4540 = vmatmul.mubr.bf16.gmra.mxu0 %v13606_v48 }
 0x32d   : > { %4549 = vmatprep.mubr.bf16.mxu0 %v13610_v19 }
 0x332   : > { %10788 = vmatmul.mubr.msk.bf16.gmra.mxu1 %vm4448_vm2, %v13617_v50 }
 0x333   : > { %4822 = vmatprep.mubr.bf16.mxu1 %v18924_v29 }
 0x334   : > { %4550 = vmatmul.mubr.bf16.gmra.mxu0 %v13621_v58 }
 0x335   : > { %4559 = vmatprep.mubr.bf16.mxu0 %v13625_v56 }
 0x33a   : > { %10789 = vmatmul.mubr.msk.bf16.gmra.mxu1 %vm4448_vm2, %v13637_v33 }
 0x33b   : > { %4832 = vmatprep.mubr.bf16.mxu1 %v18924_v29 }
 0x33c   : > { %4560 = vmatmul.mubr.bf16.gmra.mxu0 %v13642_v3 }
 0x33d   : > { %4569 = vmatprep.mubr.bf16.mxu0 %v13646_v24 }
 0x342   : > { %10790 = vmatmul.mubr.msk.bf16.gmra.mxu1 %vm4448_vm2, %v13650_v53 }
 0x343   : > { %4842 = vmatprep.mubr.bf16.mxu1 %v18924_v29 }
 0x344   : > { %4570 = vmatmul.mubr.bf16.gmra.mxu0 %v13653_v36 }
 0x345   : > { %4579 = vmatprep.mubr.bf16.mxu0 %v13657_v63 }
 0x34a   : > { %10791 = vmatmul.mubr.msk.bf16.gmra.mxu1 %vm4448_vm2, %v13661_v16 }
 0x34b   : > { %4852 = vmatprep.mubr.bf16.mxu1 %v18924_v29 }
 0x34c   : > { %4580 = vmatmul.mubr.bf16.gmra.mxu0 %v13674_v31 }
 0x34d   : > { %4589 = vmatprep.mubr.bf16.mxu0 %v13678_v27 }
 0x352   : > { %10792 = vmatmul.mubr.msk.bf16.gmra.mxu1 %vm4448_vm2, %v13682_v26 }
 0x353   : > { %4862 = vmatprep.mubr.bf16.mxu1 %v18924_v29 }
 0x354   : > { %4590 = vmatmul.mubr.bf16.gmra.mxu0 %v13685_v25 }
 0x355   : > { %4599 = vmatprep.mubr.bf16.mxu0 %v13689_v62 }
 0x35a   : > { %10793 = vmatmul.mubr.msk.bf16.gmra.mxu1 %vm4448_vm2, %v13693_v54 }
 0x35b   : > { %4872 = vmatprep.mubr.bf16.mxu1 %v18924_v29 }
 0x35c   : > { %4600 = vmatmul.mubr.bf16.gmra.mxu0 %v13696_v21 }
 0x35d   : > { %4609 = vmatprep.mubr.bf16.mxu0 %v13700_v57 }
 0x362   : > { %10794 = vmatmul.mubr.msk.bf16.gmra.mxu1 %vm4448_vm2, %v13704_v32 }
 0x363   : > { %4915 = vmatprep.mubr.bf16.mxu1 %v13523_v2  ;;  %v13728_v2 = vld [vmem:[%s12331_s30 + $0x1d8] sm:$0xff] }
 0x364   : > { %4610 = vmatmul.mubr.bf16.gmra.mxu0 %v13707_v47 }
 0x365   : > { %4619 = vmatprep.mubr.bf16.mxu0 %v13711_v30 }
 0x36a   : > { %4916 = vmatmul.mubr.bf16.vlgmr.msra.gmra.mxu1 %v13593_v4 }
 0x36b   : > { %4925 = vmatprep.mubr.bf16.mxu1 %v13595_v61  ;;  %5270 = vmatpush1.bf16.msra.mxu1 %v10703_v42  ;;  %v10663_v42 = vcombine.low %v3410_v41, %v3414_v35 }
 0x36c   : > { %5271 = vmatprep.subr.bf16.mxu1 %v10696_v23  ;;  %4620 = vmatmul.mubr.bf16.gmra.mxu0 %v13720_v51  ;;  %v10656_v23 = vcombine.high %v3402_v22, %v3406_v49 }
 0x36d   : > { %4629 = vmatprep.mubr.bf16.mxu0 %v13725_v1 }
 0x36f   : > { %5272 = vmatpush1.bf16.msra.mxu1 %v10695_v9  ;;  %v10655_v9 = vcombine.low %v3402_v22, %v3406_v49  ;;  %v3502_v22 = vld [vmem:[%s12331_s30 + $0x370] sm:$0xff] }
 0x370   : > { %5273 = vmatprep.subr.bf16.mxu1 %v10688_v59  ;;  %v10648_v59 = vcombine.high %v3394_v17, %v3398_v38  ;;  %v13781_v49 = vld [vmem:[#allocation2 + $0x154] ss:$12 sps:$4 sm:$0xff]  }
 0x371   : > { %19321 = vst [vmem:[#allocation72_spill] sm:$0xff] %v13781_v49  ;;  %v3490_v17 = vld [vmem:[%s12331_s30 + $0x310] sm:$0xff] }
 0x372   : > { %4926 = vmatmul.mubr.bf16.gmra.mxu1 %v13606_v48  ;;  %v3494_v38 = vld [vmem:[%s12331_s30 + $0x330] sm:$0xff] }
 0x373   : > { %4935 = vmatprep.mubr.bf16.mxu1 %v13610_v19  ;;  %5274 = vmatpush1.bf16.msra.mxu1 %v10687_v10  ;;  %v3518_v10 = vld [vmem:[%s12331_s30 + $0x3f0] sm:$0xff] }
 0x374   : > { %5275 = vmatprep.subr.bf16.mxu1 %v10680_v0  ;;  %4630 = vmatmul.mubr.bf16.gmra.mxu0 %v13740_v40  ;;  %v13769_v0 = vld [vmem:[#allocation2 + $0x13c] ss:$12 sps:$4 sm:$0xff]   ;;  %v10768_v52 = vcombine.high %v3514_v14, %v3518_v10  ;;  %v10767_v41 = vcombine.low %v3514_v14, %v3518_v10  ;;  %v3482_v10 = vld [vmem:[%s12331_s30 + $0x2d0] sm:$0xff] }
 0x375   : > { %4639 = vmatprep.mubr.bf16.mxu0 %v13745_v5  ;;  %19319 = vst [vmem:[#allocation70_spill] sm:$0xff] %v13769_v0  ;;  %v13788_v14 = vld [vmem:[#allocation2 + $0x150] ss:$12 sps:$4 sm:$0xff]  }
 0x376   : > { %19322 = vst [vmem:[#allocation73_spill] sm:$0xff] %v13788_v14 }
 0x377   : > { %5276 = vmatpush1.bf16.msra.mxu1 %v10679_v20  ;;  %v3506_v20 = vld [vmem:[%s12331_s30 + $0x390] sm:$0xff] }
 0x378   : > { %5277 = vmatprep.subr.bf16.mxu1 %v10672_v12  ;;  %v3510_v12 = vld [vmem:[%s12331_s30 + $0x3b0] sm:$0xff] }
 0x379   : > { %v10760_v35 = vcombine.high %v3506_v20, %v3510_v12 }
 0x37a   : > { %4936 = vmatmul.mubr.bf16.gmra.mxu1 %v13621_v58 }
 0x37b   : > { %4945 = vmatprep.mubr.bf16.mxu1 %v13625_v56  ;;  %5278 = vmatpush1.bf16.msra.mxu1 %v10671_v39  ;;  %v13776_v39 = vld [vmem:[#allocation2 + $0x138] ss:$12 sps:$4 sm:$0xff]  }
 0x37c   : > { %5279 = vmatprep.subr.bf16.mxu1 %v10664_v60  ;;  %4640 = vmatmul.mubr.bf16.gmra.mxu0 %v13752_v46  ;;  %19320 = vst [vmem:[#allocation71_spill] sm:$0xff] %v13776_v39  ;;  %v3498_v60 = vld [vmem:[%s12331_s30 + $0x350] sm:$0xff] }
 0x37d   : > { %4649 = vmatprep.mubr.bf16.mxu0 %v13757_v34 }
 0x37f   : > { %5280 = vmatpush1.bf16.msra.mxu1 %v10663_v42  ;;  %v10759_v42 = vcombine.low %v3506_v20, %v3510_v12  ;;  %v10743_v20 = vcombine.low %v3490_v17, %v3494_v38 }
 0x380   : > { %5281 = vmatprep.subr.bf16.mxu1 %v10656_v23  ;;  %v10752_v23 = vcombine.high %v3498_v60, %v3502_v22 }
 0x382   : > { %4946 = vmatmul.mubr.bf16.gmra.mxu1 %v13642_v3 }
 0x383   : > { %4955 = vmatprep.mubr.bf16.mxu1 %v13646_v24  ;;  %5282 = vmatpush1.bf16.msra.mxu1 %v10655_v9  ;;  %v10751_v9 = vcombine.low %v3498_v60, %v3502_v22 }
 0x384   : > { %5283 = vmatprep.subr.bf16.mxu1 %v10648_v59  ;;  %4650 = vmatmul.mubr.bf16.gmra.mxu0 %v13764_v45  ;;  %v10744_v59 = vcombine.high %v3490_v17, %v3494_v38 }
 0x385   : > { %4659 = vmatprep.mubr.bf16.mxu0 %v13769_v0 }
 0x387   : > { %5284 = vmatpush1.bf16.msra.mxu1 %v10647_v6  ;;  %v3486_v6 = vld [vmem:[%s12331_s30 + $0x2f0] sm:$0xff] }
 0x388   : > { %5285 = vmatprep.subr.bf16.mxu1 %v10768_v52  ;;  %v13793_v52 = vld [vmem:[#allocation2 + $0x16c] ss:$12 sps:$4 sm:$0xff]   ;;  %v10736_v12 = vcombine.high %v3482_v10, %v3486_v6  ;;  %v10735_v60 = vcombine.low %v3482_v10, %v3486_v6 }
 0x389   : > { %19323 = vst [vmem:[#allocation74_spill] sm:$0xff] %v13793_v52 }
 0x38a   : > { %4956 = vmatmul.mubr.bf16.gmra.mxu1 %v13653_v36 }
 0x38b   : > { %4965 = vmatprep.mubr.bf16.mxu1 %v13657_v63  ;;  %5286 = vmatpush2.bf16.msra.mxu1 %v10767_v41  ;;  %v3474_v41 = vld [vmem:[%s12331_s30 + $0x290] sm:$0xff] }
 0x38c   : > { %5287 = vmatprep.subr.bf16.mxu1 %v10760_v35  ;;  %4660 = vmatmul.mubr.bf16.gmra.mxu0 %v13776_v39  ;;  %v3478_v35 = vld [vmem:[%s12331_s30 + $0x2b0] sm:$0xff] }
 0x38d   : > { %4669 = vmatprep.mubr.bf16.mxu0 %v13781_v49  ;;  %v10728_v22 = vcombine.high %v3474_v41, %v3478_v35  ;;  %v10727_v17 = vcombine.low %v3474_v41, %v3478_v35  ;;  %v13814_v41 = vld [vmem:[#allocation2 + $0x8] ss:$12 sps:$4 sm:$0xff]  }
 0x38e   : > { %19325 = vst [vmem:[#allocation76_spill] sm:$0xff] %v13814_v41 }
 0x38f   : > { %5288 = vmatpush2.bf16.msra.mxu1 %v10759_v42  ;;  %v13800_v42 = vld [vmem:[#allocation2 + $0x168] ss:$12 sps:$4 sm:$0xff]  }
 0x390   : > { %5289 = vmatprep.subr.bf16.mxu1 %v10752_v23  ;;  %19324 = vst [vmem:[#allocation75_spill] sm:$0xff] %v13800_v42  ;;  %v3466_v23 = vld [vmem:[%s12331_s30 + $0x250] sm:$0xff] }
 0x391   : > { %v10720_v38 = vcombine.high %v3466_v23, %v3470_v43  ;;  %v10719_v10 = vcombine.low %v3466_v23, %v3470_v43  ;;  %v13843_v23 = vld [vmem:[#allocation2 + $0x38] ss:$12 sps:$4 sm:$0xff]  }
 0x392   : > { %4966 = vmatmul.mubr.bf16.gmra.mxu1 %v13674_v31  ;;  %19327 = vst [vmem:[#allocation78_spill] sm:$0xff] %v13843_v23 }
 0x393   : > { %4975 = vmatprep.mubr.bf16.mxu1 %v13678_v27  ;;  %5290 = vmatpush2.bf16.msra.mxu1 %v10751_v9  ;;  %v3458_v9 = vld [vmem:[%s12331_s30 + $0x210] sm:$0xff] }
 0x394   : > { %5291 = vmatprep.subr.bf16.mxu1 %v10744_v59  ;;  %4670 = vmatmul.mubr.bf16.gmra.mxu0 %v13788_v14  ;;  %v3462_v59 = vld [vmem:[%s12331_s30 + $0x230] sm:$0xff] }
 0x395   : > { %4679 = vmatprep.mubr.bf16.mxu0 %v13793_v52  ;;  %v10712_v6 = vcombine.high %v3458_v9, %v3462_v59 }
 0x397   : > { %5292 = vmatpush2.bf16.msra.mxu1 %v10743_v20  ;;  %v10711_v20 = vcombine.low %v3458_v9, %v3462_v59 }
 0x398   : > { %5293 = vmatprep.subr.bf16.mxu1 %v10736_v12  ;;  %v10706_v12 = vcombine.high %v13728_v2, %v13731_v11 }
 0x39a   : > { %4976 = vmatmul.mubr.bf16.gmra.mxu1 %v13685_v25 }
 0x39b   : > { %4985 = vmatprep.mubr.bf16.mxu1 %v13689_v62  ;;  %5294 = vmatpush2.bf16.msra.mxu1 %v10735_v60  ;;  %v13828_v60 = vld [vmem:[#allocation2 + $0x20] ss:$12 sps:$4 sm:$0xff]  }
 0x39c   : > { %5295 = vmatprep.subr.bf16.mxu1 %v10728_v22  ;;  %4680 = vmatmul.mubr.bf16.gmra.mxu0 %v13800_v42  ;;  %19326 = vst [vmem:[#allocation77_spill] sm:$0xff] %v13828_v60 }
 0x39d   : > { %5108 = vmatprep.mubr.bf16.mxu0 %v18924_v29 }
 0x39f   : > { %5296 = vmatpush2.bf16.msra.mxu1 %v10727_v17 }
 0x3a0   : > { %5297 = vmatprep.subr.bf16.mxu1 %v10720_v38 }
 0x3a2   : > { %4986 = vmatmul.mubr.bf16.gmra.mxu1 %v13696_v21 }
 0x3a3   : > { %4995 = vmatprep.mubr.bf16.mxu1 %v13700_v57  ;;  %5298 = vmatpush2.bf16.msra.mxu1 %v10719_v10 }
 0x3a4   : > { %5299 = vmatprep.subr.bf16.mxu1 %v10712_v6  ;;  %10795 = vmatmul.mubr.msk.bf16.vlgmr.msra.gmra.mxu0 %vm4448_vm2, %v13814_v41 }
 0x3a5   : > { %5118 = vmatprep.mubr.bf16.mxu0 %v18924_v29  ;;  %5477 = vmatpush1.bf16.msra.mxu0 %v10775_v7 }
 0x3a7   : > { %5300 = vmatpush2.bf16.msra.mxu1 %v10711_v20 }
 0x3a8   : > { %5655 = vmatprep.subr.bf16.mxu1 %v10706_v12 }
 0x3aa   : > { %v13822_v43 = vpop.f32.mrf.mxu1  ;;  %4996 = vmatmul.mubr.bf16.gmra.mxu1 %v13707_v47  ;;  %v13930_v47 = vld [vmem:[#allocation2 + $0x4] ss:$12 sps:$4 sm:$0xff]  }
 0x3ab   : > { %5005 = vmatprep.mubr.bf16.mxu1 %v13711_v30  ;;  %19332 = vst [vmem:[#allocation82_spill] sm:$0xff] %v13930_v47 }
 0x3ac   : > { %v13826_v35 = vpop.f32.mrf.mxu1  ;;  %10796 = vmatmul.mubr.msk.bf16.gmra.mxu0 %vm4448_vm2, %v13828_v60 }
 0x3ad   : > { %5128 = vmatprep.mubr.bf16.mxu0 %v18924_v29 }
 0x3ae   : > { %v13832_v22 = vpop.f32.mrf.mxu1 }
 0x3b0   : > { %v13835_v44 = vpop.f32.mrf.mxu1 }
 0x3b2   : > { %v13837_v37 = vpop.f32.mrf.mxu1  ;;  %5006 = vmatmul.mubr.bf16.gmra.mxu1 %v13720_v51 }
 0x3b3   : > { %5015 = vmatprep.mubr.bf16.mxu1 %v13725_v1 }
 0x3b4   : > { %v13841_v7 = vpop.f32.mrf.mxu1  ;;  %10797 = vmatmul.mubr.msk.bf16.gmra.mxu0 %vm4448_vm2, %v13843_v23  ;;  %v19330_v23 = vmov 0  }
 0x3b5   : > { %5138 = vmatprep.mubr.bf16.mxu0 %v18924_v29 }
 0x3b6   : > { %v13847_v17 = vpop.f32.mrf.mxu1 }
 0x3b8   : > { %v13850_v38 = vpop.f32.mrf.mxu1 }
 0x3ba   : > { %v13852_v9 = vpop.f32.mrf.mxu1  ;;  %5016 = vmatmul.mubr.bf16.gmra.mxu1 %v13740_v40  ;;  %v13880_v40 = vld [vmem:[%s12331_s30 + $0x438] sm:$0xff] }
 0x3bb   : > { %5025 = vmatprep.mubr.bf16.mxu1 %v13745_v5  ;;  %19329 = vst [vmem:[#allocation80_spill] sm:$0xff] %v13880_v40 }
 0x3bc   : > { %v13856_v59 = vpop.f32.mrf.mxu1  ;;  %10798 = vmatmul.mubr.msk.bf16.gmra.mxu0 %vm4448_vm2, %v13537_v28  ;;  %v13877_v28 = vld [vmem:[%s12331_s30 + $0x418] sm:$0xff] }
 0x3bd   : > { %5148 = vmatprep.mubr.bf16.mxu0 %v18924_v29  ;;  %19328 = vst [vmem:[#allocation79_spill] sm:$0xff] %v13877_v28 }
 0x3be   : > { %v13860_v10 = vpop.f32.mrf.mxu1 }
 0x3c0   : > { %v13863_v6 = vpop.f32.mrf.mxu1 }
 0x3c2   : > { %v13865_v20 = vpop.f32.mrf.mxu1  ;;  %5026 = vmatmul.mubr.bf16.gmra.mxu1 %v13752_v46  ;;  %v10778_v46 = vcombine.high %v13877_v28, %v13880_v40  ;;  %v3447_v40 = vld [vmem:[%s12331_s30 + $0x1b8] sm:$0xff] }
 0x3c3   : > { %5035 = vmatprep.mubr.bf16.mxu1 %v13757_v34 }
 0x3c4   : > { %v13869_v12 = vpop.f32.mrf.mxu1  ;;  %10799 = vmatmul.mubr.msk.bf16.gmra.mxu0 %vm4448_vm2, %v13550_v13  ;;  %5862 = vmatprep.subr.bf16.mxu0 %v10778_v46 }
 0x3c5   : > { %5158 = vmatprep.mubr.bf16.mxu0 %v18924_v29 }
 0x3c6   : > { %v13873_v5 = vpop.f32.mrf.mxu1 }
 0x3c8   : > { %v13886_v34 = vpop.f32.mrf.mxu1 }
 0x3ca   : > { %v13888_v1 = vpop.f32.mrf.mxu1  ;;  %5036 = vmatmul.mubr.bf16.gmra.mxu1 %v13764_v45 }
 0x3cb   : > { %5045 = vmatprep.mubr.bf16.mxu1 %v13769_v0 }
 0x3cc   : > { %v13892_v13 = vpop.f32.mrf.mxu1  ;;  %10800 = vmatmul.mubr.msk.bf16.gmra.mxu0 %vm4448_vm2, %v13563_v15 }
 0x3cd   : > { %5168 = vmatprep.mubr.bf16.mxu0 %v19330_v23 }
 0x3ce   : > { %v13896_v29 = vpop.f32.mrf.mxu1 }
 0x3d0   : > { %v13899_v51 = vpop.f32.mrf.mxu1 }
 0x3d2   : > { %v13901_v60 = vpop.f32.mrf.mxu1  ;;  %5046 = vmatmul.mubr.bf16.gmra.mxu1 %v13776_v39 }
 0x3d3   : > { %5055 = vmatprep.mubr.bf16.mxu1 %v13781_v49 }
 0x3d4   : > { %v13905_v46 = vpop.f32.mrf.mxu1  ;;  %10801 = vmatmul.mubr.msk.bf16.gmra.mxu0 %vm4448_vm2, %v13572_v8 }
 0x3d5   : > { %5178 = vmatprep.mubr.bf16.mxu0 %v19330_v23 }
 0x3d6   : > { %v13909_v0 = vpop.f32.mrf.mxu1 }
 0x3d8   : > { %v13912_v15 = vpop.f32.mrf.mxu1 }
 0x3da   : > { %v13914_v45 = vpop.f32.mrf.mxu1  ;;  %5056 = vmatmul.mubr.bf16.gmra.mxu1 %v13788_v14 }
 0x3db   : > { %5065 = vmatprep.mubr.bf16.mxu1 %v13793_v52 }
 0x3dc   : > { %v13918_v49 = vpop.f32.mrf.mxu1  ;;  %10802 = vmatmul.mubr.msk.bf16.gmra.mxu0 %vm4448_vm2, %v13585_v55  ;;  %v3443_v55 = vld [vmem:[%s12331_s30 + $0x198] sm:$0xff] }
 0x3dd   : > { %5188 = vmatprep.mubr.bf16.mxu0 %v19330_v23 }
 0x3de   : > { %v13922_v8 = vpop.f32.mrf.mxu1 }
 0x3e0   : > { %v13925_v39 = vpop.f32.mrf.mxu1 }
 0x3e2   : > { %v13927_v30 = vpop.f32.mrf.mxu1  ;;  %5066 = vmatmul.mubr.bf16.gmra.mxu1 %v13800_v42 }
 0x3e3   : > { %19331 = vst [vmem:[#allocation81_spill] sm:$0xff] %v13927_v30  ;;  %5301 = vmatprep.mubr.bf16.mxu1 %v13930_v47  ;;  %v3435_v30 = vld [vmem:[%s12331_s30 + $0x158] sm:$0xff] }
 0x3e4   : > { %v13933_v52 = vpop.f32.mrf.mxu1  ;;  %v4531_v14 = vpop.f32.mrf.mxu0  ;;  %10803 = vmatmul.mubr.msk.bf16.gmra.mxu0 %vm4448_vm2, %v13602_v18  ;;  %v3439_v18 = vld [vmem:[%s12331_s30 + $0x178] sm:$0xff] }
 0x3e5   : > { %19333 = vst [vmem:[#allocation83_spill] sm:$0xff] %v13933_v52  ;;  %v13940_v28 = vadd.f32 %v13822_v43, %v4531_v14  ;;  %5198 = vmatprep.mubr.bf16.mxu0 %v19330_v23  ;;  %v10698_v52 = vcombine.high %v3443_v55, %v3447_v40 }
 0x3e6   : > { %v13942_v41 = vpop.f32.mrf.mxu1  ;;  %v4533_v42 = vpop.f32.mrf.mxu0 }
 0x3e7   : > { %19334 = vst [vmem:[#allocation84_spill] sm:$0xff] %v13940_v28  ;;  %19335 = vst [vmem:[#allocation85_spill] sm:$0xff] %v13942_v41  ;;  %v13946_v57 = vadd.f32 %v13826_v35, %v4533_v42  ;;  %v19340_v42 = vcombine.low %v13728_v2, %v13731_v11  ;;  %v10697_v35 = vcombine.low %v3443_v55, %v3447_v40  ;;  %v3431_v2 = vld [vmem:[%s12331_s30 + $0x138] sm:$0xff] }
 0x3e8   : > { %v13948_v47 = vpop.f32.mrf.mxu1  ;;  %v4535_v21 = vpop.f32.mrf.mxu0  ;;  %v3403_v28 = vld [vmem:[%s12331_s30 + $0x58] sm:$0xff] }
 0x3e9   : > { %19336 = vst [vmem:[#allocation86_spill] sm:$0xff] %v13946_v57  ;;  %19337 = vst [vmem:[#allocation87_spill] sm:$0xff] %v13948_v47  ;;  %v13953_v32 = vadd.f32 %v13832_v22, %v4535_v21  ;;  %v10690_v22 = vcombine.high %v3435_v30, %v3439_v18  ;;  %v3419_v47 = vld [vmem:[%s12331_s30 + $0xd8] sm:$0xff] }
 0x3ea   : > { %v13955_v14 = vpop.f32.mrf.mxu1  ;;  %5302 = vmatmul.mubr.bf16.vlgmr.msra.gmra.mxu1 %v13593_v4  ;;  %v4537_v43 = vpop.f32.mrf.mxu0  ;;  %v3427_v4 = vld [vmem:[%s12331_s30 + $0x118] sm:$0xff] }
 0x3eb   : > { %19338 = vst [vmem:[#allocation88_spill] sm:$0xff] %v13953_v32  ;;  %19339 = vst [vmem:[#allocation89_spill] sm:$0xff] %v13955_v14  ;;  %5656 = vmatpush1.bf16.msra.mxu1 %v19340_v42  ;;  %5311 = vmatprep.mubr.bf16.mxu1 %v13595_v61  ;;  %v13965_v41 = vadd.f32 %v13835_v44, %v4537_v43  ;;  %v10689_v44 = vcombine.low %v3435_v30, %v3439_v18  ;;  %v3423_v61 = vld [vmem:[%s12331_s30 + $0xf8] sm:$0xff] }
 0x3ec   : > { %v13967_v21 = vpop.f32.mrf.mxu1  ;;  %5657 = vmatprep.subr.bf16.mxu1 %v10698_v52  ;;  %v4541_v14 = vpop.f32.mrf.mxu0  ;;  %10804 = vmatmul.mubr.msk.bf16.gmra.mxu0 %vm4448_vm2, %v13617_v50  ;;  %v10682_v43 = vcombine.high %v3427_v4, %v3431_v2  ;;  %v3515_v32 = vld [vmem:[%s12331_s30 + $0x3d8] sm:$0xff] }
 0x3ed   : > { %19341 = vst [vmem:[#allocation90_spill] sm:$0xff] %v13965_v41  ;;  %v13976_v11 = vadd.f32 %v13837_v37, %v4541_v14  ;;  %5208 = vmatprep.mubr.bf16.mxu0 %v19330_v23  ;;  %v3499_v57 = vld [vmem:[%s12331_s30 + $0x358] sm:$0xff] }
 0x3ee   : > { %v13978_v40 = vpop.f32.mrf.mxu1  ;;  %v4543_v52 = vpop.f32.mrf.mxu0  ;;  %v3483_v41 = vld [vmem:[%s12331_s30 + $0x2d8] sm:$0xff] }
 0x3ef   : > { %19342 = vst [vmem:[#allocation91_spill] sm:$0xff] %v13976_v11  ;;  %5658 = vmatpush1.bf16.msra.mxu1 %v10697_v35  ;;  %v13982_v55 = vadd.f32 %v13841_v7, %v4543_v52  ;;  %v10681_v7 = vcombine.low %v3427_v4, %v3431_v2  ;;  %v3467_v11 = vld [vmem:[%s12331_s30 + $0x258] sm:$0xff] }
 0x3f0   : > { %v13984_v50 = vpop.f32.mrf.mxu1  ;;  %5659 = vmatprep.subr.bf16.mxu1 %v10690_v22  ;;  %v4545_v42 = vpop.f32.mrf.mxu0 }
 0x3f1   : > { %19343 = vst [vmem:[#allocation92_spill] sm:$0xff] %v13982_v55  ;;  %v13989_v37 = vadd.f32 %v13847_v17, %v4545_v42  ;;  %v10674_v17 = vcombine.high %v3419_v47, %v3423_v61  ;;  %v19353_v55 = vld [vmem:[#allocation85_spill] sm:$0xff] }
 0x3f2   : > { %v13991_v14 = vpop.f32.mrf.mxu1  ;;  %5312 = vmatmul.mubr.bf16.gmra.mxu1 %v13606_v48  ;;  %v4547_v30 = vpop.f32.mrf.mxu0  ;;  %v3411_v48 = vld [vmem:[%s12331_s30 + $0x98] sm:$0xff] }
 0x3f3   : > { %19344 = vst [vmem:[#allocation93_spill] sm:$0xff] %v13989_v37  ;;  %5660 = vmatpush1.bf16.msra.mxu1 %v10689_v44  ;;  %5321 = vmatprep.mubr.bf16.mxu1 %v13610_v19  ;;  %v13998_v35 = vadd.f32 %v13850_v38, %v4547_v30  ;;  %v3415_v44 = vld [vmem:[%s12331_s30 + $0xb8] sm:$0xff] }
 0x3f4   : > { %v14000_v22 = vpop.f32.mrf.mxu1  ;;  %5661 = vmatprep.subr.bf16.mxu1 %v10682_v43  ;;  %v4551_v52 = vpop.f32.mrf.mxu0  ;;  %10805 = vmatmul.mubr.msk.bf16.gmra.mxu0 %vm4448_vm2, %v13637_v33  ;;  %v10673_v43 = vcombine.low %v3419_v47, %v3423_v61  ;;  %v10666_v30 = vcombine.high %v3411_v48, %v3415_v44  ;;  %v3407_v19 = vld [vmem:[%s12331_s30 + $0x78] sm:$0xff] }
 0x3f5   : > { %19345 = vst [vmem:[#allocation94_spill] sm:$0xff] %v13998_v35  ;;  %v14009_v4 = vadd.f32 %v13852_v9, %v4551_v52  ;;  %5218 = vmatprep.mubr.bf16.mxu0 %v19330_v23  ;;  %v3463_v37 = vld [vmem:[%s12331_s30 + $0x238] sm:$0xff] }
 0x3f6   : > { %v14011_v38 = vpop.f32.mrf.mxu1  ;;  %v4553_v2 = vpop.f32.mrf.mxu0 }
 0x3f7   : > { %19346 = vst [vmem:[#allocation95_spill] sm:$0xff] %v14009_v4  ;;  %5662 = vmatpush1.bf16.msra.mxu1 %v10681_v7  ;;  %v14015_v42 = vadd.f32 %v13856_v59, %v4553_v2  ;;  %v10665_v59 = vcombine.low %v3411_v48, %v3415_v44  ;;  %v3399_v2 = vld [vmem:[%s12331_s30 + $0x38] sm:$0xff] }
 0x3f8   : > { %v14017_v33 = vpop.f32.mrf.mxu1  ;;  %5663 = vmatprep.subr.bf16.mxu1 %v10674_v17  ;;  %v4555_v18 = vpop.f32.mrf.mxu0 }
 0x3f9   : > { %19347 = vst [vmem:[#allocation96_spill] sm:$0xff] %v14015_v42  ;;  %v14022_v9 = vadd.f32 %v13860_v10, %v4555_v18  ;;  %v10658_v10 = vcombine.high %v3403_v28, %v3407_v19  ;;  %v19356_v42 = vld [vmem:[#allocation83_spill] sm:$0xff] }
 0x3fa   : > { %v14024_v52 = vpop.f32.mrf.mxu1  ;;  %5322 = vmatmul.mubr.bf16.gmra.mxu1 %v13621_v58  ;;  %v4557_v47 = vpop.f32.mrf.mxu0  ;;  %v3395_v58 = vld [vmem:[%s12331_s30 + $0x18] sm:$0xff] }
 0x3fb   : > { %19348 = vst [vmem:[#allocation97_spill] sm:$0xff] %v14022_v9  ;;  %5664 = vmatpush1.bf16.msra.mxu1 %v10673_v43  ;;  %5331 = vmatprep.mubr.bf16.mxu1 %v13625_v56  ;;  %v14031_v7 = vadd.f32 %v13863_v6, %v4557_v47  ;;  %v10657_v43 = vcombine.low %v3403_v28, %v3407_v19  ;;  %v3519_v56 = vld [vmem:[%s12331_s30 + $0x3f8] sm:$0xff] }
 0x3fc   : > { %v14033_v17 = vpop.f32.mrf.mxu1  ;;  %5665 = vmatprep.subr.bf16.mxu1 %v10666_v30  ;;  %v4561_v18 = vpop.f32.mrf.mxu0  ;;  %10806 = vmatmul.mubr.msk.bf16.gmra.mxu0 %vm4448_vm2, %v13650_v53  ;;  %v10650_v47 = vcombine.high %v3395_v58, %v3399_v2 }
 0x3fd   : > { %19349 = vst [vmem:[#allocation98_spill] sm:$0xff] %v14031_v7  ;;  %v14042_v48 = vadd.f32 %v13865_v20, %v4561_v18  ;;  %5228 = vmatprep.mubr.bf16.mxu0 %v19330_v23 }
 0x3fe   : > { %v14044_v6 = vpop.f32.mrf.mxu1  ;;  %v4563_v44 = vpop.f32.mrf.mxu0 }
 0x3ff   : > { %19350 = vst [vmem:[#allocation99_spill] sm:$0xff] %v14042_v48  ;;  %5666 = vmatpush1.bf16.msra.mxu1 %v10665_v59  ;;  %v14048_v30 = vadd.f32 %v13869_v12, %v4563_v44  ;;  %v10649_v12 = vcombine.low %v3395_v58, %v3399_v2  ;;  %v3511_v44 = vld [vmem:[%s12331_s30 + $0x3b8] sm:$0xff] }
 0x400   : > { %v14050_v53 = vpop.f32.mrf.mxu1  ;;  %5667 = vmatprep.subr.bf16.mxu1 %v10658_v10  ;;  %v4565_v61 = vpop.f32.mrf.mxu0  ;;  %v19359_v48 = vld [vmem:[#allocation89_spill] sm:$0xff] }
 0x401   : > { %v14055_v20 = vadd.f32 %v13873_v5, %v4565_v61  ;;  %v10770_v5 = vcombine.high %v3515_v32, %v3519_v56 }
 0x402   : > { %v14057_v18 = vpop.f32.mrf.mxu1  ;;  %5332 = vmatmul.mubr.bf16.gmra.mxu1 %v13642_v3  ;;  %v4567_v28 = vpop.f32.mrf.mxu0  ;;  %v3507_v3 = vld [vmem:[%s12331_s30 + $0x398] sm:$0xff] }
 0x403   : > { %5668 = vmatpush1.bf16.msra.mxu1 %v10657_v43  ;;  %5341 = vmatprep.mubr.bf16.mxu1 %v13646_v24  ;;  %v14064_v59 = vadd.f32 %v13886_v34, %v4567_v28  ;;  %v10769_v43 = vcombine.low %v3515_v32, %v3519_v56  ;;  %v10762_v28 = vcombine.high %v3507_v3, %v3511_v44  ;;  %v3503_v24 = vld [vmem:[%s12331_s30 + $0x378] sm:$0xff] }
 0x404   : > { %v14066_v10 = vpop.f32.mrf.mxu1  ;;  %5669 = vmatprep.subr.bf16.mxu1 %v10650_v47  ;;  %v4571_v61 = vpop.f32.mrf.mxu0  ;;  %10807 = vmatmul.mubr.msk.bf16.gmra.mxu0 %vm4448_vm2, %v13661_v16 }
 0x405   : > { %v14075_v58 = vadd.f32 %v13888_v1, %v4571_v61  ;;  %5238 = vmatprep.mubr.bf16.mxu0 %v19330_v23 }
 0x406   : > { %v14077_v34 = vpop.f32.mrf.mxu1  ;;  %v4573_v2 = vpop.f32.mrf.mxu0 }
 0x407   : > { %5670 = vmatpush1.bf16.msra.mxu1 %v10649_v12  ;;  %v14081_v47 = vadd.f32 %v13892_v13, %v4573_v2  ;;  %v10761_v13 = vcombine.low %v3507_v3, %v3511_v44  ;;  %v3495_v2 = vld [vmem:[%s12331_s30 + $0x338] sm:$0xff] }
 0x408   : > { %v14083_v16 = vpop.f32.mrf.mxu1  ;;  %5671 = vmatprep.subr.bf16.mxu1 %v10770_v5  ;;  %v4575_v19 = vpop.f32.mrf.mxu0 }
 0x409   : > { %v14088_v1 = vadd.f32 %v13896_v29, %v4575_v19  ;;  %v10754_v29 = vcombine.high %v3499_v57, %v3503_v24 }
 0x40a   : > { %v14090_v61 = vpop.f32.mrf.mxu1  ;;  %5342 = vmatmul.mubr.bf16.gmra.mxu1 %v13653_v36  ;;  %v4577_v32 = vpop.f32.mrf.mxu0  ;;  %v3491_v36 = vld [vmem:[%s12331_s30 + $0x318] sm:$0xff] }
 0x40b   : > { %5672 = vmatpush2.bf16.msra.mxu1 %v10769_v43  ;;  %5351 = vmatprep.mubr.bf16.mxu1 %v13657_v63  ;;  %v14097_v12 = vadd.f32 %v13899_v51, %v4577_v32  ;;  %v10753_v43 = vcombine.low %v3499_v57, %v3503_v24  ;;  %v10746_v32 = vcombine.high %v3491_v36, %v3495_v2  ;;  %v3487_v63 = vld [vmem:[%s12331_s30 + $0x2f8] sm:$0xff] }
 0x40c   : > { %v14099_v5 = vpop.f32.mrf.mxu1  ;;  %5673 = vmatprep.subr.bf16.mxu1 %v10762_v28  ;;  %v4581_v19 = vpop.f32.mrf.mxu0  ;;  %10808 = vmatmul.mubr.msk.bf16.gmra.mxu0 %vm4448_vm2, %v13682_v26 }
 0x40d   : > { %v14108_v3 = vadd.f32 %v13901_v60, %v4581_v19  ;;  %5248 = vmatprep.mubr.bf16.mxu0 %v19330_v23 }
 0x40e   : > { %v14110_v51 = vpop.f32.mrf.mxu1  ;;  %v4583_v44 = vpop.f32.mrf.mxu0 }
 0x40f   : > { %5674 = vmatpush2.bf16.msra.mxu1 %v10761_v13  ;;  %v14114_v28 = vadd.f32 %v13905_v46, %v4583_v44  ;;  %v10745_v46 = vcombine.low %v3491_v36, %v3495_v2  ;;  %v3479_v44 = vld [vmem:[%s12331_s30 + $0x2b8] sm:$0xff] }
 0x410   : > { %v14116_v26 = vpop.f32.mrf.mxu1  ;;  %5675 = vmatprep.subr.bf16.mxu1 %v10754_v29  ;;  %v4585_v56 = vpop.f32.mrf.mxu0 }
 0x411   : > { %v14121_v60 = vadd.f32 %v13909_v0, %v4585_v56  ;;  %v10738_v0 = vcombine.high %v3483_v41, %v3487_v63 }
 0x412   : > { %v14123_v19 = vpop.f32.mrf.mxu1  ;;  %5352 = vmatmul.mubr.bf16.gmra.mxu1 %v13674_v31  ;;  %v4587_v57 = vpop.f32.mrf.mxu0  ;;  %v3475_v31 = vld [vmem:[%s12331_s30 + $0x298] sm:$0xff] }
 0x413   : > { %5676 = vmatpush2.bf16.msra.mxu1 %v10753_v43  ;;  %5361 = vmatprep.mubr.bf16.mxu1 %v13678_v27  ;;  %v14130_v13 = vadd.f32 %v13912_v15, %v4587_v57  ;;  %v10737_v43 = vcombine.low %v3483_v41, %v3487_v63  ;;  %v10730_v57 = vcombine.high %v3475_v31, %v3479_v44  ;;  %v3471_v27 = vld [vmem:[%s12331_s30 + $0x278] sm:$0xff] }
 0x414   : > { %v14132_v29 = vpop.f32.mrf.mxu1  ;;  %5677 = vmatprep.subr.bf16.mxu1 %v10746_v32  ;;  %v4591_v56 = vpop.f32.mrf.mxu0  ;;  %10809 = vmatmul.mubr.msk.bf16.gmra.mxu0 %vm4448_vm2, %v13693_v54 }
 0x415   : > { %v14141_v36 = vadd.f32 %v13914_v45, %v4591_v56  ;;  %5258 = vmatprep.mubr.bf16.mxu0 %v19330_v23 }
 0x416   : > { %v14143_v15 = vpop.f32.mrf.mxu1  ;;  %v4593_v2 = vpop.f32.mrf.mxu0 }
 0x417   : > { %5678 = vmatpush2.bf16.msra.mxu1 %v10745_v46  ;;  %v14147_v32 = vadd.f32 %v13918_v49, %v4593_v2  ;;  %v10729_v49 = vcombine.low %v3475_v31, %v3479_v44  ;;  %v19351_v2 = vld [vmem:[#allocation60_spill] sm:$0xff]  ;;  %v19352_v31 = vld [vmem:[#allocation81_spill] sm:$0xff] }
 0x418   : > { %v14149_v54 = vpop.f32.mrf.mxu1  ;;  %5679 = vmatprep.subr.bf16.mxu1 %v10738_v0  ;;  %v4595_v24 = vpop.f32.mrf.mxu0 }
 0x419   : > { %v14154_v45 = vadd.f32 %v13922_v8, %v4595_v24  ;;  %v10722_v8 = vcombine.high %v3467_v11, %v3471_v27 }
 0x41a   : > { %v14156_v56 = vpop.f32.mrf.mxu1  ;;  %5362 = vmatmul.mubr.bf16.gmra.mxu1 %v13685_v25  ;;  %v4597_v41 = vpop.f32.mrf.mxu0  ;;  %v3459_v25 = vld [vmem:[%s12331_s30 + $0x218] sm:$0xff] }
 0x41b   : > { %5680 = vmatpush2.bf16.msra.mxu1 %v10737_v43  ;;  %5371 = vmatprep.mubr.bf16.mxu1 %v13689_v62  ;;  %v14163_v46 = vadd.f32 %v13925_v39, %v4597_v41  ;;  %v10714_v63 = vcombine.high %v3459_v25, %v3463_v37  ;;  %v19354_v62 = vld [vmem:[#allocation58_spill] sm:$0xff]  ;;  %v10713_v9 = vcombine.low %v3459_v25, %v3463_v37  ;;  %v19361_v37 = vld [vmem:[#allocation79_spill] sm:$0xff] }
 0x41c   : > { %v14165_v0 = vpop.f32.mrf.mxu1  ;;  %5681 = vmatprep.subr.bf16.mxu1 %v10730_v57  ;;  %v4601_v24 = vpop.f32.mrf.mxu0  ;;  %10810 = vmatmul.mubr.msk.bf16.gmra.mxu0 %vm4448_vm2, %v19351_v2  ;;  %v10721_v57 = vcombine.low %v3467_v11, %v3471_v27  ;;  %v19357_v27 = vld [vmem:[#allocation87_spill] sm:$0xff] }
 0x41d   : > { %v14174_v44 = vadd.f32 %v19352_v31, %v4601_v24  ;;  %5494 = vmatprep.mubr.bf16.mxu0 %v19330_v23  ;;  %v19355_v31 = vld [vmem:[#allocation59_spill] sm:$0xff] }
 0x41e   : > { %v14176_v43 = vpop.f32.mrf.mxu1  ;;  %v4603_v39 = vpop.f32.mrf.mxu0 }
 0x41f   : > { %5682 = vmatpush2.bf16.msra.mxu1 %v10729_v49  ;;  %v4797_v49 = vadd.f32 %v19356_v42, %v4603_v39  ;;  %v19362_v42 = vld [vmem:[#allocation80_spill] sm:$0xff] }
 0x420   : > { %v14179_v41 = vpop.f32.mrf.mxu1  ;;  %5683 = vmatprep.subr.bf16.mxu1 %v10722_v8  ;;  %v4605_v2 = vpop.f32.mrf.mxu0  ;;  %v19363_v25 = vcombine.low %v19361_v37, %v19362_v42  ;;  %v19367_v37 = vld [vmem:[#allocation62_spill] sm:$0xff] }
 0x421   : > { %v14182_v35 = vadd.f32 %v19353_v55, %v4605_v2  ;;  %v19358_v2 = vld [vmem:[#allocation76_spill] sm:$0xff] }
 0x422   : > { %v14184_v4 = vpop.f32.mrf.mxu1  ;;  %5372 = vmatmul.mubr.bf16.gmra.mxu1 %v19354_v62  ;;  %v4607_v24 = vpop.f32.mrf.mxu0 }
 0x423   : > { %5684 = vmatpush2.bf16.msra.mxu1 %v10721_v57  ;;  %5381 = vmatprep.mubr.bf16.mxu1 %v19355_v31  ;;  %v4801_v8 = vadd.f32 %v19357_v27, %v4607_v24 }
 0x424   : > { %v14192_v7 = vpop.f32.mrf.mxu1  ;;  %5685 = vmatprep.subr.bf16.mxu1 %v10714_v63  ;;  %v4611_v55 = vpop.f32.mrf.mxu0  ;;  %10811 = vmatmul.mubr.msk.bf16.vlgmr.msra.gmra.mxu0 %vm4448_vm2, %v19358_v2 }
 0x425   : > { %v6098_v62 = vpack.c.bf16 %v4801_v8, %v4797_v49  ;;  %v14197_v57 = vadd.f32 %v19359_v48, %v4611_v55  ;;  %5504 = vmatprep.mubr.bf16.mxu0 %v19330_v23  ;;  %5863 = vmatpush1.bf16.msra.mxu0 %v19363_v25  ;;  %v19366_v55 = vld [vmem:[#allocation61_spill] sm:$0xff] }
 0x426   : > { %v14199_v31 = vpop.f32.mrf.mxu1  ;;  %v4613_v39 = vpop.f32.mrf.mxu0  ;;  %v19369_v25 = vld [vmem:[#allocation77_spill] sm:$0xff] }
 0x427   : > { %19360 = vst [vmem:[#allocation60_spill] sm:$0xff] %v14197_v57  ;;  %5686 = vmatpush2.bf16.msra.mxu1 %v10713_v9  ;;  %v14206_v63 = vadd.f32 %v13967_v21, %v4613_v39  ;;  %v6226_v49 = vmax.bf16 %v19330_v23, %v6098_v62  ;;  %v19373_v21 = vld [vmem:[#allocation63_spill] sm:$0xff]  ;;  %v19376_v57 = vld [vmem:[#allocation78_spill] sm:$0xff] }
 0x428   : > { %v14208_v24 = vpop.f32.mrf.mxu1  ;;  %v4615_v27 = vpop.f32.mrf.mxu0 }
 0x429   : > { %19364 = vst [vmem:[#allocation81_spill] sm:$0xff] %v14206_v63  ;;  %v14212_v48 = vadd.f32 %v13978_v40, %v4615_v27  ;;  %6489 = vmatprep.subr.bf16.mxu1 %v6226_v49 }
 0x42a   : > { %v14214_v8 = vpop.f32.mrf.mxu1  ;;  %5382 = vmatmul.mubr.bf16.gmra.mxu1 %v19366_v55  ;;  %v4617_v2 = vpop.f32.mrf.mxu0 }
 0x42b   : > { %19365 = vst [vmem:[#allocation85_spill] sm:$0xff] %v14212_v48  ;;  %5391 = vmatprep.mubr.bf16.mxu1 %v19367_v37  ;;  %v14221_v9 = vadd.f32 %v13984_v50, %v4617_v2 }
 0x42c   : > { %v14223_v42 = vpop.f32.mrf.mxu1  ;;  %v4621_v62 = vpop.f32.mrf.mxu0  ;;  %10812 = vmatmul.mubr.msk.bf16.gmra.mxu0 %vm4448_vm2, %v19369_v25 }
 0x42d   : > { %19368 = vst [vmem:[#allocation58_spill] sm:$0xff] %v14221_v9  ;;  %v14230_v39 = vadd.f32 %v13991_v14, %v4621_v62  ;;  %5514 = vmatprep.mubr.bf16.mxu0 %v19330_v23  ;;  %v19374_v62 = vld [vmem:[#allocation64_spill] sm:$0xff] }
 0x42e   : > { %v14232_v49 = vpop.f32.mrf.mxu1  ;;  %v4623_v27 = vpop.f32.mrf.mxu0 }
 0x42f   : > { %19370 = vst [vmem:[#allocation59_spill] sm:$0xff] %v14230_v39  ;;  %v14236_v50 = vadd.f32 %v14000_v22, %v4623_v27  ;;  %v14283_v39 = vld [vmem:[#allocation2 + $0x50] ss:$12 sps:$4 sm:$0xff]  }
 0x430   : > { %v14238_v55 = vpop.f32.mrf.mxu1  ;;  %v4625_v2 = vpop.f32.mrf.mxu0  ;;  %19383 = vst [vmem:[#allocation62_spill] sm:$0xff] %v14283_v39 }
 0x431   : > { %19371 = vst [vmem:[#allocation83_spill] sm:$0xff] %v14236_v50  ;;  %v14241_v37 = vadd.f32 %v14011_v38, %v4625_v2  ;;  %v19380_v38 = vld [vmem:[#allocation65_spill] sm:$0xff] }
 0x432   : > { %v14243_v25 = vpop.f32.mrf.mxu1  ;;  %5392 = vmatmul.mubr.bf16.gmra.mxu1 %v19373_v21  ;;  %v4627_v14 = vpop.f32.mrf.mxu0 }
 0x433   : > { %19372 = vst [vmem:[#allocation87_spill] sm:$0xff] %v14241_v37  ;;  %5401 = vmatprep.mubr.bf16.mxu1 %v19374_v62  ;;  %v14250_v11 = vadd.f32 %v14017_v33, %v4627_v14 }
 0x434   : > { %v14252_v22 = vpop.f32.mrf.mxu1  ;;  %v4631_v27 = vpop.f32.mrf.mxu0  ;;  %10813 = vmatmul.mubr.msk.bf16.gmra.mxu0 %vm4448_vm2, %v19376_v57 }
 0x435   : > { %19375 = vst [vmem:[#allocation76_spill] sm:$0xff] %v14250_v11  ;;  %v14259_v21 = vadd.f32 %v14024_v52, %v4631_v27  ;;  %5524 = vmatprep.mubr.bf16.mxu0 %v19330_v23  ;;  %v19381_v27 = vld [vmem:[#allocation66_spill] sm:$0xff] }
 0x436   : > { %v14261_v2 = vpop.f32.mrf.mxu1  ;;  %v4633_v62 = vpop.f32.mrf.mxu0 }
 0x437   : > { %19377 = vst [vmem:[#allocation89_spill] sm:$0xff] %v14259_v21  ;;  %v14265_v33 = vadd.f32 %v14033_v17, %v4633_v62  ;;  %v14314_v21 = vld [vmem:[#allocation2 + $0x68] ss:$12 sps:$4 sm:$0xff]  }
 0x438   : > { %v14267_v14 = vpop.f32.mrf.mxu1  ;;  %v4635_v40 = vpop.f32.mrf.mxu0  ;;  %19390 = vst [vmem:[#allocation65_spill] sm:$0xff] %v14314_v21 }
 0x439   : > { %19378 = vst [vmem:[#allocation79_spill] sm:$0xff] %v14265_v33  ;;  %v14270_v48 = vadd.f32 %v14044_v6, %v4635_v40  ;;  %v19387_v6 = vld [vmem:[#allocation67_spill] sm:$0xff] }
 0x43a   : > { %v14272_v57 = vpop.f32.mrf.mxu1  ;;  %5402 = vmatmul.mubr.bf16.gmra.mxu1 %v19380_v38  ;;  %v4637_v52 = vpop.f32.mrf.mxu0 }
 0x43b   : > { %19379 = vst [vmem:[#allocation80_spill] sm:$0xff] %v14270_v48  ;;  %5411 = vmatprep.mubr.bf16.mxu1 %v19381_v27  ;;  %v14279_v9 = vadd.f32 %v14050_v53, %v4637_v52 }
 0x43c   : > { %v14281_v17 = vpop.f32.mrf.mxu1  ;;  %v4641_v62 = vpop.f32.mrf.mxu0  ;;  %10814 = vmatmul.mubr.msk.bf16.gmra.mxu0 %vm4448_vm2, %v14283_v39 }
 0x43d   : > { %19382 = vst [vmem:[#allocation61_spill] sm:$0xff] %v14279_v9  ;;  %v14290_v40 = vadd.f32 %v14057_v18, %v4641_v62  ;;  %5534 = vmatprep.mubr.bf16.mxu0 %v19330_v23  ;;  %v19388_v62 = vld [vmem:[#allocation68_spill] sm:$0xff] }
 0x43e   : > { %v14292_v38 = vpop.f32.mrf.mxu1  ;;  %v4643_v53 = vpop.f32.mrf.mxu0 }
 0x43f   : > { %19384 = vst [vmem:[#allocation77_spill] sm:$0xff] %v14290_v40  ;;  %v14296_v52 = vadd.f32 %v14066_v10, %v4643_v53  ;;  %v14345_v40 = vld [vmem:[#allocation2 + $0x80] ss:$12 sps:$4 sm:$0xff]  }
 0x440   : > { %v14298_v27 = vpop.f32.mrf.mxu1  ;;  %v4645_v63 = vpop.f32.mrf.mxu0 }
 0x441   : > { %19385 = vst [vmem:[#allocation63_spill] sm:$0xff] %v14296_v52  ;;  %v14301_v37 = vadd.f32 %v14077_v34, %v4645_v63  ;;  %v19394_v34 = vld [vmem:[#allocation69_spill] sm:$0xff] }
 0x442   : > { %v14303_v39 = vpop.f32.mrf.mxu1  ;;  %5412 = vmatmul.mubr.bf16.gmra.mxu1 %v19387_v6  ;;  %v4647_v18 = vpop.f32.mrf.mxu0 }
 0x443   : > { %19386 = vst [vmem:[#allocation64_spill] sm:$0xff] %v14301_v37  ;;  %5421 = vmatprep.mubr.bf16.mxu1 %v19388_v62  ;;  %v14310_v11 = vadd.f32 %v14083_v16, %v4647_v18 }
 0x444   : > { %v14312_v10 = vpop.f32.mrf.mxu1  ;;  %v4651_v53 = vpop.f32.mrf.mxu0  ;;  %10815 = vmatmul.mubr.msk.bf16.gmra.mxu0 %vm4448_vm2, %v14314_v21 }
 0x445   : > { %19389 = vst [vmem:[#allocation78_spill] sm:$0xff] %v14310_v11  ;;  %v14321_v63 = vadd.f32 %v14090_v61, %v4651_v53  ;;  %5544 = vmatprep.mubr.bf16.mxu0 %v19330_v23  ;;  %v19395_v53 = vld [vmem:[#allocation70_spill] sm:$0xff] }
 0x446   : > { %v14323_v6 = vpop.f32.mrf.mxu1  ;;  %v4653_v16 = vpop.f32.mrf.mxu0  ;;  %19397 = vst [vmem:[#allocation70_spill] sm:$0xff] %v14345_v40 }
 0x447   : > { %19391 = vst [vmem:[#allocation66_spill] sm:$0xff] %v14321_v63  ;;  %v14327_v18 = vadd.f32 %v14099_v5, %v4653_v16 }
 0x448   : > { %v14329_v62 = vpop.f32.mrf.mxu1  ;;  %v4655_v50 = vpop.f32.mrf.mxu0 }
 0x449   : > { %19392 = vst [vmem:[#allocation67_spill] sm:$0xff] %v14327_v18  ;;  %v14332_v48 = vadd.f32 %v14110_v51, %v4655_v50  ;;  %v19399_v51 = vld [vmem:[#allocation72_spill] sm:$0xff] }
 0x44a   : > { %v14334_v21 = vpop.f32.mrf.mxu1  ;;  %5422 = vmatmul.mubr.bf16.gmra.mxu1 %v19394_v34  ;;  %v4657_v61 = vpop.f32.mrf.mxu0 }
 0x44b   : > { %19393 = vst [vmem:[#allocation68_spill] sm:$0xff] %v14332_v48  ;;  %5431 = vmatprep.mubr.bf16.mxu1 %v19395_v53  ;;  %v14341_v9 = vadd.f32 %v14116_v26, %v4657_v61 }
 0x44c   : > { %v14343_v5 = vpop.f32.mrf.mxu1  ;;  %v4661_v16 = vpop.f32.mrf.mxu0  ;;  %10816 = vmatmul.mubr.msk.bf16.gmra.mxu0 %vm4448_vm2, %v14345_v40  ;;  %v19398_v40 = vld [vmem:[#allocation71_spill] sm:$0xff] }
 0x44d   : > { %19396 = vst [vmem:[#allocation69_spill] sm:$0xff] %v14341_v9  ;;  %5554 = vmatprep.mubr.bf16.mxu0 %v19330_v23  ;;  %v14357_v61 = vadd.f32 %v14123_v19, %v4661_v16  ;;  %v14376_v16 = vld [vmem:[#allocation2 + $0x98] ss:$12 sps:$4 sm:$0xff]  }
 0x44e   : > { %v14351_v50 = vpop.f32.mrf.mxu1  ;;  %v4663_v34 = vpop.f32.mrf.mxu0  ;;  %19401 = vst [vmem:[#allocation72_spill] sm:$0xff] %v14376_v16 }
 0x44f   : > { %v14367_v11 = vadd.f32 %v14132_v29, %v4663_v34 }
 0x450   : > { %v14354_v53 = vpop.f32.mrf.mxu1  ;;  %v4665_v26 = vpop.f32.mrf.mxu0 }
 0x451   : > { %v14360_v33 = vadd.f32 %v14143_v15, %v4665_v26 }
 0x452   : > { %v14362_v37 = vpop.f32.mrf.mxu1  ;;  %5432 = vmatmul.mubr.bf16.gmra.mxu1 %v19398_v40  ;;  %v4667_v52 = vpop.f32.mrf.mxu0  ;;  %v19405_v40 = vld [vmem:[#allocation74_spill] sm:$0xff] }
 0x453   : > { %5441 = vmatprep.mubr.bf16.mxu1 %v19399_v51  ;;  %v14372_v48 = vadd.f32 %v14149_v54, %v4667_v52 }
 0x454   : > { %v14374_v19 = vpop.f32.mrf.mxu1  ;;  %v4671_v15 = vpop.f32.mrf.mxu0  ;;  %10817 = vmatmul.mubr.msk.bf16.gmra.mxu0 %vm4448_vm2, %v14376_v16  ;;  %v19404_v16 = vld [vmem:[#allocation73_spill] sm:$0xff] }
 0x455   : > { %19400 = vst [vmem:[#allocation71_spill] sm:$0xff] %v14374_v19  ;;  %5564 = vmatprep.mubr.bf16.mxu0 %v19330_v23  ;;  %v14388_v52 = vadd.f32 %v14156_v56, %v4671_v15  ;;  %v14407_v15 = vld [vmem:[#allocation2 + $0xb0] ss:$12 sps:$4 sm:$0xff]  }
 0x456   : > { %v14382_v51 = vpop.f32.mrf.mxu1  ;;  %v4673_v29 = vpop.f32.mrf.mxu0  ;;  %19407 = vst [vmem:[#allocation74_spill] sm:$0xff] %v14407_v15 }
 0x457   : > { %v14398_v18 = vadd.f32 %v14165_v0, %v4673_v29 }
 0x458   : > { %v14385_v34 = vpop.f32.mrf.mxu1  ;;  %v4675_v54 = vpop.f32.mrf.mxu0 }
 0x459   : > { %19402 = vst [vmem:[#allocation100_spill] sm:$0xff] %v14385_v34  ;;  %v14391_v26 = vadd.f32 %v14176_v43, %v4675_v54 }
 0x45a   : > { %v14393_v63 = vpop.f32.mrf.mxu1  ;;  %5442 = vmatmul.mubr.bf16.gmra.mxu1 %v19404_v16  ;;  %v4677_v19 = vpop.f32.mrf.mxu0  ;;  %v19411_v16 = vld [vmem:[#allocation82_spill] sm:$0xff] }
 0x45b   : > { %19403 = vst [vmem:[#allocation101_spill] sm:$0xff] %v14393_v63  ;;  %5451 = vmatprep.mubr.bf16.mxu1 %v19405_v40  ;;  %v14403_v9 = vadd.f32 %v14179_v41, %v4677_v19 }
 0x45c   : > { %v14405_v56 = vpop.f32.mrf.mxu1  ;;  %v4681_v43 = vpop.f32.mrf.mxu0  ;;  %10818 = vmatmul.mubr.msk.bf16.gmra.mxu0 %vm4448_vm2, %v14407_v15  ;;  %v19410_v15 = vld [vmem:[#allocation75_spill] sm:$0xff] }
 0x45d   : > { %19406 = vst [vmem:[#allocation73_spill] sm:$0xff] %v14405_v56  ;;  %5574 = vmatprep.mubr.bf16.mxu0 %v19330_v23  ;;  %v14419_v19 = vadd.f32 %v14184_v4, %v4681_v43  ;;  %v14438_v43 = vld [vmem:[#allocation2 + $0xc8] ss:$12 sps:$4 sm:$0xff]  }
 0x45e   : > { %v14413_v40 = vpop.f32.mrf.mxu1  ;;  %v4683_v0 = vpop.f32.mrf.mxu0  ;;  %19413 = vst [vmem:[#allocation82_spill] sm:$0xff] %v14438_v43 }
 0x45f   : > { %19408 = vst [vmem:[#allocation102_spill] sm:$0xff] %v14413_v40  ;;  %v14429_v40 = vadd.f32 %v14192_v7, %v4683_v0 }
 0x460   : > { %v14416_v29 = vpop.f32.mrf.mxu1  ;;  %v4685_v41 = vpop.f32.mrf.mxu0 }
 0x461   : > { %19409 = vst [vmem:[#allocation103_spill] sm:$0xff] %v14416_v29  ;;  %v14422_v54 = vadd.f32 %v14199_v31, %v4685_v41  ;;  %v19415_v41 = vpack.c.bf16 %v14182_v35, %v14174_v44 }
 0x462   : > { %v14424_v34 = vpop.f32.mrf.mxu1  ;;  %5452 = vmatmul.mubr.bf16.gmra.mxu1 %v19410_v15  ;;  %v4687_v56 = vpop.f32.mrf.mxu0 }
 0x463   : > { %5687 = vmatprep.mubr.bf16.mxu1 %v19411_v16  ;;  %v14434_v63 = vadd.f32 %v14208_v24, %v4687_v56  ;;  %v6225_v29 = vmax.bf16 %v19330_v23, %v19415_v41  ;;  %v14479_v41 = vld [vmem:[#allocation2 + $0xe0] ss:$12 sps:$4 sm:$0xff]  }
 0x464   : > { %v14436_v4 = vpop.f32.mrf.mxu1  ;;  %v5110_v31 = vpop.f32.mrf.mxu0  ;;  %10819 = vmatmul.mubr.msk.bf16.gmra.mxu0 %vm4448_vm2, %v14438_v43  ;;  %19418 = vst [vmem:[#allocation105_spill] sm:$0xff] %v14479_v41 }
 0x465   : > { %19412 = vst [vmem:[#allocation75_spill] sm:$0xff] %v14436_v4  ;;  %v14447_v7 = vadd.f32 %v5110_v31, %v14214_v8  ;;  %5584 = vmatprep.mubr.bf16.mxu0 %v19330_v23  ;;  %v11765_v8 = vld [vmem:[#allocation2] ss:$12 sps:$4 sm:$0xff]   ;;  %v19416_v31 = vpack.c.bf16 %v14163_v46, %v14147_v32 }
 0x466   : > { %v14444_v16 = vpop.f32.mrf.mxu1  ;;  %v5112_v24 = vpop.f32.mrf.mxu0 }
 0x467   : > { %v14453_v0 = vadd.f32 %v5112_v24, %v14223_v42  ;;  %v11766_v24 = vld [vmem:[#allocation2 + $0x1c] ss:$12 sps:$4 sm:$0xff]  }
 0x468   : > { %v14450_v56 = vpop.f32.mrf.mxu1  ;;  %v5114_v43 = vpop.f32.mrf.mxu0 }
 0x469   : > { %19414 = vst [vmem:[#allocation104_spill] sm:$0xff] %v14450_v56  ;;  %v14462_v4 = vadd.f32 %v5114_v43, %v14232_v49  ;;  %v6218_v56 = vmax.bf16 %v19330_v23, %v19416_v31  ;;  %v19417_v43 = vpack.c.bf16 %v14154_v45, %v14141_v36 }
 0x46a   : > { %v14459_v15 = vpop.f32.mrf.mxu1  ;;  %5688 = vmatmul.mubr.bf16.vlgmr.msra.gmra.mxu1 %v11765_v8  ;;  %v5116_v42 = vpop.f32.mrf.mxu0 }
 0x46b   : > { %6490 = vmatpush1.bf16.msra.mxu1 %v6225_v29  ;;  %5697 = vmatprep.mubr.bf16.mxu1 %v11766_v24  ;;  %v14473_v49 = vadd.f32 %v5116_v42, %v14238_v55  ;;  %v6217_v32 = vmax.bf16 %v19330_v23, %v19417_v43  ;;  %v19419_v55 = vpack.c.bf16 %v14130_v13, %v14114_v28  ;;  %v11768_v13 = vld [vmem:[#allocation2 + $0x18] ss:$12 sps:$4 sm:$0xff]  }
 0x46c   : > { %6491 = vmatprep.subr.bf16.mxu1 %v6218_v56  ;;  %v14470_v44 = vpop.f32.mrf.mxu1  ;;  %v5120_v46 = vpop.f32.mrf.mxu0  ;;  %10820 = vmatmul.mubr.msk.bf16.gmra.mxu0 %vm4448_vm2, %v14479_v41  ;;  %v19420_v24 = vpack.c.bf16 %v14121_v60, %v14108_v3  ;;  %v11772_v29 = vld [vmem:[#allocation2 + $0x4c] ss:$12 sps:$4 sm:$0xff]  }
 0x46d   : > { %v14488_v8 = vadd.f32 %v5120_v46, %v14243_v25  ;;  %v6210_v36 = vmax.bf16 %v19330_v23, %v19419_v55  ;;  %5594 = vmatprep.mubr.bf16.mxu0 %v19330_v23  ;;  %v19438_v3 = vld [vmem:[#allocation91_spill] sm:$0xff] }
 0x46e   : > { %v14485_v56 = vpop.f32.mrf.mxu1  ;;  %v5122_v45 = vpop.f32.mrf.mxu0  ;;  %v6209_v25 = vmax.bf16 %v19330_v23, %v19420_v24  ;;  %v14524_v24 = vld [vmem:[#allocation2 + $0xf8] ss:$12 sps:$4 sm:$0xff]  }
 0x46f   : > { %6492 = vmatpush1.bf16.msra.mxu1 %v6217_v32  ;;  %v14498_v42 = vadd.f32 %v5122_v45, %v14252_v22  ;;  %v19421_v32 = vpack.c.bf16 %v14097_v12, %v14081_v47  ;;  %v19422_v45 = vpack.c.bf16 %v14088_v1, %v14075_v58  ;;  %19423 = vst [vmem:[#allocation106_spill] sm:$0xff] %v14524_v24 }
 0x470   : > { %6493 = vmatprep.subr.bf16.mxu1 %v6210_v36  ;;  %v14495_v31 = vpop.f32.mrf.mxu1  ;;  %v5124_v43 = vpop.f32.mrf.mxu0  ;;  %v11769_v36 = vld [vmem:[#allocation2 + $0x34] ss:$12 sps:$4 sm:$0xff]  }
 0x471   : > { %v14507_v28 = vadd.f32 %v5124_v43, %v14261_v2  ;;  %v6202_v55 = vmax.bf16 %v19330_v23, %v19421_v32  ;;  %v6201_v47 = vmax.bf16 %v19330_v23, %v19422_v45 }
 0x472   : > { %v14504_v46 = vpop.f32.mrf.mxu1  ;;  %5698 = vmatmul.mubr.bf16.gmra.mxu1 %v11768_v13  ;;  %v5126_v22 = vpop.f32.mrf.mxu0 }
 0x473   : > { %6494 = vmatpush1.bf16.msra.mxu1 %v6209_v25  ;;  %5707 = vmatprep.mubr.bf16.mxu1 %v11769_v36  ;;  %v14518_v2 = vadd.f32 %v5126_v22, %v14267_v14  ;;  %v19424_v14 = vpack.c.bf16 %v14064_v59, %v14048_v30  ;;  %v11771_v30 = vld [vmem:[#allocation2 + $0x30] ss:$12 sps:$4 sm:$0xff]   ;;  %v19427_v59 = vld [vmem:[#allocation98_spill] sm:$0xff] }
 0x474   : > { %6495 = vmatprep.subr.bf16.mxu1 %v6202_v55  ;;  %v14515_v60 = vpop.f32.mrf.mxu1  ;;  %v5130_v12 = vpop.f32.mrf.mxu0  ;;  %10821 = vmatmul.mubr.msk.bf16.gmra.mxu0 %vm4448_vm2, %v14524_v24  ;;  %v19425_v55 = vld [vmem:[#allocation99_spill] sm:$0xff] }
 0x475   : > { %v14533_v13 = vadd.f32 %v5130_v12, %v14272_v57  ;;  %v6194_v58 = vmax.bf16 %v19330_v23, %v19424_v14  ;;  %5604 = vmatprep.mubr.bf16.mxu0 %v19330_v23  ;;  %v19426_v22 = vpack.c.bf16 %v14055_v20, %v19425_v55  ;;  %v19428_v14 = vld [vmem:[#allocation96_spill] sm:$0xff] }
 0x476   : > { %v14530_v43 = vpop.f32.mrf.mxu1  ;;  %v5132_v1 = vpop.f32.mrf.mxu0 }
 0x477   : > { %6496 = vmatpush1.bf16.msra.mxu1 %v6201_v47  ;;  %v6193_v36 = vmax.bf16 %v19330_v23, %v19426_v22  ;;  %v19429_v47 = vpack.c.bf16 %v19427_v59, %v19428_v14  ;;  %v14556_v20 = vadd.f32 %v5132_v1, %v14281_v17  ;;  %v19434_v1 = vld [vmem:[#allocation94_spill] sm:$0xff] }
 0x478   : > { %6497 = vmatprep.subr.bf16.mxu1 %v6194_v58  ;;  %v14540_v32 = vpop.f32.mrf.mxu1  ;;  %v5134_v45 = vpop.f32.mrf.mxu0 }
 0x479   : > { %v14549_v12 = vadd.f32 %v5134_v45, %v14292_v38  ;;  %v6186_v58 = vmax.bf16 %v19330_v23, %v19429_v47  ;;  %v19430_v45 = vld [vmem:[#allocation97_spill] sm:$0xff] }
 0x47a   : > { %v14546_v57 = vpop.f32.mrf.mxu1  ;;  %5708 = vmatmul.mubr.bf16.gmra.mxu1 %v11771_v30  ;;  %v5136_v35 = vpop.f32.mrf.mxu0  ;;  %v19431_v30 = vld [vmem:[#allocation95_spill] sm:$0xff]  ;;  %v14569_v47 = vld [vmem:[#allocation2 + $0x110] ss:$12 sps:$4 sm:$0xff]  }
 0x47b   : > { %6498 = vmatpush1.bf16.msra.mxu1 %v6193_v36  ;;  %5717 = vmatprep.mubr.bf16.mxu1 %v11772_v29  ;;  %v14563_v22 = vadd.f32 %v5136_v35, %v14298_v27  ;;  %v19432_v59 = vpack.c.bf16 %v19430_v45, %v19431_v30  ;;  %19433 = vst [vmem:[#allocation99_spill] sm:$0xff] %v14569_v47 }
 0x47c   : > { %6499 = vmatprep.subr.bf16.mxu1 %v6186_v58  ;;  %v14560_v38 = vpop.f32.mrf.mxu1  ;;  %v5140_v14 = vpop.f32.mrf.mxu0  ;;  %10822 = vmatmul.mubr.msk.bf16.gmra.mxu0 %vm4448_vm2, %v14569_v47  ;;  %v19435_v58 = vld [vmem:[#allocation92_spill] sm:$0xff] }
 0x47d   : > { %v6185_v36 = vmax.bf16 %v19330_v23, %v19432_v59  ;;  %v19436_v27 = vpack.c.bf16 %v19434_v1, %v19435_v58  ;;  %5614 = vmatprep.mubr.bf16.mxu0 %v19330_v23  ;;  %v19437_v59 = vld [vmem:[#allocation93_spill] sm:$0xff]  ;;  %v14589_v47 = vadd.f32 %v5140_v14, %v14303_v39  ;;  %v11774_v58 = vld [vmem:[#allocation2 + $0x48] ss:$12 sps:$4 sm:$0xff]  }
 0x47e   : > { %v14575_v29 = vpop.f32.mrf.mxu1  ;;  %v5142_v45 = vpop.f32.mrf.mxu0  ;;  %v19439_v25 = vpack.c.bf16 %v19437_v59, %v19438_v3  ;;  %v11775_v59 = vld [vmem:[#allocation2 + $0x64] ss:$12 sps:$4 sm:$0xff]  }
 0x47f   : > { %v6178_v35 = vmax.bf16 %v19330_v23, %v19436_v27  ;;  %6500 = vmatpush1.bf16.msra.mxu1 %v6185_v36  ;;  %v19440_v36 = vld [vmem:[#allocation90_spill] sm:$0xff] }
 0x480   : > { %v14582_v30 = vpop.f32.mrf.mxu1  ;;  %v6177_v55 = vmax.bf16 %v19330_v23, %v19439_v25  ;;  %v5144_v17 = vpop.f32.mrf.mxu0  ;;  %v19441_v27 = vld [vmem:[#allocation86_spill] sm:$0xff]  ;;  %v14601_v25 = vadd.f32 %v5142_v45, %v14312_v10 }
 0x481   : > { %6501 = vmatprep.subr.bf16.mxu1 %v6178_v35  ;;  %v14594_v1 = vadd.f32 %v5144_v17, %v14323_v6  ;;  %v19442_v35 = vpack.c.bf16 %v19440_v36, %v19441_v27  ;;  %v19443_v17 = vld [vmem:[#allocation88_spill] sm:$0xff] }
 0x482   : > { %v14591_v24 = vpop.f32.mrf.mxu1  ;;  %5718 = vmatmul.mubr.bf16.gmra.mxu1 %v11774_v58  ;;  %v5146_v3 = vpop.f32.mrf.mxu0  ;;  %v19444_v58 = vld [vmem:[#allocation84_spill] sm:$0xff] }
 0x483   : > { %v6170_v41 = vmax.bf16 %v19330_v23, %v19442_v35  ;;  %6502 = vmatpush1.bf16.msra.mxu1 %v6177_v55  ;;  %5727 = vmatprep.mubr.bf16.mxu1 %v11775_v59  ;;  %v14608_v14 = vadd.f32 %v5146_v3, %v14329_v62  ;;  %v19445_v36 = vpack.c.bf16 %v19443_v17, %v19444_v58  ;;  %v14614_v35 = vld [vmem:[#allocation2 + $0x128] ss:$12 sps:$4 sm:$0xff]  }
 0x484   : > { %v14605_v6 = vpop.f32.mrf.mxu1  ;;  %v5150_v27 = vpop.f32.mrf.mxu0  ;;  %19446 = vst [vmem:[#allocation98_spill] sm:$0xff] %v14614_v35  ;;  %10823 = vmatmul.mubr.msk.bf16.gmra.mxu0 %vm4448_vm2, %v14614_v35  ;;  %v19447_v62 = vpack.c.bf16 %v14434_v63, %v14429_v40  ;;  %v19448_v17 = vpack.c.bf16 %v14422_v54, %v14419_v19  ;;  %v11777_v40 = vld [vmem:[#allocation2 + $0x60] ss:$12 sps:$4 sm:$0xff]   ;;  %v11778_v54 = vld [vmem:[#allocation2 + $0x7c] ss:$12 sps:$4 sm:$0xff]  }
 0x485   : > { %6503 = vmatprep.subr.bf16.mxu1 %v6170_v41  ;;  %v6169_v55 = vmax.bf16 %v19330_v23, %v19445_v36  ;;  %5624 = vmatprep.mubr.bf16.mxu0 %v19330_v23  ;;  %v14634_v39 = vadd.f32 %v5150_v27, %v14334_v21  ;;  %v19477_v35 = vld [vmem:[#allocation101_spill] sm:$0xff] }
 0x486   : > { %v14620_v41 = vpop.f32.mrf.mxu1  ;;  %v6290_v45 = vmax.bf16 %v19330_v23, %v19447_v62  ;;  %v5152_v3 = vpop.f32.mrf.mxu0  ;;  %v6289_v58 = vmax.bf16 %v19330_v23, %v19448_v17 }
 0x487   : > { %6504 = vmatpush1.bf16.msra.mxu1 %v6169_v55  ;;  %v19450_v55 = vpack.c.bf16 %v14403_v9, %v14398_v18  ;;  %v19452_v9 = vpack.c.bf16 %v14391_v26, %v14388_v52 }
 0x488   : > { %6505 = vmatprep.subr.bf16.mxu1 %v6290_v45  ;;  %v14627_v59 = vpop.f32.mrf.mxu1  ;;  %v5154_v36 = vpop.f32.mrf.mxu0  ;;  %v14646_v45 = vadd.f32 %v5152_v3, %v14343_v5  ;;  %v14704_v5 = vld [vmem:[#allocation2 + $0x158] ss:$12 sps:$4 sm:$0xff]  }
 0x489   : > { %v14639_v63 = vadd.f32 %v5154_v36, %v14351_v50  ;;  %v6282_v62 = vmax.bf16 %v19330_v23, %v19450_v55  ;;  %v6281_v18 = vmax.bf16 %v19330_v23, %v19452_v9  ;;  %v19459_v9 = vld [vmem:[#allocation69_spill] sm:$0xff]  ;;  %19468 = vst [vmem:[#allocation90_spill] sm:$0xff] %v14704_v5 }
 0x48a   : > { %v14636_v10 = vpop.f32.mrf.mxu1  ;;  %5728 = vmatmul.mubr.bf16.gmra.mxu1 %v11777_v40  ;;  %v5156_v19 = vpop.f32.mrf.mxu0  ;;  %v19457_v40 = vpack.c.bf16 %v14360_v33, %v14357_v61  ;;  %v11781_v61 = vld [vmem:[#allocation2 + $0x94] ss:$12 sps:$4 sm:$0xff]  }
 0x48b   : > { %19449 = vst [vmem:[#allocation96_spill] sm:$0xff] %v14636_v10  ;;  %6506 = vmatpush2.bf16.msra.mxu1 %v6289_v58  ;;  %5737 = vmatprep.mubr.bf16.mxu1 %v11778_v54  ;;  %v14653_v27 = vadd.f32 %v5156_v19, %v14354_v53  ;;  %v14659_v58 = vld [vmem:[#allocation2 + $0x140] ss:$12 sps:$4 sm:$0xff]   ;;  %v19455_v53 = vpack.c.bf16 %v14372_v48, %v14367_v11  ;;  %v11780_v48 = vld [vmem:[#allocation2 + $0x78] ss:$12 sps:$4 sm:$0xff]  }
 0x48c   : > { %6507 = vmatprep.subr.bf16.mxu1 %v6282_v62  ;;  %v14650_v50 = vpop.f32.mrf.mxu1  ;;  %v5160_v17 = vpop.f32.mrf.mxu0  ;;  %19453 = vst [vmem:[#allocation95_spill] sm:$0xff] %v14659_v58  ;;  %10824 = vmatmul.mubr.msk.bf16.gmra.mxu0 %vm4448_vm2, %v14659_v58  ;;  %v6273_v55 = vmax.bf16 %v19330_v23, %v19457_v40  ;;  %v19462_v40 = vld [vmem:[#allocation71_spill] sm:$0xff] }
 0x48d   : > { %19451 = vst [vmem:[#allocation97_spill] sm:$0xff] %v14650_v50  ;;  %v6274_v36 = vmax.bf16 %v19330_v23, %v19455_v53  ;;  %5634 = vmatprep.mubr.bf16.mxu0 %v19330_v23  ;;  %v14679_v19 = vadd.f32 %v5160_v17, %v14362_v37  ;;  %v19464_v17 = vld [vmem:[#allocation100_spill] sm:$0xff]  ;;  %v19475_v37 = vld [vmem:[#allocation77_spill] sm:$0xff] }
 0x48e   : > { %v14665_v3 = vpop.f32.mrf.mxu1  ;;  %v5162_v52 = vpop.f32.mrf.mxu0  ;;  %v11788_v10 = vld [vmem:[#allocation2 + $0x8] ss:$12 sps:$4 sm:$0xff]  }
 0x48f   : > { %19454 = vst [vmem:[#allocation94_spill] sm:$0xff] %v14665_v3  ;;  %6508 = vmatpush2.bf16.msra.mxu1 %v6281_v18  ;;  %v19460_v18 = vld [vmem:[#allocation67_spill] sm:$0xff]  ;;  %v14691_v21 = vadd.f32 %v5162_v52, %v19462_v40 }
 0x490   : > { %6509 = vmatprep.subr.bf16.mxu1 %v6274_v36  ;;  %v14672_v26 = vpop.f32.mrf.mxu1  ;;  %v5164_v62 = vpop.f32.mrf.mxu0  ;;  %v19461_v53 = vpack.c.bf16 %v19459_v9, %v19460_v18  ;;  %v19466_v9 = vld [vmem:[#allocation66_spill] sm:$0xff]  ;;  %v19471_v40 = vld [vmem:[#allocation63_spill] sm:$0xff] }
 0x491   : > { %19456 = vst [vmem:[#allocation92_spill] sm:$0xff] %v14672_v26  ;;  %v14684_v11 = vadd.f32 %v5164_v62, %v14382_v51 }
 0x492   : > { %v14681_v54 = vpop.f32.mrf.mxu1  ;;  %5738 = vmatmul.mubr.bf16.gmra.mxu1 %v11780_v48  ;;  %v6266_v36 = vmax.bf16 %v19330_v23, %v19461_v53  ;;  %v5166_v33 = vpop.f32.mrf.mxu0  ;;  %v19465_v48 = vld [vmem:[#allocation68_spill] sm:$0xff] }
 0x493   : > { %19458 = vst [vmem:[#allocation93_spill] sm:$0xff] %v14681_v54  ;;  %6510 = vmatpush2.bf16.msra.mxu1 %v6273_v55  ;;  %5747 = vmatprep.mubr.bf16.mxu1 %v11781_v61  ;;  %v14698_v62 = vadd.f32 %v5166_v33, %v19464_v17  ;;  %v19467_v18 = vpack.c.bf16 %v19465_v48, %v19466_v9  ;;  %v19470_v61 = vld [vmem:[#allocation78_spill] sm:$0xff] }
 0x494   : > { %6511 = vmatprep.subr.bf16.mxu1 %v6266_v36  ;;  %v14695_v51 = vpop.f32.mrf.mxu1  ;;  %v5170_v53 = vpop.f32.mrf.mxu0  ;;  %10825 = vmatmul.mubr.msk.bf16.gmra.mxu0 %vm4448_vm2, %v14704_v5  ;;  %v19472_v33 = vpack.c.bf16 %v19470_v61, %v19471_v40  ;;  %v19479_v61 = vld [vmem:[#allocation102_spill] sm:$0xff] }
 0x495   : > { %19463 = vst [vmem:[#allocation91_spill] sm:$0xff] %v14695_v51  ;;  %v6265_v55 = vmax.bf16 %v19330_v23, %v19467_v18  ;;  %5644 = vmatprep.mubr.bf16.mxu0 %v19330_v23  ;;  %v19474_v18 = vld [vmem:[#allocation64_spill] sm:$0xff]  ;;  %v14724_v51 = vadd.f32 %v5170_v53, %v19477_v35 }
 0x496   : > { %v14710_v36 = vpop.f32.mrf.mxu1  ;;  %v6258_v17 = vmax.bf16 %v19330_v23, %v19472_v33  ;;  %v5172_v48 = vpop.f32.mrf.mxu0  ;;  %v19476_v5 = vpack.c.bf16 %v19474_v18, %v19475_v37  ;;  %v11783_v33 = vld [vmem:[#allocation2 + $0x90] ss:$12 sps:$4 sm:$0xff]   ;;  %v11784_v18 = vld [vmem:[#allocation2 + $0xac] ss:$12 sps:$4 sm:$0xff]  }
 0x497   : > { %19469 = vst [vmem:[#allocation86_spill] sm:$0xff] %v14710_v36  ;;  %6512 = vmatpush2.bf16.msra.mxu1 %v6265_v55  ;;  %v19480_v55 = vld [vmem:[#allocation61_spill] sm:$0xff] }
 0x498   : > { %6513 = vmatprep.subr.bf16.mxu1 %v6258_v17  ;;  %v14717_v9 = vpop.f32.mrf.mxu1  ;;  %v6257_v58 = vmax.bf16 %v19330_v23, %v19476_v5  ;;  %v5174_v52 = vpop.f32.mrf.mxu0  ;;  %v19481_v17 = vld [vmem:[#allocation79_spill] sm:$0xff]  ;;  %v19483_v5 = vld [vmem:[#allocation73_spill] sm:$0xff] }
 0x499   : > { %19473 = vst [vmem:[#allocation88_spill] sm:$0xff] %v14717_v9  ;;  %v14729_v40 = vadd.f32 %v5174_v52, %v19479_v61  ;;  %v19482_v54 = vpack.c.bf16 %v19480_v55, %v19481_v17  ;;  %v5173_v26 = vadd.f32 %v5172_v48, %v19483_v5  ;;  %v19485_v52 = vld [vmem:[#allocation103_spill] sm:$0xff] }
 0x49a   : > { %v14726_v36 = vpop.f32.mrf.mxu1  ;;  %5748 = vmatmul.mubr.bf16.gmra.mxu1 %v11783_v33  ;;  %v5176_v37 = vpop.f32.mrf.mxu0  ;;  %v19486_v33 = vld [vmem:[#allocation80_spill] sm:$0xff]  ;;  %v19496_v5 = vld [vmem:[#allocation59_spill] sm:$0xff] }
 0x49b   : > { %19478 = vst [vmem:[#allocation84_spill] sm:$0xff] %v14726_v36  ;;  %v6250_v9 = vmax.bf16 %v19330_v23, %v19482_v54  ;;  %6514 = vmatpush2.bf16.msra.mxu1 %v6257_v58  ;;  %5757 = vmatprep.mubr.bf16.mxu1 %v11784_v18  ;;  %v6091_v35 = vpack.c.bf16 %v14729_v40, %v14724_v51  ;;  %v19487_v36 = vld [vmem:[#allocation89_spill] sm:$0xff]  ;;  %v19491_v51 = vld [vmem:[#allocation76_spill] sm:$0xff] }
 0x49c   : > { %v14738_v53 = vpop.f32.mrf.mxu1  ;;  %v5177_v61 = vadd.f32 %v5176_v37, %v19485_v52  ;;  %v19488_v50 = vpack.c.bf16 %v19486_v33, %v19487_v36  ;;  %v5180_v54 = vpop.f32.mrf.mxu0  ;;  %v14745_v58 = vld [vmem:[#allocation2 + $0x170] ss:$12 sps:$4 sm:$0xff]   ;;  %v19495_v37 = vld [vmem:[#allocation87_spill] sm:$0xff] }
 0x49d   : > { %6515 = vmatprep.subr.bf16.mxu1 %v6250_v9  ;;  %19484 = vst [vmem:[#allocation69_spill] sm:$0xff] %v14738_v53  ;;  %19489 = vst [vmem:[#allocation67_spill] sm:$0xff] %v14745_v58  ;;  %10826 = vmatmul.mubr.msk.bf16.gmra.mxu0 %vm4448_vm2, %v14745_v58  ;;  %v19492_v9 = vld [vmem:[#allocation83_spill] sm:$0xff]  ;;  %v19497_v52 = vpack.c.bf16 %v19495_v37, %v19496_v5 }
 0x49e   : > { %v6249_v55 = vmax.bf16 %v19330_v23, %v19488_v50  ;;  %v6092_v48 = vpack.c.bf16 %v5177_v61, %v5173_v26  ;;  %v14749_v17 = vpop.f32.mrf.mxu1  ;;  %v19493_v40 = vpack.c.bf16 %v19491_v51, %v19492_v9  ;;  %5880 = vmatprep.mubr.bf16.mxu0 %v19330_v23  ;;  %v5182_v36 = vpop.f32.mrf.mxu0  ;;  %v11786_v51 = vld [vmem:[#allocation2 + $0xa8] ss:$12 sps:$4 sm:$0xff]   ;;  %v19499_v9 = vld [vmem:[#allocation58_spill] sm:$0xff] }
 0x49f   : > { %19490 = vst [vmem:[#allocation71_spill] sm:$0xff] %v14749_v17  ;;  %v6241_v33 = vmax.bf16 %v19330_v23, %v19497_v52  ;;  %v11787_v17 = vld [vmem:[#allocation2 + $0xc4] ss:$12 sps:$4 sm:$0xff]   ;;  %v19502_v37 = vld [vmem:[#allocation75_spill] sm:$0xff] }
 0x4a0   : > { %v6242_v18 = vmax.bf16 %v19330_v23, %v19493_v40  ;;  %6516 = vmatpush2.bf16.msra.mxu1 %v6249_v55  ;;  %v14756_v50 = vpop.f32.mrf.mxu1  ;;  %v5184_v26 = vpop.f32.mrf.mxu0  ;;  %v19500_v40 = vld [vmem:[#allocation81_spill] sm:$0xff]  ;;  %v5183_v5 = vadd.f32 %v5182_v36, %v19502_v37 }
 0x4a1   : > { %19494 = vst [vmem:[#allocation100_spill] sm:$0xff] %v14756_v50  ;;  %v5185_v58 = vadd.f32 %v5184_v26, %v14444_v16  ;;  %v19501_v53 = vpack.c.bf16 %v19499_v9, %v19500_v40  ;;  %v19504_v26 = vld [vmem:[#allocation85_spill] sm:$0xff] }
 0x4a2   : > { %6517 = vmatprep.subr.bf16.mxu1 %v6242_v18  ;;  %v14762_v61 = vpop.f32.mrf.mxu1  ;;  %5758 = vmatmul.mubr.bf16.gmra.mxu1 %v11786_v51  ;;  %v5181_v18 = vadd.f32 %v5180_v54, %v14424_v34  ;;  %v5186_v50 = vpop.f32.mrf.mxu0  ;;  %v19505_v51 = vld [vmem:[#allocation60_spill] sm:$0xff] }
 0x4a3   : > { %19498 = vst [vmem:[#allocation68_spill] sm:$0xff] %v14762_v61  ;;  %v6234_v55 = vmax.bf16 %v19330_v23, %v19501_v53  ;;  %5767 = vmatprep.mubr.bf16.mxu1 %v11787_v17  ;;  %v19503_v61 = vld [vmem:[#allocation104_spill] sm:$0xff]  ;;  %v19506_v3 = vpack.c.bf16 %v19504_v26, %v19505_v51 }
 0x4a4   : > { %6518 = vmatpush2.bf16.msra.mxu1 %v6241_v33  ;;  %v14771_v52 = vpop.f32.mrf.mxu1  ;;  %v5187_v16 = vadd.f32 %v5186_v50, %v19503_v61  ;;  %v6099_v40 = vpack.c.bf16 %v5185_v58, %v5181_v18  ;;  %v5190_v53 = vpop.f32.mrf.mxu0  ;;  %v6220_v18 = vmax.bf16 %v19330_v23, %v6092_v48  ;;  %v19532_v48 = vld [vmem:[#allocation91_spill] sm:$0xff] }
 0x4a5   : > { %6519 = vmatprep.subr.bf16.mxu1 %v6234_v55  ;;  %v6233_v9 = vmax.bf16 %v19330_v23, %v19506_v3  ;;  %10827 = vmatmul.mubr.msk.bf16.vlgmr.msra.gmra.mxu0 %vm4448_vm2, %v11788_v10  ;;  %v14782_v17 = vadd.f32 %v5190_v53, %v14459_v15  ;;  %v11789_v15 = vld [vmem:[#allocation2 + $0xc0] ss:$12 sps:$4 sm:$0xff]  }
 0x4a6   : > { %v6100_v34 = vpack.c.bf16 %v5187_v16, %v5183_v5  ;;  %v14779_v54 = vpop.f32.mrf.mxu1  ;;  %5890 = vmatprep.mubr.bf16.mxu0 %v19330_v23  ;;  %v5192_v36 = vpop.f32.mrf.mxu0  ;;  %v6227_v58 = vmax.bf16 %v19330_v23, %v6099_v40  ;;  %v11790_v5 = vld [vmem:[#allocation2 + $0xdc] ss:$12 sps:$4 sm:$0xff]  }
 0x4a7   : > { %v14788_v33 = vadd.f32 %v5192_v36, %v14470_v44  ;;  %v11802_v44 = vld [vmem:[#allocation2 + $0x154] ss:$12 sps:$4 sm:$0xff]  }
 0x4a8   : > { %6520 = vmatpush2.bf16.msra.mxu1 %v6233_v9  ;;  %v14785_v50 = vpop.f32.mrf.mxu1  ;;  %v6228_v3 = vmax.bf16 %v19330_v23, %v6100_v34  ;;  %v5194_v10 = vpop.f32.mrf.mxu0  ;;  %v11791_v9 = vld [vmem:[#allocation2 + $0x20] ss:$12 sps:$4 sm:$0xff]  }
 0x4a9   : > { %v14793_v61 = vadd.f32 %v5194_v10, %v14485_v56  ;;  %v6219_v56 = vmax.bf16 %v19330_v23, %v6091_v35 }
 0x4aa   : > { %v14795_v55 = vpop.f32.mrf.mxu1  ;;  %5768 = vmatmul.mubr.bf16.gmra.mxu1 %v11789_v15  ;;  %6682 = vmatprep.subr.bf16.mxu0 %v6228_v3  ;;  %v5196_v37 = vpop.f32.mrf.mxu0  ;;  %v11792_v15 = vld [vmem:[#allocation2 + $0xd8] ss:$12 sps:$4 sm:$0xff]  }
 0x4ab   : > { %6683 = vmatpush1.bf16.msra.mxu0 %v6227_v58  ;;  %5777 = vmatprep.mubr.bf16.mxu1 %v11790_v5  ;;  %v14801_v16 = vadd.f32 %v5196_v37, %v14495_v31  ;;  %v19507_v31 = vpack.c.bf16 %v14698_v62, %v14691_v21  ;;  %v11793_v5 = vld [vmem:[#allocation2 + $0xf4] ss:$12 sps:$4 sm:$0xff]  }
 0x4ac   : > { %v14803_v26 = vpop.f32.mrf.mxu1  ;;  %6684 = vmatprep.subr.bf16.mxu0 %v6220_v18  ;;  %v5200_v51 = vpop.f32.mrf.mxu0 }
 0x4ad   : > { %10828 = vmatmul.mubr.msk.bf16.gmra.mxu0 %vm4448_vm2, %v11791_v9  ;;  %v14810_v40 = vadd.f32 %v5200_v51, %v14504_v46  ;;  %v6212_v34 = vmax.bf16 %v19330_v23, %v19507_v31  ;;  %v19508_v46 = vpack.c.bf16 %v14684_v11, %v14679_v19  ;;  %v11794_v51 = vld [vmem:[#allocation2 + $0x38] ss:$12 sps:$4 sm:$0xff]  }
 0x4ae   : > { %v14812_v53 = vpop.f32.mrf.mxu1  ;;  %5900 = vmatprep.mubr.bf16.mxu0 %v19330_v23  ;;  %v5202_v35 = vpop.f32.mrf.mxu0  ;;  %v11804_v9 = vld [vmem:[#allocation2 + $0x16c] ss:$12 sps:$4 sm:$0xff]  }
 0x4af   : > { %6685 = vmatpush1.bf16.msra.mxu0 %v6219_v56  ;;  %v14820_v36 = vadd.f32 %v5202_v35, %v14515_v60  ;;  %v6211_v58 = vmax.bf16 %v19330_v23, %v19508_v46  ;;  %v19509_v60 = vpack.c.bf16 %v14653_v27, %v14646_v45  ;;  %v19510_v56 = vpack.c.bf16 %v14639_v63, %v14634_v39 }
 0x4b0   : > { %v14822_v3 = vpop.f32.mrf.mxu1  ;;  %6686 = vmatprep.subr.bf16.mxu0 %v6212_v34  ;;  %v5204_v10 = vpop.f32.mrf.mxu0  ;;  %v19511_v34 = vpack.c.bf16 %v14608_v14, %v14601_v25  ;;  %v19512_v46 = vpack.c.bf16 %v14594_v1, %v14589_v47  ;;  %v11795_v25 = vld [vmem:[#allocation2 + $0xf0] ss:$12 sps:$4 sm:$0xff]   ;;  %v19513_v14 = vpack.c.bf16 %v14563_v22, %v14556_v20  ;;  %v19514_v20 = vpack.c.bf16 %v14549_v12, %v14533_v13 }
 0x4b1   : > { %v14829_v21 = vadd.f32 %v5204_v10, %v14530_v43  ;;  %v6204_v18 = vmax.bf16 %v19330_v23, %v19509_v60  ;;  %v6203_v45 = vmax.bf16 %v19330_v23, %v19510_v56  ;;  %v19517_v12 = vpack.c.bf16 %v14507_v28, %v14488_v8  ;;  %v11798_v8 = vld [vmem:[#allocation2 + $0x124] ss:$12 sps:$4 sm:$0xff]  }
 0x4b2   : > { %v14831_v62 = vpop.f32.mrf.mxu1  ;;  %5778 = vmatmul.mubr.bf16.gmra.mxu1 %v11792_v15  ;;  %v5206_v37 = vpop.f32.mrf.mxu0  ;;  %v6196_v35 = vmax.bf16 %v19330_v23, %v19511_v34  ;;  %v6188_v60 = vmax.bf16 %v19330_v23, %v19513_v14  ;;  %v6187_v22 = vmax.bf16 %v19330_v23, %v19514_v20 }
 0x4b3   : > { %6687 = vmatpush1.bf16.msra.mxu0 %v6211_v58  ;;  %5787 = vmatprep.mubr.bf16.mxu1 %v11793_v5  ;;  %v14840_v11 = vadd.f32 %v5206_v37, %v14540_v32  ;;  %v11796_v37 = vld [vmem:[#allocation2 + $0x10c] ss:$12 sps:$4 sm:$0xff]  }
 0x4b4   : > { %v14842_v43 = vpop.f32.mrf.mxu1  ;;  %6688 = vmatprep.subr.bf16.mxu0 %v6204_v18  ;;  %v5210_v27 = vpop.f32.mrf.mxu0 }
 0x4b5   : > { %10829 = vmatmul.mubr.msk.bf16.gmra.mxu0 %vm4448_vm2, %v11794_v51  ;;  %v14852_v31 = vadd.f32 %v5210_v27, %v14546_v57  ;;  %v6195_v57 = vmax.bf16 %v19330_v23, %v19512_v46 }
 0x4b6   : > { %v14854_v32 = vpop.f32.mrf.mxu1  ;;  %5910 = vmatprep.mubr.bf16.mxu0 %v19330_v23  ;;  %v5212_v39 = vpop.f32.mrf.mxu0 }
 0x4b7   : > { %6689 = vmatpush1.bf16.msra.mxu0 %v6203_v45  ;;  %v14877_v47 = vadd.f32 %v5212_v39, %v14560_v38  ;;  %v19515_v45 = vld [vmem:[#allocation62_spill] sm:$0xff] }
 0x4b8   : > { %v14861_v63 = vpop.f32.mrf.mxu1  ;;  %6690 = vmatprep.subr.bf16.mxu0 %v6196_v35  ;;  %v5214_v58 = vpop.f32.mrf.mxu0  ;;  %v6179_v35 = vmax.bf16 %v19330_v23, %v19517_v12 }
 0x4b9   : > { %v14868_v10 = vadd.f32 %v5214_v58, %v14575_v29  ;;  %v19518_v58 = vpack.c.bf16 %v14473_v49, %v14453_v0  ;;  %v19519_v0 = vpack.c.bf16 %v14462_v4, %v14447_v7  ;;  %v19522_v7 = vld [vmem:[#allocation94_spill] sm:$0xff]  ;;  %v19533_v29 = vld [vmem:[#allocation88_spill] sm:$0xff] }
 0x4ba   : > { %v14870_v15 = vpop.f32.mrf.mxu1  ;;  %5788 = vmatmul.mubr.bf16.gmra.mxu1 %v11795_v25  ;;  %v5216_v18 = vpop.f32.mrf.mxu0 }
 0x4bb   : > { %6691 = vmatpush1.bf16.msra.mxu0 %v6195_v57  ;;  %5797 = vmatprep.mubr.bf16.mxu1 %v11796_v37  ;;  %v14882_v1 = vadd.f32 %v5216_v18, %v14582_v30  ;;  %v19516_v30 = vpack.c.bf16 %v14518_v2, %v14498_v42  ;;  %v11797_v57 = vld [vmem:[#allocation2 + $0x108] ss:$12 sps:$4 sm:$0xff]   ;;  %v6172_v25 = vmax.bf16 %v19330_v23, %v19518_v58  ;;  %v19520_v37 = vld [vmem:[#allocation65_spill] sm:$0xff] }
 0x4bc   : > { %v14884_v5 = vpop.f32.mrf.mxu1  ;;  %6692 = vmatprep.subr.bf16.mxu0 %v6188_v60  ;;  %v5220_v56 = vpop.f32.mrf.mxu0  ;;  %v6171_v49 = vmax.bf16 %v19330_v23, %v19519_v0 }
 0x4bd   : > { %10830 = vmatmul.mubr.msk.bf16.gmra.mxu0 %vm4448_vm2, %v19515_v45  ;;  %v6180_v51 = vmax.bf16 %v19330_v23, %v19516_v30  ;;  %v14908_v46 = vadd.f32 %v5220_v56, %v14591_v24  ;;  %v19521_v45 = vld [vmem:[#allocation96_spill] sm:$0xff] }
 0x4be   : > { %v14894_v27 = vpop.f32.mrf.mxu1  ;;  %5920 = vmatprep.mubr.bf16.mxu0 %v19330_v23  ;;  %v5222_v34 = vpop.f32.mrf.mxu0  ;;  %v19538_v24 = vld [vmem:[#allocation84_spill] sm:$0xff] }
 0x4bf   : > { %6693 = vmatpush1.bf16.msra.mxu0 %v6187_v22  ;;  %v14920_v28 = vadd.f32 %v5222_v34, %v14605_v6  ;;  %v11799_v34 = vld [vmem:[#allocation2 + $0x120] ss:$12 sps:$4 sm:$0xff]  }
 0x4c0   : > { %v14901_v13 = vpop.f32.mrf.mxu1  ;;  %6694 = vmatprep.subr.bf16.mxu0 %v6180_v51  ;;  %v5224_v39 = vpop.f32.mrf.mxu0 }
 0x4c1   : > { %v14911_v42 = vadd.f32 %v5224_v39, %v14620_v41  ;;  %v19523_v39 = vld [vmem:[#allocation97_spill] sm:$0xff] }
 0x4c2   : > { %v14913_v2 = vpop.f32.mrf.mxu1  ;;  %5798 = vmatmul.mubr.bf16.gmra.mxu1 %v11797_v57  ;;  %v5226_v14 = vpop.f32.mrf.mxu0 }
 0x4c3   : > { %6695 = vmatpush1.bf16.msra.mxu0 %v6179_v35  ;;  %5807 = vmatprep.mubr.bf16.mxu1 %v11798_v8  ;;  %v14925_v41 = vadd.f32 %v5226_v14, %v14627_v59  ;;  %v11800_v35 = vld [vmem:[#allocation2 + $0x13c] ss:$12 sps:$4 sm:$0xff]  }
 0x4c4   : > { %v14927_v60 = vpop.f32.mrf.mxu1  ;;  %6696 = vmatprep.subr.bf16.mxu0 %v6172_v25  ;;  %v5230_v18 = vpop.f32.mrf.mxu0  ;;  %v19524_v25 = vld [vmem:[#allocation92_spill] sm:$0xff] }
 0x4c5   : > { %10831 = vmatmul.mubr.msk.bf16.gmra.mxu0 %vm4448_vm2, %v19520_v37  ;;  %v14943_v4 = vadd.f32 %v5230_v18, %v19521_v45  ;;  %v11803_v18 = vld [vmem:[#allocation2 + $0x150] ss:$12 sps:$4 sm:$0xff]  }
 0x4c6   : > { %v14937_v20 = vpop.f32.mrf.mxu1  ;;  %5930 = vmatprep.mubr.bf16.mxu0 %v19330_v23  ;;  %v5232_v59 = vpop.f32.mrf.mxu0 }
 0x4c7   : > { %6697 = vmatpush1.bf16.msra.mxu0 %v6171_v49  ;;  %v14951_v57 = vadd.f32 %v5232_v59, %v19523_v39  ;;  %v19526_v49 = vld [vmem:[#allocation70_spill] sm:$0xff] }
 0x4c8   : > { %v14940_v22 = vpop.f32.mrf.mxu1  ;;  %v5234_v56 = vpop.f32.mrf.mxu0 }
 0x4c9   : > { %v14946_v30 = vadd.f32 %v5234_v56, %v19522_v7  ;;  %v19529_v7 = vld [vmem:[#allocation93_spill] sm:$0xff] }
 0x4ca   : > { %v14948_v51 = vpop.f32.mrf.mxu1  ;;  %5808 = vmatmul.mubr.bf16.gmra.mxu1 %v11799_v34  ;;  %v5236_v12 = vpop.f32.mrf.mxu0 }
 0x4cb   : > { %5817 = vmatprep.mubr.bf16.mxu1 %v11800_v35  ;;  %v14956_v14 = vadd.f32 %v5236_v12, %v19524_v25  ;;  %v19530_v12 = vld [vmem:[#allocation86_spill] sm:$0xff] }
 0x4cc   : > { %v14958_v8 = vpop.f32.mrf.mxu1  ;;  %v5240_v0 = vpop.f32.mrf.mxu0  ;;  %v11801_v25 = vld [vmem:[#allocation2 + $0x138] ss:$12 sps:$4 sm:$0xff]  }
 0x4cd   : > { %19525 = vst [vmem:[#allocation66_spill] sm:$0xff] %v14958_v8  ;;  %10832 = vmatmul.mubr.msk.bf16.gmra.mxu0 %vm4448_vm2, %v19526_v49  ;;  %v14970_v34 = vadd.f32 %v5240_v0, %v19529_v7  ;;  %v19535_v7 = vld [vmem:[#allocation72_spill] sm:$0xff] }
 0x4ce   : > { %v14964_v37 = vpop.f32.mrf.mxu1  ;;  %5940 = vmatprep.mubr.bf16.mxu0 %v19330_v23  ;;  %v5242_v59 = vpop.f32.mrf.mxu0 }
 0x4cf   : > { %19527 = vst [vmem:[#allocation78_spill] sm:$0xff] %v14964_v37  ;;  %v14978_v19 = vadd.f32 %v5242_v59, %v19532_v48  ;;  %v19543_v37 = vld [vmem:[#allocation74_spill] sm:$0xff] }
 0x4d0   : > { %v14967_v56 = vpop.f32.mrf.mxu1  ;;  %v5244_v45 = vpop.f32.mrf.mxu0 }
 0x4d1   : > { %19528 = vst [vmem:[#allocation63_spill] sm:$0xff] %v14967_v56  ;;  %v14973_v35 = vadd.f32 %v5244_v45, %v19530_v12  ;;  %v19540_v12 = vld [vmem:[#allocation69_spill] sm:$0xff] }
 0x4d2   : > { %v14975_v39 = vpop.f32.mrf.mxu1  ;;  %5818 = vmatmul.mubr.bf16.gmra.mxu1 %v11801_v25  ;;  %v5246_v49 = vpop.f32.mrf.mxu0 }
 0x4d3   : > { %19531 = vst [vmem:[#allocation64_spill] sm:$0xff] %v14975_v39  ;;  %5827 = vmatprep.mubr.bf16.mxu1 %v11802_v44  ;;  %v14983_v38 = vadd.f32 %v5246_v49, %v19533_v29  ;;  %v19539_v49 = vld [vmem:[#allocation71_spill] sm:$0xff]  ;;  %v19541_v39 = vld [vmem:[#allocation100_spill] sm:$0xff] }
 0x4d4   : > { %v14985_v0 = vpop.f32.mrf.mxu1  ;;  %v5250_v45 = vpop.f32.mrf.mxu0 }
 0x4d5   : > { %19534 = vst [vmem:[#allocation77_spill] sm:$0xff] %v14985_v0  ;;  %10833 = vmatmul.mubr.msk.bf16.gmra.mxu0 %vm4448_vm2, %v19535_v7  ;;  %v5251_v29 = vadd.f32 %v5250_v45, %v19538_v24 }
 0x4d6   : > { %v14991_v25 = vpop.f32.mrf.mxu1  ;;  %5950 = vmatprep.mubr.bf16.mxu0 %v19330_v23  ;;  %v5252_v44 = vpop.f32.mrf.mxu0 }
 0x4d7   : > { %19536 = vst [vmem:[#allocation101_spill] sm:$0xff] %v14991_v25  ;;  %v5253_v0 = vadd.f32 %v5252_v44, %v19540_v12 }
 0x4d8   : > { %v14994_v48 = vpop.f32.mrf.mxu1  ;;  %v5254_v59 = vpop.f32.mrf.mxu0 }
 0x4d9   : > { %19537 = vst [vmem:[#allocation102_spill] sm:$0xff] %v14994_v48  ;;  %v5255_v6 = vadd.f32 %v5254_v59, %v19539_v49  ;;  %v11805_v59 = vld [vmem:[#allocation2 + $0x168] ss:$12 sps:$4 sm:$0xff]  }
 0x4da   : > { %v14998_v58 = vpop.f32.mrf.mxu1  ;;  %5828 = vmatmul.mubr.bf16.gmra.mxu1 %v11803_v18  ;;  %v5256_v7 = vpop.f32.mrf.mxu0 }
 0x4db   : > { %5837 = vmatprep.mubr.bf16.mxu1 %v11804_v9  ;;  %v6155_v25 = vpack.c.bf16 %v5255_v6, %v5251_v29  ;;  %v5257_v56 = vadd.f32 %v5256_v7, %v19541_v39  ;;  %v15012_v9 = vld [vmem:[%s18889_s3 + $0x4] ss:$8 sps:$4 sm:$0xff]  }
 0x4dc   : > { %v15002_v8 = vpop.f32.mrf.mxu1  ;;  %v5260_v48 = vpop.f32.mrf.mxu0  ;;  %19545 = vst [vmem:[#allocation73_spill] sm:$0xff] %v15012_v9 }
 0x4dd   : > { %19542 = vst [vmem:[#allocation61_spill] sm:$0xff] %v15002_v8  ;;  %10834 = vmatmul.mubr.msk.bf16.gmra.mxu0 %vm4448_vm2, %v19543_v37  ;;  %v6156_v24 = vpack.c.bf16 %v5257_v56, %v5253_v0  ;;  %v19547_v37 = vld [vmem:[#allocation68_spill] sm:$0xff] }
 0x4de   : > { %v15006_v45 = vpop.f32.mrf.mxu1  ;;  %5960 = vmatprep.mubr.bf16.mxu0 %v19330_v23  ;;  %v5262_v18 = vpop.f32.mrf.mxu0  ;;  %v5261_v56 = vadd.f32 %v5260_v48, %v19547_v37  ;;  %v15035_v48 = vld [vmem:[%s18889_s3] ss:$8 sps:$4 sm:$0xff]  }
 0x4df   : > { %19544 = vst [vmem:[#allocation79_spill] sm:$0xff] %v15006_v45  ;;  %v5263_v29 = vadd.f32 %v5262_v18, %v14771_v52  ;;  %v19548_v45 = vld [vmem:[#allocation82_spill] sm:$0xff] }
 0x4e0   : > { %v15014_v6 = vpop.f32.mrf.mxu1  ;;  %v5264_v39 = vpop.f32.mrf.mxu0 }
 0x4e1   : > { %19546 = vst [vmem:[#allocation103_spill] sm:$0xff] %v15014_v6  ;;  %v5265_v12 = vadd.f32 %v5264_v39, %v14779_v54 }
 0x4e2   : > { %v15017_v44 = vpop.f32.mrf.mxu1  ;;  %5838 = vmatmul.mubr.bf16.gmra.mxu1 %v11805_v59  ;;  %v5266_v0 = vpop.f32.mrf.mxu0 }
 0x4e3   : > { %6521 = vmatprep.mubr.bf16.mxu1 %v15012_v9  ;;  %v5267_v49 = vadd.f32 %v5266_v0, %v14785_v50  ;;  %v6163_v8 = vpack.c.bf16 %v5265_v12, %v5261_v56  ;;  %v15041_v50 = vld [vmem:[%s18889_s3 + $0x14] ss:$8 sps:$4 sm:$0xff]   ;;  %v6284_v0 = vmax.bf16 %v19330_v23, %v6156_v24 }
 0x4e4   : > { %v15023_v7 = vpop.f32.mrf.mxu1  ;;  %v5496_v6 = vpop.f32.mrf.mxu0 }
 0x4e5   : > { %10835 = vmatmul.mubr.msk.bf16.gmra.mxu0 %vm4448_vm2, %v19548_v45  ;;  %v6164_v54 = vpack.c.bf16 %v5267_v49, %v5263_v29  ;;  %v15030_v59 = vadd.f32 %v5496_v6, %v14795_v55  ;;  %v6291_v6 = vmax.bf16 %v19330_v23, %v6163_v8 }
 0x4e6   : > { %v15027_v39 = vpop.f32.mrf.mxu1  ;;  %5970 = vmatprep.mubr.bf16.mxu0 %v19330_v23  ;;  %v5498_v52 = vpop.f32.mrf.mxu0 }
 0x4e7   : > { %19549 = vst [vmem:[#allocation80_spill] sm:$0xff] %v15030_v59  ;;  %v15046_v18 = vadd.f32 %v5498_v52, %v14803_v26  ;;  %v6292_v55 = vmax.bf16 %v19330_v23, %v6164_v54  ;;  %v19553_v52 = vld [vmem:[#allocation105_spill] sm:$0xff]  ;;  %v19556_v26 = vpack.c.bf16 %v14956_v14, %v14951_v57 }
 0x4e8   : > { %v15043_v45 = vpop.f32.mrf.mxu1  ;;  %v5500_v12 = vpop.f32.mrf.mxu0 }
 0x4e9   : > { %19550 = vst [vmem:[#allocation89_spill] sm:$0xff] %v15046_v18  ;;  %v15053_v56 = vadd.f32 %v5500_v12, %v14812_v53  ;;  %6698 = vmatprep.subr.bf16.mxu0 %v6292_v55  ;;  %v6283_v53 = vmax.bf16 %v19330_v23, %v6155_v25  ;;  %v19554_v12 = vpack.c.bf16 %v14983_v38, %v14978_v19  ;;  %v15082_v25 = vld [vmem:[%s18889_s3 + $0x10] ss:$8 sps:$4 sm:$0xff]  }
 0x4ea   : > { %v15050_v37 = vpop.f32.mrf.mxu1  ;;  %6522 = vmatmul.mubr.bf16.vlgmr.msra.gmra.mxu1 %v15035_v48  ;;  %v5502_v29 = vpop.f32.mrf.mxu0  ;;  %6699 = vmatpush2.bf16.msra.mxu0 %v6291_v6  ;;  %v19555_v38 = vpack.c.bf16 %v14973_v35, %v14970_v34 }
 0x4eb   : > { %19551 = vst [vmem:[#allocation76_spill] sm:$0xff] %v15053_v56  ;;  %6531 = vmatprep.mubr.bf16.mxu1 %v15041_v50  ;;  %v15063_v8 = vadd.f32 %v5502_v29, %v14822_v3  ;;  %6700 = vmatprep.subr.bf16.mxu0 %v6284_v0  ;;  %v6276_v3 = vmax.bf16 %v19330_v23, %v19554_v12  ;;  %v15088_v29 = vld [vmem:[%s18889_s3 + $0x24] ss:$8 sps:$4 sm:$0xff]  }
 0x4ec   : > { %v15060_v49 = vpop.f32.mrf.mxu1  ;;  %v5506_v54 = vpop.f32.mrf.mxu0 }
 0x4ed   : > { %19552 = vst [vmem:[#allocation83_spill] sm:$0xff] %v15063_v8  ;;  %10836 = vmatmul.mubr.msk.bf16.gmra.mxu0 %vm4448_vm2, %v19553_v52  ;;  %v15073_v6 = vadd.f32 %v5506_v54, %v14831_v62  ;;  %v6275_v54 = vmax.bf16 %v19330_v23, %v19555_v38  ;;  %v7404_v38 = vld [vmem:[%s18890_s4 + $0x3c] sm:$0xf]  ;;  %v15381_v8 = vld [vmem:[%s18889_s3 + $0x70] ss:$8 sps:$4 sm:$0xff]  }
 0x4ee   : > { %v15070_v55 = vpop.f32.mrf.mxu1  ;;  %5980 = vmatprep.mubr.bf16.mxu0 %v19330_v23  ;;  %v5508_v0 = vpop.f32.mrf.mxu0  ;;  %6701 = vmatpush2.bf16.msra.mxu0 %v6283_v53 }
 0x4ef   : > { %v15093_v19 = vadd.f32 %v5508_v0, %v14842_v43  ;;  %6702 = vmatprep.subr.bf16.mxu0 %v6276_v3  ;;  %v6268_v43 = vmax.bf16 %v19330_v23, %v19556_v26  ;;  %v19558_v26 = vld [vmem:[#allocation106_spill] sm:$0xff] }
 0x4f0   : > { %v15090_v62 = vpop.f32.mrf.mxu1  ;;  %v5510_v52 = vpop.f32.mrf.mxu0 }
 0x4f1   : > { %v15102_v53 = vadd.f32 %v5510_v52, %v14854_v32  ;;  %v19557_v32 = vpack.c.bf16 %v14946_v30, %v14943_v4  ;;  %v15137_v4 = vld [vmem:[%s18889_s3 + $0x20] ss:$8 sps:$4 sm:$0xff]  }
 0x4f2   : > { %v15099_v12 = vpop.f32.mrf.mxu1  ;;  %6532 = vmatmul.mubr.bf16.gmra.mxu1 %v15082_v25  ;;  %v5512_v0 = vpop.f32.mrf.mxu0  ;;  %6703 = vmatpush2.bf16.msra.mxu0 %v6275_v54 }
 0x4f3   : > { %6541 = vmatprep.mubr.bf16.mxu1 %v15088_v29  ;;  %v15115_v3 = vadd.f32 %v5512_v0, %v14861_v63  ;;  %6704 = vmatprep.subr.bf16.mxu0 %v6268_v43  ;;  %v6267_v57 = vmax.bf16 %v19330_v23, %v19557_v32  ;;  %v19559_v63 = vpack.c.bf16 %v14925_v41, %v14920_v28  ;;  %v15143_v0 = vld [vmem:[%s18889_s3 + $0x34] ss:$8 sps:$4 sm:$0xff]  }
 0x4f4   : > { %v15112_v35 = vpop.f32.mrf.mxu1  ;;  %v5516_v14 = vpop.f32.mrf.mxu0  ;;  %v19560_v28 = vpack.c.bf16 %v14911_v42, %v14908_v46  ;;  %v19577_v42 = vld [vmem:[#allocation63_spill] sm:$0xff] }
 0x4f5   : > { %10837 = vmatmul.mubr.msk.bf16.gmra.mxu0 %vm4448_vm2, %v19558_v26  ;;  %v15128_v52 = vadd.f32 %v5516_v14, %v14870_v15  ;;  %v6260_v43 = vmax.bf16 %v19330_v23, %v19559_v63 }
 0x4f6   : > { %v15125_v54 = vpop.f32.mrf.mxu1  ;;  %5990 = vmatprep.mubr.bf16.mxu0 %v19330_v23  ;;  %v5518_v30 = vpop.f32.mrf.mxu0  ;;  %6705 = vmatpush2.bf16.msra.mxu0 %v6267_v57  ;;  %v6259_v41 = vmax.bf16 %v19330_v23, %v19560_v28  ;;  %v19561_v57 = vpack.c.bf16 %v14882_v1, %v14877_v47  ;;  %v19562_v47 = vpack.c.bf16 %v14868_v10, %v14852_v31  ;;  %v15189_v31 = vld [vmem:[%s18889_s3 + $0x30] ss:$8 sps:$4 sm:$0xff]  }
 0x4f7   : > { %6706 = vmatprep.subr.bf16.mxu0 %v6260_v43  ;;  %v15163_v46 = vadd.f32 %v5518_v30, %v14884_v5 }
 0x4f8   : > { %v15145_v15 = vpop.f32.mrf.mxu1  ;;  %v5520_v32 = vpop.f32.mrf.mxu0  ;;  %v6252_v63 = vmax.bf16 %v19330_v23, %v19561_v57  ;;  %v6251_v1 = vmax.bf16 %v19330_v23, %v19562_v47 }
 0x4f9   : > { %v15154_v26 = vadd.f32 %v5520_v32, %v14894_v27  ;;  %v19564_v32 = vpack.c.bf16 %v14840_v11, %v14820_v36  ;;  %v19565_v36 = vpack.c.bf16 %v14829_v21, %v14810_v40 }
 0x4fa   : > { %v15151_v14 = vpop.f32.mrf.mxu1  ;;  %6542 = vmatmul.mubr.bf16.gmra.mxu1 %v15137_v4  ;;  %v5522_v24 = vpop.f32.mrf.mxu0  ;;  %6707 = vmatpush2.bf16.msra.mxu0 %v6259_v41  ;;  %v19563_v41 = vld [vmem:[#allocation99_spill] sm:$0xff] }
 0x4fb   : > { %6551 = vmatprep.mubr.bf16.mxu1 %v15143_v0  ;;  %v15170_v27 = vadd.f32 %v5522_v24, %v14901_v13  ;;  %6708 = vmatprep.subr.bf16.mxu0 %v6252_v63  ;;  %v6244_v13 = vmax.bf16 %v19330_v23, %v19564_v32  ;;  %v15195_v24 = vld [vmem:[%s18889_s3 + $0x44] ss:$8 sps:$4 sm:$0xff]   ;;  %v6243_v11 = vmax.bf16 %v19330_v23, %v19565_v36 }
 0x4fc   : > { %v15167_v43 = vpop.f32.mrf.mxu1  ;;  %v5526_v28 = vpop.f32.mrf.mxu0  ;;  %v19566_v32 = vpack.c.bf16 %v14801_v16, %v14788_v33  ;;  %v19568_v33 = vpack.c.bf16 %v14793_v61, %v14782_v17  ;;  %v19569_v36 = vld [vmem:[#allocation98_spill] sm:$0xff]  ;;  %v7403_v17 = vld [vmem:[%s18890_s4 + $0x38] sm:$0xf] }
 0x4fd   : > { %10838 = vmatmul.mubr.msk.bf16.gmra.mxu0 %vm4448_vm2, %v19563_v41  ;;  %v15204_v47 = vadd.f32 %v5526_v28, %v14913_v2  ;;  %7591 = vperm.xlu0 %11591, %v7403_v17   ;;  %v7401_v17 = vld [vmem:[%s18890_s4 + $0x30] sm:$0xf] }
 0x4fe   : > { %v15180_v30 = vpop.f32.mrf.mxu1  ;;  %6000 = vmatprep.mubr.bf16.mxu0 %v19330_v23  ;;  %v5528_v10 = vpop.f32.mrf.mxu0  ;;  %6709 = vmatpush2.bf16.msra.mxu0 %v6251_v1  ;;  %v6235_v16 = vmax.bf16 %v19330_v23, %v19568_v33  ;;  %v19574_v33 = vld [vmem:[#allocation78_spill] sm:$0xff] }
 0x4ff   : > { %6710 = vmatprep.subr.bf16.mxu0 %v6244_v13  ;;  %v6236_v13 = vmax.bf16 %v19330_v23, %v19566_v32  ;;  %v15218_v40 = vadd.f32 %v5528_v10, %v14927_v60  ;;  %7567 = vperm.xlu1 %11592, %v7401_v17   ;;  %v19578_v60 = vld [vmem:[#allocation95_spill] sm:$0xff] }
 0x500   : > { %v15197_v57 = vpop.f32.mrf.mxu1  ;;  %v5530_v63 = vpop.f32.mrf.mxu0 }
 0x501   : > { %v15209_v1 = vadd.f32 %v5530_v63, %v14937_v20  ;;  %7603 = vperm.xlu0 %11591, %v7404_v38   ;;  %v7402_v38 = vld [vmem:[%s18890_s4 + $0x34] sm:$0xf] }
 0x502   : > { %v15206_v41 = vpop.f32.mrf.mxu1  ;;  %6552 = vmatmul.mubr.bf16.gmra.mxu1 %v15189_v31  ;;  %v5532_v34 = vpop.f32.mrf.mxu0  ;;  %6711 = vmatpush2.bf16.msra.mxu0 %v6243_v11 }
 0x503   : > { %6561 = vmatprep.mubr.bf16.mxu1 %v15195_v24  ;;  %v15225_v20 = vadd.f32 %v5532_v34, %v14940_v22  ;;  %6712 = vmatprep.subr.bf16.mxu0 %v6236_v13  ;;  %v15240_v22 = vld [vmem:[%s18889_s3 + $0x40] ss:$8 sps:$4 sm:$0xff]   ;;  %v15249_v34 = vld [vmem:[%s18889_s3 + $0x54] ss:$8 sps:$4 sm:$0xff]  }
 0x504   : > { %v15222_v2 = vpop.f32.mrf.mxu1  ;;  %v5536_v28 = vpop.f32.mrf.mxu0  ;;  %19570 = vst [vmem:[#allocation59_spill] sm:$0xff] %v15240_v22  ;;  %19571 = vst [vmem:[#allocation58_spill] sm:$0xff] %v15249_v34  ;;  %7579 = vperm.xlu1 %11592, %v7402_v38   ;;  %v19586_v38 = vld [vmem:[#allocation77_spill] sm:$0xff] }
 0x505   : > { %19567 = vst [vmem:[#allocation87_spill] sm:$0xff] %v15222_v2  ;;  %10839 = vmatmul.mubr.msk.bf16.gmra.mxu0 %vm4448_vm2, %v19569_v36  ;;  %v15254_v32 = vadd.f32 %v5536_v28, %v14948_v51  ;;  %v19575_v51 = vld [vmem:[#allocation66_spill] sm:$0xff] }
 0x506   : > { %v15235_v10 = vpop.f32.mrf.mxu1  ;;  %6010 = vmatprep.mubr.bf16.mxu0 %v19330_v23  ;;  %v5538_v61 = vpop.f32.mrf.mxu0  ;;  %6713 = vmatpush2.bf16.msra.mxu0 %v6235_v16 }
 0x507   : > { %v15270_v28 = vadd.f32 %v5538_v61, %v19575_v51  ;;  %v15288_v61 = vld [vmem:[%s18889_s3 + $0x50] ss:$8 sps:$4 sm:$0xff]  }
 0x508   : > { %v15251_v11 = vpop.f32.mrf.mxu1  ;;  %v5540_v63 = vpop.f32.mrf.mxu0  ;;  %19580 = vst [vmem:[#allocation60_spill] sm:$0xff] %v15288_v61 }
 0x509   : > { %19572 = vst [vmem:[#allocation81_spill] sm:$0xff] %v15251_v11  ;;  %v15259_v36 = vadd.f32 %v5540_v63, %v19574_v33  ;;  %v19583_v63 = vld [vmem:[#allocation64_spill] sm:$0xff]  ;;  %v19595_v11 = vld [vmem:[#allocation79_spill] sm:$0xff] }
 0x50a   : > { %v15256_v13 = vpop.f32.mrf.mxu1  ;;  %6562 = vmatmul.mubr.bf16.gmra.mxu1 %v15240_v22  ;;  %v5542_v16 = vpop.f32.mrf.mxu0 }
 0x50b   : > { %19573 = vst [vmem:[#allocation75_spill] sm:$0xff] %v15256_v13  ;;  %6571 = vmatprep.mubr.bf16.mxu1 %v15249_v34  ;;  %v15277_v5 = vadd.f32 %v5542_v16, %v19577_v42  ;;  %v7399_v42 = vld [vmem:[%s18890_s4 + $0x28] sm:$0xf]  ;;  %v15300_v16 = vld [vmem:[%s18889_s3 + $0x64] ss:$8 sps:$4 sm:$0xff]  }
 0x50c   : > { %v15274_v33 = vpop.f32.mrf.mxu1  ;;  %v5546_v21 = vpop.f32.mrf.mxu0  ;;  %19581 = vst [vmem:[#allocation62_spill] sm:$0xff] %v15300_v16  ;;  %7543 = vperm.xlu0 %11591, %v7399_v42  }
 0x50d   : > { %19576 = vst [vmem:[#allocation104_spill] sm:$0xff] %v15274_v33  ;;  %10840 = vmatmul.mubr.msk.bf16.gmra.mxu0 %vm4448_vm2, %v19578_v60  ;;  %v15305_v13 = vadd.f32 %v5546_v21, %v19583_v63  ;;  %v7395_v21 = vld [vmem:[%s18890_s4 + $0x18] sm:$0xf] }
 0x50e   : > { %v15283_v34 = vpop.f32.mrf.mxu1  ;;  %6020 = vmatprep.mubr.bf16.mxu0 %v19330_v23  ;;  %v5548_v60 = vpop.f32.mrf.mxu0 }
 0x50f   : > { %19579 = vst [vmem:[#allocation85_spill] sm:$0xff] %v15283_v34  ;;  %v19585_v34 = vld [vmem:[#allocation101_spill] sm:$0xff]  ;;  %v15318_v42 = vadd.f32 %v5548_v60, %v19586_v38  ;;  %v15336_v60 = vld [vmem:[%s18889_s3 + $0x60] ss:$8 sps:$4 sm:$0xff]  }
 0x510   : > { %v15302_v17 = vpop.f32.mrf.mxu1  ;;  %v5550_v51 = vpop.f32.mrf.mxu0  ;;  %19591 = vst [vmem:[#allocation92_spill] sm:$0xff] %v15336_v60 }
 0x511   : > { %19582 = vst [vmem:[#allocation65_spill] sm:$0xff] %v15302_v17  ;;  %v15310_v22 = vadd.f32 %v5550_v51, %v19585_v34  ;;  %v7400_v17 = vld [vmem:[%s18890_s4 + $0x2c] sm:$0xf] }
 0x512   : > { %v15307_v33 = vpop.f32.mrf.mxu1  ;;  %6572 = vmatmul.mubr.bf16.gmra.mxu1 %v15288_v61  ;;  %v5552_v59 = vpop.f32.mrf.mxu0  ;;  %7555 = vperm.xlu1 %11592, %v7400_v17   ;;  %v19589_v61 = vld [vmem:[#allocation90_spill] sm:$0xff]  ;;  %v15348_v17 = vld [vmem:[%s18889_s3 + $0x74] ss:$8 sps:$4 sm:$0xff]  }
 0x513   : > { %19584 = vst [vmem:[#allocation96_spill] sm:$0xff] %v15307_v33  ;;  %6581 = vmatprep.mubr.bf16.mxu1 %v15300_v16  ;;  %v19588_v33 = vld [vmem:[#allocation102_spill] sm:$0xff]  ;;  %19592 = vst [vmem:[#allocation70_spill] sm:$0xff] %v15348_v17 }
 0x514   : > { %v15322_v63 = vpop.f32.mrf.mxu1  ;;  %v15325_v34 = vadd.f32 %v5552_v59, %v19588_v33  ;;  %v5556_v51 = vpop.f32.mrf.mxu0  ;;  %v7397_v59 = vld [vmem:[%s18890_s4 + $0x20] sm:$0xf]  ;;  %v7398_v33 = vld [vmem:[%s18890_s4 + $0x24] sm:$0xf] }
 0x515   : > { %19587 = vst [vmem:[#allocation94_spill] sm:$0xff] %v15322_v63  ;;  %10841 = vmatmul.mubr.msk.bf16.gmra.mxu0 %vm4448_vm2, %v19589_v61  ;;  %7519 = vperm.xlu0 %11591, %v7397_v59   ;;  %v15356_v63 = vadd.f32 %v5556_v51, %v14998_v58  ;;  %v7396_v59 = vld [vmem:[%s18890_s4 + $0x1c] sm:$0xf] }
 0x516   : > { %v15331_v56 = vpop.f32.mrf.mxu1  ;;  %6030 = vmatprep.mubr.bf16.mxu0 %v19330_v23  ;;  %v5558_v61 = vpop.f32.mrf.mxu0  ;;  %7531 = vperm.xlu1 %11592, %v7398_v33   ;;  %v19596_v33 = vld [vmem:[#allocation61_spill] sm:$0xff] }
 0x517   : > { %19590 = vst [vmem:[#allocation97_spill] sm:$0xff] %v15331_v56 }
 0x518   : > { %v15350_v38 = vpop.f32.mrf.mxu1  ;;  %v5560_v16 = vpop.f32.mrf.mxu0 }
 0x519   : > { %19593 = vst [vmem:[#allocation93_spill] sm:$0xff] %v15350_v38  ;;  %v15361_v2 = vadd.f32 %v5560_v16, %v19595_v11  ;;  %7495 = vperm.xlu0 %11591, %v7395_v21   ;;  %v5559_v38 = vadd.f32 %v5558_v61, %v19596_v33  ;;  %v7393_v61 = vld [vmem:[%s18890_s4 + $0x10] sm:$0xf] }
 0x51a   : > { %v15358_v56 = vpop.f32.mrf.mxu1  ;;  %6582 = vmatmul.mubr.bf16.gmra.mxu1 %v15336_v60  ;;  %v5562_v18 = vpop.f32.mrf.mxu0  ;;  %7507 = vperm.xlu1 %11592, %v7396_v59   ;;  %v19599_v60 = vld [vmem:[#allocation67_spill] sm:$0xff] }
 0x51b   : > { %19594 = vst [vmem:[#allocation86_spill] sm:$0xff] %v15358_v56  ;;  %6591 = vmatprep.mubr.bf16.mxu1 %v15348_v17  ;;  %v19598_v56 = vld [vmem:[#allocation103_spill] sm:$0xff] }
 0x51c   : > { %v15371_v51 = vpop.f32.mrf.mxu1  ;;  %v5563_v11 = vadd.f32 %v5562_v18, %v19598_v56  ;;  %v5566_v16 = vpop.f32.mrf.mxu0  ;;  %v7394_v18 = vld [vmem:[%s18890_s4 + $0x14] sm:$0xf]  ;;  %v7391_v59 = vld [vmem:[%s18890_s4 + $0x8] sm:$0xf] }
 0x51d   : > { %19597 = vst [vmem:[#allocation91_spill] sm:$0xff] %v15371_v51  ;;  %10842 = vmatmul.mubr.msk.bf16.gmra.mxu0 %vm4448_vm2, %v19599_v60  ;;  %v15393_v60 = vld [vmem:[%s18889_s3 + $0x84] ss:$8 sps:$4 sm:$0xff]   ;;  %7471 = vperm.xlu0 %11591, %v7393_v61  }
 0x51e   : > { %v6094_v17 = vpack.c.bf16 %v5563_v11, %v5559_v38  ;;  %v15376_v21 = vpop.f32.mrf.mxu1  ;;  %6714 = vmatprep.mubr.bf16.mxu0 %v15012_v9  ;;  %v5568_v56 = vpop.f32.mrf.mxu0  ;;  %19600 = vst [vmem:[#allocation88_spill] sm:$0xff] %v15393_v60  ;;  %7483 = vperm.xlu1 %11592, %v7394_v18   ;;  %v5567_v9 = vadd.f32 %v5566_v16, %v15017_v44  ;;  %v7392_v61 = vld [vmem:[%s18890_s4 + $0xc] sm:$0xf] }
 0x51f   : > { %v5569_v18 = vadd.f32 %v5568_v56, %v15023_v7  ;;  %v7390_v7 = vld [vmem:[%s18890_s4 + $0x4] sm:$0xf] }
 0x520   : > { %v15395_v38 = vpop.f32.mrf.mxu1  ;;  %v5570_v33 = vpop.f32.mrf.mxu0 }
 0x521   : > { %19601 = vst [vmem:[#allocation72_spill] sm:$0xff] %v15395_v38  ;;  %v5571_v58 = vadd.f32 %v5570_v33, %v15027_v39  ;;  %7447 = vperm.xlu0 %11591, %v7391_v59  }
 0x522   : > { %v15400_v11 = vpop.f32.mrf.mxu1  ;;  %6592 = vmatmul.mubr.bf16.gmra.mxu1 %v15381_v8  ;;  %v5572_v51 = vpop.f32.mrf.mxu0  ;;  %7459 = vperm.xlu1 %11592, %v7392_v61  }
 0x523   : > { %19602 = vst [vmem:[#allocation84_spill] sm:$0xff] %v15400_v11  ;;  %6601 = vmatprep.mubr.bf16.mxu1 %v15393_v60  ;;  %v5573_v11 = vadd.f32 %v5572_v51, %v15043_v45  ;;  %v6101_v39 = vpack.c.bf16 %v5571_v58, %v5567_v9  ;;  %v15422_v60 = vld [vmem:[%s18889_s3 + $0x80] ss:$8 sps:$4 sm:$0xff]   ;;  %v15434_v45 = vld [vmem:[%s18889_s3 + $0x94] ss:$8 sps:$4 sm:$0xff]  }
 0x524   : > { %v15410_v38 = vpop.f32.mrf.mxu1  ;;  %v5576_v33 = vpop.f32.mrf.mxu0  ;;  %v7389_v9 = vld [vmem:[%s18890_s4] sm:$0xf] }
 0x525   : > { %6715 = vmatmul.mubr.bf16.vlgmr.msra.gmra.mxu0 %v15035_v48  ;;  %v6102_v44 = vpack.c.bf16 %v5573_v11, %v5569_v18  ;;  %v15417_v59 = vadd.f32 %v5576_v33, %v15050_v37  ;;  %7423 = vperm.xlu0 %11591, %v7389_v9   ;;  %v6229_v51 = vmax.bf16 %v19330_v23, %v6101_v39  ;;  %v7419_v11 = vld [vmem:[%s18890_s4 + $0x78] sm:$0xf]  ;;  %v7420_v39 = vld [vmem:[%s18890_s4 + $0x7c] sm:$0xf] }
 0x526   : > { %v15414_v16 = vpop.f32.mrf.mxu1  ;;  %6724 = vmatprep.mubr.bf16.mxu0 %v15041_v50  ;;  %v5578_v48 = vpop.f32.mrf.mxu0  ;;  %7435 = vperm.xlu1 %11592, %v7390_v7  }
 0x527   : > { %19603 = vst [vmem:[#allocation71_spill] sm:$0xff] %v15417_v59  ;;  %v15439_v58 = vadd.f32 %v5578_v48, %v15060_v49  ;;  %v6230_v50 = vmax.bf16 %v19330_v23, %v6102_v44  ;;  %v6222_v49 = vmax.bf16 %v19330_v23, %v6094_v17  ;;  %v19607_v17 = vpack.c.bf16 %v15361_v2, %v15356_v63  ;;  %v15483_v2 = vld [vmem:[%s18889_s3 + $0x90] ss:$8 sps:$4 sm:$0xff]   ;;  %v15492_v63 = vld [vmem:[%s18889_s3 + $0xa4] ss:$8 sps:$4 sm:$0xff]  }
 0x528   : > { %v15436_v37 = vpop.f32.mrf.mxu1  ;;  %v5580_v56 = vpop.f32.mrf.mxu0  ;;  %v19634_v44 = vld [vmem:[#allocation85_spill] sm:$0xff] }
 0x529   : > { %19604 = vst [vmem:[#allocation69_spill] sm:$0xff] %v15439_v58  ;;  %v15447_v61 = vadd.f32 %v5580_v56, %v15070_v55  ;;  %6875 = vmatprep.subr.bf16.mxu1 %v6230_v50  ;;  %7783 = vperm.xlu0 %11591, %v7419_v11   ;;  %v6221_v7 = vmax.bf16 %v19330_v23, %v19607_v17  ;;  %v7415_v17 = vld [vmem:[%s18890_s4 + $0x68] sm:$0xf] }
 0x52a   : > { %v15449_v18 = vpop.f32.mrf.mxu1  ;;  %6602 = vmatmul.mubr.bf16.gmra.mxu1 %v15422_v60  ;;  %v5582_v33 = vpop.f32.mrf.mxu0  ;;  %7795 = vperm.xlu1 %11592, %v7420_v39   ;;  %v19608_v56 = vpack.c.bf16 %v15325_v34, %v15318_v42  ;;  %v7418_v42 = vld [vmem:[%s18890_s4 + $0x74] sm:$0xf] }
 0x52b   : > { %19605 = vst [vmem:[#allocation100_spill] sm:$0xff] %v15447_v61  ;;  %6876 = vmatpush1.bf16.msra.mxu1 %v6229_v51  ;;  %6611 = vmatprep.mubr.bf16.mxu1 %v15434_v45  ;;  %v15460_v55 = vadd.f32 %v5582_v33, %v15090_v62 }
 0x52c   : > { %v15462_v9 = vpop.f32.mrf.mxu1  ;;  %6877 = vmatprep.subr.bf16.mxu1 %v6222_v49  ;;  %v5586_v48 = vpop.f32.mrf.mxu0  ;;  %v6214_v11 = vmax.bf16 %v19330_v23, %v19608_v56  ;;  %v7416_v56 = vld [vmem:[%s18890_s4 + $0x6c] sm:$0xf] }
 0x52d   : > { %19606 = vst [vmem:[#allocation74_spill] sm:$0xff] %v15460_v55  ;;  %6725 = vmatmul.mubr.bf16.gmra.mxu0 %v15082_v25  ;;  %v15472_v51 = vadd.f32 %v5586_v48, %v15099_v12  ;;  %v7417_v25 = vld [vmem:[%s18890_s4 + $0x70] sm:$0xf]  ;;  %v19610_v48 = vpack.c.bf16 %v15277_v5, %v15270_v28  ;;  %v19611_v5 = vpack.c.bf16 %v15259_v36, %v15254_v32  ;;  %v15549_v32 = vld [vmem:[%s18889_s3 + $0xa0] ss:$8 sps:$4 sm:$0xff]  }
 0x52e   : > { %v15474_v62 = vpop.f32.mrf.mxu1  ;;  %6734 = vmatprep.mubr.bf16.mxu0 %v15088_v29  ;;  %v5588_v12 = vpop.f32.mrf.mxu0  ;;  %7759 = vperm.xlu0 %11591, %v7417_v25   ;;  %v19609_v29 = vpack.c.bf16 %v15310_v22, %v15305_v13  ;;  %v15558_v36 = vld [vmem:[%s18889_s3 + $0xb4] ss:$8 sps:$4 sm:$0xff]  }
 0x52f   : > { %6878 = vmatpush1.bf16.msra.mxu1 %v6221_v7  ;;  %v15498_v34 = vadd.f32 %v5588_v12, %v15112_v35  ;;  %7771 = vperm.xlu1 %11592, %v7418_v42   ;;  %v6206_v22 = vmax.bf16 %v19330_v23, %v19610_v48  ;;  %v6205_v28 = vmax.bf16 %v19330_v23, %v19611_v5  ;;  %v19660_v55 = vld [vmem:[#allocation72_spill] sm:$0xff] }
 0x530   : > { %v15500_v49 = vpop.f32.mrf.mxu1  ;;  %6879 = vmatprep.subr.bf16.mxu1 %v6214_v11  ;;  %v6213_v33 = vmax.bf16 %v19330_v23, %v19609_v29  ;;  %v5590_v39 = vpop.f32.mrf.mxu0  ;;  %v19614_v5 = vpack.c.bf16 %v15170_v27, %v15163_v46  ;;  %v19615_v27 = vpack.c.bf16 %v15154_v26, %v15128_v52  ;;  %v15612_v52 = vld [vmem:[%s18889_s3 + $0xb0] ss:$8 sps:$4 sm:$0xff]  }
 0x531   : > { %v15510_v7 = vadd.f32 %v5590_v39, %v15125_v54  ;;  %v7409_v26 = vld [vmem:[%s18890_s4 + $0x50] sm:$0xf] }
 0x532   : > { %v15512_v35 = vpop.f32.mrf.mxu1  ;;  %6612 = vmatmul.mubr.bf16.gmra.mxu1 %v15483_v2  ;;  %v5592_v13 = vpop.f32.mrf.mxu0  ;;  %7735 = vperm.xlu0 %11591, %v7415_v17  }
 0x533   : > { %6880 = vmatpush1.bf16.msra.mxu1 %v6213_v33  ;;  %6621 = vmatprep.mubr.bf16.mxu1 %v15492_v63  ;;  %v15526_v11 = vadd.f32 %v5592_v13, %v15145_v15  ;;  %v19612_v33 = vpack.c.bf16 %v15225_v20, %v15218_v40  ;;  %v7414_v40 = vld [vmem:[%s18890_s4 + $0x64] sm:$0xf] }
 0x534   : > { %v15528_v25 = vpop.f32.mrf.mxu1  ;;  %6881 = vmatprep.subr.bf16.mxu1 %v6206_v22  ;;  %v5596_v12 = vpop.f32.mrf.mxu0  ;;  %7747 = vperm.xlu1 %11592, %v7416_v56   ;;  %v7411_v22 = vld [vmem:[%s18890_s4 + $0x58] sm:$0xf] }
 0x535   : > { %6735 = vmatmul.mubr.bf16.gmra.mxu0 %v15137_v4  ;;  %v15538_v29 = vadd.f32 %v5596_v12, %v15151_v14  ;;  %v6198_v39 = vmax.bf16 %v19330_v23, %v19612_v33  ;;  %v7413_v4 = vld [vmem:[%s18890_s4 + $0x60] sm:$0xf] }
 0x536   : > { %v15540_v15 = vpop.f32.mrf.mxu1  ;;  %6744 = vmatprep.mubr.bf16.mxu0 %v15143_v0  ;;  %v5598_v14 = vpop.f32.mrf.mxu0  ;;  %7711 = vperm.xlu0 %11591, %v7413_v4   ;;  %v19613_v0 = vpack.c.bf16 %v15209_v1, %v15204_v47  ;;  %v6190_v47 = vmax.bf16 %v19330_v23, %v19614_v5 }
 0x537   : > { %6882 = vmatpush1.bf16.msra.mxu1 %v6205_v28  ;;  %v7412_v28 = vld [vmem:[%s18890_s4 + $0x5c] sm:$0xf] }
 0x538   : > { %v15563_v20 = vpop.f32.mrf.mxu1  ;;  %6883 = vmatprep.subr.bf16.mxu1 %v6198_v39  ;;  %v6197_v17 = vmax.bf16 %v19330_v23, %v19613_v0  ;;  %v5600_v48 = vpop.f32.mrf.mxu0  ;;  %7723 = vperm.xlu1 %11592, %v7414_v40   ;;  %v6189_v39 = vmax.bf16 %v19330_v23, %v19615_v27  ;;  %v15621_v0 = vld [vmem:[%s18889_s3 + $0xc4] ss:$8 sps:$4 sm:$0xff]  }
 0x539   : > { %v15573_v13 = vadd.f32 %v5600_v48, %v15180_v30  ;;  %v15587_v30 = vadd.f32 %v5598_v14, %v15167_v43  ;;  %v19637_v43 = vld [vmem:[#allocation65_spill] sm:$0xff] }
 0x53a   : > { %v15575_v56 = vpop.f32.mrf.mxu1  ;;  %6622 = vmatmul.mubr.bf16.gmra.mxu1 %v15549_v32  ;;  %v5602_v1 = vpop.f32.mrf.mxu0  ;;  %7687 = vperm.xlu0 %11591, %v7411_v22   ;;  %v7407_v22 = vld [vmem:[%s18890_s4 + $0x48] sm:$0xf] }
 0x53b   : > { %6884 = vmatpush1.bf16.msra.mxu1 %v6197_v17  ;;  %6631 = vmatprep.mubr.bf16.mxu1 %v15558_v36  ;;  %v15592_v33 = vadd.f32 %v5602_v1, %v15197_v57  ;;  %v19616_v57 = vpack.c.bf16 %v15115_v3, %v15093_v19  ;;  %v7410_v19 = vld [vmem:[%s18890_s4 + $0x54] sm:$0xf] }
 0x53c   : > { %v15594_v46 = vpop.f32.mrf.mxu1  ;;  %6885 = vmatprep.subr.bf16.mxu1 %v6190_v47  ;;  %v5606_v4 = vpop.f32.mrf.mxu0  ;;  %7699 = vperm.xlu1 %11592, %v7412_v28   ;;  %v19618_v28 = vld [vmem:[#allocation83_spill] sm:$0xff] }
 0x53d   : > { %6745 = vmatmul.mubr.bf16.gmra.mxu0 %v15189_v31  ;;  %v6182_v40 = vmax.bf16 %v19330_v23, %v19616_v57  ;;  %v15636_v5 = vadd.f32 %v5606_v4, %v15206_v41  ;;  %v7408_v41 = vld [vmem:[%s18890_s4 + $0x4c] sm:$0xf] }
 0x53e   : > { %v15603_v14 = vpop.f32.mrf.mxu1  ;;  %6754 = vmatprep.mubr.bf16.mxu0 %v15195_v24  ;;  %v5608_v31 = vpop.f32.mrf.mxu0  ;;  %7663 = vperm.xlu0 %11591, %v7409_v26   ;;  %v19617_v24 = vpack.c.bf16 %v15102_v53, %v15073_v6  ;;  %v19619_v6 = vld [vmem:[#allocation89_spill] sm:$0xff]  ;;  %v19621_v4 = vld [vmem:[#allocation87_spill] sm:$0xff] }
 0x53f   : > { %6886 = vmatpush1.bf16.msra.mxu1 %v6189_v39  ;;  %v19620_v53 = vpack.c.bf16 %v19618_v28, %v19619_v6 }
 0x540   : > { %v15626_v3 = vpop.f32.mrf.mxu1  ;;  %6887 = vmatprep.subr.bf16.mxu1 %v6182_v40  ;;  %v6181_v17 = vmax.bf16 %v19330_v23, %v19617_v24  ;;  %v5610_v48 = vpop.f32.mrf.mxu0  ;;  %7675 = vperm.xlu1 %11592, %v7410_v19   ;;  %v19622_v40 = vld [vmem:[#allocation81_spill] sm:$0xff]  ;;  %v19624_v24 = vld [vmem:[#allocation76_spill] sm:$0xff] }
 0x541   : > { %v15639_v47 = vadd.f32 %v5610_v48, %v15235_v10  ;;  %v6174_v27 = vmax.bf16 %v19330_v23, %v19620_v53  ;;  %v15653_v10 = vadd.f32 %v5608_v31, %v19621_v4  ;;  %v19627_v53 = vld [vmem:[#allocation59_spill] sm:$0xff] }
 0x542   : > { %v15641_v1 = vpop.f32.mrf.mxu1  ;;  %6632 = vmatmul.mubr.bf16.gmra.mxu1 %v15612_v52  ;;  %v5612_v39 = vpop.f32.mrf.mxu0  ;;  %7639 = vperm.xlu0 %11591, %v7407_v22   ;;  %v19630_v22 = vld [vmem:[#allocation58_spill] sm:$0xff] }
 0x543   : > { %6888 = vmatpush1.bf16.msra.mxu1 %v6181_v17  ;;  %6641 = vmatprep.mubr.bf16.mxu1 %v15621_v0  ;;  %v15658_v26 = vadd.f32 %v5612_v39, %v19622_v40  ;;  %v19625_v17 = vld [vmem:[#allocation80_spill] sm:$0xff]  ;;  %v15674_v39 = vld [vmem:[%s18889_s3 + $0xc0] ss:$8 sps:$4 sm:$0xff]  }
 0x544   : > { %v15660_v19 = vpop.f32.mrf.mxu1  ;;  %6889 = vmatprep.subr.bf16.mxu1 %v6174_v27  ;;  %v19626_v48 = vpack.c.bf16 %v19624_v24, %v19625_v17  ;;  %v5616_v6 = vpop.f32.mrf.mxu0  ;;  %7651 = vperm.xlu1 %11592, %v7408_v41   ;;  %19629 = vst [vmem:[#allocation105_spill] sm:$0xff] %v15674_v39  ;;  %v7405_v27 = vld [vmem:[%s18890_s4 + $0x40] sm:$0xf]  ;;  %v15683_v41 = vld [vmem:[%s18889_s3 + $0xd4] ss:$8 sps:$4 sm:$0xff]  }
 0x545   : > { %19623 = vst [vmem:[#allocation68_spill] sm:$0xff] %v15660_v19  ;;  %6755 = vmatmul.mubr.bf16.gmra.mxu0 %v19627_v53  ;;  %19631 = vst [vmem:[#allocation106_spill] sm:$0xff] %v15683_v41  ;;  %v7406_v24 = vld [vmem:[%s18890_s4 + $0x44] sm:$0xf]  ;;  %v9263_v53 = vld [vmem:[%s18892_s6 + $0x38] sm:$0xf] }
 0x546   : > { %v6173_v28 = vmax.bf16 %v19330_v23, %v19626_v48  ;;  %v15669_v4 = vpop.f32.mrf.mxu1  ;;  %6764 = vmatprep.mubr.bf16.mxu0 %v19630_v22  ;;  %v5618_v40 = vpop.f32.mrf.mxu0  ;;  %7615 = vperm.xlu0 %11591, %v7405_v27   ;;  %v19633_v22 = vld [vmem:[#allocation75_spill] sm:$0xff]  ;;  %v19636_v27 = vld [vmem:[#allocation104_spill] sm:$0xff] }
 0x547   : > { %19628 = vst [vmem:[#allocation82_spill] sm:$0xff] %v15669_v4  ;;  %v15704_v12 = vadd.f32 %v5618_v40, %v19636_v27  ;;  %v15721_v40 = vld [vmem:[%s18889_s3 + $0xd0] ss:$8 sps:$4 sm:$0xff]   ;;  %v19642_v27 = vld [vmem:[#allocation62_spill] sm:$0xff] }
 0x548   : > { %6890 = vmatpush1.bf16.msra.mxu1 %v6173_v28  ;;  %v15688_v17 = vpop.f32.mrf.mxu1  ;;  %v5620_v48 = vpop.f32.mrf.mxu0  ;;  %7627 = vperm.xlu1 %11592, %v7406_v24   ;;  %v15694_v28 = vadd.f32 %v5616_v6, %v19633_v22  ;;  %19641 = vst [vmem:[#allocation63_spill] sm:$0xff] %v15721_v40 }
 0x549   : > { %19632 = vst [vmem:[#allocation99_spill] sm:$0xff] %v15688_v17  ;;  %v15697_v50 = vadd.f32 %v5620_v48, %v19634_v44  ;;  %v19639_v48 = vld [vmem:[#allocation60_spill] sm:$0xff]  ;;  %v19649_v17 = vld [vmem:[#allocation93_spill] sm:$0xff] }
 0x54a   : > { %v15699_v54 = vpop.f32.mrf.mxu1  ;;  %6642 = vmatmul.mubr.bf16.gmra.mxu1 %v15674_v39  ;;  %v5622_v42 = vpop.f32.mrf.mxu0  ;;  %9451 = vperm.xlu0 %11591, %v9263_v53  }
 0x54b   : > { %19635 = vst [vmem:[#allocation98_spill] sm:$0xff] %v15699_v54  ;;  %6651 = vmatprep.mubr.bf16.mxu1 %v15683_v41  ;;  %v15709_v57 = vadd.f32 %v5622_v42, %v19637_v43  ;;  %v9264_v42 = vld [vmem:[%s18892_s6 + $0x3c] sm:$0xf]  ;;  %v9261_v43 = vld [vmem:[%s18892_s6 + $0x30] sm:$0xf] }
 0x54c   : > { %v15711_v6 = vpop.f32.mrf.mxu1  ;;  %v5626_v44 = vpop.f32.mrf.mxu0  ;;  %9463 = vperm.xlu1 %11592, %v9264_v42   ;;  %v19646_v41 = vld [vmem:[#allocation97_spill] sm:$0xff] }
 0x54d   : > { %19638 = vst [vmem:[#allocation78_spill] sm:$0xff] %v15711_v6  ;;  %6765 = vmatmul.mubr.bf16.gmra.mxu0 %v19639_v48  ;;  %v15733_v48 = vld [vmem:[%s18889_s3 + $0xe4] ss:$8 sps:$4 sm:$0xff]   ;;  %v9259_v6 = vld [vmem:[%s18892_s6 + $0x28] sm:$0xf] }
 0x54e   : > { %v15716_v31 = vpop.f32.mrf.mxu1  ;;  %6774 = vmatprep.mubr.bf16.mxu0 %v19642_v27  ;;  %v5628_v53 = vpop.f32.mrf.mxu0  ;;  %19643 = vst [vmem:[#allocation95_spill] sm:$0xff] %v15733_v48  ;;  %9427 = vperm.xlu0 %11591, %v9261_v43   ;;  %v9262_v27 = vld [vmem:[%s18892_s6 + $0x34] sm:$0xf]  ;;  %v19648_v43 = vld [vmem:[#allocation94_spill] sm:$0xff] }
 0x54f   : > { %19640 = vst [vmem:[#allocation66_spill] sm:$0xff] %v15716_v31  ;;  %v19645_v31 = vld [vmem:[#allocation96_spill] sm:$0xff] }
 0x550   : > { %v15735_v24 = vpop.f32.mrf.mxu1  ;;  %v5630_v22 = vpop.f32.mrf.mxu0  ;;  %v15744_v54 = vadd.f32 %v5626_v44, %v19645_v31  ;;  %9439 = vperm.xlu1 %11592, %v9262_v27   ;;  %v19654_v27 = vld [vmem:[#allocation70_spill] sm:$0xff] }
 0x551   : > { %19644 = vst [vmem:[#allocation64_spill] sm:$0xff] %v15735_v24  ;;  %v15747_v39 = vadd.f32 %v5630_v22, %v19646_v41  ;;  %v15754_v24 = vadd.f32 %v5628_v53, %v19648_v43  ;;  %v19651_v22 = vld [vmem:[#allocation92_spill] sm:$0xff]  ;;  %v15771_v53 = vld [vmem:[%s18889_s3 + $0xe0] ss:$8 sps:$4 sm:$0xff]  }
 0x552   : > { %v15749_v59 = vpop.f32.mrf.mxu1  ;;  %6652 = vmatmul.mubr.bf16.gmra.mxu1 %v15721_v40  ;;  %v5632_v42 = vpop.f32.mrf.mxu0  ;;  %9403 = vperm.xlu0 %11591, %v9259_v6   ;;  %19653 = vst [vmem:[#allocation90_spill] sm:$0xff] %v15771_v53  ;;  %v9257_v6 = vld [vmem:[%s18892_s6 + $0x20] sm:$0xf]  ;;  %v15783_v43 = vld [vmem:[%s18889_s3 + $0xf4] ss:$8 sps:$4 sm:$0xff]  }
 0x553   : > { %19647 = vst [vmem:[#allocation101_spill] sm:$0xff] %v15749_v59  ;;  %6661 = vmatprep.mubr.bf16.mxu1 %v15733_v48  ;;  %v15759_v31 = vadd.f32 %v5632_v42, %v19649_v17  ;;  %v9260_v17 = vld [vmem:[%s18892_s6 + $0x2c] sm:$0xf]  ;;  %19655 = vst [vmem:[#allocation79_spill] sm:$0xff] %v15783_v43  ;;  %v9255_v59 = vld [vmem:[%s18892_s6 + $0x18] sm:$0xf] }
 0x554   : > { %v15761_v44 = vpop.f32.mrf.mxu1  ;;  %v5636_v41 = vpop.f32.mrf.mxu0  ;;  %9415 = vperm.xlu1 %11592, %v9260_v17  }
 0x555   : > { %19650 = vst [vmem:[#allocation77_spill] sm:$0xff] %v15761_v44  ;;  %6775 = vmatmul.mubr.bf16.gmra.mxu0 %v19651_v22  ;;  %v19657_v44 = vld [vmem:[#allocation86_spill] sm:$0xff] }
 0x556   : > { %v15766_v48 = vpop.f32.mrf.mxu1  ;;  %6784 = vmatprep.mubr.bf16.mxu0 %v19654_v27  ;;  %v5638_v42 = vpop.f32.mrf.mxu0  ;;  %9379 = vperm.xlu0 %11591, %v9257_v6   ;;  %v9258_v27 = vld [vmem:[%s18892_s6 + $0x24] sm:$0xf]  ;;  %v19659_v6 = vld [vmem:[#allocation91_spill] sm:$0xff] }
 0x557   : > { %19652 = vst [vmem:[#allocation102_spill] sm:$0xff] %v15766_v48  ;;  %v15794_v48 = vadd.f32 %v5636_v41, %v19657_v44 }
 0x558   : > { %v15785_v22 = vpop.f32.mrf.mxu1  ;;  %v5640_v61 = vpop.f32.mrf.mxu0  ;;  %9391 = vperm.xlu1 %11592, %v9258_v27   ;;  %v15815_v27 = vld [vmem:[%s18889_s3 + $0xf0] ss:$8 sps:$4 sm:$0xff]  }
 0x559   : > { %19656 = vst [vmem:[#allocation61_spill] sm:$0xff] %v15785_v22  ;;  %v15797_v40 = vadd.f32 %v5640_v61, %v15376_v21  ;;  %v5639_v22 = vadd.f32 %v5638_v42, %v19659_v6  ;;  %v19663_v42 = vld [vmem:[#allocation88_spill] sm:$0xff] }
 0x55a   : > { %v15799_v19 = vpop.f32.mrf.mxu1  ;;  %6662 = vmatmul.mubr.bf16.gmra.mxu1 %v15771_v53  ;;  %v5642_v17 = vpop.f32.mrf.mxu0  ;;  %9355 = vperm.xlu0 %11591, %v9255_v59   ;;  %v9253_v59 = vld [vmem:[%s18892_s6 + $0x10] sm:$0xf] }
 0x55b   : > { %19658 = vst [vmem:[#allocation103_spill] sm:$0xff] %v15799_v19  ;;  %6671 = vmatprep.mubr.bf16.mxu1 %v15783_v43  ;;  %v6157_v58 = vpack.c.bf16 %v15797_v40, %v15794_v48  ;;  %v5643_v4 = vadd.f32 %v5642_v17, %v19660_v55  ;;  %v9256_v55 = vld [vmem:[%s18892_s6 + $0x1c] sm:$0xf] }
 0x55c   : > { %v15807_v44 = vpop.f32.mrf.mxu1  ;;  %9367 = vperm.xlu1 %11592, %v9256_v55  }
 0x55d   : > { %19661 = vst [vmem:[#allocation67_spill] sm:$0xff] %v15807_v44  ;;  %v5646_v21 = vpop.f32.mrf.mxu0  ;;  %6785 = vmatmul.mubr.bf16.gmra.mxu0 %v15381_v8  ;;  %v6158_v61 = vpack.c.bf16 %v5643_v4, %v5639_v22  ;;  %v9254_v4 = vld [vmem:[%s18892_s6 + $0x14] sm:$0xf]  ;;  %v9251_v22 = vld [vmem:[%s18892_s6 + $0x8] sm:$0xf] }
 0x55e   : > { %v15810_v41 = vpop.f32.mrf.mxu1  ;;  %6794 = vmatprep.mubr.bf16.mxu0 %v19663_v42  ;;  %9331 = vperm.xlu0 %11591, %v9253_v59   ;;  %v19665_v42 = vld [vmem:[#allocation84_spill] sm:$0xff] }
 0x55f   : > { %19662 = vst [vmem:[#allocation83_spill] sm:$0xff] %v15810_v41  ;;  %v5648_v40 = vpop.f32.mrf.mxu0  ;;  %v5647_v55 = vadd.f32 %v5646_v21, %v19665_v42 }
 0x560   : > { %v15824_v8 = vpop.f32.mrf.mxu1  ;;  %9343 = vperm.xlu1 %11592, %v9254_v4   ;;  %v5649_v59 = vadd.f32 %v5648_v40, %v15410_v38  ;;  %v9252_v38 = vld [vmem:[%s18892_s6 + $0xc] sm:$0xf] }
 0x561   : > { %19664 = vst [vmem:[#allocation89_spill] sm:$0xff] %v15824_v8  ;;  %v5650_v48 = vpop.f32.mrf.mxu0  ;;  %v19666_v8 = vld [vmem:[#allocation73_spill] sm:$0xff] }
 0x562   : > { %v5651_v17 = vadd.f32 %v5650_v48, %v15414_v16  ;;  %v15833_v6 = vpop.f32.mrf.mxu1  ;;  %6672 = vmatmul.mubr.bf16.gmra.mxu1 %v15815_v27  ;;  %9307 = vperm.xlu0 %11591, %v9251_v22  }
 0x563   : > { %v5652_v44 = vpop.f32.mrf.mxu0  ;;  %6907 = vmatprep.mubr.bf16.mxu1 %v19666_v8  ;;  %v9279_v8 = vld [vmem:[%s18892_s6 + $0x78] sm:$0xf] }
 0x564   : > { %v5653_v41 = vadd.f32 %v5652_v44, %v15436_v37  ;;  %v15840_v19 = vpop.f32.mrf.mxu1  ;;  %v6165_v43 = vpack.c.bf16 %v5651_v17, %v5647_v55  ;;  %v9249_v37 = vld [vmem:[%s18892_s6] sm:$0xf]  ;;  %9319 = vperm.xlu1 %11592, %v9252_v38  }
 0x565   : > { %v5882_v53 = vpop.f32.mrf.mxu0  ;;  %6795 = vmatmul.mubr.bf16.gmra.mxu0 %v15422_v60 }
 0x566   : > { %v6166_v16 = vpack.c.bf16 %v5653_v41, %v5649_v59  ;;  %v15843_v48 = vpop.f32.mrf.mxu1  ;;  %v15846_v21 = vadd.f32 %v5882_v53, %v15449_v18  ;;  %6804 = vmatprep.mubr.bf16.mxu0 %v15434_v45  ;;  %9283 = vperm.xlu0 %11591, %v9249_v37   ;;  %v9250_v45 = vld [vmem:[%s18892_s6 + $0x4] sm:$0xf]  ;;  %v6293_v53 = vmax.bf16 %v19330_v23, %v6165_v43 }
 0x567   : > { %v5884_v44 = vpop.f32.mrf.mxu0  ;;  %v6285_v59 = vmax.bf16 %v19330_v23, %v6157_v58 }
 0x568   : > { %v15855_v40 = vpop.f32.mrf.mxu1  ;;  %v15858_v60 = vadd.f32 %v5884_v44, %v15462_v9  ;;  %v6294_v18 = vmax.bf16 %v19330_v23, %v6166_v16  ;;  %v6286_v9 = vmax.bf16 %v19330_v23, %v6158_v61  ;;  %9295 = vperm.xlu1 %11592, %v9250_v45   ;;  %v9277_v16 = vld [vmem:[%s18892_s6 + $0x70] sm:$0xf]  ;;  %v19667_v44 = vpack.c.bf16 %v15759_v31, %v15754_v24 }
 0x569   : > { %v5886_v41 = vpop.f32.mrf.mxu0  ;;  %v19668_v24 = vpack.c.bf16 %v15747_v39, %v15744_v54  ;;  %v19698_v54 = vld [vmem:[#allocation101_spill] sm:$0xff] }
 0x56a   : > { %v15868_v4 = vpop.f32.mrf.mxu1  ;;  %v15871_v22 = vadd.f32 %v5886_v41, %v15474_v62  ;;  %6891 = vmatprep.subr.bf16.mxu1 %v6294_v18  ;;  %9643 = vperm.xlu0 %11591, %v9279_v8   ;;  %v9280_v62 = vld [vmem:[%s18892_s6 + $0x7c] sm:$0xf]  ;;  %v6278_v58 = vmax.bf16 %v19330_v23, %v19667_v44  ;;  %v19669_v8 = vpack.c.bf16 %v15709_v57, %v15704_v12 }
 0x56b   : > { %v5888_v17 = vpop.f32.mrf.mxu0  ;;  %6892 = vmatpush2.bf16.msra.mxu1 %v6293_v53  ;;  %v6277_v31 = vmax.bf16 %v19330_v23, %v19668_v24  ;;  %v9275_v53 = vld [vmem:[%s18892_s6 + $0x68] sm:$0xf]  ;;  %v19670_v12 = vpack.c.bf16 %v15697_v50, %v15694_v28  ;;  %v19671_v50 = vpack.c.bf16 %v15658_v26, %v15653_v10 }
 0x56c   : > { %v15876_v43 = vpop.f32.mrf.mxu1  ;;  %v15879_v55 = vadd.f32 %v5888_v17, %v15500_v49  ;;  %6893 = vmatprep.subr.bf16.mxu1 %v6286_v9  ;;  %9655 = vperm.xlu1 %11592, %v9280_v62   ;;  %v6270_v9 = vmax.bf16 %v19330_v23, %v19669_v8 }
 0x56d   : > { %v5892_v61 = vpop.f32.mrf.mxu0  ;;  %6805 = vmatmul.mubr.bf16.gmra.mxu0 %v15483_v2  ;;  %v6269_v57 = vmax.bf16 %v19330_v23, %v19670_v12  ;;  %v6262_v28 = vmax.bf16 %v19330_v23, %v19671_v50  ;;  %v19675_v12 = vpack.c.bf16 %v15526_v11, %v15498_v34 }
 0x56e   : > { %v15891_v49 = vpop.f32.mrf.mxu1  ;;  %v15894_v37 = vadd.f32 %v5892_v61, %v15512_v35  ;;  %6814 = vmatprep.mubr.bf16.mxu0 %v15492_v63  ;;  %9619 = vperm.xlu0 %11591, %v9277_v16   ;;  %v9278_v35 = vld [vmem:[%s18892_s6 + $0x74] sm:$0xf]  ;;  %v9273_v61 = vld [vmem:[%s18892_s6 + $0x60] sm:$0xf] }
 0x56f   : > { %v5894_v2 = vpop.f32.mrf.mxu0  ;;  %6894 = vmatpush2.bf16.msra.mxu1 %v6285_v59 }
 0x570   : > { %v15901_v18 = vpop.f32.mrf.mxu1  ;;  %v15904_v45 = vadd.f32 %v5894_v2, %v15528_v25  ;;  %6895 = vmatprep.subr.bf16.mxu1 %v6278_v58  ;;  %9631 = vperm.xlu1 %11592, %v9278_v35   ;;  %v9274_v2 = vld [vmem:[%s18892_s6 + $0x64] sm:$0xf] }
 0x571   : > { %v5896_v63 = vpop.f32.mrf.mxu0 }
 0x572   : > { %v15916_v41 = vpop.f32.mrf.mxu1  ;;  %v15919_v25 = vadd.f32 %v5896_v63, %v15540_v15  ;;  %9595 = vperm.xlu0 %11591, %v9275_v53   ;;  %v9276_v15 = vld [vmem:[%s18892_s6 + $0x6c] sm:$0xf] }
 0x573   : > { %v5898_v17 = vpop.f32.mrf.mxu0  ;;  %6896 = vmatpush2.bf16.msra.mxu1 %v6277_v31  ;;  %v19673_v31 = vpack.c.bf16 %v15592_v33, %v15587_v30  ;;  %v9272_v30 = vld [vmem:[%s18892_s6 + $0x5c] sm:$0xf]  ;;  %v19674_v33 = vpack.c.bf16 %v15573_v13, %v15538_v29 }
 0x574   : > { %v15927_v39 = vpop.f32.mrf.mxu1  ;;  %v15930_v62 = vadd.f32 %v5898_v17, %v15563_v20  ;;  %6897 = vmatprep.subr.bf16.mxu1 %v6270_v9  ;;  %9607 = vperm.xlu1 %11592, %v9276_v15   ;;  %v9269_v17 = vld [vmem:[%s18892_s6 + $0x50] sm:$0xf] }
 0x575   : > { %v5902_v59 = vpop.f32.mrf.mxu0  ;;  %6815 = vmatmul.mubr.bf16.gmra.mxu0 %v15549_v32  ;;  %v6254_v63 = vmax.bf16 %v19330_v23, %v19673_v31 }
 0x576   : > { %v15945_v16 = vpop.f32.mrf.mxu1  ;;  %v15948_v44 = vadd.f32 %v5902_v59, %v15575_v56  ;;  %6824 = vmatprep.mubr.bf16.mxu0 %v15558_v36  ;;  %9571 = vperm.xlu0 %11591, %v9273_v61   ;;  %v19672_v56 = vpack.c.bf16 %v15639_v47, %v15636_v5  ;;  %v9271_v36 = vld [vmem:[%s18892_s6 + $0x58] sm:$0xf]  ;;  %v19676_v59 = vpack.c.bf16 %v15510_v7, %v15472_v51  ;;  %v16119_v47 = vld [vmem:[%s18889_s3 + $0x24] ss:$8 sps:$4 sm:$0xff]  }
 0x577   : > { %v5904_v32 = vpop.f32.mrf.mxu0  ;;  %6898 = vmatpush2.bf16.msra.mxu1 %v6269_v57  ;;  %v6246_v57 = vmax.bf16 %v19330_v23, %v19675_v12  ;;  %19702 = vst [vmem:[#allocation75_spill] sm:$0xff] %v16119_v47 }
 0x578   : > { %v15955_v58 = vpop.f32.mrf.mxu1  ;;  %6899 = vmatprep.subr.bf16.mxu1 %v6262_v28  ;;  %v6261_v10 = vmax.bf16 %v19330_v23, %v19672_v56  ;;  %9583 = vperm.xlu1 %11592, %v9274_v2   ;;  %v15977_v5 = vadd.f32 %v5904_v32, %v15594_v46  ;;  %v6253_v46 = vmax.bf16 %v19330_v23, %v19674_v33  ;;  %v19677_v28 = vld [vmem:[#allocation82_spill] sm:$0xff]  ;;  %v19679_v56 = vld [vmem:[#allocation69_spill] sm:$0xff]  ;;  %v19683_v33 = vld [vmem:[#allocation100_spill] sm:$0xff] }
 0x579   : > { %v5906_v26 = vpop.f32.mrf.mxu0  ;;  %v6245_v34 = vmax.bf16 %v19330_v23, %v19676_v59  ;;  %v19678_v2 = vld [vmem:[#allocation74_spill] sm:$0xff] }
 0x57a   : > { %v15967_v35 = vpop.f32.mrf.mxu1  ;;  %v15970_v24 = vadd.f32 %v5906_v26, %v15603_v14  ;;  %9547 = vperm.xlu0 %11591, %v9271_v36   ;;  %v19681_v26 = vld [vmem:[#allocation68_spill] sm:$0xff] }
 0x57b   : > { %v5908_v53 = vpop.f32.mrf.mxu0  ;;  %6900 = vmatpush2.bf16.msra.mxu1 %v6261_v10  ;;  %v19680_v10 = vpack.c.bf16 %v19678_v2, %v19679_v56  ;;  %v10018_v56 = vld [vmem:[%s18894_s8] sm:$0xff] }
 0x57c   : > { %v15981_v8 = vpop.f32.mrf.mxu1  ;;  %v15984_v9 = vadd.f32 %v5908_v53, %v15626_v3  ;;  %6901 = vmatprep.subr.bf16.mxu1 %v6254_v63  ;;  %9559 = vperm.xlu1 %11592, %v9272_v30   ;;  %v19682_v63 = vld [vmem:[#allocation99_spill] sm:$0xff]  ;;  %v19705_v3 = vld [vmem:[#allocation61_spill] sm:$0xff] }
 0x57d   : > { %v5912_v14 = vpop.f32.mrf.mxu0  ;;  %6825 = vmatmul.mubr.bf16.gmra.mxu0 %v15612_v52  ;;  %v9270_v52 = vld [vmem:[%s18892_s6 + $0x54] sm:$0xf]  ;;  %v6238_v51 = vmax.bf16 %v19330_v23, %v19680_v10  ;;  %v9268_v30 = vld [vmem:[%s18892_s6 + $0x4c] sm:$0xf]  ;;  %v19688_v10 = vld [vmem:[#allocation98_spill] sm:$0xff] }
 0x57e   : > { %v15999_v15 = vpop.f32.mrf.mxu1  ;;  %6834 = vmatprep.mubr.bf16.mxu0 %v15621_v0  ;;  %9523 = vperm.xlu0 %11591, %v9269_v17   ;;  %v9267_v0 = vld [vmem:[%s18892_s6 + $0x48] sm:$0xf]  ;;  %v16019_v61 = vadd.f32 %v5912_v14, %v15641_v1 }
 0x57f   : > { %v5914_v29 = vpop.f32.mrf.mxu0  ;;  %6902 = vmatpush2.bf16.msra.mxu1 %v6253_v46  ;;  %v19684_v46 = vld [vmem:[#allocation71_spill] sm:$0xff] }
 0x580   : > { %v16006_v13 = vpop.f32.mrf.mxu1  ;;  %6903 = vmatprep.subr.bf16.mxu1 %v6246_v57  ;;  %9535 = vperm.xlu1 %11592, %v9270_v52   ;;  %v16031_v36 = vadd.f32 %v5914_v29, %v19681_v26  ;;  %v19685_v14 = vpack.c.bf16 %v19683_v33, %v19684_v46  ;;  %v19686_v57 = vld [vmem:[#allocation105_spill] sm:$0xff]  ;;  %v9265_v29 = vld [vmem:[%s18892_s6 + $0x40] sm:$0xf] }
 0x581   : > { %v5916_v11 = vpop.f32.mrf.mxu0  ;;  %v19689_v26 = vld [vmem:[#allocation66_spill] sm:$0xff]  ;;  %v16081_v46 = vld [vmem:[%s18889_s3 + $0x14] ss:$8 sps:$4 sm:$0xff]  }
 0x582   : > { %v16021_v50 = vpop.f32.mrf.mxu1  ;;  %v16024_v32 = vadd.f32 %v5916_v11, %v19677_v28  ;;  %9499 = vperm.xlu0 %11591, %v9267_v0   ;;  %v6237_v17 = vmax.bf16 %v19330_v23, %v19685_v14  ;;  %v9266_v28 = vld [vmem:[%s18892_s6 + $0x44] sm:$0xf]  ;;  %19691 = vst [vmem:[#allocation81_spill] sm:$0xff] %v16081_v46 }
 0x583   : > { %v5918_v7 = vpop.f32.mrf.mxu0  ;;  %6904 = vmatpush2.bf16.msra.mxu1 %v6245_v34  ;;  %v19687_v34 = vld [vmem:[#allocation106_spill] sm:$0xff] }
 0x584   : > { %v16035_v31 = vpop.f32.mrf.mxu1  ;;  %v16038_v53 = vadd.f32 %v5918_v7, %v19682_v63  ;;  %6905 = vmatprep.subr.bf16.mxu1 %v6238_v51  ;;  %9511 = vperm.xlu1 %11592, %v9268_v30   ;;  %v16075_v30 = vld [vmem:[%s18889_s3] ss:$8 sps:$4 sm:$0xff]  }
 0x585   : > { %v5922_v12 = vpop.f32.mrf.mxu0  ;;  %6835 = vmatmul.mubr.bf16.gmra.mxu0 %v19686_v57  ;;  %19690 = vst [vmem:[#allocation87_spill] sm:$0xff] %v16075_v30  ;;  %v19692_v14 = vld [vmem:[#allocation78_spill] sm:$0xff] }
 0x586   : > { %v16053_v59 = vpop.f32.mrf.mxu1  ;;  %6844 = vmatprep.mubr.bf16.mxu0 %v19687_v34  ;;  %9475 = vperm.xlu0 %11591, %v9265_v29   ;;  %v16065_v51 = vadd.f32 %v5922_v12, %v19688_v10  ;;  %v19694_v29 = vld [vmem:[#allocation64_spill] sm:$0xff]  ;;  %v19695_v10 = vld [vmem:[#allocation63_spill] sm:$0xff]  ;;  %v19706_v12 = vld [vmem:[#allocation90_spill] sm:$0xff] }
 0x587   : > { %v5924_v11 = vpop.f32.mrf.mxu0  ;;  %6906 = vmatpush2.bf16.msra.mxu1 %v6237_v17 }
 0x588   : > { %v16056_v0 = vpop.f32.mrf.mxu1  ;;  %9487 = vperm.xlu1 %11592, %v9266_v28   ;;  %v16085_v17 = vadd.f32 %v5924_v11, %v19692_v14  ;;  %v19696_v28 = vld [vmem:[#allocation95_spill] sm:$0xff] }
 0x589   : > { %v5926_v2 = vpop.f32.mrf.mxu0 }
 0x58a   : > { %v16067_v7 = vpop.f32.mrf.mxu1  ;;  %v16070_v63 = vadd.f32 %v5926_v2, %v19689_v26  ;;  %6908 = vmatmul.mubr.bf16.vlgmr.msra.gmra.mxu1 %v16075_v30  ;;  %10021 = vperm.xlu0 %11591, %v10018_v56   ;;  %v19700_v56 = vld [vmem:[#allocation102_spill] sm:$0xff] }
 0x58b   : > { %v5928_v33 = vpop.f32.mrf.mxu0  ;;  %6917 = vmatprep.mubr.bf16.mxu1 %v16081_v46 }
 0x58c   : > { %v16089_v57 = vpop.f32.mrf.mxu1  ;;  %v16092_v34 = vadd.f32 %v5928_v33, %v19694_v29 }
 0x58d   : > { %19693 = vst [vmem:[#allocation76_spill] sm:$0xff] %v16089_v57  ;;  %v5932_v2 = vpop.f32.mrf.mxu0  ;;  %6845 = vmatmul.mubr.bf16.gmra.mxu0 %v19695_v10  ;;  %v16113_v10 = vld [vmem:[%s18889_s3 + $0x10] ss:$8 sps:$4 sm:$0xff]  }
 0x58e   : > { %v16097_v42 = vpop.f32.mrf.mxu1  ;;  %6854 = vmatprep.mubr.bf16.mxu0 %v19696_v28  ;;  %v16103_v20 = vadd.f32 %v5932_v2, %v19698_v54  ;;  %19701 = vst [vmem:[#allocation58_spill] sm:$0xff] %v16113_v10  ;;  %v19703_v54 = vld [vmem:[#allocation77_spill] sm:$0xff] }
 0x58f   : > { %v5934_v11 = vpop.f32.mrf.mxu0 }
 0x590   : > { %v16100_v14 = vpop.f32.mrf.mxu1  ;;  %v16123_v2 = vadd.f32 %v5934_v11, %v19703_v54 }
 0x591   : > { %19697 = vst [vmem:[#allocation80_spill] sm:$0xff] %v16100_v14  ;;  %v5936_v38 = vpop.f32.mrf.mxu0  ;;  %v11812_v14 = vld [vmem:[%s18889_s3 + $0x4] ss:$8 sps:$4 sm:$0xff]  }
 0x592   : > { %v16105_v33 = vpop.f32.mrf.mxu1  ;;  %v16108_v29 = vadd.f32 %v5936_v38, %v19700_v56  ;;  %6918 = vmatmul.mubr.bf16.gmra.mxu1 %v16113_v10  ;;  %v19710_v38 = vld [vmem:[#allocation103_spill] sm:$0xff] }
 0x593   : > { %19699 = vst [vmem:[#allocation59_spill] sm:$0xff] %v16105_v33  ;;  %v5938_v28 = vpop.f32.mrf.mxu0  ;;  %6927 = vmatprep.mubr.bf16.mxu1 %v16119_v47  ;;  %v19708_v47 = vld [vmem:[#allocation79_spill] sm:$0xff] }
 0x594   : > { %v16127_v56 = vpop.f32.mrf.mxu1  ;;  %v16130_v1 = vadd.f32 %v5938_v28, %v19705_v3  ;;  %v19712_v3 = vld [vmem:[#allocation83_spill] sm:$0xff] }
 0x595   : > { %19704 = vst [vmem:[#allocation85_spill] sm:$0xff] %v16127_v56  ;;  %v5942_v52 = vpop.f32.mrf.mxu0  ;;  %6855 = vmatmul.mubr.bf16.gmra.mxu0 %v19706_v12  ;;  %v16147_v12 = vld [vmem:[%s18889_s3 + $0x20] ss:$8 sps:$4 sm:$0xff]  }
 0x596   : > { %v16135_v10 = vpop.f32.mrf.mxu1  ;;  %6864 = vmatprep.mubr.bf16.mxu0 %v19708_v47  ;;  %v5943_v30 = vadd.f32 %v5942_v52, %v19710_v38  ;;  %19713 = vst [vmem:[#allocation62_spill] sm:$0xff] %v16147_v12  ;;  %v16153_v47 = vld [vmem:[%s18889_s3 + $0x34] ss:$8 sps:$4 sm:$0xff]   ;;  %v19715_v52 = vld [vmem:[#allocation67_spill] sm:$0xff] }
 0x597   : > { %19707 = vst [vmem:[#allocation104_spill] sm:$0xff] %v16135_v10  ;;  %v5944_v11 = vpop.f32.mrf.mxu0  ;;  %19714 = vst [vmem:[#allocation96_spill] sm:$0xff] %v16153_v47 }
 0x598   : > { %v16138_v54 = vpop.f32.mrf.mxu1  ;;  %v5945_v38 = vadd.f32 %v5944_v11, %v19715_v52 }
 0x599   : > { %19709 = vst [vmem:[#allocation65_spill] sm:$0xff] %v16138_v54  ;;  %v5946_v46 = vpop.f32.mrf.mxu0 }
 0x59a   : > { %v16141_v56 = vpop.f32.mrf.mxu1  ;;  %v5947_v28 = vadd.f32 %v5946_v46, %v19712_v3  ;;  %6928 = vmatmul.mubr.bf16.gmra.mxu1 %v16147_v12  ;;  %v19717_v46 = vld [vmem:[#allocation89_spill] sm:$0xff] }
 0x59b   : > { %19711 = vst [vmem:[#allocation60_spill] sm:$0xff] %v16141_v56  ;;  %v5948_v26 = vpop.f32.mrf.mxu0  ;;  %6937 = vmatprep.mubr.bf16.mxu1 %v16153_v47 }
 0x59c   : > { %v6095_v56 = vpack.c.bf16 %v5947_v28, %v5943_v30  ;;  %v16157_v54 = vpop.f32.mrf.mxu1  ;;  %v5949_v3 = vadd.f32 %v5948_v26, %v19717_v46 }
 0x59d   : > { %19716 = vst [vmem:[#allocation97_spill] sm:$0xff] %v16157_v54  ;;  %v5952_v10 = vpop.f32.mrf.mxu0  ;;  %6865 = vmatmul.mubr.bf16.gmra.mxu0 %v15815_v27  ;;  %v16174_v27 = vld [vmem:[%s18889_s3 + $0x30] ss:$8 sps:$4 sm:$0xff]  }
 0x59e   : > { %v6096_v33 = vpack.c.bf16 %v5949_v3, %v5945_v38  ;;  %v16161_v12 = vpop.f32.mrf.mxu1  ;;  %7100 = vmatprep.mubr.bf16.mxu0 %v11812_v14  ;;  %19720 = vst [vmem:[#allocation92_spill] sm:$0xff] %v16174_v27  ;;  %v5953_v26 = vadd.f32 %v5952_v10, %v15833_v6  ;;  %v16181_v14 = vld [vmem:[%s18889_s3 + $0x44] ss:$8 sps:$4 sm:$0xff]  }
 0x59f   : > { %v5954_v57 = vpop.f32.mrf.mxu0  ;;  %19721 = vst [vmem:[#allocation70_spill] sm:$0xff] %v16181_v14 }
 0x5a0   : > { %v16166_v47 = vpop.f32.mrf.mxu1  ;;  %v5955_v38 = vadd.f32 %v5954_v57, %v15840_v19 }
 0x5a1   : > { %19718 = vst [vmem:[#allocation94_spill] sm:$0xff] %v16166_v47  ;;  %v5956_v11 = vpop.f32.mrf.mxu0 }
 0x5a2   : > { %v16168_v30 = vpop.f32.mrf.mxu1  ;;  %v5957_v28 = vadd.f32 %v5956_v11, %v15843_v48  ;;  %6938 = vmatmul.mubr.bf16.gmra.mxu1 %v16174_v27 }
 0x5a3   : > { %19719 = vst [vmem:[#allocation93_spill] sm:$0xff] %v16168_v30  ;;  %v5958_v52 = vpop.f32.mrf.mxu0  ;;  %6947 = vmatprep.mubr.bf16.mxu1 %v16181_v14 }
 0x5a4   : > { %v16185_v48 = vpop.f32.mrf.mxu1  ;;  %v5959_v46 = vadd.f32 %v5958_v52, %v15855_v40  ;;  %v6103_v3 = vpack.c.bf16 %v5957_v28, %v5953_v26 }
 0x5a5   : > { %v5962_v11 = vpop.f32.mrf.mxu0 }
 0x5a6   : > { %v6104_v30 = vpack.c.bf16 %v5959_v46, %v5955_v38  ;;  %v16188_v27 = vpop.f32.mrf.mxu1  ;;  %v16191_v6 = vadd.f32 %v5962_v11, %v15868_v4  ;;  %v6231_v57 = vmax.bf16 %v19330_v23, %v6103_v3  ;;  %v16208_v4 = vld [vmem:[%s18889_s3 + $0x40] ss:$8 sps:$4 sm:$0xff]   ;;  %v16449_v46 = vld [vmem:[%s18889_s3 + $0x90] ss:$8 sps:$4 sm:$0xff]  }
 0x5a7   : > { %v5964_v10 = vpop.f32.mrf.mxu0  ;;  %19726 = vst [vmem:[#allocation84_spill] sm:$0xff] %v16208_v4 }
 0x5a8   : > { %19722 = vst [vmem:[#allocation86_spill] sm:$0xff] %v16191_v6  ;;  %v16193_v47 = vpop.f32.mrf.mxu1  ;;  %v16196_v54 = vadd.f32 %v5964_v10, %v15876_v43  ;;  %v6232_v19 = vmax.bf16 %v19330_v23, %v6104_v30  ;;  %v6224_v43 = vmax.bf16 %v19330_v23, %v6096_v33  ;;  %v16215_v30 = vld [vmem:[%s18889_s3 + $0x54] ss:$8 sps:$4 sm:$0xff]   ;;  %v6223_v33 = vmax.bf16 %v19330_v23, %v6095_v56 }
 0x5a9   : > { %v5966_v14 = vpop.f32.mrf.mxu0  ;;  %19727 = vst [vmem:[#allocation73_spill] sm:$0xff] %v16215_v30  ;;  %v19732_v10 = vpack.c.bf16 %v16130_v1, %v16123_v2  ;;  %v7429_v6 = vlaneseq }
 0x5aa   : > { %19723 = vst [vmem:[#allocation91_spill] sm:$0xff] %v16196_v54  ;;  %v16201_v40 = vadd.f32 %v5966_v14, %v15891_v49  ;;  %v16203_v28 = vpop.f32.mrf.mxu1  ;;  %6948 = vmatmul.mubr.bf16.gmra.mxu1 %v16208_v4  ;;  %7068 = vmatprep.subr.bf16.mxu0 %v6232_v19 }
 0x5ab   : > { %19725 = vst [vmem:[#allocation88_spill] sm:$0xff] %v16203_v28  ;;  %v5968_v26 = vpop.f32.mrf.mxu0  ;;  %7069 = vmatpush1.bf16.msra.mxu0 %v6231_v57  ;;  %6957 = vmatprep.mubr.bf16.mxu1 %v16215_v30  ;;  %v11928_v30 = vmov 839922192  }
 0x5ac   : > { %19724 = vst [vmem:[#allocation72_spill] sm:$0xff] %v16201_v40  ;;  %v16221_v52 = vadd.f32 %v5968_v26, %v15901_v18  ;;  %v16223_v14 = vpop.f32.mrf.mxu1  ;;  %7070 = vmatprep.subr.bf16.mxu0 %v6224_v43  ;;  %v6216_v18 = vmax.bf16 %v19330_v23, %v19732_v10  ;;  %v7427_v4 = vunpack.c.l.s4 %v11928_v30  ;;  %v16487_v40 = vld [vmem:[%s18889_s3 + $0xa0] ss:$8 sps:$4 sm:$0xff]  }
 0x5ad   : > { %19729 = vst [vmem:[#allocation74_spill] sm:$0xff] %v16223_v14  ;;  %v5972_v38 = vpop.f32.mrf.mxu0 }
 0x5ae   : > { %19728 = vst [vmem:[#allocation82_spill] sm:$0xff] %v16221_v52  ;;  %v16229_v3 = vadd.f32 %v5972_v38, %v15916_v41  ;;  %v16231_v11 = vpop.f32.mrf.mxu1  ;;  %v19735_v41 = vpack.c.bf16 %v16108_v29, %v16103_v20  ;;  %v19739_v20 = vpack.c.bf16 %v16092_v34, %v16085_v17  ;;  %v19743_v17 = vpack.c.bf16 %v16070_v63, %v16065_v51 }
 0x5af   : > { %19731 = vst [vmem:[#allocation68_spill] sm:$0xff] %v16231_v11  ;;  %v5974_v57 = vpop.f32.mrf.mxu0  ;;  %7071 = vmatpush1.bf16.msra.mxu0 %v6223_v33  ;;  %v7428_v54 = vunpack.c.0.s8 %v7427_v4  ;;  %v19778_v4 = vld [vmem:[#allocation97_spill] sm:$0xff] }
 0x5b0   : > { %19730 = vst [vmem:[#allocation69_spill] sm:$0xff] %v16229_v3  ;;  %v16240_v56 = vadd.f32 %v5974_v57, %v15927_v39  ;;  %v16242_v43 = vpop.f32.mrf.mxu1  ;;  %7072 = vmatprep.subr.bf16.mxu0 %v6216_v18  ;;  %v6215_v26 = vmax.bf16 %v19330_v23, %v19735_v41  ;;  %v16258_v39 = vld [vmem:[%s18889_s3 + $0x50] ss:$8 sps:$4 sm:$0xff]   ;;  %v6208_v29 = vmax.bf16 %v19330_v23, %v19739_v20 }
 0x5b1   : > { %19734 = vst [vmem:[#allocation100_spill] sm:$0xff] %v16242_v43  ;;  %v5976_v2 = vpop.f32.mrf.mxu0  ;;  %19738 = vst [vmem:[#allocation106_spill] sm:$0xff] %v16258_v39  ;;  %v6207_v34 = vmax.bf16 %v19330_v23, %v19743_v17  ;;  %v19748_v17 = vpack.c.bf16 %v16024_v32, %v16019_v61  ;;  %v19751_v61 = vpack.c.bf16 %v15984_v9, %v15977_v5 }
 0x5b2   : > { %19733 = vst [vmem:[#allocation99_spill] sm:$0xff] %v16240_v56  ;;  %v16251_v38 = vadd.f32 %v5976_v2, %v15945_v16  ;;  %v16253_v10 = vpop.f32.mrf.mxu1  ;;  %6958 = vmatmul.mubr.bf16.gmra.mxu1 %v16258_v39  ;;  %v16268_v16 = vld [vmem:[%s18889_s3 + $0x64] ss:$8 sps:$4 sm:$0xff]   ;;  %v19755_v9 = vpack.c.bf16 %v15970_v24, %v15948_v44  ;;  %v19758_v44 = vpack.c.bf16 %v15919_v25, %v15894_v37 }
 0x5b3   : > { %19737 = vst [vmem:[#allocation105_spill] sm:$0xff] %v16253_v10  ;;  %v5978_v33 = vpop.f32.mrf.mxu0  ;;  %7073 = vmatpush1.bf16.msra.mxu0 %v6215_v26  ;;  %19740 = vst [vmem:[#allocation98_spill] sm:$0xff] %v16268_v16  ;;  %6967 = vmatprep.mubr.bf16.mxu1 %v16268_v16  ;;  %v6192_v32 = vmax.bf16 %v19330_v23, %v19751_v61  ;;  %v19762_v37 = vpack.c.bf16 %v15879_v55, %v15858_v60 }
 0x5b4   : > { %19736 = vst [vmem:[#allocation71_spill] sm:$0xff] %v16251_v38  ;;  %v16274_v57 = vadd.f32 %v5978_v33, %v15955_v58  ;;  %v16276_v41 = vpop.f32.mrf.mxu1  ;;  %7074 = vmatprep.subr.bf16.mxu0 %v6208_v29  ;;  %v19746_v58 = vpack.c.bf16 %v16038_v53, %v16031_v36  ;;  %v6183_v24 = vmax.bf16 %v19330_v23, %v19758_v44 }
 0x5b5   : > { %19742 = vst [vmem:[#allocation78_spill] sm:$0xff] %v16276_v41  ;;  %v5982_v26 = vpop.f32.mrf.mxu0  ;;  %v6176_v25 = vmax.bf16 %v19330_v23, %v19762_v37  ;;  %v19764_v55 = vpack.c.bf16 %v15871_v22, %v15846_v21  ;;  %v16407_v22 = vld [vmem:[%s18889_s3 + $0x80] ss:$8 sps:$4 sm:$0xff]  }
 0x5b6   : > { %19741 = vst [vmem:[#allocation66_spill] sm:$0xff] %v16274_v57  ;;  %v16285_v20 = vadd.f32 %v5982_v26, %v15967_v35  ;;  %v16287_v49 = vpop.f32.mrf.mxu1  ;;  %v6200_v33 = vmax.bf16 %v19330_v23, %v19746_v58  ;;  %v6199_v35 = vmax.bf16 %v19330_v23, %v19748_v17  ;;  %19765 = vst [vmem:[#allocation107_spill] sm:$0xff] %v16407_v22  ;;  %v16428_v26 = vpop.permute.xlu1 %7567 }
 0x5b7   : > { %19745 = vst [vmem:[#allocation63_spill] sm:$0xff] %v16287_v49  ;;  %v5984_v51 = vpop.f32.mrf.mxu0  ;;  %7075 = vmatpush1.bf16.msra.mxu0 %v6207_v34  ;;  %v16311_v34 = vld [vmem:[%s18889_s3 + $0x60] ss:$8 sps:$4 sm:$0xff]  }
 0x5b8   : > { %19744 = vst [vmem:[#allocation64_spill] sm:$0xff] %v16285_v20  ;;  %v16295_v63 = vpop.f32.mrf.mxu1  ;;  %7076 = vmatprep.subr.bf16.mxu0 %v6200_v33  ;;  %19750 = vst [vmem:[#allocation102_spill] sm:$0xff] %v16311_v34 }
 0x5b9   : > { %19747 = vst [vmem:[#allocation95_spill] sm:$0xff] %v16295_v63  ;;  %v5986_v19 = vpop.f32.mrf.mxu0 }
 0x5ba   : > { %v16304_v36 = vadd.f32 %v5986_v19, %v15999_v15  ;;  %v16306_v53 = vpop.f32.mrf.mxu1  ;;  %6968 = vmatmul.mubr.bf16.gmra.mxu1 %v16311_v34  ;;  %v16321_v15 = vld [vmem:[%s18889_s3 + $0x74] ss:$8 sps:$4 sm:$0xff]   ;;  %v16325_v19 = vadd.f32 %v5984_v51, %v15981_v8  ;;  %v19757_v51 = vpack.c.bf16 %v15930_v62, %v15904_v45  ;;  %v16363_v62 = vld [vmem:[%s18889_s3 + $0x70] ss:$8 sps:$4 sm:$0xff]  }
 0x5bb   : > { %v5988_v58 = vpop.f32.mrf.mxu0  ;;  %7077 = vmatpush1.bf16.msra.mxu0 %v6199_v35  ;;  %19752 = vst [vmem:[#allocation77_spill] sm:$0xff] %v16321_v15  ;;  %6977 = vmatprep.mubr.bf16.mxu1 %v16321_v15  ;;  %v6191_v35 = vmax.bf16 %v19330_v23, %v19755_v9  ;;  %19761 = vst [vmem:[#allocation67_spill] sm:$0xff] %v16363_v62  ;;  %v19774_v34 = vld [vmem:[#allocation65_spill] sm:$0xff] }
 0x5bc   : > { %19749 = vst [vmem:[#allocation101_spill] sm:$0xff] %v16304_v36  ;;  %19753 = vst [vmem:[#allocation61_spill] sm:$0xff] %v16325_v19  ;;  %v16330_v17 = vadd.f32 %v5988_v58, %v16006_v13  ;;  %v16332_v5 = vpop.f32.mrf.mxu1  ;;  %7078 = vmatprep.subr.bf16.mxu0 %v6192_v32  ;;  %v6184_v13 = vmax.bf16 %v19330_v23, %v19757_v51 }
 0x5bd   : > { %v5992_v61 = vpop.f32.mrf.mxu0 }
 0x5be   : > { %19754 = vst [vmem:[#allocation90_spill] sm:$0xff] %v16330_v17  ;;  %v16340_v8 = vpop.f32.mrf.mxu1  ;;  %v16353_v9 = vadd.f32 %v5992_v61, %v16021_v50  ;;  %v16373_v50 = vld [vmem:[%s18889_s3 + $0x84] ss:$8 sps:$4 sm:$0xff]  }
 0x5bf   : > { %19756 = vst [vmem:[#allocation79_spill] sm:$0xff] %v16340_v8  ;;  %v5994_v58 = vpop.f32.mrf.mxu0  ;;  %7079 = vmatpush1.bf16.msra.mxu0 %v6191_v35  ;;  %19763 = vst [vmem:[#allocation89_spill] sm:$0xff] %v16373_v50 }
 0x5c0   : > { %v16346_v1 = vpop.f32.mrf.mxu1  ;;  %7080 = vmatprep.subr.bf16.mxu0 %v6184_v13  ;;  %19759 = vst [vmem:[#allocation103_spill] sm:$0xff] %v16353_v9  ;;  %v6175_v13 = vmax.bf16 %v19330_v23, %v19764_v55  ;;  %v16413_v55 = vld [vmem:[%s18889_s3 + $0x94] ss:$8 sps:$4 sm:$0xff]  }
 0x5c1   : > { %v5996_v32 = vpop.f32.mrf.mxu0  ;;  %19766 = vst [vmem:[#allocation108_spill] sm:$0xff] %v16413_v55 }
 0x5c2   : > { %v16356_v18 = vadd.f32 %v5996_v32, %v16053_v59  ;;  %v16358_v45 = vpop.f32.mrf.mxu1  ;;  %6978 = vmatmul.mubr.bf16.gmra.mxu1 %v16363_v62  ;;  %v16377_v59 = vadd.f32 %v5994_v58, %v16035_v31  ;;  %v16452_v62 = vpop.permute.xlu1 %7579 }
 0x5c3   : > { %v5998_v35 = vpop.f32.mrf.mxu0  ;;  %7081 = vmatpush1.bf16.msra.mxu0 %v6183_v24  ;;  %6987 = vmatprep.mubr.bf16.mxu1 %v16373_v50 }
 0x5c4   : > { %19760 = vst [vmem:[#allocation83_spill] sm:$0xff] %v16356_v18  ;;  %v16382_v51 = vadd.f32 %v5998_v35, %v16056_v0  ;;  %v16384_v60 = vpop.f32.mrf.mxu1  ;;  %7082 = vmatprep.subr.bf16.mxu0 %v6176_v25 }
 0x5c5   : > { %v6002_v44 = vpop.f32.mrf.mxu0 }
 0x5c6   : > { %v16392_v31 = vpop.f32.mrf.mxu1  ;;  %v16397_v37 = vadd.f32 %v6002_v44, %v16067_v7  ;;  %v16416_v7 = vpop.permute.xlu0 %7591  ;;  %v19769_v44 = vld [vmem:[#allocation59_spill] sm:$0xff] }
 0x5c7   : > { %v6004_v58 = vpop.f32.mrf.mxu0  ;;  %7083 = vmatpush1.bf16.msra.mxu0 %v6175_v13  ;;  %v7556_v11 = vpop.permute.xlu1 %7555  ;;  %19776 = vst [vmem:[#allocation59_spill] sm:$0xff] %v16487_v40 }
 0x5c8   : > { %v16394_v32 = vpop.f32.mrf.mxu1 }
 0x5c9   : > { %v6006_v0 = vpop.f32.mrf.mxu0 }
 0x5ca   : > { %v16400_v25 = vadd.f32 %v6006_v0, %v16097_v42  ;;  %v16402_v21 = vpop.f32.mrf.mxu1  ;;  %6988 = vmatmul.mubr.bf16.gmra.mxu1 %v16407_v22  ;;  %v19767_v42 = vld [vmem:[#allocation76_spill] sm:$0xff] }
 0x5cb   : > { %v6008_v35 = vpop.f32.mrf.mxu0  ;;  %6997 = vmatprep.mubr.bf16.mxu1 %v16413_v55  ;;  %v16419_v13 = vadd.f32 %v6004_v58, %v19767_v42  ;;  %v19768_v0 = vld [vmem:[#allocation80_spill] sm:$0xff]  ;;  %v16436_v42 = vpop.permute.xlu0 %7603  ;;  %19771 = vst [vmem:[#allocation76_spill] sm:$0xff] %v16449_v46 }
 0x5cc   : > { %v16424_v29 = vadd.f32 %v6008_v35, %v19768_v0  ;;  %v16426_v2 = vpop.f32.mrf.mxu1  ;;  %v19770_v35 = vld [vmem:[#allocation104_spill] sm:$0xff]  ;;  %v7532_v57 = vpop.permute.xlu1 %7531 }
 0x5cd   : > { %v6012_v33 = vpop.f32.mrf.mxu0 }
 0x5ce   : > { %v16432_v61 = vpop.f32.mrf.mxu1  ;;  %v16439_v22 = vadd.f32 %v6012_v33, %v19769_v44  ;;  %v16457_v33 = vld [vmem:[%s18889_s3 + $0xa4] ss:$8 sps:$4 sm:$0xff]   ;;  %v19773_v44 = vld [vmem:[#allocation85_spill] sm:$0xff] }
 0x5cf   : > { %v6014_v24 = vpop.f32.mrf.mxu0  ;;  %19772 = vst [vmem:[#allocation80_spill] sm:$0xff] %v16457_v33 }
 0x5d0   : > { %v16434_v55 = vpop.f32.mrf.mxu1  ;;  %v7508_v36 = vpop.permute.xlu1 %7507 }
 0x5d1   : > { %v6016_v58 = vpop.f32.mrf.mxu0 }
 0x5d2   : > { %v16442_v0 = vadd.f32 %v6016_v58, %v19770_v35  ;;  %v16444_v50 = vpop.f32.mrf.mxu1  ;;  %6998 = vmatmul.mubr.bf16.gmra.mxu1 %v16449_v46  ;;  %v16461_v58 = vadd.f32 %v6014_v24, %v19773_v44 }
 0x5d3   : > { %v6018_v15 = vpop.f32.mrf.mxu0  ;;  %7007 = vmatprep.mubr.bf16.mxu1 %v16457_v33  ;;  %v7544_v33 = vpop.permute.xlu0 %7543 }
 0x5d4   : > { %v16466_v16 = vadd.f32 %v6018_v15, %v19774_v34  ;;  %v16468_v46 = vpop.f32.mrf.mxu1  ;;  %v7430_v34 = vshrl.u32 %v7429_v6, 7  ;;  %v19775_v15 = vld [vmem:[#allocation60_spill] sm:$0xff] }
 0x5d5   : > { %v6022_v39 = vpop.f32.mrf.mxu0  ;;  %v16493_v6 = vld [vmem:[%s18889_s3 + $0xb4] ss:$8 sps:$4 sm:$0xff]  }
 0x5d6   : > { %v16472_v28 = vpop.f32.mrf.mxu1  ;;  %v16477_v52 = vadd.f32 %v6022_v39, %v19775_v15  ;;  %19777 = vst [vmem:[#allocation104_spill] sm:$0xff] %v16493_v6 }
 0x5d7   : > { %v6024_v24 = vpop.f32.mrf.mxu0  ;;  %v16500_v38 = vpop.permute.xlu0 %7519 }
 0x5d8   : > { %v16474_v44 = vpop.f32.mrf.mxu1 }
 0x5d9   : > { %v6026_v35 = vpop.f32.mrf.mxu0 }
 0x5da   : > { %v16480_v14 = vadd.f32 %v6026_v35, %v16161_v12  ;;  %v16482_v30 = vpop.f32.mrf.mxu1  ;;  %7008 = vmatmul.mubr.bf16.gmra.mxu1 %v16487_v40  ;;  %v6025_v12 = vadd.f32 %v6024_v24, %v19778_v4  ;;  %v19779_v35 = vld [vmem:[#allocation94_spill] sm:$0xff]  ;;  %v16502_v40 = vsub.s32 %v7428_v54, %v7430_v34 }
 0x5db   : > { %v6028_v43 = vpop.f32.mrf.mxu0  ;;  %7017 = vmatprep.mubr.bf16.mxu1 %v16493_v6 }
 0x5dc   : > { %v6029_v15 = vadd.f32 %v6028_v43, %v19779_v35  ;;  %v6585_v3 = vpop.f32.mrf.mxu1  ;;  %19780 = vst [vmem:[#allocation85_spill] sm:$0xff] %v16502_v40  ;;  %v7600_v24 = vrot.slane %v16416_v7, %v16502_v40  ;;  %v7576_v4 = vrot.slane %v16428_v26, %v16502_v40  ;;  %v7612_v43 = vrot.slane %v16436_v42, %v16502_v40  ;;  %v16518_v35 = vld [vmem:[%s18889_s3 + $0xb0] ss:$8 sps:$4 sm:$0xff]   ;;  %v7496_v7 = vpop.permute.xlu0 %7495  ;;  %v16525_v42 = vld [vmem:[%s18889_s3 + $0xc4] ss:$8 sps:$4 sm:$0xff]  }
 0x5dd   : > { %v6032_v10 = vpop.f32.mrf.mxu0  ;;  %v7588_v54 = vrot.slane %v16452_v62, %v16502_v40  ;;  %19781 = vst [vmem:[#allocation65_spill] sm:$0xff] %v16518_v35  ;;  %19783 = vst [vmem:[#allocation60_spill] sm:$0xff] %v16525_v42  ;;  %v7564_v62 = vrot.slane %v7556_v11, %v16502_v40 }
 0x5de   : > { %v6160_v49 = vpack.c.bf16 %v6029_v15, %v6025_v12  ;;  %v16504_v56 = vpop.f32.mrf.mxu1  ;;  %v19782_v15 = vld [vmem:[#allocation93_spill] sm:$0xff]  ;;  %v16534_v17 = vcombine.low %v7600_v24, %v7612_v43 }
 0x5df   : > { %v6034_v41 = vpop.f32.mrf.mxu0  ;;  %v6033_v39 = vadd.f32 %v6032_v10, %v19782_v15  ;;  %v16536_v9 = vcombine.low %v7576_v4, %v7588_v54 }
 0x5e0   : > { %v6589_v63 = vpop.f32.mrf.mxu1  ;;  %19785 = vst [vmem:[#allocation94_spill] sm:$0xff] %v16534_v17  ;;  %v16551_v24 = vpop.permute.xlu0 %7471 }
 0x5e1   : > { %v6036_v6 = vpop.f32.mrf.mxu0  ;;  %v7310_v19 = vpack.c.bf16 %v6589_v63, %v6585_v3  ;;  %19786 = vst [vmem:[#allocation93_spill] sm:$0xff] %v16536_v9  ;;  %v7302_v3 = vpack.c.bf16 %v16474_v44, %v16468_v46  ;;  %v6288_v44 = vmax.bf16 %v19330_v23, %v6160_v49  ;;  %v7294_v49 = vpack.c.bf16 %v16434_v55, %v16426_v2 }
 0x5e2   : > { %v6037_v34 = vadd.f32 %v6036_v6, %v16188_v27  ;;  %v6593_v12 = vpop.f32.mrf.mxu1  ;;  %7018 = vmatmul.mubr.bf16.gmra.mxu1 %v16518_v35  ;;  %v7552_v27 = vrot.slane %v7544_v33, %v16502_v40  ;;  %v6035_v6 = vadd.f32 %v6034_v41, %v16185_v48  ;;  %v7540_v48 = vrot.slane %v7532_v57, %v16502_v40 }
 0x5e3   : > { %v6038_v26 = vpop.f32.mrf.mxu0  ;;  %7027 = vmatprep.mubr.bf16.mxu1 %v16525_v42  ;;  %v7309_v41 = vpack.c.bf16 %v16504_v56, %v16482_v30  ;;  %v7950_v57 = vadd.bf16 %v16536_v9, %v7310_v19  ;;  %v7516_v30 = vrot.slane %v7508_v36, %v16502_v40  ;;  %v16575_v19 = vld [vmem:[%s18889_s3 + $0xd4] ss:$8 sps:$4 sm:$0xff]   ;;  %v7301_v36 = vpack.c.bf16 %v16472_v28, %v16444_v50 }
 0x5e4   : > { %v6039_v20 = vadd.f32 %v6038_v26, %v16193_v47  ;;  %v6595_v35 = vpop.f32.mrf.mxu1  ;;  %v6167_v10 = vpack.c.bf16 %v6037_v34, %v6033_v39  ;;  %v16540_v11 = vcombine.low %v7552_v27, %v7564_v62  ;;  %v7528_v47 = vrot.slane %v16500_v38, %v16502_v40  ;;  %19793 = vst [vmem:[#allocation115_spill] sm:$0xff] %v16575_v19 }
 0x5e5   : > { %v16532_v15 = vpop.f32.mrf.mxu0  ;;  %v7504_v39 = vrot.slane %v7496_v7, %v16502_v40  ;;  %v19796_v27 = vpack.c.bf16 %v16480_v14, %v16477_v52  ;;  %v8078_v2 = vmax.bf16 %v19330_v23, %v7950_v57  ;;  %v19799_v55 = vpack.c.bf16 %v16466_v16, %v16461_v58  ;;  %v7448_v52 = vpop.permute.xlu0 %7447 }
 0x5e6   : > { %19784 = vst [vmem:[#allocation97_spill] sm:$0xff] %v16532_v15  ;;  %v6168_v18 = vpack.c.bf16 %v6039_v20, %v6035_v6  ;;  %v6597_v42 = vpop.f32.mrf.mxu1  ;;  %19788 = vst [vmem:[#allocation110_spill] sm:$0xff] %v16540_v11  ;;  %v6295_v4 = vmax.bf16 %v19330_v23, %v6167_v10  ;;  %v7942_v28 = vadd.bf16 %v16540_v11, %v7302_v3 }
 0x5e7   : > { %v7317_v8 = vpack.c.bf16 %v6597_v42, %v6593_v12  ;;  %v16538_v33 = vpop.f32.mrf.mxu0  ;;  %v7949_v42 = vadd.bf16 %v16536_v9, %v7309_v41  ;;  %v6287_v62 = vmax.bf16 %v19330_v23, %v19796_v27  ;;  %v7480_v3 = vrot.slane %v16551_v24, %v16502_v40 }
 0x5e8   : > { %19787 = vst [vmem:[#allocation109_spill] sm:$0xff] %v16538_v33  ;;  %v6599_v63 = vpop.f32.mrf.mxu1  ;;  %v6296_v20 = vmax.bf16 %v19330_v23, %v6168_v18  ;;  %v16565_v18 = vld [vmem:[%s18889_s3 + $0xc0] ss:$8 sps:$4 sm:$0xff]   ;;  %v7293_v16 = vpack.c.bf16 %v16432_v61, %v16402_v21  ;;  %v19803_v24 = vpack.c.bf16 %v16442_v0, %v16439_v22  ;;  %v8070_v61 = vmax.bf16 %v19330_v23, %v7942_v28 }
 0x5e9   : > { %v7318_v43 = vpack.c.bf16 %v6599_v63, %v6595_v35  ;;  %v16554_v54 = vpop.f32.mrf.mxu0  ;;  %v7957_v38 = vadd.bf16 %v16534_v17, %v7317_v8  ;;  %19791 = vst [vmem:[#allocation113_spill] sm:$0xff] %v16565_v18  ;;  %v7484_v8 = vpop.permute.xlu1 %7483  ;;  %v16579_v35 = vcombine.low %v7528_v47, %v7540_v48  ;;  %v6280_v47 = vmax.bf16 %v19330_v23, %v19799_v55 }
 0x5ea   : > { %19789 = vst [vmem:[#allocation111_spill] sm:$0xff] %v16554_v54  ;;  %v16558_v46 = vpop.f32.mrf.mxu1  ;;  %7028 = vmatmul.mubr.bf16.gmra.mxu1 %v16565_v18  ;;  %7084 = vmatprep.subr.bf16.mxu0 %v6296_v20  ;;  %v16604_v48 = vcombine.low %v7504_v39, %v7516_v30  ;;  %v7492_v63 = vrot.slane %v7484_v8, %v16502_v40  ;;  %v16648_v8 = vld [vmem:[%s18889_s3 + $0xe4] ss:$8 sps:$4 sm:$0xff]   ;;  %v7424_v27 = vpop.permute.xlu0 %7423 }
 0x5eb   : > { %19790 = vst [vmem:[#allocation112_spill] sm:$0xff] %v16558_v46  ;;  %v16570_v34 = vpop.f32.mrf.mxu0  ;;  %7085 = vmatpush2.bf16.msra.mxu0 %v6295_v4  ;;  %7037 = vmatprep.mubr.bf16.mxu1 %v16575_v19  ;;  %v7958_v12 = vadd.bf16 %v16534_v17, %v7318_v43  ;;  %19794 = vst [vmem:[#allocation116_spill] sm:$0xff] %v16579_v35  ;;  %v8085_v26 = vmax.bf16 %v19330_v23, %v7957_v38  ;;  %v19866_v19 = vld [vmem:[#allocation58_spill] sm:$0xff]  ;;  %v19867_v18 = vld [vmem:[#allocation75_spill] sm:$0xff] }
 0x5ec   : > { %19792 = vst [vmem:[#allocation114_spill] sm:$0xff] %v16570_v34  ;;  %v16585_v7 = vpop.f32.mrf.mxu1  ;;  %7086 = vmatprep.subr.bf16.mxu0 %v6288_v44  ;;  %19800 = vst [vmem:[#allocation120_spill] sm:$0xff] %v16604_v48  ;;  %v8077_v20 = vmax.bf16 %v19330_v23, %v7949_v42  ;;  %v7941_v39 = vadd.bf16 %v16540_v11, %v7301_v36  ;;  %v7286_v43 = vpack.c.bf16 %v16394_v32, %v16384_v60  ;;  %v16636_v60 = vld [vmem:[%s18889_s3 + $0xd0] ss:$8 sps:$4 sm:$0xff]  }
 0x5ed   : > { %19795 = vst [vmem:[#allocation117_spill] sm:$0xff] %v16585_v7  ;;  %v16593_v6 = vpop.f32.mrf.mxu0  ;;  %v8086_v10 = vmax.bf16 %v19330_v23, %v7958_v12  ;;  %v7460_v4 = vpop.permute.xlu1 %7459  ;;  %v6279_v38 = vmax.bf16 %v19330_v23, %v19803_v24  ;;  %v7934_v21 = vadd.bf16 %v16579_v35, %v7294_v49  ;;  %19806 = vst [vmem:[#allocation125_spill] sm:$0xff] %v16636_v60 }
 0x5ee   : > { %19797 = vst [vmem:[#allocation118_spill] sm:$0xff] %v16593_v6  ;;  %v16598_v50 = vpop.f32.mrf.mxu1  ;;  %v19807_v32 = vpack.c.bf16 %v16424_v29, %v16419_v13  ;;  %19809 = vst [vmem:[#allocation127_spill] sm:$0xff] %v16648_v8  ;;  %v16651_v12 = vcombine.low %v7480_v3, %v7492_v63  ;;  %v7456_v49 = vrot.slane %v7448_v52, %v16502_v40  ;;  %v19817_v63 = vld [vmem:[#allocation79_spill] sm:$0xff]  ;;  %v19869_v6 = vld [vmem:[#allocation96_spill] sm:$0xff] }
 0x5ef   : > { %19798 = vst [vmem:[#allocation119_spill] sm:$0xff] %v16598_v50  ;;  %v16608_v41 = vpop.f32.mrf.mxu0  ;;  %7087 = vmatpush2.bf16.msra.mxu0 %v6287_v62  ;;  %8349 = vmatprep.subr.bf16.mxu1 %v8086_v10  ;;  %v7468_v36 = vrot.slane %v7460_v4, %v16502_v40  ;;  %v7285_v29 = vpack.c.bf16 %v16392_v31, %v16358_v45  ;;  %v19820_v4 = vld [vmem:[#allocation103_spill] sm:$0xff] }
 0x5f0   : > { %19801 = vst [vmem:[#allocation121_spill] sm:$0xff] %v16608_v41  ;;  %v16615_v58 = vpop.f32.mrf.mxu1  ;;  %7088 = vmatprep.subr.bf16.mxu0 %v6280_v47  ;;  %8350 = vmatpush1.bf16.msra.mxu1 %v8085_v26  ;;  %v6272_v22 = vmax.bf16 %v19330_v23, %v19807_v32  ;;  %19810 = vst [vmem:[#allocation128_spill] sm:$0xff] %v16651_v12  ;;  %v8069_v26 = vmax.bf16 %v19330_v23, %v7941_v39  ;;  %v19819_v39 = vld [vmem:[#allocation83_spill] sm:$0xff] }
 0x5f1   : > { %19802 = vst [vmem:[#allocation122_spill] sm:$0xff] %v16615_v58  ;;  %v16625_v57 = vpop.f32.mrf.mxu0  ;;  %8351 = vmatprep.subr.bf16.mxu1 %v8078_v2  ;;  %v7933_v42 = vadd.bf16 %v16579_v35, %v7293_v16  ;;  %v7278_v62 = vpack.c.bf16 %v16346_v1, %v16332_v5  ;;  %v19812_v10 = vpack.c.bf16 %v16400_v25, %v16397_v37  ;;  %v7436_v1 = vpop.permute.xlu1 %7435 }
 0x5f2   : > { %19804 = vst [vmem:[#allocation123_spill] sm:$0xff] %v16625_v57  ;;  %v16629_v44 = vpop.f32.mrf.mxu1  ;;  %7038 = vmatmul.mubr.bf16.gmra.mxu1 %v16636_v60  ;;  %v8062_v45 = vmax.bf16 %v19330_v23, %v7934_v21  ;;  %v7926_v31 = vadd.bf16 %v16604_v48, %v7286_v43  ;;  %v19815_v47 = vpack.c.bf16 %v16382_v51, %v16377_v59 }
 0x5f3   : > { %19805 = vst [vmem:[#allocation124_spill] sm:$0xff] %v16629_v44  ;;  %v16643_v0 = vpop.f32.mrf.mxu0  ;;  %7089 = vmatpush2.bf16.msra.mxu0 %v6279_v38  ;;  %7047 = vmatprep.mubr.bf16.mxu1 %v16648_v8  ;;  %v6271_v2 = vmax.bf16 %v19330_v23, %v19812_v10  ;;  %v16681_v25 = vcombine.low %v7456_v49, %v7468_v36  ;;  %v19825_v49 = vld [vmem:[#allocation90_spill] sm:$0xff]  ;;  %v19826_v36 = vld [vmem:[#allocation61_spill] sm:$0xff] }
 0x5f4   : > { %19808 = vst [vmem:[#allocation126_spill] sm:$0xff] %v16643_v0  ;;  %v16657_v13 = vpop.f32.mrf.mxu1  ;;  %7090 = vmatprep.subr.bf16.mxu0 %v6272_v22  ;;  %8352 = vmatpush1.bf16.msra.mxu1 %v8077_v20  ;;  %v6264_v52 = vmax.bf16 %v19330_v23, %v19815_v47  ;;  %v7432_v3 = vrot.slane %v7424_v27, %v16502_v40  ;;  %v16704_v22 = vld [vmem:[%s18889_s3 + $0xe0] ss:$8 sps:$4 sm:$0xff]   ;;  %v16716_v27 = vld [vmem:[%s18889_s3 + $0xf4] ss:$8 sps:$4 sm:$0xff]  }
 0x5f5   : > { %19811 = vst [vmem:[#allocation129_spill] sm:$0xff] %v16657_v13  ;;  %v16667_v28 = vpop.f32.mrf.mxu0  ;;  %8353 = vmatprep.subr.bf16.mxu1 %v8070_v61  ;;  %19816 = vst [vmem:[#allocation132_spill] sm:$0xff] %v16681_v25  ;;  %v7277_v16 = vpack.c.bf16 %v19817_v63, %v16306_v53  ;;  %v8061_v59 = vmax.bf16 %v19330_v23, %v7933_v42  ;;  %v7925_v51 = vadd.bf16 %v16604_v48, %v7285_v29 }
 0x5f6   : > { %19813 = vst [vmem:[#allocation130_spill] sm:$0xff] %v16667_v28  ;;  %v16671_v55 = vpop.f32.mrf.mxu1  ;;  %v19821_v43 = vpack.c.bf16 %v19819_v39, %v19820_v4  ;;  %v8054_v61 = vmax.bf16 %v19330_v23, %v7926_v31  ;;  %v7444_v53 = vrot.slane %v7436_v1, %v16502_v40  ;;  %v7918_v21 = vadd.bf16 %v16651_v12, %v7278_v62  ;;  %v19831_v31 = vld [vmem:[#allocation64_spill] sm:$0xff]  ;;  %v19834_v4 = vld [vmem:[#allocation95_spill] sm:$0xff] }
 0x5f7   : > { %19814 = vst [vmem:[#allocation131_spill] sm:$0xff] %v16671_v55  ;;  %v16679_v37 = vpop.f32.mrf.mxu0  ;;  %7091 = vmatpush2.bf16.msra.mxu0 %v6271_v2  ;;  %19824 = vst [vmem:[#allocation133_spill] sm:$0xff] %v16704_v22  ;;  %v19827_v29 = vpack.c.bf16 %v19825_v49, %v19826_v36  ;;  %v8053_v10 = vmax.bf16 %v19330_v23, %v7925_v51  ;;  %v7917_v2 = vadd.bf16 %v16651_v12, %v7277_v16  ;;  %v19838_v16 = vld [vmem:[#allocation66_spill] sm:$0xff]  ;;  %v19839_v49 = vld [vmem:[#allocation99_spill] sm:$0xff] }
 0x5f8   : > { %v16686_v20 = vpop.f32.mrf.mxu1  ;;  %7092 = vmatprep.subr.bf16.mxu0 %v6264_v52  ;;  %8354 = vmatpush1.bf16.msra.mxu1 %v8069_v26  ;;  %v6263_v24 = vmax.bf16 %v19330_v23, %v19821_v43  ;;  %19828 = vst [vmem:[#allocation90_spill] sm:$0xff] %v16716_v27  ;;  %v16729_v63 = vcombine.low %v7432_v3, %v7444_v53  ;;  %v19835_v43 = vld [vmem:[#allocation78_spill] sm:$0xff] }
 0x5f9   : > { %19818 = vst [vmem:[#allocation79_spill] sm:$0xff] %v16686_v20  ;;  %v16694_v38 = vpop.f32.mrf.mxu0  ;;  %8355 = vmatprep.subr.bf16.mxu1 %v8062_v45  ;;  %v6256_v26 = vmax.bf16 %v19330_v23, %v19827_v29  ;;  %v19830_v45 = vld [vmem:[#allocation101_spill] sm:$0xff]  ;;  %v8046_v39 = vmax.bf16 %v19330_v23, %v7918_v21  ;;  %v19840_v36 = vpack.c.bf16 %v19838_v16, %v19839_v49  ;;  %v16747_v3 = vld [vmem:[%s18891_s5 + $0x4] ss:$8 sps:$4 sm:$0xff]  }
 0x5fa   : > { %19822 = vst [vmem:[#allocation83_spill] sm:$0xff] %v16694_v38  ;;  %v16699_v32 = vpop.f32.mrf.mxu1  ;;  %7048 = vmatmul.mubr.bf16.gmra.mxu1 %v16704_v22  ;;  %v19832_v47 = vpack.c.bf16 %v19830_v45, %v19831_v31  ;;  %19833 = vst [vmem:[#allocation101_spill] sm:$0xff] %v16729_v63  ;;  %v8045_v53 = vmax.bf16 %v19330_v23, %v7917_v2  ;;  %v19843_v21 = vld [vmem:[#allocation63_spill] sm:$0xff]  ;;  %v19844_v45 = vld [vmem:[#allocation105_spill] sm:$0xff] }
 0x5fb   : > { %19823 = vst [vmem:[#allocation103_spill] sm:$0xff] %v16699_v32  ;;  %v16711_v42 = vpop.f32.mrf.mxu0  ;;  %7093 = vmatpush2.bf16.msra.mxu0 %v6263_v24  ;;  %7057 = vmatprep.mubr.bf16.mxu1 %v16716_v27  ;;  %v19836_v24 = vpack.c.bf16 %v19834_v4, %v19835_v43  ;;  %v6248_v29 = vmax.bf16 %v19330_v23, %v19840_v36  ;;  %19841 = vst [vmem:[#allocation95_spill] sm:$0xff] %v16747_v3  ;;  %v19846_v4 = vld [vmem:[#allocation71_spill] sm:$0xff]  ;;  %v19847_v43 = vld [vmem:[#allocation69_spill] sm:$0xff] }
 0x5fc   : > { %v16719_v62 = vpop.f32.mrf.mxu1  ;;  %7094 = vmatprep.subr.bf16.mxu0 %v6256_v26  ;;  %8356 = vmatpush1.bf16.msra.mxu1 %v8061_v59  ;;  %v6255_v52 = vmax.bf16 %v19330_v23, %v19832_v47  ;;  %v19845_v31 = vpack.c.bf16 %v19843_v21, %v19844_v45  ;;  %v19849_v36 = vld [vmem:[#allocation100_spill] sm:$0xff]  ;;  %v19854_v45 = vld [vmem:[#allocation82_spill] sm:$0xff] }
 0x5fd   : > { %19829 = vst [vmem:[#allocation61_spill] sm:$0xff] %v16719_v62  ;;  %v16727_v1 = vpop.f32.mrf.mxu0  ;;  %8357 = vmatprep.subr.bf16.mxu1 %v8054_v61  ;;  %v7910_v59 = vadd.bf16 %v16681_v25, %v19836_v24  ;;  %v19848_v24 = vpack.c.bf16 %v19846_v4, %v19847_v43  ;;  %v16772_v21 = vld [vmem:[%s18889_s3 + $0xf0] ss:$8 sps:$4 sm:$0xff]  }
 0x5fe   : > { %v16736_v51 = vpop.f32.mrf.mxu1  ;;  %v7909_v47 = vadd.bf16 %v16681_v25, %v19845_v31  ;;  %19853 = vst [vmem:[#allocation99_spill] sm:$0xff] %v16772_v21  ;;  %v19855_v31 = vld [vmem:[#allocation91_spill] sm:$0xff] }
 0x5ff   : > { %19837 = vst [vmem:[#allocation64_spill] sm:$0xff] %v16736_v51  ;;  %v16742_v26 = vpop.f32.mrf.mxu0  ;;  %7095 = vmatpush2.bf16.msra.mxu0 %v6255_v52  ;;  %v6247_v52 = vmax.bf16 %v19330_v23, %v19848_v24  ;;  %v8038_v49 = vmax.bf16 %v19330_v23, %v7910_v59  ;;  %v19856_v4 = vpack.c.bf16 %v19854_v45, %v19855_v31  ;;  %v16784_v24 = vpop.permute.xlu0 %7783  ;;  %v19860_v31 = vld [vmem:[#allocation72_spill] sm:$0xff] }
 0x600   : > { %v16749_v61 = vpop.f32.mrf.mxu1  ;;  %7096 = vmatprep.subr.bf16.mxu0 %v6248_v29  ;;  %8358 = vmatpush1.bf16.msra.mxu1 %v8053_v10  ;;  %v19850_v29 = vld [vmem:[#allocation74_spill] sm:$0xff]  ;;  %v7792_v51 = vrot.slane %v16784_v24, %v16502_v40 }
 0x601   : > { %19842 = vst [vmem:[#allocation78_spill] sm:$0xff] %v16749_v61  ;;  %v16760_v16 = vpop.f32.mrf.mxu0  ;;  %8359 = vmatprep.subr.bf16.mxu1 %v8046_v39  ;;  %v19851_v10 = vpack.c.bf16 %v19849_v36, %v19850_v29  ;;  %v6240_v39 = vmax.bf16 %v19330_v23, %v19856_v4  ;;  %v8037_v36 = vmax.bf16 %v19330_v23, %v7909_v47  ;;  %v19857_v29 = vld [vmem:[#allocation68_spill] sm:$0xff]  ;;  %v19861_v4 = vld [vmem:[#allocation86_spill] sm:$0xff] }
 0x602   : > { %v16767_v14 = vpop.f32.mrf.mxu1  ;;  %7058 = vmatmul.mubr.bf16.gmra.mxu1 %v16772_v21  ;;  %v19862_v56 = vpack.c.bf16 %v19860_v31, %v19861_v4  ;;  %v19864_v31 = vld [vmem:[#allocation87_spill] sm:$0xff] }
 0x603   : > { %v7902_v2 = vadd.bf16 %v16729_v63, %v19851_v10  ;;  %19852 = vst [vmem:[#allocation66_spill] sm:$0xff] %v16767_v14  ;;  %v16779_v59 = vpop.f32.mrf.mxu0  ;;  %7097 = vmatpush2.bf16.msra.mxu0 %v6247_v52  ;;  %8381 = vmatprep.mubr.bf16.mxu1 %v16747_v3  ;;  %v19858_v10 = vld [vmem:[#allocation88_spill] sm:$0xff]  ;;  %v16797_v3 = vpop.permute.xlu1 %7795 }
 0x604   : > { %v16782_v43 = vpop.f32.mrf.mxu1  ;;  %7098 = vmatprep.subr.bf16.mxu0 %v6240_v39  ;;  %8360 = vmatpush1.bf16.msra.mxu1 %v8045_v53  ;;  %v19859_v5 = vpack.c.bf16 %v19857_v29, %v19858_v10  ;;  %v6239_v52 = vmax.bf16 %v19330_v23, %v19862_v56  ;;  %v7804_v32 = vrot.slane %v16797_v3, %v16502_v40 }
 0x605   : > { %v16795_v30 = vpop.f32.mrf.mxu0  ;;  %8361 = vmatprep.subr.bf16.mxu1 %v8038_v49  ;;  %v8030_v39 = vmax.bf16 %v19330_v23, %v7902_v2  ;;  %v7760_v49 = vpop.permute.xlu0 %7759  ;;  %v19865_v2 = vld [vmem:[#allocation81_spill] sm:$0xff] }
 0x606   : > { %v7901_v45 = vadd.bf16 %v16729_v63, %v19859_v5  ;;  %v16800_v53 = vpop.f32.mrf.mxu1  ;;  %v19868_v63 = vld [vmem:[#allocation62_spill] sm:$0xff]  ;;  %v7768_v33 = vrot.slane %v7760_v49, %v16502_v40  ;;  %v19870_v49 = vld [vmem:[#allocation92_spill] sm:$0xff] }
 0x607   : > { %19863 = vst [vmem:[#allocation63_spill] sm:$0xff] %v16800_v53  ;;  %v16802_v47 = vpop.f32.mrf.mxu0  ;;  %7099 = vmatpush2.bf16.msra.mxu0 %v6239_v52  ;;  %v7772_v21 = vpop.permute.xlu1 %7771 }
 0x608   : > { %v16804_v29 = vpop.f32.mrf.mxu1  ;;  %8362 = vmatpush1.bf16.msra.mxu1 %v8037_v36  ;;  %v8029_v5 = vmax.bf16 %v19330_v23, %v7901_v45 }
 0x609   : > { %v16807_v10 = vpop.f32.mrf.mxu0  ;;  %8363 = vmatprep.subr.bf16.mxu1 %v8030_v39  ;;  %v7736_v22 = vpop.permute.xlu0 %7735 }
 0x60a   : > { %v16809_v56 = vpop.f32.mrf.mxu1  ;;  %7101 = vmatmul.mubr.bf16.vlgmr.msra.gmra.mxu0 %v19864_v31  ;;  %v7744_v61 = vrot.slane %v7736_v22, %v16502_v40 }
 0x60b   : > { %v16812_v4 = vpop.f32.mrf.mxu0  ;;  %7110 = vmatprep.mubr.bf16.mxu0 %v19865_v2  ;;  %v7748_v31 = vpop.permute.xlu1 %7747 }
 0x60c   : > { %v16815_v27 = vpop.f32.mrf.mxu1  ;;  %8364 = vmatpush1.bf16.msra.mxu1 %v8029_v5 }
 0x60d   : > { %v16817_v52 = vpop.f32.mrf.mxu0  ;;  %v7712_v44 = vpop.permute.xlu0 %7711 }
 0x60e   : > { %v16819_v36 = vpop.f32.mrf.mxu1  ;;  %v7720_v12 = vrot.slane %v7712_v44, %v16502_v40 }
 0x60f   : > { %v16821_v45 = vpop.f32.mrf.mxu0  ;;  %v7724_v15 = vpop.permute.xlu1 %7723 }
 0x610   : > { %v16823_v39 = vpop.f32.mrf.mxu1  ;;  %v7732_v38 = vrot.slane %v7724_v15, %v16502_v40 }
 0x611   : > { %v16825_v8 = vpop.f32.mrf.mxu0 }
 0x612   : > { %v16827_v60 = vpop.f32.mrf.mxu1  ;;  %7111 = vmatmul.mubr.bf16.gmra.mxu0 %v19866_v19 }
 0x613   : > { %v16830_v2 = vpop.f32.mrf.mxu0  ;;  %7120 = vmatprep.mubr.bf16.mxu0 %v19867_v18  ;;  %v7688_v18 = vpop.permute.xlu0 %7687 }
 0x614   : > { %v16833_v5 = vpop.f32.mrf.mxu1  ;;  %v7700_v13 = vpop.permute.xlu1 %7699  ;;  %v7696_v24 = vrot.slane %v7688_v18, %v16502_v40 }
 0x615   : > { %v6776_v46 = vpop.f32.mrf.mxu0  ;;  %v7708_v3 = vrot.slane %v7700_v13, %v16502_v40  ;;  %v7304_v13 = vpack.c.bf16 %v16830_v2, %v16821_v45 }
 0x616   : > { %v16835_v50 = vpop.f32.mrf.mxu1 }
 0x617   : > { %v6778_v55 = vpop.f32.mrf.mxu0 }
 0x618   : > { %v16837_v54 = vpop.f32.mrf.mxu1  ;;  %v16867_v15 = vpop.permute.xlu1 %7675 }
 0x619   : > { %v6780_v58 = vpop.f32.mrf.mxu0 }
 0x61a   : > { %v16839_v7 = vpop.f32.mrf.mxu1  ;;  %7121 = vmatmul.mubr.bf16.gmra.mxu0 %v19868_v63  ;;  %v7780_v63 = vrot.slane %v7772_v21, %v16502_v40  ;;  %v16858_v21 = vpop.permute.xlu0 %7663  ;;  %v7311_v22 = vpack.c.bf16 %v6780_v58, %v6776_v46 }
 0x61b   : > { %v6782_v19 = vpop.f32.mrf.mxu0  ;;  %7130 = vmatprep.mubr.bf16.mxu0 %v19869_v6  ;;  %v7756_v6 = vrot.slane %v7748_v31, %v16502_v40  ;;  %v16860_v31 = vcombine.low %v7792_v51, %v7804_v32  ;;  %v16877_v51 = vcombine.low %v7696_v24, %v7708_v3  ;;  %v7295_v3 = vpack.c.bf16 %v16807_v10, %v16795_v30 }
 0x61c   : > { %v6665_v57 = vpop.f32.mrf.mxu1  ;;  %v7312_v62 = vpack.c.bf16 %v6782_v19, %v6778_v55  ;;  %v16862_v55 = vcombine.low %v7768_v33, %v7780_v63  ;;  %v19871_v19 = vld [vmem:[#allocation70_spill] sm:$0xff]  ;;  %v16875_v33 = vcombine.low %v7720_v12, %v7732_v38  ;;  %v7288_v63 = vpack.c.bf16 %v16779_v59, %v16742_v26 }
 0x61d   : > { %v6786_v20 = vpop.f32.mrf.mxu0  ;;  %v16865_v44 = vcombine.low %v7744_v61, %v7756_v6  ;;  %v7672_v61 = vrot.slane %v16858_v21, %v16502_v40  ;;  %v7944_v26 = vadd.bf16 %v16540_v11, %v7304_v13  ;;  %v19873_v13 = vld [vmem:[#allocation73_spill] sm:$0xff]  ;;  %v7365_v10 = vpack.c.bf16 %v16835_v50, %v16827_v60 }
 0x61e   : > { %v16843_v25 = vpop.f32.mrf.mxu1  ;;  %v7640_v30 = vpop.permute.xlu0 %7639  ;;  %v7280_v50 = vpack.c.bf16 %v16711_v42, %v16679_v37  ;;  %v7287_v60 = vpack.c.bf16 %v16760_v16, %v16727_v1  ;;  %v7350_v16 = vpack.c.bf16 %v16804_v29, %v16782_v43  ;;  %v19879_v43 = vld [vmem:[#allocation128_spill] sm:$0xff] }
 0x61f   : > { %v6788_v34 = vpop.f32.mrf.mxu0  ;;  %v7373_v59 = vpack.c.bf16 %v16843_v25, %v16839_v7  ;;  %v19872_v25 = vld [vmem:[#allocation84_spill] sm:$0xff]  ;;  %v8005_v42 = vadd.bf16 %v16865_v44, %v7365_v10 }
 0x620   : > { %v6669_v53 = vpop.f32.mrf.mxu1  ;;  %v7920_v29 = vadd.bf16 %v19879_v43, %v7280_v50  ;;  %v7927_v10 = vadd.bf16 %v16604_v48, %v7287_v60  ;;  %v19929_v7 = vld [vmem:[#allocation104_spill] sm:$0xff] }
 0x621   : > { %v6790_v14 = vpop.f32.mrf.mxu0  ;;  %v7374_v58 = vpack.c.bf16 %v6669_v53, %v6665_v57  ;;  %v7951_v57 = vadd.bf16 %v16536_v9, %v7311_v22 }
 0x622   : > { %v6673_v28 = vpop.f32.mrf.mxu1  ;;  %v7319_v0 = vpack.c.bf16 %v6790_v14, %v6786_v20  ;;  %7131 = vmatmul.mubr.bf16.gmra.mxu0 %v19870_v49  ;;  %v7952_v14 = vadd.bf16 %v16536_v9, %v7312_v62  ;;  %v7296_v62 = vpack.c.bf16 %v16812_v4, %v16802_v47  ;;  %v8055_v21 = vmax.bf16 %v19330_v23, %v7927_v10 }
 0x623   : > { %v6792_v41 = vpop.f32.mrf.mxu0  ;;  %7140 = vmatprep.mubr.bf16.mxu0 %v19871_v19 }
 0x624   : > { %v7959_v20 = vadd.bf16 %v16534_v17, %v7319_v0  ;;  %v6675_v18 = vpop.f32.mrf.mxu1  ;;  %v7320_v46 = vpack.c.bf16 %v6792_v41, %v6788_v34  ;;  %v7684_v34 = vrot.slane %v16867_v15, %v16502_v40  ;;  %v7303_v41 = vpack.c.bf16 %v16825_v8, %v16817_v52 }
 0x625   : > { %v16873_v32 = vpop.f32.mrf.mxu0  ;;  %v8080_v2 = vmax.bf16 %v19330_v23, %v7952_v14  ;;  %v7366_v8 = vpack.c.bf16 %v16837_v54, %v16833_v5  ;;  %v7936_v49 = vadd.bf16 %v16579_v35, %v7296_v62  ;;  %v8079_v5 = vmax.bf16 %v19330_v23, %v7951_v57  ;;  %v7652_v57 = vpop.permute.xlu1 %7651 }
 0x626   : > { %v7960_v0 = vadd.bf16 %v16534_v17, %v7320_v46  ;;  %v6677_v45 = vpop.f32.mrf.mxu1  ;;  %v8087_v12 = vmax.bf16 %v19330_v23, %v7959_v20  ;;  %v7943_v54 = vadd.bf16 %v16540_v11, %v7303_v41  ;;  %v8013_v20 = vadd.bf16 %v16862_v55, %v7373_v59 }
 0x627   : > { %v7381_v38 = vpack.c.bf16 %v6677_v45, %v6673_v28  ;;  %v16892_v53 = vpop.f32.mrf.mxu0  ;;  %v8014_v28 = vadd.bf16 %v16862_v55, %v7374_v58  ;;  %v7358_v46 = vpack.c.bf16 %v16823_v39, %v16815_v27  ;;  %v8006_v45 = vadd.bf16 %v16865_v44, %v7366_v8  ;;  %v19876_v8 = vld [vmem:[#allocation130_spill] sm:$0xff] }
 0x628   : > { %v6679_v47 = vpop.f32.mrf.mxu1  ;;  %v8088_v4 = vmax.bf16 %v19330_v23, %v7960_v0  ;;  %v7648_v41 = vrot.slane %v7640_v30, %v16502_v40  ;;  %v7357_v27 = vpack.c.bf16 %v16819_v36, %v16809_v56  ;;  %v8071_v39 = vmax.bf16 %v19330_v23, %v7943_v54 }
 0x629   : > { %v8021_v52 = vadd.bf16 %v16860_v31, %v7381_v38  ;;  %v7382_v6 = vpack.c.bf16 %v6679_v47, %v6675_v18  ;;  %v16902_v24 = vpop.f32.mrf.mxu0  ;;  %v8072_v18 = vmax.bf16 %v19330_v23, %v7944_v26  ;;  %v8142_v0 = vmax.bf16 %v19330_v23, %v8014_v28  ;;  %v19874_v47 = vld [vmem:[#allocation121_spill] sm:$0xff] }
 0x62a   : > { %7141 = vmatmul.mubr.bf16.gmra.mxu0 %v19872_v25  ;;  %8542 = vmatprep.subr.bf16.mxu0 %v8088_v4  ;;  %v7935_v26 = vadd.bf16 %v16579_v35, %v7295_v3  ;;  %v8141_v37 = vmax.bf16 %v19330_v23, %v8013_v20  ;;  %v8064_v1 = vmax.bf16 %v19330_v23, %v7936_v49  ;;  %v19875_v4 = vld [vmem:[#allocation126_spill] sm:$0xff]  ;;  %v19881_v49 = vld [vmem:[#allocation63_spill] sm:$0xff]  ;;  %v17127_v28 = vld [vmem:[%s18891_s5 + $0x34] ss:$8 sps:$4 sm:$0xff]  }
 0x62b   : > { %v8022_v22 = vadd.bf16 %v16860_v31, %v7382_v6  ;;  %v16914_v19 = vpop.f32.mrf.mxu0  ;;  %7150 = vmatprep.mubr.bf16.mxu0 %v19873_v13  ;;  %8543 = vmatpush1.bf16.msra.mxu0 %v8087_v12  ;;  %v8149_v14 = vmax.bf16 %v19330_v23, %v8021_v52  ;;  %v7928_v12 = vadd.bf16 %v16604_v48, %v7288_v63  ;;  %v19877_v52 = vld [vmem:[#allocation83_spill] sm:$0xff]  ;;  %v19878_v3 = vld [vmem:[#allocation106_spill] sm:$0xff]  ;;  %v7616_v13 = vpop.permute.xlu0 %7615 }
 0x62c   : > { %8544 = vmatprep.subr.bf16.mxu0 %v8080_v2  ;;  %v8134_v36 = vmax.bf16 %v19330_v23, %v8006_v45  ;;  %v7998_v63 = vadd.bf16 %v16875_v33, %v7358_v46  ;;  %v7660_v59 = vrot.slane %v7652_v57, %v16502_v40  ;;  %v7272_v2 = vpack.c.bf16 %v19875_v4, %v19874_v47  ;;  %v19880_v25 = vld [vmem:[#allocation66_spill] sm:$0xff]  ;;  %v19883_v46 = vld [vmem:[#allocation61_spill] sm:$0xff] }
 0x62d   : > { %v16924_v58 = vpop.f32.mrf.mxu0  ;;  %v8150_v62 = vmax.bf16 %v19330_v23, %v8022_v22  ;;  %v7279_v6 = vpack.c.bf16 %v19877_v52, %v19876_v8  ;;  %v7349_v54 = vpack.c.bf16 %v19881_v49, %v19880_v25  ;;  %v19882_v22 = vld [vmem:[#allocation98_spill] sm:$0xff]  ;;  %v8063_v30 = vmax.bf16 %v19330_v23, %v7935_v26  ;;  %v19892_v4 = vld [vmem:[#allocation129_spill] sm:$0xff]  ;;  %v19893_v8 = vld [vmem:[#allocation79_spill] sm:$0xff]  ;;  %19930 = vst [vmem:[#allocation58_spill] sm:$0xff] %v17127_v28 }
 0x62e   : > { %v7997_v20 = vadd.bf16 %v16875_v33, %v7357_v27  ;;  %v16979_v50 = vcombine.low %v7672_v61, %v7684_v34  ;;  %v8126_v60 = vmax.bf16 %v19330_v23, %v7998_v63  ;;  %v7990_v57 = vadd.bf16 %v16877_v51, %v7350_v16  ;;  %v19886_v27 = vld [vmem:[#allocation109_spill] sm:$0xff]  ;;  %v19891_v34 = vld [vmem:[#allocation132_spill] sm:$0xff]  ;;  %v19894_v49 = vld [vmem:[#allocation102_spill] sm:$0xff] }
 0x62f   : > { %8365 = vmatprep.subr.bf16.mxu1 %v8150_v62  ;;  %v16938_v38 = vpop.f32.mrf.mxu0  ;;  %8545 = vmatpush1.bf16.msra.mxu0 %v8079_v5  ;;  %v19884_v62 = vld [vmem:[#allocation78_spill] sm:$0xff]  ;;  %v16985_v26 = vcombine.low %v7648_v41, %v7660_v59  ;;  %v7919_v61 = vadd.bf16 %v19879_v43, %v7279_v6  ;;  %v7912_v16 = vadd.bf16 %v19891_v34, %v7272_v2  ;;  %v17141_v43 = vld [vmem:[%s18891_s5 + $0x30] ss:$8 sps:$4 sm:$0xff]  }
 0x630   : > { %8366 = vmatpush2.bf16.msra.mxu1 %v8149_v14  ;;  %8546 = vmatprep.subr.bf16.mxu0 %v8072_v18  ;;  %v8133_v14 = vmax.bf16 %v19330_v23, %v8005_v42  ;;  %v8056_v18 = vmax.bf16 %v19330_v23, %v7928_v12  ;;  %19885 = vst [vmem:[#allocation105_spill] sm:$0xff] %v16979_v50  ;;  %v19887_v12 = vld [vmem:[#allocation114_spill] sm:$0xff]  ;;  %v7628_v42 = vpop.permute.xlu1 %7627  ;;  %19932 = vst [vmem:[#allocation75_spill] sm:$0xff] %v17141_v43 }
 0x631   : > { %v16946_v56 = vpop.f32.mrf.mxu0  ;;  %8367 = vmatprep.subr.bf16.mxu1 %v8142_v0  ;;  %v7342_v0 = vpack.c.bf16 %v19884_v62, %v19883_v46  ;;  %19888 = vst [vmem:[#allocation71_spill] sm:$0xff] %v16985_v26  ;;  %v8125_v63 = vmax.bf16 %v19330_v23, %v7997_v20  ;;  %v7989_v41 = vadd.bf16 %v16877_v51, %v7349_v54  ;;  %v19895_v54 = vld [vmem:[#allocation77_spill] sm:$0xff] }
 0x632   : > { %7151 = vmatmul.mubr.bf16.gmra.mxu0 %v19878_v3  ;;  %v8048_v59 = vmax.bf16 %v19330_v23, %v7920_v29  ;;  %v7334_v52 = vpack.c.bf16 %v19893_v8, %v19892_v4  ;;  %v8118_v25 = vmax.bf16 %v19330_v23, %v7990_v57  ;;  %v7636_v6 = vrot.slane %v7628_v42, %v16502_v40  ;;  %v19899_v20 = vld [vmem:[#allocation101_spill] sm:$0xff]  ;;  %v19901_v57 = vld [vmem:[#allocation122_spill] sm:$0xff] }
 0x633   : > { %v16961_v5 = vpop.f32.mrf.mxu0  ;;  %7160 = vmatprep.mubr.bf16.mxu0 %v19882_v22  ;;  %8547 = vmatpush1.bf16.msra.mxu0 %v8071_v39  ;;  %v7264_v39 = vpack.c.bf16 %v19887_v12, %v19886_v27  ;;  %v7982_v2 = vadd.bf16 %v16979_v50, %v7342_v0  ;;  %v8047_v29 = vmax.bf16 %v19330_v23, %v7919_v61  ;;  %v19904_v61 = vld [vmem:[#allocation97_spill] sm:$0xff] }
 0x634   : > { %8368 = vmatpush2.bf16.msra.mxu1 %v8141_v37  ;;  %8548 = vmatprep.subr.bf16.mxu0 %v8064_v1  ;;  %v7624_v37 = vrot.slane %v7616_v13, %v16502_v40  ;;  %v19889_v1 = vld [vmem:[#allocation103_spill] sm:$0xff]  ;;  %v8117_v46 = vmax.bf16 %v19330_v23, %v7989_v41  ;;  %v8040_v0 = vmax.bf16 %v19330_v23, %v7912_v16 }
 0x635   : > { %v16971_v45 = vpop.f32.mrf.mxu0  ;;  %8369 = vmatprep.subr.bf16.mxu1 %v8134_v36  ;;  %v19890_v36 = vld [vmem:[#allocation64_spill] sm:$0xff]  ;;  %v19896_v13 = vld [vmem:[#allocation123_spill] sm:$0xff] }
 0x636   : > { %v7341_v15 = vpack.c.bf16 %v19890_v36, %v19889_v1  ;;  %v17022_v42 = vcombine.low %v7624_v37, %v7636_v6  ;;  %v8110_v1 = vmax.bf16 %v19330_v23, %v7982_v2  ;;  %v19907_v37 = vld [vmem:[#allocation124_spill] sm:$0xff] }
 0x637   : > { %v16990_v47 = vpop.f32.mrf.mxu0  ;;  %8549 = vmatpush1.bf16.msra.mxu0 %v8063_v30  ;;  %v19897_v30 = vld [vmem:[#allocation118_spill] sm:$0xff] }
 0x638   : > { %8370 = vmatpush2.bf16.msra.mxu1 %v8133_v14  ;;  %8550 = vmatprep.subr.bf16.mxu0 %v8056_v18  ;;  %v19898_v10 = vpack.c.bf16 %v19896_v13, %v19897_v30  ;;  %v7904_v18 = vadd.bf16 %v19899_v20, %v7264_v39  ;;  %v7981_v62 = vadd.bf16 %v16979_v50, %v7341_v15 }
 0x639   : > { %v17000_v3 = vpop.f32.mrf.mxu0  ;;  %8371 = vmatprep.subr.bf16.mxu1 %v8126_v60  ;;  %v19900_v60 = vld [vmem:[#allocation117_spill] sm:$0xff]  ;;  %19902 = vst [vmem:[#allocation69_spill] sm:$0xff] %v17022_v42  ;;  %v7974_v39 = vadd.bf16 %v16985_v26, %v7334_v52 }
 0x63a   : > { %7161 = vmatmul.mubr.bf16.gmra.mxu0 %v19894_v49  ;;  %v7911_v14 = vadd.bf16 %v19891_v34, %v19898_v10  ;;  %v7326_v27 = vpack.c.bf16 %v19901_v57, %v19900_v60  ;;  %v8109_v41 = vmax.bf16 %v19330_v23, %v7981_v62  ;;  %v8032_v52 = vmax.bf16 %v19330_v23, %v7904_v18  ;;  %v19909_v49 = vld [vmem:[#allocation67_spill] sm:$0xff]  ;;  %v19931_v34 = vld [vmem:[#allocation65_spill] sm:$0xff] }
 0x63b   : > { %v17006_v22 = vpop.f32.mrf.mxu0  ;;  %7170 = vmatprep.mubr.bf16.mxu0 %v19895_v54  ;;  %8551 = vmatpush1.bf16.msra.mxu0 %v8055_v21  ;;  %v19903_v21 = vld [vmem:[#allocation111_spill] sm:$0xff]  ;;  %v8102_v6 = vmax.bf16 %v19330_v23, %v7974_v39 }
 0x63c   : > { %8372 = vmatpush2.bf16.msra.mxu1 %v8125_v63  ;;  %8552 = vmatprep.subr.bf16.mxu0 %v8048_v59  ;;  %v8039_v15 = vmax.bf16 %v19330_v23, %v7911_v14  ;;  %v19905_v16 = vpack.c.bf16 %v19903_v21, %v19904_v61  ;;  %v19906_v59 = vld [vmem:[#allocation131_spill] sm:$0xff]  ;;  %v7966_v2 = vadd.bf16 %v17022_v42, %v7326_v27  ;;  %v19912_v14 = vld [vmem:[#allocation112_spill] sm:$0xff] }
 0x63d   : > { %v17020_v12 = vpop.f32.mrf.mxu0  ;;  %8373 = vmatprep.subr.bf16.mxu1 %v8118_v25  ;;  %v19908_v4 = vpack.c.bf16 %v19906_v59, %v19907_v37  ;;  %v19911_v10 = vld [vmem:[#allocation119_spill] sm:$0xff]  ;;  %v19916_v61 = vld [vmem:[#allocation108_spill] sm:$0xff] }
 0x63e   : > { %v7903_v63 = vadd.bf16 %v19899_v20, %v19905_v16  ;;  %v19913_v18 = vpack.c.bf16 %v19911_v10, %v19912_v14  ;;  %v19915_v39 = vld [vmem:[#allocation107_spill] sm:$0xff] }
 0x63f   : > { %v17026_v36 = vpop.f32.mrf.mxu0  ;;  %8553 = vmatpush1.bf16.msra.mxu0 %v8047_v29  ;;  %v7973_v8 = vadd.bf16 %v16985_v26, %v19908_v4  ;;  %v19910_v29 = vld [vmem:[#allocation89_spill] sm:$0xff]  ;;  %v17069_v21 = vld [vmem:[%s18891_s5] ss:$8 sps:$4 sm:$0xff]   ;;  %v17103_v10 = vld [vmem:[%s18891_s5 + $0x24] ss:$8 sps:$4 sm:$0xff]  }
 0x640   : > { %8374 = vmatpush2.bf16.msra.mxu1 %v8117_v46  ;;  %8554 = vmatprep.subr.bf16.mxu0 %v8040_v0  ;;  %v8031_v13 = vmax.bf16 %v19330_v23, %v7903_v63  ;;  %v7965_v46 = vadd.bf16 %v17022_v42, %v19913_v18  ;;  %v8094_v0 = vmax.bf16 %v19330_v23, %v7966_v2  ;;  %v17077_v63 = vld [vmem:[%s18891_s5 + $0x14] ss:$8 sps:$4 sm:$0xff]   ;;  %v17119_v37 = vld [vmem:[%s18891_s5 + $0x20] ss:$8 sps:$4 sm:$0xff]  }
 0x641   : > { %v17039_v25 = vpop.f32.mrf.mxu0  ;;  %8375 = vmatprep.subr.bf16.mxu1 %v8110_v1  ;;  %v8101_v30 = vmax.bf16 %v19330_v23, %v7973_v8  ;;  %v19921_v2 = vld [vmem:[#allocation76_spill] sm:$0xff]  ;;  %19924 = vst [vmem:[#allocation72_spill] sm:$0xff] %v17103_v10  ;;  %19928 = vst [vmem:[#allocation81_spill] sm:$0xff] %v17119_v37 }
 0x642   : > { %7171 = vmatmul.mubr.bf16.gmra.mxu0 %v19909_v49  ;;  %v8093_v57 = vmax.bf16 %v19330_v23, %v7965_v46 }
 0x643   : > { %v17044_v54 = vpop.f32.mrf.mxu0  ;;  %7180 = vmatprep.mubr.bf16.mxu0 %v19910_v29  ;;  %8555 = vmatpush1.bf16.msra.mxu0 %v8039_v15  ;;  %v17095_v29 = vld [vmem:[%s18891_s5 + $0x10] ss:$8 sps:$4 sm:$0xff]  }
 0x644   : > { %8376 = vmatpush2.bf16.msra.mxu1 %v8109_v41  ;;  %8556 = vmatprep.subr.bf16.mxu0 %v8032_v52  ;;  %19922 = vst [vmem:[#allocation88_spill] sm:$0xff] %v17095_v29 }
 0x645   : > { %v17053_v62 = vpop.f32.mrf.mxu0  ;;  %8377 = vmatprep.subr.bf16.mxu1 %v8102_v6 }
 0x647   : > { %v17056_v60 = vpop.f32.mrf.mxu0  ;;  %8557 = vmatpush1.bf16.msra.mxu0 %v8031_v13  ;;  %v19923_v13 = vld [vmem:[#allocation80_spill] sm:$0xff] }
 0x648   : > { %8378 = vmatpush2.bf16.msra.mxu1 %v8101_v30 }
 0x649   : > { %v17059_v27 = vpop.f32.mrf.mxu0  ;;  %8379 = vmatprep.subr.bf16.mxu1 %v8094_v0 }
 0x64a   : > { %v17061_v1 = vpop.f32.mrf.mxu1  ;;  %7181 = vmatmul.mubr.bf16.gmra.mxu0 %v19915_v39 }
 0x64b   : > { %19914 = vst [vmem:[#allocation100_spill] sm:$0xff] %v17061_v1  ;;  %v17064_v15 = vpop.f32.mrf.mxu0  ;;  %7190 = vmatprep.mubr.bf16.mxu0 %v19916_v61 }
 0x64c   : > { %8380 = vmatpush2.bf16.msra.mxu1 %v8093_v57  ;;  %v17072_v16 = vpop.f32.mrf.mxu1 }
 0x64d   : > { %19917 = vst [vmem:[#allocation74_spill] sm:$0xff] %v17072_v16  ;;  %v17079_v41 = vpop.f32.mrf.mxu0 }
 0x64e   : > { %v17081_v59 = vpop.f32.mrf.mxu1 }
 0x64f   : > { %19918 = vst [vmem:[#allocation82_spill] sm:$0xff] %v17081_v59  ;;  %8382 = vmatmul.mubr.bf16.vlgmr.msra.gmra.mxu1 %v17069_v21  ;;  %v6848_v4 = vpop.f32.mrf.mxu0 }
 0x650   : > { %v17086_v8 = vpop.f32.mrf.mxu1  ;;  %8391 = vmatprep.mubr.bf16.mxu1 %v17077_v63 }
 0x651   : > { %19919 = vst [vmem:[#allocation91_spill] sm:$0xff] %v17086_v8  ;;  %v6850_v52 = vpop.f32.mrf.mxu0 }
 0x652   : > { %v17089_v6 = vpop.f32.mrf.mxu1  ;;  %7191 = vmatmul.mubr.bf16.gmra.mxu0 %v19921_v2  ;;  %v19927_v2 = vld [vmem:[#allocation59_spill] sm:$0xff] }
 0x653   : > { %19920 = vst [vmem:[#allocation68_spill] sm:$0xff] %v17089_v6  ;;  %v6852_v49 = vpop.f32.mrf.mxu0  ;;  %7200 = vmatprep.mubr.bf16.mxu0 %v19923_v13 }
 0x654   : > { %v17098_v30 = vpop.f32.mrf.mxu1 }
 0x655   : > { %v6856_v14 = vpop.f32.mrf.mxu0 }
 0x656   : > { %v17105_v18 = vpop.f32.mrf.mxu1 }
 0x657   : > { %19925 = vst [vmem:[#allocation86_spill] sm:$0xff] %v17105_v18  ;;  %8392 = vmatmul.mubr.bf16.gmra.mxu1 %v17095_v29  ;;  %v6858_v0 = vpop.f32.mrf.mxu0 }
 0x658   : > { %v17110_v57 = vpop.f32.mrf.mxu1  ;;  %8401 = vmatprep.mubr.bf16.mxu1 %v17103_v10 }
 0x659   : > { %19926 = vst [vmem:[#allocation87_spill] sm:$0xff] %v17110_v57  ;;  %v6860_v39 = vpop.f32.mrf.mxu0 }
 0x65a   : > { %v17113_v61 = vpop.f32.mrf.mxu1  ;;  %7201 = vmatmul.mubr.bf16.gmra.mxu0 %v19927_v2  ;;  %v7375_v8 = vpack.c.bf16 %v6860_v39, %v6856_v14  ;;  %v7367_v39 = vpack.c.bf16 %v6850_v52, %v17079_v41  ;;  %v17178_v52 = vld [vmem:[%s18891_s5 + $0x40] ss:$8 sps:$4 sm:$0xff]  }
 0x65b   : > { %v6862_v13 = vpop.f32.mrf.mxu0  ;;  %7210 = vmatprep.mubr.bf16.mxu0 %v19929_v7  ;;  %19936 = vst [vmem:[#allocation96_spill] sm:$0xff] %v17178_v52 }
 0x65c   : > { %v17122_v46 = vpop.f32.mrf.mxu1  ;;  %v7376_v59 = vpack.c.bf16 %v6862_v13, %v6858_v0  ;;  %v7368_v0 = vpack.c.bf16 %v6852_v49, %v6848_v4 }
 0x65d   : > { %v6866_v40 = vpop.f32.mrf.mxu0 }
 0x65e   : > { %v17129_v1 = vpop.f32.mrf.mxu1  ;;  %v8016_v13 = vadd.bf16 %v16862_v55, %v7376_v59  ;;  %v8008_v4 = vadd.bf16 %v16865_v44, %v7368_v0  ;;  %v7352_v0 = vpack.c.bf16 %v17044_v54, %v17026_v36  ;;  %v7344_v54 = vpack.c.bf16 %v17006_v22, %v16990_v47  ;;  %v17216_v22 = vld [vmem:[%s18891_s5 + $0x50] ss:$8 sps:$4 sm:$0xff]  }
 0x65f   : > { %8402 = vmatmul.mubr.bf16.gmra.mxu1 %v17119_v37  ;;  %v6868_v2 = vpop.f32.mrf.mxu0  ;;  %v19933_v37 = vld [vmem:[#allocation60_spill] sm:$0xff]  ;;  %19940 = vst [vmem:[#allocation70_spill] sm:$0xff] %v17216_v22 }
 0x660   : > { %v17132_v20 = vpop.f32.mrf.mxu1  ;;  %8411 = vmatprep.mubr.bf16.mxu1 %v17127_v28 }
 0x661   : > { %v6870_v6 = vpop.f32.mrf.mxu0 }
 0x662   : > { %v7383_v7 = vpack.c.bf16 %v6870_v6, %v6866_v40  ;;  %v17135_v18 = vpop.f32.mrf.mxu1  ;;  %7211 = vmatmul.mubr.bf16.gmra.mxu0 %v19931_v34  ;;  %v17151_v34 = vld [vmem:[%s18891_s5 + $0x44] ss:$8 sps:$4 sm:$0xff]  }
 0x663   : > { %v6872_v16 = vpop.f32.mrf.mxu0  ;;  %7220 = vmatprep.mubr.bf16.mxu0 %v19933_v37  ;;  %19934 = vst [vmem:[#allocation62_spill] sm:$0xff] %v17151_v34  ;;  %v8015_v37 = vadd.bf16 %v16862_v55, %v7375_v8  ;;  %v19935_v8 = vld [vmem:[#allocation113_spill] sm:$0xff] }
 0x664   : > { %v8023_v28 = vadd.bf16 %v16860_v31, %v7383_v7  ;;  %v7384_v57 = vpack.c.bf16 %v6872_v16, %v6868_v2  ;;  %v17146_v40 = vpop.f32.mrf.mxu1  ;;  %v7360_v16 = vpack.c.bf16 %v17064_v15, %v17056_v60  ;;  %v8007_v60 = vadd.bf16 %v16865_v44, %v7367_v39  ;;  %v19937_v7 = vld [vmem:[#allocation115_spill] sm:$0xff] }
 0x665   : > { %v8143_v15 = vmax.bf16 %v19330_v23, %v8015_v37  ;;  %v7351_v37 = vpack.c.bf16 %v17039_v25, %v17020_v12  ;;  %v19939_v25 = vld [vmem:[#allocation125_spill] sm:$0xff] }
 0x666   : > { %v8024_v6 = vadd.bf16 %v16860_v31, %v7384_v57  ;;  %v17154_v14 = vpop.f32.mrf.mxu1  ;;  %v8151_v59 = vmax.bf16 %v19330_v23, %v8023_v28  ;;  %v8144_v57 = vmax.bf16 %v19330_v23, %v8016_v13  ;;  %v7359_v28 = vpack.c.bf16 %v17059_v27, %v17053_v62  ;;  %v17190_v27 = vld [vmem:[%s18891_s5 + $0x54] ss:$8 sps:$4 sm:$0xff]  }
 0x667   : > { %8412 = vmatmul.mubr.bf16.gmra.mxu1 %v17141_v43  ;;  %v8000_v13 = vadd.bf16 %v16875_v33, %v7360_v16  ;;  %v8136_v62 = vmax.bf16 %v19330_v23, %v8008_v4  ;;  %19938 = vst [vmem:[#allocation92_spill] sm:$0xff] %v17190_v27  ;;  %v8135_v36 = vmax.bf16 %v19330_v23, %v8007_v60 }
 0x668   : > { %v17163_v49 = vpop.f32.mrf.mxu1  ;;  %v8152_v2 = vmax.bf16 %v19330_v23, %v8024_v6  ;;  %8421 = vmatprep.mubr.bf16.mxu1 %v17151_v34  ;;  %v7992_v16 = vadd.bf16 %v16877_v51, %v7352_v0  ;;  %v7336_v60 = vpack.c.bf16 %v16961_v5, %v16938_v38  ;;  %v7328_v38 = vpack.c.bf16 %v16914_v19, %v16892_v53  ;;  %v19945_v53 = vld [vmem:[#allocation90_spill] sm:$0xff] }
 0x669   : > { %v19946_v19 = vpack.c.bf16 %v16946_v56, %v16924_v58  ;;  %v19948_v58 = vpack.c.bf16 %v16902_v24, %v16873_v32  ;;  %v19951_v32 = vld [vmem:[#allocation95_spill] sm:$0xff] }
 0x66a   : > { %v17168_v41 = vpop.f32.mrf.mxu1  ;;  %7221 = vmatmul.mubr.bf16.gmra.mxu0 %v19935_v8  ;;  %8558 = vmatprep.subr.bf16.mxu0 %v8152_v2  ;;  %v8128_v2 = vmax.bf16 %v19330_v23, %v8000_v13  ;;  %v7991_v8 = vadd.bf16 %v16877_v51, %v7351_v37 }
 0x66b   : > { %8559 = vmatpush2.bf16.msra.mxu0 %v8151_v59  ;;  %7230 = vmatprep.mubr.bf16.mxu0 %v19937_v7  ;;  %v7999_v59 = vadd.bf16 %v16875_v33, %v7359_v28  ;;  %v19941_v28 = vld [vmem:[#allocation127_spill] sm:$0xff]  ;;  %v7967_v56 = vadd.bf16 %v17022_v42, %v19948_v58 }
 0x66c   : > { %v17184_v6 = vpop.f32.mrf.mxu1  ;;  %8560 = vmatprep.subr.bf16.mxu0 %v8144_v57  ;;  %v7343_v57 = vpack.c.bf16 %v17000_v3, %v16971_v45  ;;  %v8120_v45 = vmax.bf16 %v19330_v23, %v7992_v16  ;;  %v17228_v3 = vld [vmem:[%s18891_s5 + $0x64] ss:$8 sps:$4 sm:$0xff]  }
 0x66d   : > { %v8127_v47 = vmax.bf16 %v19330_v23, %v7999_v59  ;;  %19942 = vst [vmem:[#allocation84_spill] sm:$0xff] %v17228_v3  ;;  %v7976_v59 = vadd.bf16 %v16985_v26, %v7336_v60 }
 0x66e   : > { %v17192_v39 = vpop.f32.mrf.mxu1  ;;  %v7983_v13 = vadd.bf16 %v16979_v50, %v7343_v57 }
 0x66f   : > { %8422 = vmatmul.mubr.bf16.gmra.mxu1 %v17178_v52  ;;  %8561 = vmatpush2.bf16.msra.mxu0 %v8143_v15  ;;  %v7984_v15 = vadd.bf16 %v16979_v50, %v7344_v54  ;;  %v19943_v54 = vld [vmem:[#allocation133_spill] sm:$0xff] }
 0x670   : > { %v17202_v4 = vpop.f32.mrf.mxu1  ;;  %8562 = vmatprep.subr.bf16.mxu0 %v8136_v62  ;;  %8431 = vmatprep.mubr.bf16.mxu1 %v17190_v27  ;;  %v8119_v62 = vmax.bf16 %v19330_v23, %v7991_v8  ;;  %v8111_v16 = vmax.bf16 %v19330_v23, %v7983_v13  ;;  %v8104_v8 = vmax.bf16 %v19330_v23, %v7976_v59 }
 0x671   : > { %v8112_v37 = vmax.bf16 %v19330_v23, %v7984_v15  ;;  %v8095_v59 = vmax.bf16 %v19330_v23, %v7967_v56 }
 0x672   : > { %v17206_v12 = vpop.f32.mrf.mxu1  ;;  %7231 = vmatmul.mubr.bf16.gmra.mxu0 %v19939_v25  ;;  %v7975_v25 = vadd.bf16 %v16985_v26, %v19946_v19 }
 0x673   : > { %8563 = vmatpush2.bf16.msra.mxu0 %v8135_v36  ;;  %7240 = vmatprep.mubr.bf16.mxu0 %v19941_v28  ;;  %v7968_v28 = vadd.bf16 %v17022_v42, %v7328_v38  ;;  %v17271_v38 = vld [vmem:[%s18891_s5 + $0x70] ss:$8 sps:$4 sm:$0xff]  }
 0x674   : > { %v17222_v7 = vpop.f32.mrf.mxu1  ;;  %8564 = vmatprep.subr.bf16.mxu0 %v8128_v2  ;;  %v17245_v2 = vld [vmem:[%s18891_s5 + $0x60] ss:$8 sps:$4 sm:$0xff]   ;;  %v8103_v15 = vmax.bf16 %v19330_v23, %v7975_v25  ;;  %19950 = vst [vmem:[#allocation126_spill] sm:$0xff] %v17271_v38 }
 0x675   : > { %19944 = vst [vmem:[#allocation73_spill] sm:$0xff] %v17245_v2  ;;  %v8096_v13 = vmax.bf16 %v19330_v23, %v7968_v28 }
 0x676   : > { %v17230_v0 = vpop.f32.mrf.mxu1 }
 0x677   : > { %8432 = vmatmul.mubr.bf16.gmra.mxu1 %v17216_v22  ;;  %8565 = vmatpush2.bf16.msra.mxu0 %v8127_v47  ;;  %v17256_v47 = vld [vmem:[%s18891_s5 + $0x74] ss:$8 sps:$4 sm:$0xff]  }
 0x678   : > { %v6965_v5 = vpop.f32.mrf.mxu1  ;;  %8566 = vmatprep.subr.bf16.mxu0 %v8120_v45  ;;  %8441 = vmatprep.mubr.bf16.mxu1 %v17228_v3  ;;  %19947 = vst [vmem:[#allocation121_spill] sm:$0xff] %v17256_v47 }
 0x679   : > { %v7306_v28 = vpack.c.bf16 %v6965_v5, %v17222_v7  ;;  %v7305_v7 = vpack.c.bf16 %v17230_v0, %v17206_v12 }
 0x67a   : > { %v6969_v36 = vpop.f32.mrf.mxu1  ;;  %7241 = vmatmul.mubr.bf16.gmra.mxu0 %v19943_v54  ;;  %v17278_v54 = vld [vmem:[%s18891_s5 + $0x84] ss:$8 sps:$4 sm:$0xff]  }
 0x67b   : > { %8567 = vmatpush2.bf16.msra.mxu0 %v8119_v62  ;;  %7250 = vmatprep.mubr.bf16.mxu0 %v19945_v53  ;;  %19952 = vst [vmem:[#allocation130_spill] sm:$0xff] %v17278_v54 }
 0x67c   : > { %v6971_v57 = vpop.f32.mrf.mxu1  ;;  %8568 = vmatprep.subr.bf16.mxu0 %v8112_v37  ;;  %v19949_v37 = vld [vmem:[#allocation99_spill] sm:$0xff] }
 0x67e   : > { %v6973_v60 = vpop.f32.mrf.mxu1 }
 0x67f   : > { %8442 = vmatmul.mubr.bf16.gmra.mxu1 %v17245_v2  ;;  %8569 = vmatpush2.bf16.msra.mxu0 %v8111_v16  ;;  %v7313_v25 = vpack.c.bf16 %v6973_v60, %v6969_v36  ;;  %v17292_v36 = vld [vmem:[%s18891_s5 + $0x80] ss:$8 sps:$4 sm:$0xff]  }
 0x680   : > { %v6975_v45 = vpop.f32.mrf.mxu1  ;;  %8570 = vmatprep.subr.bf16.mxu0 %v8104_v8  ;;  %8451 = vmatprep.mubr.bf16.mxu1 %v17256_v47 }
 0x681   : > { %v7314_v16 = vpack.c.bf16 %v6975_v45, %v6971_v57  ;;  %v7953_v5 = vadd.bf16 %v16536_v9, %v7313_v25 }
 0x682   : > { %v6979_v62 = vpop.f32.mrf.mxu1  ;;  %7251 = vmatmul.mubr.bf16.gmra.mxu0 %v19949_v37  ;;  %v7298_v37 = vpack.c.bf16 %v17202_v4, %v17184_v6 }
 0x683   : > { %8571 = vmatpush2.bf16.msra.mxu0 %v8103_v15  ;;  %8574 = vmatprep.mubr.bf16.mxu0 %v19951_v32  ;;  %v7954_v15 = vadd.bf16 %v16536_v9, %v7314_v16  ;;  %v7297_v16 = vpack.c.bf16 %v17192_v39, %v17168_v41  ;;  %v8081_v6 = vmax.bf16 %v19330_v23, %v7953_v5  ;;  %v17333_v41 = vld [vmem:[%s18891_s5 + $0x90] ss:$8 sps:$4 sm:$0xff]  }
 0x684   : > { %v6981_v24 = vpop.f32.mrf.mxu1  ;;  %8572 = vmatprep.subr.bf16.mxu0 %v8096_v13  ;;  %v7938_v25 = vadd.bf16 %v16579_v35, %v7298_v37  ;;  %v7289_v39 = vpack.c.bf16 %v17154_v14, %v17135_v18  ;;  %v7281_v5 = vpack.c.bf16 %v17129_v1, %v17113_v61  ;;  %v19955_v1 = vld [vmem:[#allocation81_spill] sm:$0xff]  ;;  %v17373_v61 = vld [vmem:[%s18891_s5 + $0xa0] ss:$8 sps:$4 sm:$0xff]  }
 0x685   : > { %v8082_v12 = vmax.bf16 %v19330_v23, %v7954_v15 }
 0x686   : > { %v6983_v53 = vpop.f32.mrf.mxu1  ;;  %v8066_v18 = vmax.bf16 %v19330_v23, %v7938_v25 }
 0x687   : > { %v7321_v19 = vpack.c.bf16 %v6983_v53, %v6979_v62  ;;  %8452 = vmatmul.mubr.bf16.gmra.mxu1 %v17271_v38  ;;  %8573 = vmatpush2.bf16.msra.mxu0 %v8095_v59  ;;  %v17304_v62 = vld [vmem:[%s18891_s5 + $0x94] ss:$8 sps:$4 sm:$0xff]   ;;  %v7946_v59 = vadd.bf16 %v16540_v11, %v7306_v28  ;;  %v7945_v53 = vadd.bf16 %v16540_v11, %v7305_v7 }
 0x688   : > { %v6985_v8 = vpop.f32.mrf.mxu1  ;;  %8461 = vmatprep.mubr.bf16.mxu1 %v17278_v54 }
 0x689   : > { %v7961_v58 = vadd.bf16 %v16534_v17, %v7321_v19  ;;  %v7322_v56 = vpack.c.bf16 %v6985_v8, %v6981_v24  ;;  %v7290_v19 = vpack.c.bf16 %v17163_v49, %v17146_v40  ;;  %v8074_v8 = vmax.bf16 %v19330_v23, %v7946_v59 }
 0x68a   : > { %v17285_v13 = vpop.f32.mrf.mxu1  ;;  %8575 = vmatmul.mubr.bf16.vlgmr.msra.gmra.mxu0 %v17069_v21  ;;  %v7937_v40 = vadd.bf16 %v16579_v35, %v7297_v16  ;;  %v8073_v49 = vmax.bf16 %v19330_v23, %v7945_v53 }
 0x68b   : > { %v7962_v57 = vadd.bf16 %v16534_v17, %v7322_v56  ;;  %8584 = vmatprep.mubr.bf16.mxu0 %v17077_v63  ;;  %v8089_v60 = vmax.bf16 %v19330_v23, %v7961_v58  ;;  %v17345_v58 = vld [vmem:[%s18891_s5 + $0xa4] ss:$8 sps:$4 sm:$0xff]   ;;  %v7282_v56 = vpack.c.bf16 %v17132_v20, %v17122_v46  ;;  %v17485_v17 = vld [vmem:[%s18891_s5 + $0xf0] ss:$8 sps:$4 sm:$0xff]  }
 0x68c   : > { %v17299_v45 = vpop.f32.mrf.mxu1  ;;  %v8065_v37 = vmax.bf16 %v19330_v23, %v7937_v40  ;;  %v19953_v46 = vld [vmem:[#allocation87_spill] sm:$0xff]  ;;  %19971 = vst [vmem:[#allocation98_spill] sm:$0xff] %v17485_v17 }
 0x68d   : > { %v8090_v32 = vmax.bf16 %v19330_v23, %v7962_v57  ;;  %v7930_v57 = vadd.bf16 %v16604_v48, %v7290_v19  ;;  %v7274_v59 = vpack.c.bf16 %v19953_v46, %v17098_v30  ;;  %v19958_v40 = vld [vmem:[#allocation91_spill] sm:$0xff] }
 0x68e   : > { %v17311_v0 = vpop.f32.mrf.mxu1 }
 0x68f   : > { %8462 = vmatmul.mubr.bf16.gmra.mxu1 %v17292_v36  ;;  %8735 = vmatprep.subr.bf16.mxu1 %v8090_v32  ;;  %v19954_v32 = vld [vmem:[#allocation128_spill] sm:$0xff]  ;;  %v8058_v16 = vmax.bf16 %v19330_v23, %v7930_v57 }
 0x690   : > { %v17320_v4 = vpop.f32.mrf.mxu1  ;;  %8736 = vmatpush1.bf16.msra.mxu1 %v8089_v60  ;;  %8471 = vmatprep.mubr.bf16.mxu1 %v17304_v62  ;;  %v7929_v60 = vadd.bf16 %v16604_v48, %v7289_v39  ;;  %v7921_v19 = vadd.bf16 %v19954_v32, %v7281_v5  ;;  %v19957_v39 = vld [vmem:[#allocation74_spill] sm:$0xff] }
 0x691   : > { %8737 = vmatprep.subr.bf16.mxu1 %v8082_v12  ;;  %v7922_v12 = vadd.bf16 %v19954_v32, %v7282_v56  ;;  %v19959_v56 = vld [vmem:[#allocation132_spill] sm:$0xff]  ;;  %v19960_v5 = vld [vmem:[#allocation86_spill] sm:$0xff] }
 0x692   : > { %v17327_v28 = vpop.f32.mrf.mxu1  ;;  %8585 = vmatmul.mubr.bf16.gmra.mxu0 %v17095_v29  ;;  %v8057_v30 = vmax.bf16 %v19330_v23, %v7929_v60  ;;  %v7914_v57 = vadd.bf16 %v19959_v56, %v7274_v59  ;;  %v19961_v60 = vld [vmem:[#allocation68_spill] sm:$0xff]  ;;  %v8049_v7 = vmax.bf16 %v19330_v23, %v7921_v19  ;;  %v19963_v59 = vld [vmem:[#allocation101_spill] sm:$0xff]  ;;  %v19964_v19 = vld [vmem:[#allocation82_spill] sm:$0xff] }
 0x693   : > { %8594 = vmatprep.mubr.bf16.mxu0 %v17103_v10 }
 0x694   : > { %v17340_v15 = vpop.f32.mrf.mxu1  ;;  %8738 = vmatpush1.bf16.msra.mxu1 %v8081_v6  ;;  %v19956_v6 = vld [vmem:[#allocation58_spill] sm:$0xff] }
 0x695   : > { %8739 = vmatprep.subr.bf16.mxu1 %v8074_v8  ;;  %v17383_v8 = vld [vmem:[%s18891_s5 + $0xb4] ss:$8 sps:$4 sm:$0xff]  }
 0x696   : > { %v17351_v14 = vpop.f32.mrf.mxu1 }
 0x697   : > { %8472 = vmatmul.mubr.bf16.gmra.mxu1 %v17333_v41 }
 0x698   : > { %v17360_v20 = vpop.f32.mrf.mxu1  ;;  %8740 = vmatpush1.bf16.msra.mxu1 %v8073_v49  ;;  %8481 = vmatprep.mubr.bf16.mxu1 %v17345_v58  ;;  %v7266_v49 = vpack.c.bf16 %v19958_v40, %v19957_v39  ;;  %v17408_v40 = vld [vmem:[%s18891_s5 + $0xb0] ss:$8 sps:$4 sm:$0xff]  }
 0x699   : > { %8741 = vmatprep.subr.bf16.mxu1 %v8066_v18  ;;  %v8050_v18 = vmax.bf16 %v19330_v23, %v7922_v12  ;;  %v8042_v12 = vmax.bf16 %v19330_v23, %v7914_v57  ;;  %v17421_v57 = vld [vmem:[%s18891_s5 + $0xc4] ss:$8 sps:$4 sm:$0xff]  }
 0x69a   : > { %v17367_v53 = vpop.f32.mrf.mxu1  ;;  %8595 = vmatmul.mubr.bf16.gmra.mxu0 %v19955_v1 }
 0x69b   : > { %8604 = vmatprep.mubr.bf16.mxu0 %v19956_v6 }
 0x69c   : > { %v17378_v25 = vpop.f32.mrf.mxu1  ;;  %8742 = vmatpush1.bf16.msra.mxu1 %v8065_v37  ;;  %v19962_v37 = vpack.c.bf16 %v19960_v5, %v19961_v60 }
 0x69d   : > { %8743 = vmatprep.subr.bf16.mxu1 %v8058_v16  ;;  %v7906_v16 = vadd.bf16 %v19963_v59, %v7266_v49 }
 0x69e   : > { %v17389_v46 = vpop.f32.mrf.mxu1  ;;  %v7913_v24 = vadd.bf16 %v19959_v56, %v19962_v37 }
 0x69f   : > { %8482 = vmatmul.mubr.bf16.gmra.mxu1 %v17373_v61  ;;  %v8034_v37 = vmax.bf16 %v19330_v23, %v7906_v16 }
 0x6a0   : > { %v17397_v32 = vpop.f32.mrf.mxu1  ;;  %8744 = vmatpush1.bf16.msra.mxu1 %v8057_v30  ;;  %8491 = vmatprep.mubr.bf16.mxu1 %v17383_v8  ;;  %v19965_v30 = vld [vmem:[#allocation100_spill] sm:$0xff]  ;;  %v8041_v49 = vmax.bf16 %v19330_v23, %v7913_v24 }
 0x6a1   : > { %8745 = vmatprep.subr.bf16.mxu1 %v8050_v18  ;;  %v19966_v5 = vpack.c.bf16 %v19964_v19, %v19965_v30 }
 0x6a2   : > { %v17402_v39 = vpop.f32.mrf.mxu1  ;;  %8605 = vmatmul.mubr.bf16.gmra.mxu0 %v17141_v43 }
 0x6a3   : > { %8614 = vmatprep.mubr.bf16.mxu0 %v17151_v34  ;;  %v7905_v60 = vadd.bf16 %v19963_v59, %v19966_v5  ;;  %v17463_v59 = vld [vmem:[%s18891_s5 + $0xe4] ss:$8 sps:$4 sm:$0xff]  }
 0x6a4   : > { %v17416_v18 = vpop.f32.mrf.mxu1  ;;  %8746 = vmatpush1.bf16.msra.mxu1 %v8049_v7  ;;  %v17437_v7 = vld [vmem:[%s18891_s5 + $0xc0] ss:$8 sps:$4 sm:$0xff]   ;;  %19968 = vst [vmem:[#allocation106_spill] sm:$0xff] %v17463_v59 }
 0x6a5   : > { %8747 = vmatprep.subr.bf16.mxu1 %v8042_v12  ;;  %v8033_v19 = vmax.bf16 %v19330_v23, %v7905_v60  ;;  %v17445_v12 = vld [vmem:[%s18891_s5 + $0xd4] ss:$8 sps:$4 sm:$0xff]  }
 0x6a6   : > { %v17424_v56 = vpop.f32.mrf.mxu1 }
 0x6a7   : > { %8492 = vmatmul.mubr.bf16.gmra.mxu1 %v17408_v40 }
 0x6a8   : > { %v17428_v30 = vpop.f32.mrf.mxu1  ;;  %8748 = vmatpush1.bf16.msra.mxu1 %v8041_v49  ;;  %8501 = vmatprep.mubr.bf16.mxu1 %v17421_v57 }
 0x6a9   : > { %8749 = vmatprep.subr.bf16.mxu1 %v8034_v37  ;;  %v17457_v37 = vld [vmem:[%s18891_s5 + $0xd0] ss:$8 sps:$4 sm:$0xff]  }
 0x6aa   : > { %v17431_v24 = vpop.f32.mrf.mxu1  ;;  %8615 = vmatmul.mubr.bf16.gmra.mxu0 %v17178_v52  ;;  %19967 = vst [vmem:[#allocation83_spill] sm:$0xff] %v17457_v37  ;;  %v17477_v52 = vld [vmem:[%s18891_s5 + $0xf4] ss:$8 sps:$4 sm:$0xff]  }
 0x6ab   : > { %8624 = vmatprep.mubr.bf16.mxu0 %v17190_v27  ;;  %v17471_v27 = vld [vmem:[%s18891_s5 + $0xe0] ss:$8 sps:$4 sm:$0xff]   ;;  %19970 = vst [vmem:[#allocation63_spill] sm:$0xff] %v17477_v52 }
 0x6ac   : > { %v17440_v16 = vpop.f32.mrf.mxu1  ;;  %8750 = vmatpush1.bf16.msra.mxu1 %v8033_v19  ;;  %19969 = vst [vmem:[#allocation66_spill] sm:$0xff] %v17471_v27 }
 0x6ae   : > { %v17447_v5 = vpop.f32.mrf.mxu1 }
 0x6af   : > { %8502 = vmatmul.mubr.bf16.gmra.mxu1 %v17437_v7 }
 0x6b0   : > { %v17450_v60 = vpop.f32.mrf.mxu1  ;;  %8511 = vmatprep.mubr.bf16.mxu1 %v17445_v12 }
 0x6b2   : > { %v7039_v49 = vpop.f32.mrf.mxu1  ;;  %8625 = vmatmul.mubr.bf16.gmra.mxu0 %v17216_v22 }
 0x6b3   : > { %8634 = vmatprep.mubr.bf16.mxu0 %v17228_v3 }
 0x6b4   : > { %v7041_v19 = vpop.f32.mrf.mxu1 }
 0x6b6   : > { %v7043_v48 = vpop.f32.mrf.mxu1 }
 0x6b7   : > { %8512 = vmatmul.mubr.bf16.gmra.mxu1 %v17457_v37 }
 0x6b8   : > { %v7045_v35 = vpop.f32.mrf.mxu1  ;;  %8521 = vmatprep.mubr.bf16.mxu1 %v17463_v59 }
 0x6ba   : > { %v7049_v22 = vpop.f32.mrf.mxu1  ;;  %8635 = vmatmul.mubr.bf16.gmra.mxu0 %v17245_v2 }
 0x6bb   : > { %8644 = vmatprep.mubr.bf16.mxu0 %v17256_v47 }
 0x6bc   : > { %v7051_v3 = vpop.f32.mrf.mxu1 }
 0x6be   : > { %v7053_v11 = vpop.f32.mrf.mxu1 }
 0x6bf   : > { %8522 = vmatmul.mubr.bf16.gmra.mxu1 %v17471_v27  ;;  %v7377_v27 = vpack.c.bf16 %v7053_v11, %v7049_v22 }
 0x6c0   : > { %v7055_v9 = vpop.f32.mrf.mxu1  ;;  %8531 = vmatprep.mubr.bf16.mxu1 %v17477_v52  ;;  %v17492_v52 = vld [vmem:[%s18891_s5 + $0x4] ss:$8 sps:$4 sm:$0xff]  }
 0x6c1   : > { %v7378_v43 = vpack.c.bf16 %v7055_v9, %v7051_v3  ;;  %19972 = vst [vmem:[#allocation61_spill] sm:$0xff] %v17492_v52  ;;  %v7370_v9 = vpack.c.bf16 %v7045_v35, %v7041_v19  ;;  %v8017_v11 = vadd.bf16 %v16862_v55, %v7377_v27  ;;  %v7362_v35 = vpack.c.bf16 %v17450_v60, %v17440_v16 }
 0x6c2   : > { %v7059_v2 = vpop.f32.mrf.mxu1  ;;  %8645 = vmatmul.mubr.bf16.gmra.mxu0 %v17271_v38 }
 0x6c3   : > { %8654 = vmatprep.mubr.bf16.mxu0 %v17278_v54  ;;  %v8145_v16 = vmax.bf16 %v19330_v23, %v8017_v11 }
 0x6c4   : > { %v7061_v47 = vpop.f32.mrf.mxu1 }
 0x6c6   : > { %v7063_v34 = vpop.f32.mrf.mxu1 }
 0x6c7   : > { %v7385_v6 = vpack.c.bf16 %v7063_v34, %v7059_v2  ;;  %8532 = vmatmul.mubr.bf16.gmra.mxu1 %v17485_v17  ;;  %v8018_v34 = vadd.bf16 %v16862_v55, %v7378_v43  ;;  %v8010_v43 = vadd.bf16 %v16865_v44, %v7370_v9 }
 0x6c8   : > { %v7065_v1 = vpop.f32.mrf.mxu1  ;;  %8767 = vmatprep.mubr.bf16.mxu1 %v17492_v52  ;;  %v7369_v52 = vpack.c.bf16 %v7043_v48, %v7039_v49  ;;  %v8002_v49 = vadd.bf16 %v16875_v33, %v7362_v35 }
 0x6c9   : > { %v7386_v38 = vpack.c.bf16 %v7065_v1, %v7061_v47  ;;  %v8025_v10 = vadd.bf16 %v16860_v31, %v7385_v6  ;;  %v8146_v1 = vmax.bf16 %v19330_v23, %v8018_v34  ;;  %v8138_v19 = vmax.bf16 %v19330_v23, %v8010_v43 }
 0x6ca   : > { %v17496_v29 = vpop.f32.mrf.mxu0  ;;  %8655 = vmatmul.mubr.bf16.gmra.mxu0 %v17292_v36  ;;  %v8009_v27 = vadd.bf16 %v16865_v44, %v7369_v52  ;;  %v7353_v52 = vpack.c.bf16 %v17424_v56, %v17402_v39  ;;  %v8130_v11 = vmax.bf16 %v19330_v23, %v8002_v49  ;;  %v7345_v39 = vpack.c.bf16 %v17389_v46, %v17367_v53 }
 0x6cb   : > { %v8026_v3 = vadd.bf16 %v16860_v31, %v7386_v38  ;;  %8664 = vmatprep.mubr.bf16.mxu0 %v17304_v62  ;;  %v8153_v22 = vmax.bf16 %v19330_v23, %v8025_v10  ;;  %v7361_v10 = vpack.c.bf16 %v17447_v5, %v17431_v24  ;;  %v7338_v43 = vpack.c.bf16 %v17360_v20, %v17340_v15  ;;  %v19982_v38 = vld [vmem:[#allocation75_spill] sm:$0xff] }
 0x6cc   : > { %v17502_v2 = vpop.f32.mrf.mxu0  ;;  %v8137_v5 = vmax.bf16 %v19330_v23, %v8009_v27  ;;  %v7993_v35 = vadd.bf16 %v16877_v51, %v7353_v52  ;;  %v7985_v53 = vadd.bf16 %v16979_v50, %v7345_v39 }
 0x6cd   : > { %v8154_v54 = vmax.bf16 %v19330_v23, %v8026_v3  ;;  %v8001_v24 = vadd.bf16 %v16875_v33, %v7361_v10  ;;  %v7978_v15 = vadd.bf16 %v16985_v26, %v7338_v43  ;;  %v19983_v3 = vld [vmem:[#allocation62_spill] sm:$0xff] }
 0x6ce   : > { %v17507_v47 = vpop.f32.mrf.mxu0  ;;  %v8121_v46 = vmax.bf16 %v19330_v23, %v7993_v35 }
 0x6cf   : > { %8751 = vmatprep.subr.bf16.mxu1 %v8154_v54  ;;  %v7354_v54 = vpack.c.bf16 %v17428_v30, %v17416_v18  ;;  %v7346_v18 = vpack.c.bf16 %v17397_v32, %v17378_v25  ;;  %v8129_v32 = vmax.bf16 %v19330_v23, %v8001_v24  ;;  %v8113_v24 = vmax.bf16 %v19330_v23, %v7985_v53 }
 0x6d0   : > { %v17515_v6 = vpop.f32.mrf.mxu0  ;;  %8752 = vmatpush2.bf16.msra.mxu1 %v8153_v22 }
 0x6d1   : > { %8753 = vmatprep.subr.bf16.mxu1 %v8146_v1  ;;  %v7994_v30 = vadd.bf16 %v16877_v51, %v7354_v54  ;;  %v7986_v1 = vadd.bf16 %v16979_v50, %v7346_v18  ;;  %v7330_v54 = vpack.c.bf16 %v17320_v4, %v17299_v45  ;;  %v8106_v4 = vmax.bf16 %v19330_v23, %v7978_v15 }
 0x6d2   : > { %v17523_v60 = vpop.f32.mrf.mxu0  ;;  %8665 = vmatmul.mubr.bf16.gmra.mxu0 %v17333_v41 }
 0x6d3   : > { %8674 = vmatprep.mubr.bf16.mxu0 %v17345_v58  ;;  %v8122_v10 = vmax.bf16 %v19330_v23, %v7994_v30  ;;  %v8114_v20 = vmax.bf16 %v19330_v23, %v7986_v1  ;;  %v7970_v45 = vadd.bf16 %v17022_v42, %v7330_v54  ;;  %v19975_v54 = vld [vmem:[#allocation88_spill] sm:$0xff] }
 0x6d4   : > { %v17531_v9 = vpop.f32.mrf.mxu0  ;;  %8754 = vmatpush2.bf16.msra.mxu1 %v8145_v16 }
 0x6d5   : > { %8755 = vmatprep.subr.bf16.mxu1 %v8138_v19  ;;  %v19973_v19 = vpack.c.bf16 %v17351_v14, %v17327_v28  ;;  %v19974_v28 = vpack.c.bf16 %v17311_v0, %v17285_v13  ;;  %v8098_v39 = vmax.bf16 %v19330_v23, %v7970_v45 }
 0x6d6   : > { %v17537_v34 = vpop.f32.mrf.mxu0 }
 0x6d7   : > { %v7977_v52 = vadd.bf16 %v16985_v26, %v19973_v19  ;;  %v7969_v14 = vadd.bf16 %v17022_v42, %v19974_v28  ;;  %v19980_v28 = vld [vmem:[#allocation58_spill] sm:$0xff]  ;;  %v19986_v26 = vld [vmem:[#allocation93_spill] sm:$0xff] }
 0x6d8   : > { %v17545_v22 = vpop.f32.mrf.mxu0  ;;  %8756 = vmatpush2.bf16.msra.mxu1 %v8137_v5 }
 0x6d9   : > { %8757 = vmatprep.subr.bf16.mxu1 %v8130_v11  ;;  %v8105_v30 = vmax.bf16 %v19330_v23, %v7977_v52  ;;  %v19977_v52 = vld [vmem:[#allocation66_spill] sm:$0xff] }
 0x6da   : > { %v17553_v25 = vpop.f32.mrf.mxu0  ;;  %8675 = vmatmul.mubr.bf16.gmra.mxu0 %v17373_v61 }
 0x6db   : > { %8684 = vmatprep.mubr.bf16.mxu0 %v17383_v8 }
 0x6dc   : > { %v17561_v27 = vpop.f32.mrf.mxu0  ;;  %8758 = vmatpush2.bf16.msra.mxu1 %v8129_v32  ;;  %v8097_v32 = vmax.bf16 %v19330_v23, %v7969_v14 }
 0x6dd   : > { %8759 = vmatprep.subr.bf16.mxu1 %v8122_v10 }
 0x6de   : > { %v17565_v16 = vpop.f32.mrf.mxu0 }
 0x6e0   : > { %v17571_v49 = vpop.f32.mrf.mxu0  ;;  %8760 = vmatpush2.bf16.msra.mxu1 %v8121_v46 }
 0x6e1   : > { %8761 = vmatprep.subr.bf16.mxu1 %v8114_v20  ;;  %v19976_v20 = vld [vmem:[#allocation72_spill] sm:$0xff] }
 0x6e2   : > { %v17578_v5 = vpop.f32.mrf.mxu0  ;;  %8685 = vmatmul.mubr.bf16.gmra.mxu0 %v17408_v40 }
 0x6e3   : > { %8694 = vmatprep.mubr.bf16.mxu0 %v17421_v57 }
 0x6e4   : > { %v17584_v18 = vpop.f32.mrf.mxu0  ;;  %8762 = vmatpush2.bf16.msra.mxu1 %v8113_v24  ;;  %v19978_v24 = vld [vmem:[#allocation63_spill] sm:$0xff] }
 0x6e5   : > { %8763 = vmatprep.subr.bf16.mxu1 %v8106_v4 }
 0x6e6   : > { %v17591_v11 = vpop.f32.mrf.mxu0 }
 0x6e8   : > { %v17594_v35 = vpop.f32.mrf.mxu0  ;;  %8764 = vmatpush2.bf16.msra.mxu1 %v8105_v30  ;;  %v19981_v30 = vld [vmem:[#allocation61_spill] sm:$0xff] }
 0x6e9   : > { %8765 = vmatprep.subr.bf16.mxu1 %v8098_v39 }
 0x6ea   : > { %v17597_v43 = vpop.f32.mrf.mxu0  ;;  %8695 = vmatmul.mubr.bf16.gmra.mxu0 %v17437_v7 }
 0x6eb   : > { %8704 = vmatprep.mubr.bf16.mxu0 %v17445_v12 }
 0x6ec   : > { %v17601_v13 = vpop.f32.mrf.mxu0  ;;  %8766 = vmatpush2.bf16.msra.mxu1 %v8097_v32 }
 0x6ee   : > { %v17603_v0 = vpop.f32.mrf.mxu0 }
 0x6ef   : > { %8768 = vmatmul.mubr.bf16.vlgmr.msra.gmra.mxu1 %v17069_v21 }
 0x6f0   : > { %v7148_v1 = vpop.f32.mrf.mxu0  ;;  %8777 = vmatprep.mubr.bf16.mxu1 %v17077_v63  ;;  %v19979_v63 = vld [vmem:[#allocation81_spill] sm:$0xff] }
 0x6f2   : > { %v7152_v10 = vpop.f32.mrf.mxu0  ;;  %8705 = vmatmul.mubr.bf16.gmra.mxu0 %v17457_v37 }
 0x6f3   : > { %8714 = vmatprep.mubr.bf16.mxu0 %v17463_v59 }
 0x6f4   : > { %v7154_v53 = vpop.f32.mrf.mxu0 }
 0x6f6   : > { %v7156_v46 = vpop.f32.mrf.mxu0 }
 0x6f7   : > { %8778 = vmatmul.mubr.bf16.gmra.mxu1 %v19975_v54 }
 0x6f8   : > { %v7158_v15 = vpop.f32.mrf.mxu0  ;;  %8787 = vmatprep.mubr.bf16.mxu1 %v19976_v20 }
 0x6fa   : > { %v7162_v19 = vpop.f32.mrf.mxu0  ;;  %8715 = vmatmul.mubr.bf16.gmra.mxu0 %v19977_v52 }
 0x6fb   : > { %8724 = vmatprep.mubr.bf16.mxu0 %v19978_v24 }
 0x6fc   : > { %v7164_v21 = vpop.f32.mrf.mxu0 }
 0x6fe   : > { %v7166_v45 = vpop.f32.mrf.mxu0 }
 0x6ff   : > { %8788 = vmatmul.mubr.bf16.gmra.mxu1 %v19979_v63  ;;  %v7315_v42 = vpack.c.bf16 %v7166_v45, %v7162_v19  ;;  %v19984_v63 = vld [vmem:[#allocation94_spill] sm:$0xff] }
 0x700   : > { %v7168_v4 = vpop.f32.mrf.mxu0  ;;  %8797 = vmatprep.mubr.bf16.mxu1 %v19980_v28  ;;  %v7308_v28 = vpack.c.bf16 %v7158_v15, %v7154_v53  ;;  %v19989_v45 = vld [vmem:[#allocation110_spill] sm:$0xff] }
 0x701   : > { %v7316_v54 = vpack.c.bf16 %v7168_v4, %v7164_v21  ;;  %v7307_v4 = vpack.c.bf16 %v7156_v46, %v7152_v10 }
 0x702   : > { %v7172_v14 = vpop.f32.mrf.mxu0  ;;  %8725 = vmatmul.mubr.bf16.gmra.mxu0 %v17485_v17 }
 0x703   : > { %8960 = vmatprep.mubr.bf16.mxu0 %v19981_v30  ;;  %v7956_v17 = vadd.bf16 %v19986_v26, %v7316_v54  ;;  %v7947_v10 = vadd.bf16 %v19989_v45, %v7307_v4  ;;  %v7284_v4 = vpack.c.bf16 %v17571_v49, %v17561_v27  ;;  %v7283_v27 = vpack.c.bf16 %v17565_v16, %v17553_v25 }
 0x704   : > { %v7174_v39 = vpop.f32.mrf.mxu0 }
 0x706   : > { %v7176_v32 = vpop.f32.mrf.mxu0 }
 0x707   : > { %v7323_v20 = vpack.c.bf16 %v7176_v32, %v7172_v14  ;;  %8798 = vmatmul.mubr.bf16.gmra.mxu1 %v19982_v38  ;;  %v7300_v38 = vpack.c.bf16 %v7148_v1, %v17601_v13  ;;  %v7948_v14 = vadd.bf16 %v19989_v45, %v7308_v28  ;;  %v7299_v1 = vpack.c.bf16 %v17603_v0, %v17597_v43  ;;  %v19996_v32 = vld [vmem:[#allocation116_spill] sm:$0xff] }
 0x708   : > { %v7178_v48 = vpop.f32.mrf.mxu0  ;;  %8807 = vmatprep.mubr.bf16.mxu1 %v19983_v3  ;;  %v7955_v3 = vadd.bf16 %v19986_v26, %v7315_v42  ;;  %v19993_v26 = vld [vmem:[#allocation92_spill] sm:$0xff]  ;;  %v7291_v0 = vpack.c.bf16 %v17591_v11, %v17578_v5  ;;  %v20003_v5 = vld [vmem:[#allocation70_spill] sm:$0xff] }
 0x709   : > { %v7324_v56 = vpack.c.bf16 %v7178_v48, %v7174_v39  ;;  %v7963_v24 = vadd.bf16 %v19984_v63, %v7323_v20  ;;  %v8084_v39 = vmax.bf16 %v19330_v23, %v7956_v17  ;;  %v7292_v17 = vpack.c.bf16 %v17594_v35, %v17584_v18 }
 0x70a   : > { %v17620_v52 = vpop.f32.mrf.mxu0  ;;  %v8083_v46 = vmax.bf16 %v19330_v23, %v7955_v3  ;;  %v7940_v54 = vadd.bf16 %v19996_v32, %v7300_v38  ;;  %v7939_v18 = vadd.bf16 %v19996_v32, %v7299_v1  ;;  %v8075_v35 = vmax.bf16 %v19330_v23, %v7947_v10  ;;  %v20001_v3 = vld [vmem:[#allocation120_spill] sm:$0xff] }
 0x70b   : > { %19985 = vst [vmem:[#allocation78_spill] sm:$0xff] %v17620_v52  ;;  %v7964_v30 = vadd.bf16 %v19984_v63, %v7324_v56  ;;  %v8091_v48 = vmax.bf16 %v19330_v23, %v7963_v24  ;;  %v19991_v56 = vld [vmem:[#allocation96_spill] sm:$0xff]  ;;  %v8076_v63 = vmax.bf16 %v19330_v23, %v7948_v14  ;;  %v7931_v49 = vadd.bf16 %v20001_v3, %v7291_v0 }
 0x70c   : > { %v17624_v50 = vpop.f32.mrf.mxu0  ;;  %v8068_v11 = vmax.bf16 %v19330_v23, %v7940_v54  ;;  %v8067_v1 = vmax.bf16 %v19330_v23, %v7939_v18 }
 0x70d   : > { %19987 = vst [vmem:[#allocation109_spill] sm:$0xff] %v17624_v50  ;;  %v8092_v21 = vmax.bf16 %v19330_v23, %v7964_v30  ;;  %v8059_v16 = vmax.bf16 %v19330_v23, %v7931_v49  ;;  %v20031_v50 = vld [vmem:[#allocation85_spill] sm:$0xff] }
 0x70e   : > { %v17630_v19 = vpop.f32.mrf.mxu0 }
 0x70f   : > { %19988 = vst [vmem:[#allocation114_spill] sm:$0xff] %v17630_v19  ;;  %v17635_v15 = vpop.f32.mrf.mxu1  ;;  %8808 = vmatmul.mubr.bf16.gmra.mxu1 %v19991_v56  ;;  %8928 = vmatprep.subr.bf16.mxu0 %v8092_v21 }
 0x710   : > { %19990 = vst [vmem:[#allocation103_spill] sm:$0xff] %v17635_v15  ;;  %v17639_v13 = vpop.f32.mrf.mxu0  ;;  %8929 = vmatpush1.bf16.msra.mxu0 %v8091_v48  ;;  %8817 = vmatprep.mubr.bf16.mxu1 %v19993_v26  ;;  %v7932_v48 = vadd.bf16 %v20001_v3, %v7292_v17  ;;  %v20013_v3 = vld [vmem:[#allocation132_spill] sm:$0xff] }
 0x711   : > { %19992 = vst [vmem:[#allocation64_spill] sm:$0xff] %v17639_v13  ;;  %v17642_v42 = vpop.f32.mrf.mxu1  ;;  %8930 = vmatprep.subr.bf16.mxu0 %v8084_v39  ;;  %v20005_v39 = vld [vmem:[#allocation84_spill] sm:$0xff] }
 0x712   : > { %19994 = vst [vmem:[#allocation129_spill] sm:$0xff] %v17642_v42  ;;  %v17648_v24 = vpop.f32.mrf.mxu0  ;;  %v8060_v54 = vmax.bf16 %v19330_v23, %v7932_v48 }
 0x713   : > { %19995 = vst [vmem:[#allocation79_spill] sm:$0xff] %v17648_v24  ;;  %v17653_v20 = vpop.f32.mrf.mxu1 }
 0x714   : > { %19997 = vst [vmem:[#allocation102_spill] sm:$0xff] %v17653_v20  ;;  %v17658_v30 = vpop.f32.mrf.mxu0  ;;  %8931 = vmatpush1.bf16.msra.mxu0 %v8083_v46  ;;  %v20008_v46 = vld [vmem:[#allocation128_spill] sm:$0xff] }
 0x715   : > { %19998 = vst [vmem:[#allocation77_spill] sm:$0xff] %v17658_v30  ;;  %v17660_v43 = vpop.f32.mrf.mxu1  ;;  %8932 = vmatprep.subr.bf16.mxu0 %v8076_v63  ;;  %v7924_v17 = vadd.bf16 %v20008_v46, %v7284_v4  ;;  %v7923_v25 = vadd.bf16 %v20008_v46, %v7283_v27  ;;  %v20012_v4 = vpack.c.bf16 %v17545_v22, %v17531_v9  ;;  %v20016_v27 = vld [vmem:[#allocation121_spill] sm:$0xff] }
 0x716   : > { %19999 = vst [vmem:[#allocation123_spill] sm:$0xff] %v17660_v43  ;;  %v17668_v38 = vpop.f32.mrf.mxu0  ;;  %v20018_v46 = vpack.c.bf16 %v17537_v34, %v17523_v60  ;;  %v20023_v60 = vpack.c.bf16 %v17507_v47, %v17496_v29 }
 0x717   : > { %20000 = vst [vmem:[#allocation118_spill] sm:$0xff] %v17668_v38  ;;  %v17675_v14 = vpop.f32.mrf.mxu1  ;;  %8818 = vmatmul.mubr.bf16.gmra.mxu1 %v20003_v5  ;;  %v7916_v48 = vadd.bf16 %v20013_v3, %v20012_v4  ;;  %v8051_v22 = vmax.bf16 %v19330_v23, %v7923_v25 }
 0x718   : > { %20002 = vst [vmem:[#allocation117_spill] sm:$0xff] %v17675_v14  ;;  %v17679_v56 = vpop.f32.mrf.mxu0  ;;  %8933 = vmatpush1.bf16.msra.mxu0 %v8075_v35  ;;  %8827 = vmatprep.mubr.bf16.mxu1 %v20005_v39  ;;  %v20015_v39 = vld [vmem:[#allocation73_spill] sm:$0xff]  ;;  %v7915_v9 = vadd.bf16 %v20013_v3, %v20018_v46  ;;  %v20025_v3 = vld [vmem:[#allocation126_spill] sm:$0xff] }
 0x719   : > { %20004 = vst [vmem:[#allocation122_spill] sm:$0xff] %v17679_v56  ;;  %v17682_v26 = vpop.f32.mrf.mxu1  ;;  %8934 = vmatprep.subr.bf16.mxu0 %v8068_v11 }
 0x71a   : > { %20006 = vst [vmem:[#allocation111_spill] sm:$0xff] %v17682_v26  ;;  %v17688_v10 = vpop.f32.mrf.mxu0  ;;  %v8043_v25 = vmax.bf16 %v19330_v23, %v7915_v9 }
 0x71b   : > { %20007 = vst [vmem:[#allocation97_spill] sm:$0xff] %v17688_v10  ;;  %v17691_v32 = vpop.f32.mrf.mxu1 }
 0x71c   : > { %20009 = vst [vmem:[#allocation131_spill] sm:$0xff] %v17691_v32  ;;  %v17696_v35 = vpop.f32.mrf.mxu0  ;;  %8935 = vmatpush1.bf16.msra.mxu0 %v8067_v1  ;;  %v8052_v1 = vmax.bf16 %v19330_v23, %v7924_v17  ;;  %v20019_v17 = vpack.c.bf16 %v17515_v6, %v17502_v2 }
 0x71d   : > { %v17698_v5 = vpop.f32.mrf.mxu1  ;;  %8936 = vmatprep.subr.bf16.mxu0 %v8060_v54 }
 0x71e   : > { %20010 = vst [vmem:[#allocation124_spill] sm:$0xff] %v17698_v5  ;;  %v17704_v18 = vpop.f32.mrf.mxu0 }
 0x71f   : > { %20011 = vst [vmem:[#allocation67_spill] sm:$0xff] %v17704_v18  ;;  %v17710_v11 = vpop.f32.mrf.mxu1  ;;  %8828 = vmatmul.mubr.bf16.gmra.mxu1 %v20015_v39  ;;  %v20020_v39 = vld [vmem:[#allocation101_spill] sm:$0xff] }
 0x720   : > { %20014 = vst [vmem:[#allocation89_spill] sm:$0xff] %v17710_v11  ;;  %v17714_v54 = vpop.f32.mrf.mxu0  ;;  %8937 = vmatpush1.bf16.msra.mxu0 %v8059_v16  ;;  %8837 = vmatprep.mubr.bf16.mxu1 %v20016_v27  ;;  %v7908_v28 = vadd.bf16 %v20020_v39, %v20019_v17  ;;  %v8044_v27 = vmax.bf16 %v19330_v23, %v7916_v48 }
 0x721   : > { %v17717_v49 = vpop.f32.mrf.mxu1  ;;  %8938 = vmatprep.subr.bf16.mxu0 %v8052_v1  ;;  %v7907_v34 = vadd.bf16 %v20020_v39, %v20023_v60 }
 0x722   : > { %20017 = vst [vmem:[#allocation119_spill] sm:$0xff] %v17717_v49  ;;  %v17724_v4 = vpop.f32.mrf.mxu0  ;;  %v8036_v48 = vmax.bf16 %v19330_v23, %v7908_v28 }
 0x723   : > { %v17730_v16 = vpop.f32.mrf.mxu1  ;;  %v8035_v29 = vmax.bf16 %v19330_v23, %v7907_v34 }
 0x724   : > { %20021 = vst [vmem:[#allocation112_spill] sm:$0xff] %v17730_v16  ;;  %v17733_v21 = vpop.f32.mrf.mxu0  ;;  %8939 = vmatpush1.bf16.msra.mxu0 %v8051_v22  ;;  %v20026_v22 = vld [vmem:[#allocation130_spill] sm:$0xff] }
 0x725   : > { %v17735_v1 = vpop.f32.mrf.mxu1  ;;  %8940 = vmatprep.subr.bf16.mxu0 %v8044_v27  ;;  %v9452_v27 = vpop.permute.xlu0 %9451 }
 0x726   : > { %20022 = vst [vmem:[#allocation107_spill] sm:$0xff] %v17735_v1  ;;  %v17742_v2 = vpop.f32.mrf.mxu0  ;;  %v9460_v1 = vrot.slane %v9452_v27, %v20031_v50 }
 0x727   : > { %v17744_v6 = vpop.f32.mrf.mxu1  ;;  %8838 = vmatmul.mubr.bf16.gmra.mxu1 %v20025_v3 }
 0x728   : > { %20024 = vst [vmem:[#allocation108_spill] sm:$0xff] %v17744_v6  ;;  %v17748_v46 = vpop.f32.mrf.mxu0  ;;  %8941 = vmatpush1.bf16.msra.mxu0 %v8043_v25  ;;  %8847 = vmatprep.mubr.bf16.mxu1 %v20026_v22 }
 0x729   : > { %v17751_v17 = vpop.f32.mrf.mxu1  ;;  %8942 = vmatprep.subr.bf16.mxu0 %v8036_v48  ;;  %v9464_v48 = vpop.permute.xlu1 %9463 }
 0x72a   : > { %20027 = vst [vmem:[#allocation76_spill] sm:$0xff] %v17751_v17  ;;  %v17754_v47 = vpop.f32.mrf.mxu0  ;;  %v9428_v63 = vpop.permute.xlu0 %9427  ;;  %v9472_v49 = vrot.slane %v9464_v48, %v20031_v50 }
 0x72b   : > { %v17756_v9 = vpop.f32.mrf.mxu1  ;;  %v9436_v18 = vrot.slane %v9428_v63, %v20031_v50 }
 0x72c   : > { %20028 = vst [vmem:[#allocation80_spill] sm:$0xff] %v17756_v9  ;;  %v17758_v39 = vpop.f32.mrf.mxu0  ;;  %8943 = vmatpush1.bf16.msra.mxu0 %v8035_v29  ;;  %v17808_v63 = vcombine.low %v9460_v1, %v9472_v49 }
 0x72d   : > { %v17760_v60 = vpop.f32.mrf.mxu1 }
 0x72e   : > { %20029 = vst [vmem:[#allocation59_spill] sm:$0xff] %v17760_v60  ;;  %v17762_v28 = vpop.f32.mrf.mxu0  ;;  %v9404_v20 = vpop.permute.xlu0 %9403 }
 0x72f   : > { %v17764_v25 = vpop.f32.mrf.mxu1  ;;  %8848 = vmatmul.mubr.bf16.gmra.mxu1 %v17292_v36  ;;  %v9440_v36 = vpop.permute.xlu1 %9439 }
 0x730   : > { %v17767_v3 = vpop.f32.mrf.mxu0  ;;  %8857 = vmatprep.mubr.bf16.mxu1 %v17304_v62  ;;  %v9448_v10 = vrot.slane %v9440_v36, %v20031_v50 }
 0x731   : > { %v17770_v34 = vpop.f32.mrf.mxu1 }
 0x732   : > { %v17772_v22 = vpop.f32.mrf.mxu0  ;;  %v9380_v5 = vpop.permute.xlu0 %9379 }
 0x733   : > { %v17774_v29 = vpop.f32.mrf.mxu1  ;;  %v9416_v19 = vpop.permute.xlu1 %9415  ;;  %v9388_v30 = vrot.slane %v9380_v5, %v20031_v50 }
 0x734   : > { %20030 = vst [vmem:[#allocation104_spill] sm:$0xff] %v17774_v29  ;;  %v17776_v53 = vpop.f32.mrf.mxu0 }
 0x735   : > { %v17778_v0 = vpop.f32.mrf.mxu1 }
 0x736   : > { %v17780_v45 = vpop.f32.mrf.mxu0  ;;  %v9356_v9 = vpop.permute.xlu0 %9355 }
 0x737   : > { %v17782_v15 = vpop.f32.mrf.mxu1  ;;  %8858 = vmatmul.mubr.bf16.gmra.mxu1 %v17333_v41  ;;  %v9392_v11 = vpop.permute.xlu1 %9391 }
 0x738   : > { %v7238_v62 = vpop.f32.mrf.mxu0  ;;  %8867 = vmatprep.mubr.bf16.mxu1 %v17345_v58  ;;  %v9400_v59 = vrot.slane %v9392_v11, %v20031_v50 }
 0x739   : > { %v17786_v42 = vpop.f32.mrf.mxu1  ;;  %v7372_v36 = vpack.c.bf16 %v7238_v62, %v17776_v53 }
 0x73a   : > { %v7242_v43 = vpop.f32.mrf.mxu0 }
 0x73b   : > { %v17788_v14 = vpop.f32.mrf.mxu1  ;;  %v9368_v5 = vpop.permute.xlu1 %9367 }
 0x73c   : > { %v7244_v32 = vpop.f32.mrf.mxu0 }
 0x73d   : > { %v17790_v52 = vpop.f32.mrf.mxu1 }
 0x73e   : > { %v7246_v26 = vpop.f32.mrf.mxu0 }
 0x73f   : > { %v17792_v24 = vpop.f32.mrf.mxu1  ;;  %8868 = vmatmul.mubr.bf16.gmra.mxu1 %v17373_v61  ;;  %v9412_v61 = vrot.slane %v9404_v20, %v20031_v50  ;;  %v7379_v11 = vpack.c.bf16 %v7246_v26, %v7242_v43 }
 0x740   : > { %v7248_v41 = vpop.f32.mrf.mxu0  ;;  %8877 = vmatprep.mubr.bf16.mxu1 %v17383_v8  ;;  %v9424_v8 = vrot.slane %v9416_v19, %v20031_v50  ;;  %v17811_v19 = vcombine.low %v9436_v18, %v9448_v10  ;;  %v9376_v18 = vrot.slane %v9368_v5, %v20031_v50 }
 0x741   : > { %v8445_v58 = vpop.f32.mrf.mxu1  ;;  %v7380_v60 = vpack.c.bf16 %v7248_v41, %v7244_v32  ;;  %v17821_v32 = vpop.permute.xlu0 %9331 }
 0x742   : > { %v7252_v38 = vpop.f32.mrf.mxu0  ;;  %v17813_v29 = vcombine.low %v9412_v61, %v9424_v8  ;;  %v9340_v43 = vrot.slane %v17821_v32, %v20031_v50  ;;  %v7363_v8 = vpack.c.bf16 %v17762_v28, %v17754_v47 }
 0x743   : > { %v17796_v16 = vpop.f32.mrf.mxu1  ;;  %v8020_v53 = vadd.bf16 %v16862_v55, %v7380_v60  ;;  %v8019_v60 = vadd.bf16 %v16862_v55, %v7379_v11 }
 0x744   : > { %v7254_v13 = vpop.f32.mrf.mxu0  ;;  %v9169_v62 = vpack.c.bf16 %v17796_v16, %v17792_v24  ;;  %v9162_v24 = vpack.c.bf16 %v17790_v52, %v17786_v42  ;;  %v9154_v42 = vpack.c.bf16 %v17778_v0, %v17770_v34 }
 0x745   : > { %v8449_v6 = vpop.f32.mrf.mxu1  ;;  %v8148_v55 = vmax.bf16 %v19330_v23, %v8020_v53 }
 0x746   : > { %v7256_v56 = vpop.f32.mrf.mxu0  ;;  %v9170_v26 = vpack.c.bf16 %v8449_v6, %v8445_v58  ;;  %v9802_v0 = vadd.bf16 %v17813_v29, %v9162_v24  ;;  %v20048_v24 = vld [vmem:[#allocation77_spill] sm:$0xff] }
 0x747   : > { %v7387_v17 = vpack.c.bf16 %v7256_v56, %v7252_v38  ;;  %v8453_v27 = vpop.f32.mrf.mxu1  ;;  %8878 = vmatmul.mubr.bf16.gmra.mxu1 %v17408_v40  ;;  %v17818_v40 = vcombine.low %v9388_v30, %v9400_v59  ;;  %v7364_v59 = vpack.c.bf16 %v17767_v3, %v17758_v39  ;;  %v7371_v30 = vpack.c.bf16 %v17780_v45, %v17772_v22  ;;  %v11842_v45 = vld [vmem:[%s18891_s5 + $0x24] ss:$8 sps:$4 sm:$0xff]  }
 0x748   : > { %v7258_v48 = vpop.f32.mrf.mxu0  ;;  %8887 = vmatprep.mubr.bf16.mxu1 %v17421_v57  ;;  %v9364_v57 = vrot.slane %v9356_v9, %v20031_v50  ;;  %v9810_v16 = vadd.bf16 %v17811_v19, %v9170_v26 }
 0x749   : > { %v7388_v20 = vpack.c.bf16 %v7258_v48, %v7254_v13  ;;  %v8455_v37 = vpop.f32.mrf.mxu1  ;;  %v8027_v38 = vadd.bf16 %v16860_v31, %v7387_v17  ;;  %v8012_v17 = vadd.bf16 %v16865_v44, %v7372_v36  ;;  %v8011_v48 = vadd.bf16 %v16865_v44, %v7371_v30  ;;  %v9308_v30 = vpop.permute.xlu0 %9307 }
 0x74a   : > { %v17816_v56 = vpop.f32.mrf.mxu0  ;;  %v17856_v61 = vcombine.low %v9364_v57, %v9376_v18  ;;  %v9938_v11 = vmax.bf16 %v19330_v23, %v9810_v16  ;;  %v20049_v16 = vld [vmem:[#allocation122_spill] sm:$0xff] }
 0x74b   : > { %20032 = vst [vmem:[#allocation65_spill] sm:$0xff] %v17816_v56  ;;  %v8028_v13 = vadd.bf16 %v16860_v31, %v7388_v20  ;;  %v8457_v10 = vpop.f32.mrf.mxu1  ;;  %v8155_v6 = vmax.bf16 %v19330_v23, %v8027_v38  ;;  %v8140_v5 = vmax.bf16 %v19330_v23, %v8012_v17  ;;  %v7355_v38 = vpack.c.bf16 %v17742_v2, %v17724_v4  ;;  %v20045_v17 = vld [vmem:[#allocation76_spill] sm:$0xff] }
 0x74c   : > { %v9177_v49 = vpack.c.bf16 %v8457_v10, %v8453_v27  ;;  %v17828_v1 = vpop.f32.mrf.mxu0  ;;  %v8004_v27 = vadd.bf16 %v16875_v33, %v7364_v59  ;;  %v20041_v10 = vld [vmem:[#allocation104_spill] sm:$0xff]  ;;  %v8139_v26 = vmax.bf16 %v19330_v23, %v8011_v48  ;;  %v20044_v59 = vld [vmem:[#allocation83_spill] sm:$0xff]  ;;  %v20053_v48 = vld [vmem:[#allocation105_spill] sm:$0xff] }
 0x74d   : > { %20033 = vst [vmem:[#allocation60_spill] sm:$0xff] %v17828_v1  ;;  %v8459_v9 = vpop.f32.mrf.mxu1  ;;  %v8156_v31 = vmax.bf16 %v19330_v23, %v8028_v13  ;;  %v8003_v13 = vadd.bf16 %v16875_v33, %v7363_v8  ;;  %v9153_v18 = vpack.c.bf16 %v20041_v10, %v17764_v25  ;;  %v20051_v8 = vld [vmem:[#allocation97_spill] sm:$0xff] }
 0x74e   : > { %v9178_v41 = vpack.c.bf16 %v8459_v9, %v8455_v37  ;;  %v17840_v58 = vpop.f32.mrf.mxu0  ;;  %v9817_v39 = vadd.bf16 %v17808_v63, %v9177_v49  ;;  %v8132_v25 = vmax.bf16 %v19330_v23, %v8004_v27  ;;  %v20046_v9 = vld [vmem:[#allocation59_spill] sm:$0xff]  ;;  %v11844_v56 = vld [vmem:[%s18891_s5 + $0x34] ss:$8 sps:$4 sm:$0xff]  }
 0x74f   : > { %20034 = vst [vmem:[#allocation113_spill] sm:$0xff] %v17840_v58  ;;  %v17843_v3 = vpop.f32.mrf.mxu1  ;;  %8888 = vmatmul.mubr.bf16.gmra.mxu1 %v17437_v7  ;;  %8944 = vmatprep.subr.bf16.mxu0 %v8156_v31  ;;  %v7356_v7 = vpack.c.bf16 %v17748_v46, %v17733_v21  ;;  %v9161_v21 = vpack.c.bf16 %v17788_v14, %v17782_v15  ;;  %v9344_v15 = vpop.permute.xlu1 %9343  ;;  %v20052_v27 = vld [vmem:[#allocation67_spill] sm:$0xff] }
 0x750   : > { %20035 = vst [vmem:[#allocation115_spill] sm:$0xff] %v17843_v3  ;;  %v9818_v37 = vadd.bf16 %v17808_v63, %v9178_v41  ;;  %v17853_v22 = vpop.f32.mrf.mxu0  ;;  %8945 = vmatpush2.bf16.msra.mxu0 %v8155_v6  ;;  %8897 = vmatprep.mubr.bf16.mxu1 %v17445_v12  ;;  %v8147_v12 = vmax.bf16 %v19330_v23, %v8019_v60  ;;  %v20047_v41 = vld [vmem:[#allocation106_spill] sm:$0xff] }
 0x751   : > { %20036 = vst [vmem:[#allocation125_spill] sm:$0xff] %v17853_v22  ;;  %v17863_v52 = vpop.f32.mrf.mxu1  ;;  %8946 = vmatprep.subr.bf16.mxu0 %v8148_v55  ;;  %v9809_v46 = vadd.bf16 %v17811_v19, %v9169_v62  ;;  %v9945_v47 = vmax.bf16 %v19330_v23, %v9817_v39  ;;  %v7348_v14 = vpack.c.bf16 %v17714_v54, %v17696_v35 }
 0x752   : > { %20037 = vst [vmem:[#allocation127_spill] sm:$0xff] %v17863_v52  ;;  %v17869_v36 = vpop.f32.mrf.mxu0  ;;  %v9946_v20 = vmax.bf16 %v19330_v23, %v9818_v37  ;;  %v7996_v57 = vadd.bf16 %v16877_v51, %v7356_v7  ;;  %v9801_v54 = vadd.bf16 %v17813_v29, %v9161_v21  ;;  %v9146_v31 = vpack.c.bf16 %v20046_v9, %v20045_v17  ;;  %v20062_v17 = vld [vmem:[#allocation64_spill] sm:$0xff] }
 0x753   : > { %20038 = vst [vmem:[#allocation133_spill] sm:$0xff] %v17869_v36  ;;  %v17876_v28 = vpop.f32.mrf.mxu1  ;;  %v9937_v4 = vmax.bf16 %v19330_v23, %v9809_v46  ;;  %v9794_v60 = vadd.bf16 %v17818_v40, %v9154_v42  ;;  %v9930_v6 = vmax.bf16 %v19330_v23, %v9802_v0  ;;  %v9352_v39 = vrot.slane %v9344_v15, %v20031_v50  ;;  %v20056_v0 = vld [vmem:[#allocation80_spill] sm:$0xff] }
 0x754   : > { %20039 = vst [vmem:[#allocation90_spill] sm:$0xff] %v17876_v28  ;;  %10031 = vmatprep.subr.bf16.mxu1 %v9946_v20  ;;  %v17882_v34 = vpop.f32.mrf.mxu0  ;;  %8947 = vmatpush2.bf16.msra.mxu0 %v8147_v12  ;;  %v9316_v55 = vrot.slane %v9308_v30, %v20031_v50  ;;  %v7340_v37 = vpack.c.bf16 %v20049_v16, %v20048_v24  ;;  %v20067_v16 = vld [vmem:[#allocation112_spill] sm:$0xff] }
 0x755   : > { %v17890_v53 = vpop.f32.mrf.mxu1  ;;  %10032 = vmatpush1.bf16.msra.mxu1 %v9945_v47  ;;  %8948 = vmatprep.subr.bf16.mxu0 %v8140_v5  ;;  %v7347_v42 = vpack.c.bf16 %v20052_v27, %v20051_v8  ;;  %v7988_v12 = vadd.bf16 %v20053_v48, %v7348_v14  ;;  %v7995_v20 = vadd.bf16 %v16877_v51, %v7355_v38  ;;  %v9320_v47 = vpop.permute.xlu1 %9319  ;;  %v20055_v5 = vld [vmem:[#allocation108_spill] sm:$0xff]  ;;  %v20058_v14 = vld [vmem:[#allocation119_spill] sm:$0xff] }
 0x756   : > { %20040 = vst [vmem:[#allocation99_spill] sm:$0xff] %v17890_v53  ;;  %10033 = vmatprep.subr.bf16.mxu1 %v9938_v11  ;;  %v17898_v35 = vpop.f32.mrf.mxu0  ;;  %v8131_v21 = vmax.bf16 %v19330_v23, %v8003_v13  ;;  %v9145_v11 = vpack.c.bf16 %v20056_v0, %v20055_v5  ;;  %v9793_v15 = vadd.bf16 %v17818_v40, %v9153_v18 }
 0x757   : > { %20042 = vst [vmem:[#allocation95_spill] sm:$0xff] %v17898_v35  ;;  %v17902_v2 = vpop.f32.mrf.mxu1  ;;  %8898 = vmatmul.mubr.bf16.gmra.mxu1 %v20044_v59  ;;  %v9929_v10 = vmax.bf16 %v19330_v23, %v9801_v54  ;;  %v20059_v59 = vld [vmem:[#allocation107_spill] sm:$0xff]  ;;  %v9786_v38 = vadd.bf16 %v17856_v61, %v9146_v31  ;;  %v9922_v30 = vmax.bf16 %v19330_v23, %v9794_v60  ;;  %v20061_v54 = vld [vmem:[#allocation109_spill] sm:$0xff] }
 0x758   : > { %20043 = vst [vmem:[#allocation87_spill] sm:$0xff] %v17902_v2  ;;  %v17911_v62 = vpop.f32.mrf.mxu0  ;;  %8949 = vmatpush2.bf16.msra.mxu0 %v8139_v26  ;;  %8907 = vmatprep.mubr.bf16.mxu1 %v20047_v41  ;;  %v9138_v51 = vpack.c.bf16 %v20059_v59, %v20058_v14  ;;  %v17946_v18 = vcombine.low %v9340_v43, %v9352_v39  ;;  %v20064_v31 = vld [vmem:[#allocation71_spill] sm:$0xff]  ;;  %v20066_v39 = vld [vmem:[#allocation89_spill] sm:$0xff] }
 0x759   : > { %v17919_v7 = vpop.f32.mrf.mxu1  ;;  %10034 = vmatpush1.bf16.msra.mxu1 %v9937_v4  ;;  %8950 = vmatprep.subr.bf16.mxu0 %v8132_v25  ;;  %v8124_v4 = vmax.bf16 %v19330_v23, %v7996_v57  ;;  %v9328_v57 = vrot.slane %v9320_v47, %v20031_v50  ;;  %v7332_v9 = vpack.c.bf16 %v20062_v17, %v20061_v54 }
 0x75a   : > { %20050 = vst [vmem:[#allocation74_spill] sm:$0xff] %v17919_v7  ;;  %10035 = vmatprep.subr.bf16.mxu1 %v9930_v6  ;;  %v17926_v46 = vpop.f32.mrf.mxu0  ;;  %20060 = vst [vmem:[#allocation68_spill] sm:$0xff] %v17946_v18  ;;  %v7980_v41 = vadd.bf16 %v20064_v31, %v7340_v37  ;;  %v7987_v24 = vadd.bf16 %v20053_v48, %v7347_v42  ;;  %v8123_v60 = vmax.bf16 %v19330_v23, %v7995_v20  ;;  %v20069_v37 = vld [vmem:[#allocation66_spill] sm:$0xff]  ;;  %v9284_v48 = vpop.permute.xlu0 %9283 }
 0x75b   : > { %20054 = vst [vmem:[#allocation91_spill] sm:$0xff] %v17926_v46  ;;  %v17932_v26 = vpop.f32.mrf.mxu1  ;;  %v9137_v8 = vpack.c.bf16 %v20067_v16, %v20066_v39  ;;  %v9785_v27 = vadd.bf16 %v17856_v61, %v9145_v11  ;;  %v8116_v42 = vmax.bf16 %v19330_v23, %v7988_v12  ;;  %v9778_v20 = vadd.bf16 %v17946_v18, %v9138_v51  ;;  %v17979_v12 = vld [vmem:[%s18893_s7] sm:$0xff]  ;;  %v20077_v39 = vld [vmem:[#allocation69_spill] sm:$0xff] }
 0x75c   : > { %20057 = vst [vmem:[#allocation86_spill] sm:$0xff] %v17932_v26  ;;  %v17940_v25 = vpop.f32.mrf.mxu0  ;;  %8951 = vmatpush2.bf16.msra.mxu0 %v8131_v21  ;;  %v9921_v21 = vmax.bf16 %v19330_v23, %v9793_v15  ;;  %v9914_v0 = vmax.bf16 %v19330_v23, %v9786_v38  ;;  %v9292_v11 = vrot.slane %v9284_v48, %v20031_v50  ;;  %20072 = vst [vmem:[#allocation81_spill] sm:$0xff] %v17979_v12  ;;  %v20074_v51 = vld [vmem:[#allocation118_spill] sm:$0xff]  ;;  %v20075_v38 = vld [vmem:[#allocation79_spill] sm:$0xff] }
 0x75d   : > { %v17951_v6 = vpop.f32.mrf.mxu1  ;;  %10036 = vmatpush1.bf16.msra.mxu1 %v9929_v10  ;;  %8952 = vmatprep.subr.bf16.mxu0 %v8124_v4  ;;  %v20070_v10 = vld [vmem:[#allocation63_spill] sm:$0xff]  ;;  %v9296_v4 = vpop.permute.xlu1 %9295  ;;  %v17981_v14 = vcombine.low %v9316_v55, %v9328_v57  ;;  %v8115_v17 = vmax.bf16 %v19330_v23, %v7987_v24  ;;  %v7972_v16 = vadd.bf16 %v20077_v39, %v7332_v9 }
 0x75e   : > { %20063 = vst [vmem:[#allocation82_spill] sm:$0xff] %v17951_v6  ;;  %10037 = vmatprep.subr.bf16.mxu1 %v9922_v30  ;;  %v17958_v43 = vpop.f32.mrf.mxu0  ;;  %v9304_v59 = vrot.slane %v9296_v4, %v20031_v50  ;;  %v20076_v30 = vpack.c.bf16 %v20074_v51, %v20075_v38  ;;  %v8108_v57 = vmax.bf16 %v19330_v23, %v7980_v41  ;;  %v20080_v48 = vld [vmem:[#allocation111_spill] sm:$0xff]  ;;  %v20085_v41 = vld [vmem:[#allocation114_spill] sm:$0xff] }
 0x75f   : > { %20065 = vst [vmem:[#allocation100_spill] sm:$0xff] %v17958_v43  ;;  %v17964_v47 = vpop.f32.mrf.mxu1  ;;  %8908 = vmatmul.mubr.bf16.gmra.mxu1 %v20069_v37  ;;  %20073 = vst [vmem:[#allocation58_spill] sm:$0xff] %v17981_v14  ;;  %v9913_v37 = vmax.bf16 %v19330_v23, %v9785_v27  ;;  %v9906_v24 = vmax.bf16 %v19330_v23, %v9778_v20  ;;  %v18006_v9 = vcombine.high %v17979_v12, %v17979_v12  ;;  %v20088_v20 = vld [vmem:[#allocation131_spill] sm:$0xff] }
 0x760   : > { %20068 = vst [vmem:[#allocation88_spill] sm:$0xff] %v17964_v47  ;;  %v17969_v5 = vpop.f32.mrf.mxu0  ;;  %8953 = vmatpush2.bf16.msra.mxu0 %v8123_v60  ;;  %8917 = vmatprep.mubr.bf16.mxu1 %v20070_v10  ;;  %v7979_v54 = vadd.bf16 %v20064_v31, %v20076_v30  ;;  %v18010_v27 = vcombine.low %v9292_v11, %v9304_v59  ;;  %v20092_v11 = vld [vmem:[#allocation98_spill] sm:$0xff] }
 0x761   : > { %v17974_v15 = vpop.f32.mrf.mxu1  ;;  %10038 = vmatpush1.bf16.msra.mxu1 %v9921_v21  ;;  %8954 = vmatprep.subr.bf16.mxu0 %v8116_v42  ;;  %v9777_v21 = vadd.bf16 %v17946_v18, %v9137_v8  ;;  %v20079_v42 = vld [vmem:[#allocation124_spill] sm:$0xff]  ;;  %20082 = vst [vmem:[#allocation75_spill] sm:$0xff] %v18006_v9  ;;  %v8100_v59 = vmax.bf16 %v19330_v23, %v7972_v16  ;;  %v11843_v26 = vld [vmem:[%s18891_s5 + $0x20] ss:$8 sps:$4 sm:$0xff]  }
 0x762   : > { %20071 = vst [vmem:[#allocation72_spill] sm:$0xff] %v17974_v15  ;;  %10039 = vmatprep.subr.bf16.mxu1 %v9914_v0  ;;  %v17989_v60 = vpop.f32.mrf.mxu0  ;;  %v20081_v10 = vpack.c.bf16 %v20079_v42, %v20080_v48  ;;  %20084 = vst [vmem:[#allocation94_spill] sm:$0xff] %v18010_v27  ;;  %v20086_v0 = vld [vmem:[#allocation78_spill] sm:$0xff]  ;;  %v8107_v30 = vmax.bf16 %v19330_v23, %v7979_v54  ;;  %v20089_v42 = vld [vmem:[#allocation117_spill] sm:$0xff] }
 0x763   : > { %v17994_v55 = vpop.f32.mrf.mxu1  ;;  %v20087_v51 = vpack.c.bf16 %v20085_v41, %v20086_v0  ;;  %v20090_v48 = vpack.c.bf16 %v20088_v20, %v20089_v42  ;;  %v20093_v41 = vld [vmem:[#allocation123_spill] sm:$0xff]  ;;  %v20096_v42 = vld [vmem:[#allocation102_spill] sm:$0xff]  ;;  %v11845_v18 = vld [vmem:[%s18891_s5 + $0x30] ss:$8 sps:$4 sm:$0xff]  }
 0x764   : > { %20078 = vst [vmem:[#allocation61_spill] sm:$0xff] %v17994_v55  ;;  %v9770_v31 = vadd.bf16 %v17981_v14, %v20081_v10  ;;  %v18001_v4 = vpop.f32.mrf.mxu0  ;;  %8955 = vmatpush2.bf16.msra.mxu0 %v8115_v17 }
 0x765   : > { %v18008_v8 = vpop.f32.mrf.mxu1  ;;  %10040 = vmatpush1.bf16.msra.mxu1 %v9913_v37  ;;  %8956 = vmatprep.subr.bf16.mxu0 %v8108_v57  ;;  %v7971_v38 = vadd.bf16 %v20077_v39, %v20087_v51  ;;  %v9769_v10 = vadd.bf16 %v17981_v14, %v20090_v48  ;;  %v9905_v37 = vmax.bf16 %v19330_v23, %v9777_v21  ;;  %v20094_v39 = vld [vmem:[#allocation129_spill] sm:$0xff]  ;;  %v20097_v48 = vld [vmem:[#allocation103_spill] sm:$0xff] }
 0x766   : > { %20083 = vst [vmem:[#allocation62_spill] sm:$0xff] %v18008_v8  ;;  %10041 = vmatprep.subr.bf16.mxu1 %v9906_v24  ;;  %v18017_v17 = vpop.f32.mrf.mxu0  ;;  %v20095_v0 = vpack.c.bf16 %v20093_v41, %v20094_v39  ;;  %v9898_v51 = vmax.bf16 %v19330_v23, %v9770_v31 }
 0x767   : > { %v18024_v57 = vpop.f32.mrf.mxu1  ;;  %8918 = vmatmul.mubr.bf16.gmra.mxu1 %v20092_v11  ;;  %v8099_v21 = vmax.bf16 %v19330_v23, %v7971_v38  ;;  %v20098_v11 = vpack.c.bf16 %v20096_v42, %v20097_v48  ;;  %v9644_v48 = vpop.permute.xlu0 %9643 }
 0x768   : > { %20091 = vst [vmem:[#allocation93_spill] sm:$0xff] %v18024_v57  ;;  %v9762_v54 = vadd.bf16 %v18010_v27, %v20095_v0  ;;  %v18032_v24 = vpop.f32.mrf.mxu0  ;;  %8957 = vmatpush2.bf16.msra.mxu0 %v8107_v30  ;;  %10063 = vmatprep.mubr.bf16.mxu1 %v18006_v9  ;;  %v9897_v30 = vmax.bf16 %v19330_v23, %v9769_v10  ;;  %v11839_v10 = vld [vmem:[%s18891_s5] ss:$8 sps:$4 sm:$0xff]  }
 0x769   : > { %v18036_v20 = vpop.f32.mrf.mxu1  ;;  %10042 = vmatpush1.bf16.msra.mxu1 %v9905_v37  ;;  %8958 = vmatprep.subr.bf16.mxu0 %v8100_v59  ;;  %v9761_v41 = vadd.bf16 %v18010_v27, %v20098_v11  ;;  %v9652_v47 = vrot.slane %v9644_v48, %v20031_v50 }
 0x76a   : > { %10043 = vmatprep.subr.bf16.mxu1 %v9898_v51  ;;  %v18039_v16 = vpop.f32.mrf.mxu0  ;;  %v9890_v37 = vmax.bf16 %v19330_v23, %v9762_v54  ;;  %v11840_v54 = vld [vmem:[%s18891_s5 + $0x14] ss:$8 sps:$4 sm:$0xff]  }
 0x76b   : > { %v18046_v39 = vpop.f32.mrf.mxu1  ;;  %v9889_v0 = vmax.bf16 %v19330_v23, %v9761_v41  ;;  %v9656_v41 = vpop.permute.xlu1 %9655 }
 0x76c   : > { %20099 = vst [vmem:[#allocation110_spill] sm:$0xff] %v18046_v39  ;;  %v18048_v31 = vpop.f32.mrf.mxu0  ;;  %8959 = vmatpush2.bf16.msra.mxu0 %v8099_v21  ;;  %v9664_v14 = vrot.slane %v9656_v41, %v20031_v50 }
 0x76d   : > { %v18051_v59 = vpop.f32.mrf.mxu1  ;;  %10044 = vmatpush1.bf16.msra.mxu1 %v9897_v30 }
 0x76e   : > { %10045 = vmatprep.subr.bf16.mxu1 %v9890_v37  ;;  %v18053_v38 = vpop.f32.mrf.mxu0 }
 0x76f   : > { %v18056_v51 = vpop.f32.mrf.mxu1  ;;  %8961 = vmatmul.mubr.bf16.vlgmr.msra.gmra.mxu0 %v11839_v10  ;;  %v9632_v32 = vpop.permute.xlu1 %9631 }
 0x770   : > { %v18061_v42 = vpop.f32.mrf.mxu0  ;;  %8970 = vmatprep.mubr.bf16.mxu0 %v11840_v54  ;;  %v11841_v54 = vld [vmem:[%s18891_s5 + $0x10] ss:$8 sps:$4 sm:$0xff]   ;;  %v9640_v22 = vrot.slane %v9632_v32, %v20031_v50  ;;  %v11846_v32 = vld [vmem:[%s18891_s5 + $0x44] ss:$8 sps:$4 sm:$0xff]  }
 0x771   : > { %v18066_v21 = vpop.f32.mrf.mxu1  ;;  %10046 = vmatpush1.bf16.msra.mxu1 %v9889_v0  ;;  %v9620_v0 = vpop.permute.xlu0 %9619 }
 0x772   : > { %v18068_v11 = vpop.f32.mrf.mxu0 }
 0x773   : > { %v18070_v30 = vpop.f32.mrf.mxu1  ;;  %v9608_v53 = vpop.permute.xlu1 %9607 }
 0x774   : > { %v18072_v37 = vpop.f32.mrf.mxu0  ;;  %v9616_v8 = vrot.slane %v9608_v53, %v20031_v50  ;;  %v18124_v53 = vcombine.low %v9652_v47, %v9664_v14 }
 0x775   : > { %v18074_v44 = vpop.f32.mrf.mxu1  ;;  %v9596_v52 = vpop.permute.xlu0 %9595 }
 0x776   : > { %v18076_v10 = vpop.f32.mrf.mxu0 }
 0x777   : > { %v18078_v49 = vpop.f32.mrf.mxu1  ;;  %8971 = vmatmul.mubr.bf16.gmra.mxu0 %v11841_v54  ;;  %v9584_v35 = vpop.permute.xlu1 %9583 }
 0x778   : > { %v18083_v13 = vpop.f32.mrf.mxu0  ;;  %8980 = vmatprep.mubr.bf16.mxu0 %v11842_v45  ;;  %v9592_v41 = vrot.slane %v9584_v35, %v20031_v50 }
 0x779   : > { %v18088_v33 = vpop.f32.mrf.mxu1  ;;  %v9572_v27 = vpop.permute.xlu0 %9571 }
 0x77a   : > { %v18090_v9 = vpop.f32.mrf.mxu0  ;;  %v9580_v48 = vrot.slane %v9572_v27, %v20031_v50 }
 0x77b   : > { %v18092_v12 = vpop.f32.mrf.mxu1  ;;  %v9560_v46 = vpop.permute.xlu1 %9559 }
 0x77c   : > { %v8638_v3 = vpop.f32.mrf.mxu0  ;;  %v18137_v14 = vcombine.low %v9580_v48, %v9592_v41 }
 0x77d   : > { %v18094_v28 = vpop.f32.mrf.mxu1 }
 0x77e   : > { %v8640_v54 = vpop.f32.mrf.mxu0 }
 0x77f   : > { %v18096_v2 = vpop.f32.mrf.mxu1  ;;  %8981 = vmatmul.mubr.bf16.gmra.mxu0 %v11843_v26  ;;  %v9628_v26 = vrot.slane %v9620_v0, %v20031_v50  ;;  %v9171_v27 = vpack.c.bf16 %v8640_v54, %v18090_v9  ;;  %v9163_v54 = vpack.c.bf16 %v18076_v10, %v18068_v11  ;;  %v11847_v11 = vld [vmem:[%s18891_s5 + $0x40] ss:$8 sps:$4 sm:$0xff]  }
 0x780   : > { %v8642_v45 = vpop.f32.mrf.mxu0  ;;  %8990 = vmatprep.mubr.bf16.mxu0 %v11844_v56  ;;  %v9604_v56 = vrot.slane %v9596_v52, %v20031_v50 }
 0x781   : > { %v18104_v58 = vpop.f32.mrf.mxu1  ;;  %v9172_v15 = vpack.c.bf16 %v8642_v45, %v8638_v3  ;;  %v9164_v3 = vpack.c.bf16 %v18083_v13, %v18072_v37  ;;  %v9811_v48 = vadd.bf16 %v17811_v19, %v9171_v27 }
 0x782   : > { %v8646_v7 = vpop.f32.mrf.mxu0  ;;  %v18132_v43 = vcombine.low %v9604_v56, %v9616_v8  ;;  %v9156_v8 = vpack.c.bf16 %v18061_v42, %v18048_v31 }
 0x783   : > { %v18106_v6 = vpop.f32.mrf.mxu1  ;;  %v9812_v13 = vadd.bf16 %v17811_v19, %v9172_v15  ;;  %v9804_v15 = vadd.bf16 %v17813_v29, %v9164_v3 }
 0x784   : > { %v8648_v36 = vpop.f32.mrf.mxu0  ;;  %v9796_v27 = vadd.bf16 %v17818_v40, %v9156_v8 }
 0x785   : > { %v8529_v55 = vpop.f32.mrf.mxu1  ;;  %v9940_v10 = vmax.bf16 %v19330_v23, %v9812_v13  ;;  %v9939_v13 = vmax.bf16 %v19330_v23, %v9811_v48 }
 0x786   : > { %v8650_v1 = vpop.f32.mrf.mxu0  ;;  %v9234_v9 = vpack.c.bf16 %v8529_v55, %v18104_v58 }
 0x787   : > { %v8533_v39 = vpop.f32.mrf.mxu1  ;;  %v9179_v57 = vpack.c.bf16 %v8650_v1, %v8646_v7  ;;  %8991 = vmatmul.mubr.bf16.gmra.mxu0 %v11845_v18  ;;  %v18126_v7 = vcombine.low %v9628_v26, %v9640_v22  ;;  %v9548_v18 = vpop.permute.xlu0 %9547  ;;  %v9568_v22 = vrot.slane %v9560_v46, %v20031_v50  ;;  %v9233_v46 = vpack.c.bf16 %v18106_v6, %v18096_v2 }
 0x788   : > { %v8652_v0 = vpop.f32.mrf.mxu0  ;;  %9000 = vmatprep.mubr.bf16.mxu0 %v11846_v32  ;;  %v9556_v32 = vrot.slane %v9548_v18, %v20031_v50  ;;  %v9226_v2 = vpack.c.bf16 %v18094_v28, %v18088_v33  ;;  %v9148_v18 = vpack.c.bf16 %v18032_v24, %v18001_v4  ;;  %v9155_v28 = vpack.c.bf16 %v18053_v38, %v18039_v16 }
 0x789   : > { %v8535_v52 = vpop.f32.mrf.mxu1  ;;  %v9180_v1 = vpack.c.bf16 %v8652_v0, %v8648_v36  ;;  %v9819_v35 = vadd.bf16 %v17808_v63, %v9179_v57  ;;  %v9874_v6 = vadd.bf16 %v18126_v7, %v9234_v9  ;;  %v9536_v9 = vpop.permute.xlu1 %9535  ;;  %v9225_v4 = vpack.c.bf16 %v18092_v12, %v18078_v49 }
 0x78a   : > { %v18130_v45 = vpop.f32.mrf.mxu0  ;;  %v9873_v24 = vadd.bf16 %v18126_v7, %v9233_v46  ;;  %v9932_v38 = vmax.bf16 %v19330_v23, %v9804_v15  ;;  %v9866_v8 = vadd.bf16 %v18132_v43, %v9226_v2  ;;  %v9140_v49 = vpack.c.bf16 %v17969_v5, %v17940_v25  ;;  %v20100_v2 = vld [vmem:[#allocation91_spill] sm:$0xff] }
 0x78b   : > { %v9820_v36 = vadd.bf16 %v17808_v63, %v9180_v1  ;;  %v8537_v47 = vpop.f32.mrf.mxu1  ;;  %v9947_v58 = vmax.bf16 %v19330_v23, %v9819_v35  ;;  %v18162_v41 = vpop.permute.xlu0 %9523  ;;  %v9803_v35 = vadd.bf16 %v17813_v29, %v9163_v54  ;;  %v9147_v12 = vpack.c.bf16 %v18017_v17, %v17989_v60  ;;  %v11849_v60 = vld [vmem:[%s18891_s5 + $0x50] ss:$8 sps:$4 sm:$0xff]  }
 0x78c   : > { %v9241_v37 = vpack.c.bf16 %v8537_v47, %v8533_v39  ;;  %v18141_v57 = vpop.f32.mrf.mxu0  ;;  %v9532_v1 = vrot.slane %v18162_v41, %v20031_v50  ;;  %v9217_v15 = vpack.c.bf16 %v18070_v30, %v18056_v51  ;;  %v10001_v25 = vmax.bf16 %v19330_v23, %v9873_v24  ;;  %v20105_v24 = vld [vmem:[#allocation72_spill] sm:$0xff] }
 0x78d   : > { %v8539_v26 = vpop.f32.mrf.mxu1  ;;  %v9948_v56 = vmax.bf16 %v19330_v23, %v9820_v36  ;;  %v9931_v48 = vmax.bf16 %v19330_v23, %v9803_v35  ;;  %v9924_v17 = vmax.bf16 %v19330_v23, %v9796_v27  ;;  %v9210_v51 = vpack.c.bf16 %v18051_v59, %v18036_v20 }
 0x78e   : > { %v9242_v55 = vpack.c.bf16 %v8539_v26, %v8535_v52  ;;  %v18153_v39 = vpop.f32.mrf.mxu0  ;;  %v9881_v31 = vadd.bf16 %v18124_v53, %v9241_v37  ;;  %v11848_v52 = vld [vmem:[%s18891_s5 + $0x54] ss:$8 sps:$4 sm:$0xff]   ;;  %v9218_v37 = vpack.c.bf16 %v18074_v44, %v18066_v21  ;;  %v10002_v26 = vmax.bf16 %v19330_v23, %v9874_v6 }
 0x78f   : > { %9001 = vmatmul.mubr.bf16.gmra.mxu0 %v11847_v11  ;;  %10072 = vmatprep.subr.bf16.mxu0 %v9948_v56  ;;  %v18198_v56 = vcombine.low %v9556_v32, %v9568_v22  ;;  %v9788_v44 = vadd.bf16 %v17856_v61, %v9148_v18  ;;  %v9795_v21 = vadd.bf16 %v17818_v40, %v9155_v28  ;;  %v9512_v11 = vpop.permute.xlu1 %9511  ;;  %v9500_v59 = vpop.permute.xlu0 %9499  ;;  %v20101_v6 = vld [vmem:[#allocation100_spill] sm:$0xff] }
 0x790   : > { %v9882_v0 = vadd.bf16 %v18124_v53, %v9242_v55  ;;  %v18168_v3 = vpop.f32.mrf.mxu0  ;;  %10073 = vmatpush1.bf16.msra.mxu0 %v9947_v58  ;;  %9010 = vmatprep.mubr.bf16.mxu0 %v11848_v52  ;;  %v10009_v16 = vmax.bf16 %v19330_v23, %v9881_v31  ;;  %v9865_v22 = vadd.bf16 %v18132_v43, %v9225_v4  ;;  %v11850_v55 = vld [vmem:[%s18891_s5 + $0x64] ss:$8 sps:$4 sm:$0xff]   ;;  %v20102_v52 = vld [vmem:[#allocation68_spill] sm:$0xff] }
 0x791   : > { %10074 = vmatprep.subr.bf16.mxu0 %v9940_v10  ;;  %v9858_v30 = vadd.bf16 %v18137_v14, %v9218_v37  ;;  %v9994_v58 = vmax.bf16 %v19330_v23, %v9866_v8  ;;  %v9544_v31 = vrot.slane %v9536_v9, %v20031_v50  ;;  %v9132_v10 = vpack.c.bf16 %v17911_v62, %v17882_v34  ;;  %v20104_v34 = vld [vmem:[#allocation110_spill] sm:$0xff] }
 0x792   : > { %v18184_v36 = vpop.f32.mrf.mxu0  ;;  %v10010_v47 = vmax.bf16 %v19330_v23, %v9882_v0  ;;  %v9139_v0 = vpack.c.bf16 %v20101_v6, %v20100_v2  ;;  %v9780_v18 = vadd.bf16 %v20102_v52, %v9140_v49  ;;  %v9787_v28 = vadd.bf16 %v17856_v61, %v9147_v12 }
 0x793   : > { %v9923_v27 = vmax.bf16 %v19330_v23, %v9795_v21  ;;  %v9993_v9 = vmax.bf16 %v19330_v23, %v9865_v22  ;;  %v9916_v4 = vmax.bf16 %v19330_v23, %v9788_v44  ;;  %v9850_v37 = vadd.bf16 %v18198_v56, %v9210_v51  ;;  %v20107_v44 = vld [vmem:[#allocation60_spill] sm:$0xff]  ;;  %v20109_v22 = vld [vmem:[#allocation58_spill] sm:$0xff]  ;;  %v9488_v41 = vpop.permute.xlu1 %9487 }
 0x794   : > { %10047 = vmatprep.subr.bf16.mxu1 %v10010_v47  ;;  %v18195_v54 = vpop.f32.mrf.mxu0  ;;  %10075 = vmatpush1.bf16.msra.mxu0 %v9939_v13  ;;  %v20103_v13 = vld [vmem:[#allocation93_spill] sm:$0xff]  ;;  %v9857_v47 = vadd.bf16 %v18137_v14, %v9217_v15  ;;  %v18254_v49 = vcombine.low %v9532_v1, %v9544_v31  ;;  %v9508_v12 = vrot.slane %v9500_v59, %v20031_v50  ;;  %v20110_v1 = vld [vmem:[#allocation88_spill] sm:$0xff]  ;;  %v9476_v59 = vpop.permute.xlu0 %9475 }
 0x795   : > { %10048 = vmatpush2.bf16.msra.mxu1 %v10009_v16  ;;  %10076 = vmatprep.subr.bf16.mxu0 %v9932_v38  ;;  %v9209_v62 = vpack.c.bf16 %v20104_v34, %v20103_v13  ;;  %v20106_v16 = vld [vmem:[#allocation62_spill] sm:$0xff]  ;;  %v9520_v21 = vrot.slane %v9512_v11, %v20031_v50  ;;  %v20108_v15 = vld [vmem:[#allocation125_spill] sm:$0xff]  ;;  %v20112_v34 = vld [vmem:[#allocation95_spill] sm:$0xff] }
 0x796   : > { %10049 = vmatprep.subr.bf16.mxu1 %v10002_v26  ;;  %v18209_v32 = vpop.f32.mrf.mxu0  ;;  %v9202_v38 = vpack.c.bf16 %v20106_v16, %v20105_v24  ;;  %v9986_v26 = vmax.bf16 %v19330_v23, %v9858_v30  ;;  %v20111_v30 = vld [vmem:[#allocation61_spill] sm:$0xff]  ;;  %v9985_v31 = vmax.bf16 %v19330_v23, %v9857_v47  ;;  %v11851_v11 = vld [vmem:[%s18891_s5 + $0x60] ss:$8 sps:$4 sm:$0xff]  }
 0x797   : > { %9011 = vmatmul.mubr.bf16.gmra.mxu0 %v11849_v60  ;;  %v9779_v60 = vadd.bf16 %v20102_v52, %v9139_v0  ;;  %v9978_v0 = vmax.bf16 %v19330_v23, %v9850_v37  ;;  %v18281_v13 = vcombine.low %v9508_v12, %v9520_v21  ;;  %v20115_v16 = vld [vmem:[#allocation94_spill] sm:$0xff] }
 0x798   : > { %v18222_v46 = vpop.f32.mrf.mxu0  ;;  %10077 = vmatpush1.bf16.msra.mxu0 %v9931_v48  ;;  %9020 = vmatprep.mubr.bf16.mxu0 %v11850_v55  ;;  %v9124_v48 = vpack.c.bf16 %v20108_v15, %v20107_v44  ;;  %v9849_v55 = vadd.bf16 %v18198_v56, %v9209_v62  ;;  %v9842_v2 = vadd.bf16 %v18254_v49, %v9202_v38  ;;  %v20113_v62 = vld [vmem:[#allocation133_spill] sm:$0xff]  ;;  %v20116_v21 = vld [vmem:[#allocation82_spill] sm:$0xff] }
 0x799   : > { %10050 = vmatpush2.bf16.msra.mxu1 %v10001_v25  ;;  %10078 = vmatprep.subr.bf16.mxu0 %v9924_v17  ;;  %v9772_v25 = vadd.bf16 %v20109_v22, %v9132_v10  ;;  %v9915_v17 = vmax.bf16 %v19330_v23, %v9787_v28  ;;  %v9908_v10 = vmax.bf16 %v19330_v23, %v9780_v18  ;;  %v11852_v28 = vld [vmem:[%s18891_s5 + $0x74] ss:$8 sps:$4 sm:$0xff]  }
 0x79a   : > { %10051 = vmatprep.subr.bf16.mxu1 %v9994_v58  ;;  %v18238_v35 = vpop.f32.mrf.mxu0  ;;  %v9201_v58 = vpack.c.bf16 %v20111_v30, %v20110_v1  ;;  %v9496_v18 = vrot.slane %v9488_v41, %v20031_v50  ;;  %v20114_v47 = vpack.c.bf16 %v20112_v34, %v20113_v62  ;;  %v9764_v38 = vadd.bf16 %v20115_v16, %v9124_v48  ;;  %v20119_v48 = vld [vmem:[#allocation113_spill] sm:$0xff] }
 0x79b   : > { %v9900_v12 = vmax.bf16 %v19330_v23, %v9772_v25  ;;  %v20120_v1 = vld [vmem:[#allocation65_spill] sm:$0xff] }
 0x79c   : > { %v18248_v8 = vpop.f32.mrf.mxu0  ;;  %10079 = vmatpush1.bf16.msra.mxu0 %v9923_v27  ;;  %v9484_v27 = vrot.slane %v9476_v59, %v20031_v50  ;;  %v9841_v37 = vadd.bf16 %v18254_v49, %v9201_v58  ;;  %v20117_v50 = vld [vmem:[#allocation74_spill] sm:$0xff]  ;;  %v20121_v30 = vpack.c.bf16 %v20119_v48, %v20120_v1 }
 0x79d   : > { %10052 = vmatpush2.bf16.msra.mxu1 %v9993_v9  ;;  %10080 = vmatprep.subr.bf16.mxu0 %v9916_v4  ;;  %v9771_v9 = vadd.bf16 %v20109_v22, %v20114_v47  ;;  %v9907_v4 = vmax.bf16 %v19330_v23, %v9779_v60  ;;  %v20118_v44 = vpack.c.bf16 %v20116_v21, %v20117_v50 }
 0x79e   : > { %10053 = vmatprep.subr.bf16.mxu1 %v9986_v26  ;;  %v18263_v51 = vpop.f32.mrf.mxu0  ;;  %v9977_v26 = vmax.bf16 %v19330_v23, %v9849_v55  ;;  %v9970_v60 = vmax.bf16 %v19330_v23, %v9842_v2  ;;  %v18302_v41 = vcombine.low %v9484_v27, %v9496_v18  ;;  %v9763_v58 = vadd.bf16 %v20115_v16, %v20121_v30  ;;  %v20125_v27 = vld [vmem:[#allocation99_spill] sm:$0xff] }
 0x79f   : > { %9021 = vmatmul.mubr.bf16.gmra.mxu0 %v11851_v11  ;;  %v9834_v15 = vadd.bf16 %v18281_v13, %v20118_v44  ;;  %v9899_v25 = vmax.bf16 %v19330_v23, %v9771_v9  ;;  %v20123_v11 = vld [vmem:[#allocation87_spill] sm:$0xff]  ;;  %v9969_v2 = vmax.bf16 %v19330_v23, %v9841_v37 }
 0x7a0   : > { %v18274_v6 = vpop.f32.mrf.mxu0  ;;  %10081 = vmatpush1.bf16.msra.mxu0 %v9915_v17  ;;  %9030 = vmatprep.mubr.bf16.mxu0 %v11852_v28  ;;  %v9892_v28 = vmax.bf16 %v19330_v23, %v9764_v38  ;;  %v20126_v18 = vld [vmem:[#allocation127_spill] sm:$0xff]  ;;  %v9891_v37 = vmax.bf16 %v19330_v23, %v9763_v58 }
 0x7a1   : > { %10054 = vmatpush2.bf16.msra.mxu1 %v9985_v31  ;;  %10082 = vmatprep.subr.bf16.mxu0 %v9908_v10  ;;  %v20122_v31 = vld [vmem:[#allocation86_spill] sm:$0xff]  ;;  %v20127_v34 = vpack.c.bf16 %v20125_v27, %v20126_v18  ;;  %v9962_v9 = vmax.bf16 %v19330_v23, %v9834_v15 }
 0x7a2   : > { %10055 = vmatprep.subr.bf16.mxu1 %v9978_v0  ;;  %v18289_v24 = vpop.f32.mrf.mxu0  ;;  %v20124_v10 = vpack.c.bf16 %v20122_v31, %v20123_v11  ;;  %v11853_v0 = vld [vmem:[%s18891_s5 + $0x70] ss:$8 sps:$4 sm:$0xff]   ;;  %v11855_v58 = vld [vmem:[%s18891_s5 + $0x80] ss:$8 sps:$4 sm:$0xff]  }
 0x7a3   : > { %v9826_v62 = vadd.bf16 %v18302_v41, %v20127_v34  ;;  %v20132_v31 = vld [vmem:[#allocation81_spill] sm:$0xff]  ;;  %v20136_v34 = vld [vmem:[#allocation75_spill] sm:$0xff] }
 0x7a4   : > { %v18299_v17 = vpop.f32.mrf.mxu0  ;;  %10083 = vmatpush1.bf16.msra.mxu0 %v9907_v4  ;;  %v9833_v59 = vadd.bf16 %v18281_v13, %v20124_v10  ;;  %v11854_v4 = vld [vmem:[%s18891_s5 + $0x84] ss:$8 sps:$4 sm:$0xff]   ;;  %v18353_v11 = vcombine.low %v20132_v31, %v20132_v31  ;;  %v11856_v10 = vld [vmem:[%s18891_s5 + $0x94] ss:$8 sps:$4 sm:$0xff]  }
 0x7a5   : > { %10056 = vmatpush2.bf16.msra.mxu1 %v9977_v26  ;;  %10084 = vmatprep.subr.bf16.mxu0 %v9900_v12  ;;  %v20128_v26 = vld [vmem:[#allocation90_spill] sm:$0xff]  ;;  %v20129_v12 = vld [vmem:[#allocation115_spill] sm:$0xff] }
 0x7a6   : > { %10057 = vmatprep.subr.bf16.mxu1 %v9970_v60  ;;  %v18309_v55 = vpop.f32.mrf.mxu0  ;;  %v20130_v21 = vpack.c.bf16 %v20128_v26, %v20129_v12  ;;  %v9961_v44 = vmax.bf16 %v19330_v23, %v9833_v59  ;;  %v9954_v60 = vmax.bf16 %v19330_v23, %v9826_v62  ;;  %v11858_v12 = vld [vmem:[%s18891_s5 + $0xa4] ss:$8 sps:$4 sm:$0xff]   ;;  %v11860_v62 = vld [vmem:[%s18891_s5 + $0xb4] ss:$8 sps:$4 sm:$0xff]  }
 0x7a7   : > { %9031 = vmatmul.mubr.bf16.gmra.mxu0 %v11853_v0 }
 0x7a8   : > { %v18324_v47 = vpop.f32.mrf.mxu0  ;;  %10085 = vmatpush1.bf16.msra.mxu0 %v9899_v25  ;;  %9040 = vmatprep.mubr.bf16.mxu0 %v11854_v4  ;;  %v9825_v50 = vadd.bf16 %v18302_v41, %v20130_v21 }
 0x7a9   : > { %10058 = vmatpush2.bf16.msra.mxu1 %v9969_v2  ;;  %10086 = vmatprep.subr.bf16.mxu0 %v9892_v28 }
 0x7aa   : > { %10059 = vmatprep.subr.bf16.mxu1 %v9962_v9  ;;  %v18331_v38 = vpop.f32.mrf.mxu0  ;;  %v9953_v1 = vmax.bf16 %v19330_v23, %v9825_v50 }
 0x7ac   : > { %v18338_v15 = vpop.f32.mrf.mxu0  ;;  %10087 = vmatpush1.bf16.msra.mxu0 %v9891_v37  ;;  %v11857_v37 = vld [vmem:[%s18891_s5 + $0x90] ss:$8 sps:$4 sm:$0xff]  }
 0x7ad   : > { %10060 = vmatpush2.bf16.msra.mxu1 %v9961_v44 }
 0x7ae   : > { %10061 = vmatprep.subr.bf16.mxu1 %v9954_v60  ;;  %v18341_v48 = vpop.f32.mrf.mxu0 }
 0x7af   : > { %v18344_v30 = vpop.f32.mrf.mxu1  ;;  %9041 = vmatmul.mubr.bf16.gmra.mxu0 %v11855_v58 }
 0x7b0   : > { %20131 = vst [vmem:[#allocation96_spill] sm:$0xff] %v18344_v30  ;;  %v18349_v25 = vpop.f32.mrf.mxu0  ;;  %9050 = vmatprep.mubr.bf16.mxu0 %v11856_v10 }
 0x7b1   : > { %10062 = vmatpush2.bf16.msra.mxu1 %v9953_v1  ;;  %v18358_v59 = vpop.f32.mrf.mxu1 }
 0x7b2   : > { %20133 = vst [vmem:[#allocation92_spill] sm:$0xff] %v18358_v59  ;;  %v18360_v2 = vpop.f32.mrf.mxu0 }
 0x7b3   : > { %v18362_v0 = vpop.f32.mrf.mxu1 }
 0x7b4   : > { %20134 = vst [vmem:[#allocation116_spill] sm:$0xff] %v18362_v0  ;;  %10064 = vmatmul.mubr.bf16.vlgmr.msra.gmra.mxu1 %v18353_v11  ;;  %v8708_v27 = vpop.f32.mrf.mxu0 }
 0x7b5   : > { %v18367_v18 = vpop.f32.mrf.mxu1  ;;  %10145 = vmatprep.mubr.bf16.mxu1 %v20136_v34 }
 0x7b6   : > { %20135 = vst [vmem:[#allocation120_spill] sm:$0xff] %v18367_v18  ;;  %v8710_v9 = vpop.f32.mrf.mxu0 }
 0x7b7   : > { %v18372_v4 = vpop.f32.mrf.mxu1  ;;  %9051 = vmatmul.mubr.bf16.gmra.mxu0 %v11857_v37 }
 0x7b8   : > { %20137 = vst [vmem:[#allocation70_spill] sm:$0xff] %v18372_v4  ;;  %v8712_v26 = vpop.f32.mrf.mxu0  ;;  %9060 = vmatprep.mubr.bf16.mxu0 %v11858_v12  ;;  %v11859_v12 = vld [vmem:[%s18891_s5 + $0xa0] ss:$8 sps:$4 sm:$0xff]  }
 0x7b9   : > { %v18380_v21 = vpop.f32.mrf.mxu1 }
 0x7ba   : > { %20138 = vst [vmem:[#allocation84_spill] sm:$0xff] %v18380_v21  ;;  %v8716_v50 = vpop.f32.mrf.mxu0 }
 0x7bb   : > { %v18382_v44 = vpop.f32.mrf.mxu1 }
 0x7bc   : > { %20139 = vst [vmem:[#allocation128_spill] sm:$0xff] %v18382_v44  ;;  %v8718_v1 = vpop.f32.mrf.mxu0 }
 0x7bd   : > { %v18386_v58 = vpop.f32.mrf.mxu1 }
 0x7be   : > { %20140 = vst [vmem:[#allocation132_spill] sm:$0xff] %v18386_v58  ;;  %v8720_v10 = vpop.f32.mrf.mxu0  ;;  %v9227_v58 = vpack.c.bf16 %v8710_v9, %v18360_v2  ;;  %v11864_v2 = vld [vmem:[%s18891_s5 + $0xd4] ss:$8 sps:$4 sm:$0xff]  }
 0x7bf   : > { %v18390_v37 = vpop.f32.mrf.mxu1  ;;  %9061 = vmatmul.mubr.bf16.gmra.mxu0 %v11859_v12  ;;  %v11861_v12 = vld [vmem:[%s18891_s5 + $0xb0] ss:$8 sps:$4 sm:$0xff]   ;;  %v9235_v44 = vpack.c.bf16 %v8720_v10, %v8716_v50 }
 0x7c0   : > { %v8722_v28 = vpop.f32.mrf.mxu0  ;;  %9070 = vmatprep.mubr.bf16.mxu0 %v11860_v62  ;;  %v11862_v62 = vld [vmem:[%s18891_s5 + $0xc4] ss:$8 sps:$4 sm:$0xff]  }
 0x7c1   : > { %v18398_v60 = vpop.f32.mrf.mxu1  ;;  %v9236_v30 = vpack.c.bf16 %v8722_v28, %v8718_v1 }
 0x7c2   : > { %v8726_v42 = vpop.f32.mrf.mxu0 }
 0x7c3   : > { %v18400_v33 = vpop.f32.mrf.mxu1 }
 0x7c4   : > { %v8728_v31 = vpop.f32.mrf.mxu0 }
 0x7c5   : > { %v18402_v5 = vpop.f32.mrf.mxu1 }
 0x7c6   : > { %v8730_v20 = vpop.f32.mrf.mxu0 }
 0x7c7   : > { %v9243_v0 = vpack.c.bf16 %v8730_v20, %v8726_v42  ;;  %v18404_v16 = vpop.f32.mrf.mxu1  ;;  %9071 = vmatmul.mubr.bf16.gmra.mxu0 %v11861_v12  ;;  %v9228_v42 = vpack.c.bf16 %v8712_v26, %v8708_v27  ;;  %v9876_v20 = vadd.bf16 %v18126_v7, %v9236_v30 }
 0x7c8   : > { %v8732_v59 = vpop.f32.mrf.mxu0  ;;  %9080 = vmatprep.mubr.bf16.mxu0 %v11862_v62 }
 0x7c9   : > { %v9244_v18 = vpack.c.bf16 %v8732_v59, %v8728_v31  ;;  %v18412_v4 = vpop.f32.mrf.mxu1  ;;  %v9883_v28 = vadd.bf16 %v18124_v53, %v9243_v0  ;;  %v9875_v59 = vadd.bf16 %v18126_v7, %v9235_v44  ;;  %v9220_v0 = vpack.c.bf16 %v18349_v25, %v18338_v15 }
 0x7ca   : > { %v9868_v27 = vadd.bf16 %v18132_v43, %v9228_v42  ;;  %v10004_v26 = vmax.bf16 %v19330_v23, %v9876_v20  ;;  %v9219_v15 = vpack.c.bf16 %v18341_v48, %v18331_v38  ;;  %v9867_v25 = vadd.bf16 %v18132_v43, %v9227_v58  ;;  %v11865_v20 = vld [vmem:[%s18891_s5 + $0xd0] ss:$8 sps:$4 sm:$0xff]  }
 0x7cb   : > { %v9884_v1 = vadd.bf16 %v18124_v53, %v9244_v18  ;;  %v18417_v22 = vpop.f32.mrf.mxu1  ;;  %v10011_v31 = vmax.bf16 %v19330_v23, %v9883_v28  ;;  %v11863_v18 = vld [vmem:[%s18891_s5 + $0xc0] ss:$8 sps:$4 sm:$0xff]   ;;  %v10003_v50 = vmax.bf16 %v19330_v23, %v9875_v59  ;;  %v9860_v44 = vadd.bf16 %v18137_v14, %v9220_v0 }
 0x7cc   : > { %v9996_v62 = vmax.bf16 %v19330_v23, %v9868_v27  ;;  %v9211_v38 = vpack.c.bf16 %v18309_v55, %v18289_v24  ;;  %v9859_v48 = vadd.bf16 %v18137_v14, %v9219_v15  ;;  %v9995_v58 = vmax.bf16 %v19330_v23, %v9867_v25  ;;  %v11866_v24 = vld [vmem:[%s18891_s5 + $0xe4] ss:$8 sps:$4 sm:$0xff]   ;;  %v11867_v25 = vld [vmem:[%s18891_s5 + $0xe0] ss:$8 sps:$4 sm:$0xff]  }
 0x7cd   : > { %v18419_v12 = vpop.f32.mrf.mxu1  ;;  %v10012_v21 = vmax.bf16 %v19330_v23, %v9884_v1  ;;  %v9988_v1 = vmax.bf16 %v19330_v23, %v9860_v44 }
 0x7ce   : > { %v9987_v59 = vmax.bf16 %v19330_v23, %v9859_v48 }
 0x7cf   : > { %v18428_v30 = vpop.f32.mrf.mxu1  ;;  %9081 = vmatmul.mubr.bf16.gmra.mxu0 %v11863_v18  ;;  %10088 = vmatprep.subr.bf16.mxu0 %v10012_v21  ;;  %v9212_v21 = vpack.c.bf16 %v18324_v47, %v18299_v17  ;;  %v9204_v17 = vpack.c.bf16 %v18274_v6, %v18248_v8  ;;  %v9203_v8 = vpack.c.bf16 %v18263_v51, %v18238_v35 }
 0x7d0   : > { %10089 = vmatpush2.bf16.msra.mxu0 %v10011_v31  ;;  %9090 = vmatprep.mubr.bf16.mxu0 %v11864_v2  ;;  %v9851_v6 = vadd.bf16 %v18198_v56, %v9211_v38  ;;  %v20141_v35 = vpack.c.bf16 %v18222_v46, %v18195_v54  ;;  %v20142_v54 = vpack.c.bf16 %v18209_v32, %v18184_v36 }
 0x7d1   : > { %v18437_v9 = vpop.f32.mrf.mxu1  ;;  %10090 = vmatprep.subr.bf16.mxu0 %v10004_v26  ;;  %v9852_v47 = vadd.bf16 %v18198_v56, %v9212_v21  ;;  %v9844_v31 = vadd.bf16 %v18254_v49, %v9204_v17  ;;  %v9843_v26 = vadd.bf16 %v18254_v49, %v9203_v8  ;;  %v11868_v21 = vld [vmem:[%s18891_s5 + $0xf4] ss:$8 sps:$4 sm:$0xff]   ;;  %v20143_v38 = vpack.c.bf16 %v18168_v3, %v18141_v57  ;;  %v11869_v57 = vld [vmem:[%s18891_s5 + $0xf0] ss:$8 sps:$4 sm:$0xff]  }
 0x7d2   : > { %v9979_v2 = vmax.bf16 %v19330_v23, %v9851_v6  ;;  %v9836_v51 = vadd.bf16 %v18281_v13, %v20141_v35  ;;  %v9835_v46 = vadd.bf16 %v18281_v13, %v20142_v54 }
 0x7d3   : > { %v18446_v10 = vpop.f32.mrf.mxu1  ;;  %v9980_v27 = vmax.bf16 %v19330_v23, %v9852_v47  ;;  %v9828_v48 = vadd.bf16 %v18302_v41, %v20143_v38 }
 0x7d4   : > { %10091 = vmatpush2.bf16.msra.mxu0 %v10003_v50  ;;  %v9972_v50 = vmax.bf16 %v19330_v23, %v9844_v31  ;;  %v9964_v17 = vmax.bf16 %v19330_v23, %v9836_v51  ;;  %v9963_v32 = vmax.bf16 %v19330_v23, %v9835_v46 }
 0x7d5   : > { %v18449_v28 = vpop.f32.mrf.mxu1  ;;  %10092 = vmatprep.subr.bf16.mxu0 %v9996_v62  ;;  %v9971_v62 = vmax.bf16 %v19330_v23, %v9843_v26  ;;  %v9956_v3 = vmax.bf16 %v19330_v23, %v9828_v48 }
 0x7d7   : > { %v18458_v42 = vpop.f32.mrf.mxu1  ;;  %9091 = vmatmul.mubr.bf16.gmra.mxu0 %v11865_v20  ;;  %v20144_v20 = vpack.c.bf16 %v18153_v39, %v18130_v45 }
 0x7d8   : > { %10093 = vmatpush2.bf16.msra.mxu0 %v9995_v58  ;;  %9100 = vmatprep.mubr.bf16.mxu0 %v11866_v24 }
 0x7d9   : > { %v18467_v55 = vpop.f32.mrf.mxu1  ;;  %10094 = vmatprep.subr.bf16.mxu0 %v9988_v1  ;;  %v9827_v36 = vadd.bf16 %v18302_v41, %v20144_v20 }
 0x7db   : > { %v18474_v0 = vpop.f32.mrf.mxu1  ;;  %v9955_v8 = vmax.bf16 %v19330_v23, %v9827_v36 }
 0x7dc   : > { %10095 = vmatpush2.bf16.msra.mxu0 %v9987_v59 }
 0x7dd   : > { %v8825_v18 = vpop.f32.mrf.mxu1  ;;  %10096 = vmatprep.subr.bf16.mxu0 %v9980_v27 }
 0x7de   : > { %v9166_v35 = vpack.c.bf16 %v8825_v18, %v18467_v55  ;;  %v9158_v55 = vpack.c.bf16 %v18449_v28, %v18437_v9 }
 0x7df   : > { %v8829_v15 = vpop.f32.mrf.mxu1  ;;  %9101 = vmatmul.mubr.bf16.gmra.mxu0 %v11867_v25 }
 0x7e0   : > { %10097 = vmatpush2.bf16.msra.mxu0 %v9979_v2  ;;  %9110 = vmatprep.mubr.bf16.mxu0 %v11868_v21  ;;  %v9806_v18 = vadd.bf16 %v17813_v29, %v9166_v35 }
 0x7e1   : > { %v8831_v44 = vpop.f32.mrf.mxu1  ;;  %10098 = vmatprep.subr.bf16.mxu0 %v9972_v50 }
 0x7e3   : > { %v8833_v58 = vpop.f32.mrf.mxu1 }
 0x7e4   : > { %10099 = vmatpush2.bf16.msra.mxu0 %v9971_v62  ;;  %v9173_v27 = vpack.c.bf16 %v8833_v58, %v8829_v15  ;;  %v9165_v15 = vpack.c.bf16 %v18474_v0, %v18458_v42  ;;  %v9157_v0 = vpack.c.bf16 %v18446_v10, %v18428_v30  ;;  %v9150_v58 = vpack.c.bf16 %v18419_v12, %v18412_v4 }
 0x7e5   : > { %v8835_v47 = vpop.f32.mrf.mxu1  ;;  %10100 = vmatprep.subr.bf16.mxu0 %v9964_v17  ;;  %v9798_v17 = vadd.bf16 %v17818_v40, %v9158_v55  ;;  %v9149_v30 = vpack.c.bf16 %v18417_v22, %v18404_v16  ;;  %v9142_v4 = vpack.c.bf16 %v18402_v5, %v18398_v60  ;;  %v9141_v16 = vpack.c.bf16 %v18400_v33, %v18390_v37  ;;  %v20145_v33 = vld [vmem:[#allocation132_spill] sm:$0xff] }
 0x7e6   : > { %v9174_v39 = vpack.c.bf16 %v8835_v47, %v8831_v44  ;;  %v9813_v44 = vadd.bf16 %v17811_v19, %v9173_v27  ;;  %v9805_v9 = vadd.bf16 %v17813_v29, %v9165_v15  ;;  %v9934_v47 = vmax.bf16 %v19330_v23, %v9806_v18  ;;  %v20146_v37 = vld [vmem:[#allocation84_spill] sm:$0xff]  ;;  %v20150_v15 = vld [vmem:[#allocation70_spill] sm:$0xff] }
 0x7e7   : > { %v8839_v1 = vpop.f32.mrf.mxu1  ;;  %9111 = vmatmul.mubr.bf16.gmra.mxu0 %v11869_v57  ;;  %v9797_v10 = vadd.bf16 %v17818_v40, %v9157_v0  ;;  %v9790_v12 = vadd.bf16 %v17856_v61, %v9150_v58  ;;  %v9926_v57 = vmax.bf16 %v19330_v23, %v9798_v17  ;;  %v20147_v27 = vpack.c.bf16 %v20145_v33, %v20146_v37  ;;  %v20153_v0 = vld [vmem:[#allocation92_spill] sm:$0xff] }
 0x7e8   : > { %10101 = vmatpush2.bf16.msra.mxu0 %v9963_v32  ;;  %10104 = vmatprep.mubr.bf16.mxu0 %v20136_v34  ;;  %v9814_v51 = vadd.bf16 %v17811_v19, %v9174_v39  ;;  %v9941_v28 = vmax.bf16 %v19330_v23, %v9813_v44  ;;  %v9933_v36 = vmax.bf16 %v19330_v23, %v9805_v9 }
 0x7e9   : > { %v8841_v24 = vpop.f32.mrf.mxu1  ;;  %10102 = vmatprep.subr.bf16.mxu0 %v9956_v3  ;;  %v9925_v5 = vmax.bf16 %v19330_v23, %v9797_v10  ;;  %v20157_v10 = vld [vmem:[#allocation96_spill] sm:$0xff] }
 0x7ea   : > { %v9942_v62 = vmax.bf16 %v19330_v23, %v9814_v51 }
 0x7eb   : > { %v8843_v45 = vpop.f32.mrf.mxu1 }
 0x7ec   : > { %v9181_v6 = vpack.c.bf16 %v8843_v45, %v8839_v1  ;;  %10103 = vmatpush2.bf16.msra.mxu0 %v9955_v8  ;;  %v9782_v8 = vadd.bf16 %v20102_v52, %v9142_v4  ;;  %v9918_v45 = vmax.bf16 %v19330_v23, %v9790_v12 }
 0x7ed   : > { %v8845_v59 = vpop.f32.mrf.mxu1 }
 0x7ee   : > { %v9182_v31 = vpack.c.bf16 %v8845_v59, %v8841_v24  ;;  %v9821_v26 = vadd.bf16 %v17808_v63, %v9181_v6  ;;  %v9789_v24 = vadd.bf16 %v17856_v61, %v9149_v30  ;;  %v9781_v6 = vadd.bf16 %v20102_v52, %v9141_v16  ;;  %v20156_v30 = vld [vmem:[#allocation116_spill] sm:$0xff] }
 0x7ef   : > { %v18512_v2 = vpop.f32.mrf.mxu1  ;;  %10105 = vmatmul.mubr.bf16.vlgmr.msra.gmra.mxu0 %v18353_v11  ;;  %v9910_v51 = vmax.bf16 %v19330_v23, %v9782_v8 }
 0x7f0   : > { %v9822_v25 = vadd.bf16 %v17808_v63, %v9182_v31  ;;  %10186 = vmatprep.mubr.bf16.mxu0 %v20136_v34  ;;  %v9949_v54 = vmax.bf16 %v19330_v23, %v9821_v26  ;;  %v9917_v59 = vmax.bf16 %v19330_v23, %v9789_v24  ;;  %v20148_v26 = vld [vmem:[#allocation58_spill] sm:$0xff]  ;;  %v9909_v55 = vmax.bf16 %v19330_v23, %v9781_v6 }
 0x7f1   : > { %v18519_v50 = vpop.f32.mrf.mxu1  ;;  %v9774_v35 = vadd.bf16 %v20148_v26, %v20147_v27 }
 0x7f2   : > { %v9950_v21 = vmax.bf16 %v19330_v23, %v9822_v25 }
 0x7f3   : > { %v18526_v46 = vpop.f32.mrf.mxu1  ;;  %v9902_v17 = vmax.bf16 %v19330_v23, %v9774_v35 }
 0x7f4   : > { %10113 = vmatprep.subr.bf16.mxu1 %v9950_v21  ;;  %v20149_v21 = vld [vmem:[#allocation128_spill] sm:$0xff] }
 0x7f5   : > { %v18534_v38 = vpop.f32.mrf.mxu1  ;;  %10114 = vmatpush1.bf16.msra.mxu1 %v9949_v54  ;;  %v20151_v44 = vpack.c.bf16 %v20149_v21, %v20150_v15 }
 0x7f6   : > { %10115 = vmatprep.subr.bf16.mxu1 %v9942_v62  ;;  %v20152_v62 = vld [vmem:[#allocation120_spill] sm:$0xff] }
 0x7f7   : > { %v18542_v48 = vpop.f32.mrf.mxu1  ;;  %v9773_v54 = vadd.bf16 %v20148_v26, %v20151_v44  ;;  %v20154_v9 = vpack.c.bf16 %v20152_v62, %v20153_v0 }
 0x7f9   : > { %v18548_v20 = vpop.f32.mrf.mxu1  ;;  %10116 = vmatpush1.bf16.msra.mxu1 %v9941_v28  ;;  %v20155_v28 = vld [vmem:[#allocation94_spill] sm:$0xff]  ;;  %v9901_v12 = vmax.bf16 %v19330_v23, %v9773_v54 }
 0x7fa   : > { %10117 = vmatprep.subr.bf16.mxu1 %v9934_v47  ;;  %v9766_v58 = vadd.bf16 %v20155_v28, %v20154_v9 }
 0x7fb   : > { %v18554_v32 = vpop.f32.mrf.mxu1 }
 0x7fc   : > { %v9197_v1 = vpack.c.bf16 %v18554_v32, %v18542_v48  ;;  %v9894_v16 = vmax.bf16 %v19330_v23, %v9766_v58  ;;  %v20160_v48 = vpack.c.bf16 %v18526_v46, %v18512_v2 }
 0x7fd   : > { %v18562_v3 = vpop.f32.mrf.mxu1  ;;  %10118 = vmatpush1.bf16.msra.mxu1 %v9933_v36  ;;  %v20158_v36 = vpack.c.bf16 %v20156_v30, %v20157_v10 }
 0x7fe   : > { %v9198_v22 = vpack.c.bf16 %v18562_v3, %v18548_v20  ;;  %10119 = vmatprep.subr.bf16.mxu1 %v9926_v57  ;;  %v20159_v20 = vpack.c.bf16 %v18534_v38, %v18519_v50  ;;  %v9829_v32 = vadd.bf16 %v18302_v41, %v20160_v48 }
 0x7ff   : > { %v18570_v60 = vpop.f32.mrf.mxu1  ;;  %v9765_v4 = vadd.bf16 %v20155_v28, %v20158_v36 }
 0x800   : > { %v9830_v3 = vadd.bf16 %v18302_v41, %v20159_v20  ;;  %v9957_v38 = vmax.bf16 %v19330_v23, %v9829_v32 }
 0x801   : > { %v18574_v39 = vpop.f32.mrf.mxu1  ;;  %10120 = vmatpush1.bf16.msra.mxu1 %v9925_v5  ;;  %v9893_v5 = vmax.bf16 %v19330_v23, %v9765_v4 }
 0x802   : > { %10121 = vmatprep.subr.bf16.mxu1 %v9918_v45 }
 0x803   : > { %v18578_v31 = vpop.f32.mrf.mxu1 }
 0x805   : > { %v18585_v25 = vpop.f32.mrf.mxu1  ;;  %10122 = vmatpush1.bf16.msra.mxu1 %v9917_v59 }
 0x806   : > { %10123 = vmatprep.subr.bf16.mxu1 %v9910_v51 }
 0x807   : > { %v18592_v18 = vpop.f32.mrf.mxu1 }
 0x809   : > { %v18599_v47 = vpop.f32.mrf.mxu1  ;;  %10124 = vmatpush1.bf16.msra.mxu1 %v9909_v55 }
 0x80a   : > { %10125 = vmatprep.subr.bf16.mxu1 %v9902_v17 }
 0x80b   : > { %v18606_v57 = vpop.f32.mrf.mxu1 }
 0x80d   : > { %v8885_v24 = vpop.f32.mrf.mxu1  ;;  %10126 = vmatpush1.bf16.msra.mxu1 %v9901_v12 }
 0x80e   : > { %10127 = vmatprep.subr.bf16.mxu1 %v9894_v16 }
 0x80f   : > { %v8889_v8 = vpop.f32.mrf.mxu1 }
 0x811   : > { %v8891_v45 = vpop.f32.mrf.mxu1  ;;  %10128 = vmatpush1.bf16.msra.mxu1 %v9893_v5 }
 0x813   : > { %v8893_v6 = vpop.f32.mrf.mxu1 }
 0x815   : > { %v8895_v59 = vpop.f32.mrf.mxu1 }
 0x817   : > { %v8899_v33 = vpop.f32.mrf.mxu1 }
 0x819   : > { %v8901_v37 = vpop.f32.mrf.mxu1 }
 0x81b   : > { %v8903_v27 = vpop.f32.mrf.mxu1 }
 0x81c   : > { %v9229_v42 = vpack.c.bf16 %v8903_v27, %v8899_v33  ;;  %v9221_v27 = vpack.c.bf16 %v8893_v6, %v8889_v8 }
 0x81d   : > { %v8905_v35 = vpop.f32.mrf.mxu1 }
 0x81e   : > { %v9230_v4 = vpack.c.bf16 %v8905_v35, %v8901_v37  ;;  %v9861_v8 = vadd.bf16 %v18137_v14, %v9221_v27 }
 0x81f   : > { %v8909_v51 = vpop.f32.mrf.mxu1 }
 0x821   : > { %v8911_v21 = vpop.f32.mrf.mxu1 }
 0x823   : > { %v8913_v15 = vpop.f32.mrf.mxu1 }
 0x824   : > { %v9237_v30 = vpack.c.bf16 %v8913_v15, %v8909_v51  ;;  %v9222_v51 = vpack.c.bf16 %v8895_v59, %v8891_v45  ;;  %v9870_v15 = vadd.bf16 %v18132_v43, %v9230_v4 }
 0x825   : > { %v8915_v44 = vpop.f32.mrf.mxu1 }
 0x826   : > { %v9238_v0 = vpack.c.bf16 %v8915_v44, %v8911_v21  ;;  %v9877_v21 = vadd.bf16 %v18126_v7, %v9237_v30 }
 0x827   : > { %v8919_v54 = vpop.f32.mrf.mxu1 }
 0x828   : > { %v9878_v12 = vadd.bf16 %v18126_v7, %v9238_v0  ;;  %v10005_v45 = vmax.bf16 %v19330_v23, %v9877_v21  ;;  %v9214_v0 = vpack.c.bf16 %v8885_v24, %v18599_v47  ;;  %v9206_v47 = vpack.c.bf16 %v18585_v25, %v18574_v39 }
 0x829   : > { %v8921_v55 = vpop.f32.mrf.mxu1  ;;  %v9989_v39 = vmax.bf16 %v19330_v23, %v9861_v8 }
 0x82a   : > { %v10006_v35 = vmax.bf16 %v19330_v23, %v9878_v12  ;;  %v9854_v24 = vadd.bf16 %v18198_v56, %v9214_v0 }
 0x82b   : > { %v8923_v62 = vpop.f32.mrf.mxu1 }
 0x82c   : > { %v9245_v9 = vpack.c.bf16 %v8923_v62, %v8919_v54  ;;  %v9869_v62 = vadd.bf16 %v18132_v43, %v9229_v42  ;;  %v9982_v21 = vmax.bf16 %v19330_v23, %v9854_v24 }
 0x82d   : > { %v8925_v58 = vpop.f32.mrf.mxu1 }
 0x82e   : > { %v9246_v17 = vpack.c.bf16 %v8925_v58, %v8921_v55  ;;  %v9885_v10 = vadd.bf16 %v18124_v53, %v9245_v9  ;;  %v9998_v9 = vmax.bf16 %v19330_v23, %v9870_v15  ;;  %v9997_v42 = vmax.bf16 %v19330_v23, %v9869_v62 }
 0x82f   : > { %v18611_v36 = vpop.f32.mrf.mxu0  ;;  %v9837_v62 = vadd.bf16 %v18281_v13, %v9197_v1 }
 0x830   : > { %v9886_v16 = vadd.bf16 %v18124_v53, %v9246_v17  ;;  %v10013_v44 = vmax.bf16 %v19330_v23, %v9885_v10  ;;  %v9213_v17 = vpack.c.bf16 %v18606_v57, %v18592_v18  ;;  %v9205_v57 = vpack.c.bf16 %v18578_v31, %v18570_v60 }
 0x831   : > { %v18615_v5 = vpop.f32.mrf.mxu0  ;;  %v9838_v60 = vadd.bf16 %v18281_v13, %v9198_v22  ;;  %v9965_v1 = vmax.bf16 %v19330_v23, %v9837_v62 }
 0x832   : > { %v10014_v34 = vmax.bf16 %v19330_v23, %v9886_v16  ;;  %v9853_v12 = vadd.bf16 %v18198_v56, %v9213_v17  ;;  %v9846_v16 = vadd.bf16 %v18254_v49, %v9206_v47  ;;  %v9958_v17 = vmax.bf16 %v19330_v23, %v9830_v3 }
 0x833   : > { %v18620_v54 = vpop.f32.mrf.mxu0  ;;  %v9966_v22 = vmax.bf16 %v19330_v23, %v9838_v60 }
 0x834   : > { %10129 = vmatprep.subr.bf16.mxu1 %v10014_v34  ;;  %v9862_v34 = vadd.bf16 %v18137_v14, %v9222_v51  ;;  %v9845_v51 = vadd.bf16 %v18254_v49, %v9205_v57  ;;  %v9981_v15 = vmax.bf16 %v19330_v23, %v9853_v12  ;;  %v9974_v31 = vmax.bf16 %v19330_v23, %v9846_v16 }
 0x835   : > { %v18626_v55 = vpop.f32.mrf.mxu0  ;;  %10130 = vmatpush2.bf16.msra.mxu1 %v10013_v44 }
 0x836   : > { %10131 = vmatprep.subr.bf16.mxu1 %v10006_v35  ;;  %v9990_v10 = vmax.bf16 %v19330_v23, %v9862_v34 }
 0x837   : > { %v18632_v59 = vpop.f32.mrf.mxu0 }
 0x839   : > { %v18637_v58 = vpop.f32.mrf.mxu0  ;;  %10132 = vmatpush2.bf16.msra.mxu1 %v10005_v45  ;;  %v9973_v45 = vmax.bf16 %v19330_v23, %v9845_v51 }
 0x83a   : > { %10133 = vmatprep.subr.bf16.mxu1 %v9998_v9 }
 0x83b   : > { %v18643_v6 = vpop.f32.mrf.mxu0 }
 0x83c   : > { %v9135_v30 = vpack.c.bf16 %v18643_v6, %v18632_v59  ;;  %v20162_v59 = vpack.c.bf16 %v18620_v54, %v18611_v36 }
 0x83d   : > { %v18651_v4 = vpop.f32.mrf.mxu0  ;;  %10134 = vmatpush2.bf16.msra.mxu1 %v9997_v42 }
 0x83e   : > { %v9136_v18 = vpack.c.bf16 %v18651_v4, %v18637_v58  ;;  %10135 = vmatprep.subr.bf16.mxu1 %v9990_v10  ;;  %v20161_v58 = vpack.c.bf16 %v18626_v55, %v18615_v5 }
 0x83f   : > { %v18659_v25 = vpop.f32.mrf.mxu0 }
 0x840   : > { %v9768_v4 = vadd.bf16 %v20155_v28, %v20161_v58 }
 0x841   : > { %v18663_v44 = vpop.f32.mrf.mxu0  ;;  %10136 = vmatpush2.bf16.msra.mxu1 %v9989_v39 }
 0x842   : > { %10137 = vmatprep.subr.bf16.mxu1 %v9982_v21 }
 0x843   : > { %v18667_v35 = vpop.f32.mrf.mxu0 }
 0x845   : > { %v18674_v27 = vpop.f32.mrf.mxu0  ;;  %10138 = vmatpush2.bf16.msra.mxu1 %v9981_v15 }
 0x846   : > { %10139 = vmatprep.subr.bf16.mxu1 %v9974_v31 }
 0x847   : > { %v18681_v0 = vpop.f32.mrf.mxu0 }
 0x849   : > { %v18688_v34 = vpop.f32.mrf.mxu0  ;;  %10140 = vmatpush2.bf16.msra.mxu1 %v9973_v45 }
 0x84a   : > { %10141 = vmatprep.subr.bf16.mxu1 %v9966_v22 }
 0x84b   : > { %v18695_v9 = vpop.f32.mrf.mxu0 }
 0x84d   : > { %v18698_v50 = vpop.f32.mrf.mxu0  ;;  %10142 = vmatpush2.bf16.msra.mxu1 %v9965_v1 }
 0x84e   : > { %10143 = vmatprep.subr.bf16.mxu1 %v9958_v17 }
 0x84f   : > { %v18701_v8 = vpop.f32.mrf.mxu0 }
 0x851   : > { %v9004_v42 = vpop.f32.mrf.mxu0  ;;  %10144 = vmatpush2.bf16.msra.mxu1 %v9957_v38 }
 0x853   : > { %v9006_v47 = vpop.f32.mrf.mxu0 }
 0x854   : > { %10146 = vmatmul.mubr.bf16.vlgmr.msra.gmra.mxu1 %v18353_v11 }
 0x855   : > { %v9008_v2 = vpop.f32.mrf.mxu0 }
 0x857   : > { %v9012_v46 = vpop.f32.mrf.mxu0 }
 0x859   : > { %v9014_v24 = vpop.f32.mrf.mxu0 }
 0x85b   : > { %v9016_v10 = vpop.f32.mrf.mxu0 }
 0x85c   : > { %v9167_v33 = vpack.c.bf16 %v9016_v10, %v9012_v46 }
 0x85d   : > { %v9018_v57 = vpop.f32.mrf.mxu0 }
 0x85e   : > { %v9168_v32 = vpack.c.bf16 %v9018_v57, %v9014_v24 }
 0x85f   : > { %v9022_v12 = vpop.f32.mrf.mxu0 }
 0x860   : > { %v9808_v24 = vadd.bf16 %v17813_v29, %v9168_v32 }
 0x861   : > { %v9024_v39 = vpop.f32.mrf.mxu0 }
 0x863   : > { %v9026_v16 = vpop.f32.mrf.mxu0 }
 0x864   : > { %v9175_v3 = vpack.c.bf16 %v9026_v16, %v9022_v12  ;;  %v18716_v12 = vpop.permute.xlu0 %10021  ;;  %v9160_v16 = vpack.c.bf16 %v9008_v2, %v9004_v42  ;;  %v9159_v42 = vpack.c.bf16 %v9006_v47, %v18701_v8  ;;  %v9807_v2 = vadd.bf16 %v17813_v29, %v9167_v33 }
 0x865   : > { %v9028_v21 = vpop.f32.mrf.mxu0  ;;  %v9151_v33 = vpack.c.bf16 %v18695_v9, %v18681_v0  ;;  %v9143_v0 = vpack.c.bf16 %v18667_v35, %v18659_v25 }
 0x866   : > { %v9176_v31 = vpack.c.bf16 %v9028_v21, %v9024_v39  ;;  %v9815_v39 = vadd.bf16 %v17811_v19, %v9175_v3  ;;  %v9936_v3 = vmax.bf16 %v19330_v23, %v9808_v24  ;;  %v9799_v8 = vadd.bf16 %v17818_v40, %v9159_v42 }
 0x867   : > { %v9032_v51 = vpop.f32.mrf.mxu0  ;;  %v9935_v47 = vmax.bf16 %v19330_v23, %v9807_v2  ;;  %v9791_v9 = vadd.bf16 %v17856_v61, %v9151_v33 }
 0x868   : > { %v9816_v1 = vadd.bf16 %v17811_v19, %v9176_v31  ;;  %v9943_v31 = vmax.bf16 %v19330_v23, %v9815_v39 }
 0x869   : > { %v9034_v15 = vpop.f32.mrf.mxu0 }
 0x86b   : > { %v9036_v60 = vpop.f32.mrf.mxu0 }
 0x86c   : > { %v9183_v62 = vpack.c.bf16 %v9036_v60, %v9032_v51 }
 0x86d   : > { %v9038_v45 = vpop.f32.mrf.mxu0 }
 0x86e   : > { %v9184_v20 = vpack.c.bf16 %v9038_v45, %v9034_v15  ;;  %v9823_v22 = vadd.bf16 %v17808_v63, %v9183_v62  ;;  %v9944_v15 = vmax.bf16 %v19330_v23, %v9816_v1  ;;  %v9152_v45 = vpack.c.bf16 %v18698_v50, %v18688_v34 }
 0x86f   : > { %v18705_v48 = vpop.f32.mrf.mxu0  ;;  %v9144_v34 = vpack.c.bf16 %v18674_v27, %v18663_v44  ;;  %v9927_v44 = vmax.bf16 %v19330_v23, %v9799_v8 }
 0x870   : > { %v9824_v17 = vadd.bf16 %v17808_v63, %v9184_v20  ;;  %v9951_v21 = vmax.bf16 %v19330_v23, %v9823_v22  ;;  %v9800_v20 = vadd.bf16 %v17818_v40, %v9160_v16  ;;  %v9792_v50 = vadd.bf16 %v17856_v61, %v9152_v45 }
 0x871   : > { %v18709_v38 = vpop.f32.mrf.mxu0  ;;  %v9784_v16 = vadd.bf16 %v20102_v52, %v9144_v34  ;;  %v9776_v61 = vadd.bf16 %v20148_v26, %v9136_v18 }
 0x872   : > { %v9952_v37 = vmax.bf16 %v19330_v23, %v9824_v17  ;;  %v9928_v39 = vmax.bf16 %v19330_v23, %v9800_v20  ;;  %v9920_v24 = vmax.bf16 %v19330_v23, %v9792_v50 }
 0x873   : > { %v18714_v51 = vpop.f32.mrf.mxu0  ;;  %v9912_v25 = vmax.bf16 %v19330_v23, %v9784_v16  ;;  %v9904_v18 = vmax.bf16 %v19330_v23, %v9776_v61 }
 0x874   : > { %v9191_v63 = vpack.c.bf16 %v18714_v51, %v18705_v48  ;;  %v10065_v57 = vpop.f32.mrf.mxu1  ;;  %10154 = vmatprep.subr.bf16.mxu0 %v9952_v37 }
 0x875   : > { %v10066_v46 = vadd.f32 %v10065_v57, %v18716_v12  ;;  %v18723_v19 = vpop.f32.mrf.mxu0  ;;  %10155 = vmatpush1.bf16.msra.mxu0 %v9951_v21 }
 0x876   : > { %v9192_v10 = vpack.c.bf16 %v18723_v19, %v18709_v38  ;;  %v10067_v60 = vpop.f32.mrf.mxu1  ;;  %10156 = vmatprep.subr.bf16.mxu0 %v9944_v15  ;;  %v9783_v15 = vadd.bf16 %v20102_v52, %v9143_v0  ;;  %v9775_v52 = vadd.bf16 %v20148_v26, %v9135_v30  ;;  %v9767_v26 = vadd.bf16 %v20155_v28, %v20162_v59 }
 0x877   : > { %10195 = vst [vmem:[%s12329_s1] sm:$0xff] %v10066_v46  ;;  %v10068_v37 = vadd.f32 %v10067_v60, %v18716_v12  ;;  %v18732_v62 = vpop.f32.mrf.mxu0  ;;  %v9919_v46 = vmax.bf16 %v19330_v23, %v9791_v9 }
 0x878   : > { %v10069_v22 = vpop.f32.mrf.mxu1  ;;  %v9911_v42 = vmax.bf16 %v19330_v23, %v9783_v15  ;;  %v9903_v6 = vmax.bf16 %v19330_v23, %v9775_v52  ;;  %v9895_v55 = vmax.bf16 %v19330_v23, %v9767_v26 }
 0x879   : > { %10196 = vst [vmem:[%s12329_s1 + $0x8] sm:$0xff] %v10068_v37  ;;  %v18739_v32 = vpop.f32.mrf.mxu0  ;;  %10157 = vmatpush1.bf16.msra.mxu0 %v9943_v31  ;;  %v9896_v37 = vmax.bf16 %v19330_v23, %v9768_v4 }
 0x87a   : > { %10158 = vmatprep.subr.bf16.mxu0 %v9936_v3  ;;  %v10070_v29 = vpop.f32.mrf.mxu1 }
 0x87b   : > { %v18745_v1 = vpop.f32.mrf.mxu0 }
 0x87c   : > { %v9199_v17 = vpack.c.bf16 %v18745_v1, %v18732_v62  ;;  %v9831_v62 = vadd.bf16 %v18302_v41, %v9191_v63 }
 0x87d   : > { %v18753_v21 = vpop.f32.mrf.mxu0  ;;  %10159 = vmatpush1.bf16.msra.mxu0 %v9935_v47 }
 0x87e   : > { %v9200_v40 = vpack.c.bf16 %v18753_v21, %v18739_v32  ;;  %10160 = vmatprep.subr.bf16.mxu0 %v9928_v39  ;;  %v9959_v38 = vmax.bf16 %v19330_v23, %v9831_v62 }
 0x87f   : > { %v18761_v27 = vpop.f32.mrf.mxu0 }
 0x881   : > { %v18765_v57 = vpop.f32.mrf.mxu0  ;;  %10161 = vmatpush1.bf16.msra.mxu0 %v9927_v44 }
 0x882   : > { %10162 = vmatprep.subr.bf16.mxu0 %v9920_v24 }
 0x883   : > { %v18769_v60 = vpop.f32.mrf.mxu0 }
 0x885   : > { %v18776_v35 = vpop.f32.mrf.mxu0  ;;  %10163 = vmatpush1.bf16.msra.mxu0 %v9919_v46 }
 0x886   : > { %10164 = vmatprep.subr.bf16.mxu0 %v9912_v25 }
 0x887   : > { %v18783_v2 = vpop.f32.mrf.mxu0 }
 0x889   : > { %v18790_v31 = vpop.f32.mrf.mxu0  ;;  %10165 = vmatpush1.bf16.msra.mxu0 %v9911_v42 }
 0x88a   : > { %10166 = vmatprep.subr.bf16.mxu0 %v9904_v18 }
 0x88b   : > { %v18797_v30 = vpop.f32.mrf.mxu0 }
 0x88d   : > { %v9078_v5 = vpop.f32.mrf.mxu0  ;;  %10167 = vmatpush1.bf16.msra.mxu0 %v9903_v6 }
 0x88e   : > { %10168 = vmatprep.subr.bf16.mxu0 %v9896_v37 }
 0x88f   : > { %v9082_v45 = vpop.f32.mrf.mxu0 }
 0x891   : > { %v9084_v20 = vpop.f32.mrf.mxu0  ;;  %10169 = vmatpush1.bf16.msra.mxu0 %v9895_v55 }
 0x893   : > { %v9086_v3 = vpop.f32.mrf.mxu0 }
 0x895   : > { %v9088_v22 = vpop.f32.mrf.mxu0 }
 0x897   : > { %v9092_v29 = vpop.f32.mrf.mxu0 }
 0x899   : > { %v9094_v36 = vpop.f32.mrf.mxu0 }
 0x89b   : > { %v9096_v54 = vpop.f32.mrf.mxu0 }
 0x89c   : > { %v9231_v26 = vpack.c.bf16 %v9096_v54, %v9092_v29 }
 0x89d   : > { %v9098_v28 = vpop.f32.mrf.mxu0 }
 0x89e   : > { %v9232_v25 = vpack.c.bf16 %v9098_v28, %v9094_v36 }
 0x89f   : > { %v9102_v33 = vpop.f32.mrf.mxu0 }
 0x8a0   : > { %v9872_v36 = vadd.bf16 %v18132_v43, %v9232_v25 }
 0x8a1   : > { %v9104_v8 = vpop.f32.mrf.mxu0 }
 0x8a3   : > { %v9106_v47 = vpop.f32.mrf.mxu0 }
 0x8a4   : > { %v9239_v15 = vpack.c.bf16 %v9106_v47, %v9102_v33  ;;  %v9224_v33 = vpack.c.bf16 %v9088_v22, %v9084_v20  ;;  %v9871_v47 = vadd.bf16 %v18132_v43, %v9231_v26  ;;  %v10000_v20 = vmax.bf16 %v19330_v23, %v9872_v36 }
 0x8a5   : > { %v9108_v34 = vpop.f32.mrf.mxu0  ;;  %v9215_v22 = vpack.c.bf16 %v18797_v30, %v18783_v2  ;;  %v9208_v43 = vpack.c.bf16 %v18776_v35, %v18765_v57 }
 0x8a6   : > { %v9240_v9 = vpack.c.bf16 %v9108_v34, %v9104_v8  ;;  %v9879_v6 = vadd.bf16 %v18126_v7, %v9239_v15  ;;  %v9223_v8 = vpack.c.bf16 %v9086_v3, %v9082_v45  ;;  %v9864_v54 = vadd.bf16 %v18137_v14, %v9224_v33 }
 0x8a7   : > { %v9112_v50 = vpop.f32.mrf.mxu0  ;;  %v9855_v3 = vadd.bf16 %v18198_v56, %v9215_v22 }
 0x8a8   : > { %v9880_v52 = vadd.bf16 %v18126_v7, %v9240_v9  ;;  %v10007_v29 = vmax.bf16 %v19330_v23, %v9879_v6  ;;  %v9216_v7 = vpack.c.bf16 %v9078_v5, %v18790_v31  ;;  %v9863_v34 = vadd.bf16 %v18137_v14, %v9223_v8 }
 0x8a9   : > { %v9114_v39 = vpop.f32.mrf.mxu0  ;;  %v9992_v31 = vmax.bf16 %v19330_v23, %v9864_v54  ;;  %v9207_v5 = vpack.c.bf16 %v18769_v60, %v18761_v27  ;;  %v9848_v14 = vadd.bf16 %v18254_v49, %v9208_v43  ;;  %v9983_v35 = vmax.bf16 %v19330_v23, %v9855_v3 }
 0x8aa   : > { %v9856_v45 = vadd.bf16 %v18198_v56, %v9216_v7  ;;  %v9991_v2 = vmax.bf16 %v19330_v23, %v9863_v34  ;;  %v9839_v56 = vadd.bf16 %v18281_v13, %v9199_v17 }
 0x8ab   : > { %v9116_v0 = vpop.f32.mrf.mxu0  ;;  %v9847_v57 = vadd.bf16 %v18254_v49, %v9207_v5  ;;  %v9976_v27 = vmax.bf16 %v19330_v23, %v9848_v14  ;;  %v9832_v49 = vadd.bf16 %v18302_v41, %v9192_v10 }
 0x8ac   : > { %v9247_v44 = vpack.c.bf16 %v9116_v0, %v9112_v50  ;;  %v9999_v50 = vmax.bf16 %v19330_v23, %v9871_v47  ;;  %v9984_v30 = vmax.bf16 %v19330_v23, %v9856_v45 }
 0x8ad   : > { %v9118_v16 = vpop.f32.mrf.mxu0  ;;  %v9975_v60 = vmax.bf16 %v19330_v23, %v9847_v57  ;;  %v9960_v1 = vmax.bf16 %v19330_v23, %v9832_v49 }
 0x8ae   : > { %v9248_v24 = vpack.c.bf16 %v9118_v16, %v9114_v39  ;;  %v9887_v46 = vadd.bf16 %v18124_v53, %v9247_v44  ;;  %v9840_v39 = vadd.bf16 %v18281_v13, %v9200_v40  ;;  %v9967_v13 = vmax.bf16 %v19330_v23, %v9839_v56 }
 0x8af   : > { %v10106_v61 = vpop.f32.mrf.mxu0 }
 0x8b0   : > { %v9888_v42 = vadd.bf16 %v18124_v53, %v9248_v24  ;;  %v10107_v58 = vadd.f32 %v10106_v61, %v18716_v12  ;;  %v10015_v37 = vmax.bf16 %v19330_v23, %v9887_v46  ;;  %v10008_v53 = vmax.bf16 %v19330_v23, %v9880_v52 }
 0x8b1   : > { %v10108_v4 = vpop.f32.mrf.mxu0  ;;  %v9968_v32 = vmax.bf16 %v19330_v23, %v9840_v39 }
 0x8b2   : > { %10197 = vst [vmem:[%s12329_s1 + $0x10] sm:$0xff] %v10107_v58  ;;  %v10109_v18 = vadd.f32 %v10108_v4, %v18716_v12  ;;  %v10016_v59 = vmax.bf16 %v19330_v23, %v9888_v42 }
 0x8b3   : > { %v10110_v55 = vpop.f32.mrf.mxu0 }
 0x8b4   : > { %10198 = vst [vmem:[%s12329_s1 + $0x18] sm:$0xff] %v10109_v18  ;;  %10170 = vmatprep.subr.bf16.mxu0 %v10016_v59 }
 0x8b5   : > { %10171 = vmatpush2.bf16.msra.mxu0 %v10015_v37  ;;  %v10111_v28 = vpop.f32.mrf.mxu0 }
 0x8b6   : > { %10172 = vmatprep.subr.bf16.mxu0 %v10008_v53 }
 0x8b9   : > { %10173 = vmatpush2.bf16.msra.mxu0 %v10007_v29 }
 0x8ba   : > { %10174 = vmatprep.subr.bf16.mxu0 %v10000_v20 }
 0x8bd   : > { %10175 = vmatpush2.bf16.msra.mxu0 %v9999_v50 }
 0x8be   : > { %10176 = vmatprep.subr.bf16.mxu0 %v9992_v31 }
 0x8c1   : > { %10177 = vmatpush2.bf16.msra.mxu0 %v9991_v2 }
 0x8c2   : > { %10178 = vmatprep.subr.bf16.mxu0 %v9984_v30 }
 0x8c5   : > { %10179 = vmatpush2.bf16.msra.mxu0 %v9983_v35 }
 0x8c6   : > { %10180 = vmatprep.subr.bf16.mxu0 %v9976_v27 }
 0x8c9   : > { %10181 = vmatpush2.bf16.msra.mxu0 %v9975_v60 }
 0x8ca   : > { %10182 = vmatprep.subr.bf16.mxu0 %v9968_v32 }
 0x8cd   : > { %10183 = vmatpush2.bf16.msra.mxu0 %v9967_v13 }
 0x8ce   : > { %10184 = vmatprep.subr.bf16.mxu0 %v9960_v1 }
 0x8d1   : > { %10185 = vmatpush2.bf16.msra.mxu0 %v9959_v38 }
 0x8d4   : > { %10187 = vmatmul.mubr.bf16.vlgmr.msra.gmra.mxu0 %v18353_v11 }
 0x914   : > { %v10147_v19 = vpop.f32.mrf.mxu1 }
 0x915   : > { %v10148_v10 = vadd.f32 %v10147_v19, %v18716_v12 }
 0x916   : > { %v10149_v17 = vpop.f32.mrf.mxu1 }
 0x917   : > { %10199 = vst [vmem:[%s12329_s1 + $0x20] sm:$0xff] %v10148_v10  ;;  %v10150_v41 = vadd.f32 %v10149_v17, %v18716_v12 }
 0x918   : > { %v10151_v48 = vpop.f32.mrf.mxu1 }
 0x919   : > { %10200 = vst [vmem:[%s12329_s1 + $0x28] sm:$0xff] %v10150_v41 }
 0x91a   : > { %v10152_v51 = vpop.f32.mrf.mxu1 }
 0x994   : > { %v10188_v63 = vpop.f32.mrf.mxu0 }
 0x995   : > { %v10189_v21 = vadd.f32 %v10188_v63, %v18716_v12 }
 0x996   : > { %v10190_v40 = vpop.f32.mrf.mxu0 }
 0x997   : > { %10201 = vst [vmem:[%s12329_s1 + $0x30] sm:$0xff] %v10189_v21  ;;  %v10191_v23 = vadd.f32 %v10190_v40, %v18716_v12 }
 0x998   : > { %v10192_v0 = vpop.f32.mrf.mxu0 }
 0x999   : > { %10202 = vst [vmem:[%s12329_s1 + $0x38] sm:$0xff] %v10191_v23 }
 0x99a   : > { %v10193_v11 = vpop.f32.mrf.mxu0 }
 0x99b PF: > { %s19_s15 = sadd.s32 1, %s11924_s15   ;;  %s20163_s17 = sld [smem:[#allocation4_spill]] }
 0x99c   : > { %p16_p13 = scmp.ge.s32.totalorder %s19_s15, 6   ;;  %s20164_s30 = smov %s11904_s10 }
 0x99d   : > { %s20165_s10 = smov %s12030_s22  ;;  %s20166_s11 = smov %s11916_s13 }
 0x99e   : > { %s20167_s12 = smov %s11920_s14  ;;  %s20168_s13 = smov %s20171_s16 }
 0x99f   :  { %18 = sbr.rel (!%p16_p13) target bundleno = 6 (0x6), region = 121 }
 0x9a1   : > { %s20169_s14 = smov %s20163_s17 }

</bundles_post_ra>
